<compile_context>
chip_gen: v7x
topology: tpu7x:2x2x1
jax: 0.10.0
libtpu: 0.0.40
codegen_flags: <defaults>
</compile_context>

<pallas_src>
import functools

import jax
import jax.numpy as jnp
from jax.experimental import pallas as pl
from jax.experimental.pallas import tpu as pltpu


# ----------------------------- configuration --------------------------------

NET_Y_DIMS = [3, 128, 256, 512, 256]
NET_T_DIMS = [1, 128, 256, 512, 256]
NET_OUT_DIMS = [256, 512, 256, 128, 3]

OUT_PAD = 128          # lane-dense padded width of the final layer
BIAS_ROWS = 16         # bias slab rows (12 used, padded to a sublane multiple)
BIAS_COLS = 512        # bias slab cols (max layer width)


def _bf16_act_supported():
    """bf16 EUP/VPU exists on v6e/v7x; keep f32 activations on older chips."""
    try:
        kind = jax.devices()[0].device_kind.lower()
    except Exception:
        return True
    return ("v6" in kind) or ("v7" in kind)


ACT_DTYPE = jnp.bfloat16 if _bf16_act_supported() else jnp.float32


# ----------------------------- parameter setup ------------------------------

def _init_net(key, dims, zero_bias):
    """nn.init.normal_(std=0.1) weights (stored bf16); biases f32."""
    layers = []
    for d_in, d_out in zip(dims[:-1], dims[1:]):
        key, kw, kb = jax.random.split(key, 3)
        w = (0.1 * jax.random.normal(kw, (d_in, d_out), dtype=jnp.float32)
             ).astype(jnp.bfloat16)
        if zero_bias:
            b = jnp.zeros((d_out,), dtype=jnp.float32)
        else:
            # net_t biases keep PyTorch's default Linear init (not zeroed).
            bound = float(d_in) ** -0.5
            b = jax.random.uniform(kb, (d_out,), dtype=jnp.float32,
                                   minval=-bound, maxval=bound)
        layers.append((w, b))
    return key, layers


def make_params(seed=0):
    key = jax.random.PRNGKey(seed)
    key, p_y = _init_net(key, NET_Y_DIMS, zero_bias=True)
    key, p_t = _init_net(key, NET_T_DIMS, zero_bias=False)
    key, p_o = _init_net(key, NET_OUT_DIMS, zero_bias=True)
    return p_y, p_t, p_o


def _flatten_kernel_params(params):
    """12 bf16 weights (last one padded to 128 cols) + one (16,512) f32 bias slab."""
    p_y, p_t, p_o = params
    weights, biases = [], []
    for net in (p_y, p_t, p_o):
        for w, b in net:
            weights.append(w)
            biases.append(b)
    # Pad the final 128->3 layer to 128 output columns (lane-dense store).
    weights[-1] = jnp.pad(weights[-1], ((0, 0), (0, OUT_PAD - weights[-1].shape[1])))
    biases[-1] = jnp.pad(biases[-1], (0, OUT_PAD - biases[-1].shape[0]))
    slab = jnp.zeros((BIAS_ROWS, BIAS_COLS), dtype=jnp.float32)
    for r, b in enumerate(biases):
        slab = slab.at[r, : b.shape[0]].set(b)
    return weights, slab


# ------------------------------- Pallas kernel ------------------------------

def odefunc_kernel(shared_t, act_dtype, x_ref, *refs):
    # refs: 12 weight refs (net_y, net_t, net_out), bias-slab ref, out ref.
    out_ref = refs[-1]
    bias_ref = refs[-2]
    w = refs[:-2]
    wy, wt, wo = w[0:4], w[4:8], w[8:12]

    x = x_ref[...]                                   # (TILE_B, 8) f32; col0=t, 1..3=y

    def bias(row, width):
        return bias_ref[row:row + 1, 0:width]        # (1, width) f32, static slice

    def act(v):
        # bf16 tanh on v6e/v7x (EUP is the binding slot); f32 on v5-class chips.
        return jnp.tanh(v.astype(act_dtype))

    def first_layer(cols, w_ref, b):
        # Degenerate-K (K=1 or K=3) layer on the VPU: broadcast multiply-add,
        # avoids an almost-empty MXU pass.
        wf = w_ref[...].astype(jnp.float32)          # (K, N)
        acc = b                                      # (1, N) broadcast
        for i in range(wf.shape[0]):
            acc = acc + cols[:, i:i + 1] * wf[i:i + 1, :]
        return act(acc)

    def dense(h, w_ref, b, activate):
        # bf16 MXU matmul, f32 accumulation + f32 bias; activation in act_dtype.
        acc = jnp.dot(h.astype(jnp.bfloat16), w_ref[...],
                      preferred_element_type=jnp.float32) + b
        return act(acc) if activate else acc

    # net_y: 3 -> 128 -> 256 -> 512 -> 256 (tanh after every layer)
    h_y = first_layer(x[:, 1:4], wy[0], bias(0, 128))
    h_y = dense(h_y, wy[1], bias(1, 256), True)
    h_y = dense(h_y, wy[2], bias(2, 512), True)
    h_y = dense(h_y, wy[3], bias(3, 256), True)

    # net_t: 1 -> 128 -> 256 -> 512 -> 256 (tanh after every layer).
    # If t is a shared scalar for this call, evaluate the tower on an 8-row
    # sublane-aligned mini-batch and broadcast the result over the tile.
    t_cols = x[0:8, 0:1] if shared_t else x[:, 0:1]
    h_t = first_layer(t_cols, wt[0], bias(4, 128))
    h_t = dense(h_t, wt[1], bias(5, 256), True)
    h_t = dense(h_t, wt[2], bias(6, 512), True)
    h_t = dense(h_t, wt[3], bias(7, 256), True)
    if shared_t:
        h_t = h_t[0:1, :]                            # (1, 256) -> broadcast add

    # latent add + net_out: 256 -> 512 -> 256 -> 128 -> 3 (padded to 128)
    h = h_y + h_t
    h = dense(h, wo[0], bias(8, 512), True)
    h = dense(h, wo[1], bias(9, 256), True)
    h = dense(h, wo[2], bias(10, 128), True)
    h = dense(h, wo[3], bias(11, OUT_PAD), False)    # f32 accumulator, no tanh

    out_ref[...] = h.astype(out_ref.dtype)           # (TILE_B, 128), lane-dense


# ------------------------------- host wrapper --------------------------------

def _tile_and_pad(batch):
    """Largest tile in {512,256,128} that still yields >=2 grid steps."""
    bp0 = ((batch + 127) // 128) * 128
    for tile in (512, 256, 128):
        if bp0 >= 2 * tile:
            bp = ((bp0 + tile - 1) // tile) * tile
            return tile, bp
    return bp0, bp0                                   # tiny batch: single step


def _net_flops(dims, rows):
    return 2 * rows * sum(a * b for a, b in zip(dims[:-1], dims[1:]))


def odefunc_forward(t, y, params):
    """t: scalar, (B,), (1,) or (B,1); y: (B,3) f32 -> (B,3) f32."""
    t = jnp.asarray(t, jnp.float32)
    y = jnp.asarray(y, jnp.float32)
    B = y.shape[0]

    if t.ndim == 0:
        shared_t = True
        t2 = jnp.broadcast_to(t.reshape(1, 1), (B, 1))
    else:
        t2 = t[:, None] if t.ndim == 1 else t[:, :1]
        shared_t = (t2.shape[0] == 1)
        t2 = jnp.broadcast_to(t2, (B, 1))

    tile, Bp = _tile_and_pad(B)

    # Pack t and y into one (Bp, 8) slab: col 0 = t, cols 1..3 = y.
    x = jnp.zeros((Bp, 8), dtype=jnp.float32)
    x = x.at[:B, 1:4].set(y)
    if shared_t:
        x = x.at[:, 0].set(t2[0, 0])                  # same t even on pad rows
    else:
        x = x.at[:B, 0:1].set(t2)

    weights, bias_slab = _flatten_kernel_params(params)

    kernel = functools.partial(odefunc_kernel, shared_t, ACT_DTYPE)

    x_spec = pl.BlockSpec((tile, 8), lambda i: (i, 0))
    # Constant block index -> each parameter is DMA'd to VMEM once and stays
    # resident across all batch tiles of the grid.
    w_specs = [pl.BlockSpec(w.shape, lambda i: (0, 0)) for w in weights]
    b_spec = pl.BlockSpec(bias_slab.shape, lambda i: (0, 0))
    out_spec = pl.BlockSpec((tile, OUT_PAD), lambda i: (i, 0))

    rows_t = 8 if shared_t else Bp
    flops = (_net_flops(NET_Y_DIMS, Bp) + _net_flops(NET_OUT_DIMS, Bp)
             + _net_flops(NET_T_DIMS, rows_t))
    transcendentals = (Bp * (sum(NET_Y_DIMS[1:]) + sum(NET_OUT_DIMS[1:-1]))
                       + rows_t * sum(NET_T_DIMS[1:]))
    bytes_accessed = (sum(int(w.size) * w.dtype.itemsize for w in weights)
                      + int(bias_slab.size) * 4
                      + int(x.size) * 4
                      + Bp * OUT_PAD * 4)

    out = pl.pallas_call(
        kernel,
        out_shape=jax.ShapeDtypeStruct((Bp, OUT_PAD), jnp.float32),
        grid=(Bp // tile,),
        in_specs=[x_spec] + w_specs + [b_spec],
        out_specs=out_spec,
        compiler_params=pltpu.CompilerParams(
            dimension_semantics=("parallel",),        # dual-TC split on v7x
            vmem_limit_bytes=32 * 1024 * 1024),
        cost_estimate=pl.CostEstimate(
            flops=flops,
            transcendentals=transcendentals,
            bytes_accessed=bytes_accessed),
    )(x, *weights, bias_slab)

    return out[:B, :3]


# ------------------------------ reference (JAX) -----------------------------

def odefunc_reference(t, y, params):
    """Pure-JAX reference mirroring the kernel's bf16/f32 numerics."""
    p_y, p_t, p_o = params
    t = jnp.asarray(t, jnp.float32)
    y = jnp.asarray(y, jnp.float32)
    B = y.shape[0]
    if t.ndim == 0:
        t = jnp.broadcast_to(t, (B,))
    if t.ndim == 1:
        t = t[:, None]
    t = jnp.broadcast_to(t[:, :1], (B, 1))

    def act(v):
        return jnp.tanh(v.astype(ACT_DTYPE))

    def first_layer(cols, w, b):
        wf = w.astype(jnp.float32)
        acc = b[None, :]
        for i in range(cols.shape[1]):
            acc = acc + cols[:, i:i + 1] * wf[i:i + 1, :]
        return act(acc)

    def dense(h, w, b, activate):
        acc = jnp.dot(h.astype(jnp.bfloat16), w,
                      preferred_element_type=jnp.float32) + b[None, :]
        return act(acc) if activate else acc

    h_y = first_layer(y, p_y[0][0], p_y[0][1])
    for w, b in p_y[1:]:
        h_y = dense(h_y, w, b, True)

    h_t = first_layer(t, p_t[0][0], p_t[0][1])
    for w, b in p_t[1:]:
        h_t = dense(h_t, w, b, True)

    h = h_y + h_t
    for idx, (w, b) in enumerate(p_o):
        h = dense(h, w, b, idx < len(p_o) - 1)
    return h


# ----------------------------------- main ------------------------------------

if __name__ == "__main__":
    # TODO(synk): bf16 weights/activations deviate slightly from the f32 PyTorch
    # module; validate step-size control if this drives an adaptive ODE solver.
    params = make_params(seed=0)

    key = jax.random.PRNGKey(0)
    k_t, k_y = jax.random.split(key)
    # Stack several ODE states / RK stages per call so the resident-weight DMA
    # (~0.9 MiB bf16) is amortized and both TCs get >=1 tile on v7x.
    B = 512
    t_in = jax.random.uniform(k_t, (B,), dtype=jnp.float32) * 25.0
    y_in = jax.random.normal(k_y, (B, 3), dtype=jnp.float32)

    # Per-sample t path.
    out = jax.block_until_ready(odefunc_forward(t_in, y_in, params))
    ref = odefunc_reference(t_in, y_in, params)
    assert out.shape == (B, 3)
    err = float(jnp.max(jnp.abs(out - ref)))
    assert jnp.allclose(out, ref, atol=1e-2, rtol=1e-2), (
        f"per-sample-t mismatch vs JAX reference (max abs err {err})")

    # Shared-scalar-t path (typical ODE-solver RHS call).
    t_scalar = jnp.float32(0.5)
    out_s = jax.block_until_ready(odefunc_forward(t_scalar, y_in, params))
    ref_s = odefunc_reference(t_scalar, y_in, params)
    assert out_s.shape == (B, 3)
    err_s = float(jnp.max(jnp.abs(out_s - ref_s)))
    assert jnp.allclose(out_s, ref_s, atol=1e-2, rtol=1e-2), (
        f"shared-t mismatch vs JAX reference (max abs err {err_s})")

    print("KERNEL_OK")
</pallas_src>

<mosaic_0001>
module attributes {stable_mosaic.version = 11 : i64} {
  func.func @odefunc_kernel(%arg0: i32, %arg1: memref<256x8xf32, #tpu.memory_space<vmem>>, %arg2: memref<3x128xbf16, #tpu.memory_space<vmem>>, %arg3: memref<128x256xbf16, #tpu.memory_space<vmem>>, %arg4: memref<256x512xbf16, #tpu.memory_space<vmem>>, %arg5: memref<512x256xbf16, #tpu.memory_space<vmem>>, %arg6: memref<1x128xbf16, #tpu.memory_space<vmem>>, %arg7: memref<128x256xbf16, #tpu.memory_space<vmem>>, %arg8: memref<256x512xbf16, #tpu.memory_space<vmem>>, %arg9: memref<512x256xbf16, #tpu.memory_space<vmem>>, %arg10: memref<256x512xbf16, #tpu.memory_space<vmem>>, %arg11: memref<512x256xbf16, #tpu.memory_space<vmem>>, %arg12: memref<256x128xbf16, #tpu.memory_space<vmem>>, %arg13: memref<128x128xbf16, #tpu.memory_space<vmem>>, %arg14: memref<16x512xf32, #tpu.memory_space<vmem>>, %arg15: memref<256x128xf32, #tpu.memory_space<vmem>>) attributes {dimension_semantics = [#tpu.dimension_semantics<parallel>], iteration_bounds = array<i64: 2>, scalar_prefetch = 0 : i64, scratch_operands = 0 : i64, tpu.core_type = #tpu.core_type<tc>, window_params = [{transform_indices = @transform_0, window_bounds = array<i64: 256, 8>}, {pipeline_mode = #tpu.pipeline_mode<synchronous>, transform_indices = @transform_1, window_bounds = array<i64: 3, 128>}, {pipeline_mode = #tpu.pipeline_mode<synchronous>, transform_indices = @transform_2, window_bounds = array<i64: 128, 256>}, {pipeline_mode = #tpu.pipeline_mode<synchronous>, transform_indices = @transform_3, window_bounds = array<i64: 256, 512>}, {pipeline_mode = #tpu.pipeline_mode<synchronous>, transform_indices = @transform_4, window_bounds = array<i64: 512, 256>}, {pipeline_mode = #tpu.pipeline_mode<synchronous>, transform_indices = @transform_5, window_bounds = array<i64: 1, 128>}, {pipeline_mode = #tpu.pipeline_mode<synchronous>, transform_indices = @transform_6, window_bounds = array<i64: 128, 256>}, {pipeline_mode = #tpu.pipeline_mode<synchronous>, transform_indices = @transform_7, window_bounds = array<i64: 256, 512>}, {pipeline_mode = #tpu.pipeline_mode<synchronous>, transform_indices = @transform_8, window_bounds = array<i64: 512, 256>}, {pipeline_mode = #tpu.pipeline_mode<synchronous>, transform_indices = @transform_9, window_bounds = array<i64: 256, 512>}, {pipeline_mode = #tpu.pipeline_mode<synchronous>, transform_indices = @transform_10, window_bounds = array<i64: 512, 256>}, {pipeline_mode = #tpu.pipeline_mode<synchronous>, transform_indices = @transform_11, window_bounds = array<i64: 256, 128>}, {pipeline_mode = #tpu.pipeline_mode<synchronous>, transform_indices = @transform_12, window_bounds = array<i64: 128, 128>}, {pipeline_mode = #tpu.pipeline_mode<synchronous>, transform_indices = @transform_13, window_bounds = array<i64: 16, 512>}, {transform_indices = @transform_14, window_bounds = array<i64: 256, 128>}]} {
    %c0 = arith.constant 0 : index
    %c0_0 = arith.constant 0 : index
    %0 = vector.load %arg1[%c0, %c0_0] : memref<256x8xf32, #tpu.memory_space<vmem>>, vector<256x8xf32>
    %1 = vector.extract_strided_slice %0 {offsets = [0, 1], sizes = [256, 3], strides = [1, 1]} : vector<256x8xf32> to vector<256x3xf32>
    %c0_1 = arith.constant 0 : index
    %c0_2 = arith.constant 0 : index
    %2 = vector.load %arg14[%c0_1, %c0_2] : memref<16x512xf32, #tpu.memory_space<vmem>>, vector<1x128xf32>
    %c0_3 = arith.constant 0 : index
    %c0_4 = arith.constant 0 : index
    %3 = vector.load %arg2[%c0_3, %c0_4] : memref<3x128xbf16, #tpu.memory_space<vmem>>, vector<3x128xbf16>
    %4 = arith.extf %3 : vector<3x128xbf16> to vector<3x128xf32>
    %5 = vector.extract_strided_slice %1 {offsets = [0, 0], sizes = [256, 1], strides = [1, 1]} : vector<256x3xf32> to vector<256x1xf32>
    %6 = vector.extract_strided_slice %4 {offsets = [0, 0], sizes = [1, 128], strides = [1, 1]} : vector<3x128xf32> to vector<1x128xf32>
    %7 = vector.broadcast %5 : vector<256x1xf32> to vector<256x128xf32>
    %8 = vector.broadcast %6 : vector<1x128xf32> to vector<256x128xf32>
    %9 = arith.mulf %7, %8 : vector<256x128xf32>
    %10 = vector.broadcast %2 : vector<1x128xf32> to vector<256x128xf32>
    %11 = arith.addf %10, %9 : vector<256x128xf32>
    %12 = vector.extract_strided_slice %1 {offsets = [0, 1], sizes = [256, 1], strides = [1, 1]} : vector<256x3xf32> to vector<256x1xf32>
    %13 = vector.extract_strided_slice %4 {offsets = [1, 0], sizes = [1, 128], strides = [1, 1]} : vector<3x128xf32> to vector<1x128xf32>
    %14 = vector.broadcast %12 : vector<256x1xf32> to vector<256x128xf32>
    %15 = vector.broadcast %13 : vector<1x128xf32> to vector<256x128xf32>
    %16 = arith.mulf %14, %15 : vector<256x128xf32>
    %17 = arith.addf %11, %16 : vector<256x128xf32>
    %18 = vector.extract_strided_slice %1 {offsets = [0, 2], sizes = [256, 1], strides = [1, 1]} : vector<256x3xf32> to vector<256x1xf32>
    %19 = vector.extract_strided_slice %4 {offsets = [2, 0], sizes = [1, 128], strides = [1, 1]} : vector<3x128xf32> to vector<1x128xf32>
    %20 = vector.broadcast %18 : vector<256x1xf32> to vector<256x128xf32>
    %21 = vector.broadcast %19 : vector<1x128xf32> to vector<256x128xf32>
    %22 = arith.mulf %20, %21 : vector<256x128xf32>
    %23 = arith.addf %17, %22 : vector<256x128xf32>
    %24 = math.tanh %23 : vector<256x128xf32>
    %c1 = arith.constant 1 : index
    %c0_5 = arith.constant 0 : index
    %25 = vector.load %arg14[%c1, %c0_5] : memref<16x512xf32, #tpu.memory_space<vmem>>, vector<1x256xf32>
    %26 = arith.truncf %24 : vector<256x128xf32> to vector<256x128xbf16>
    %c0_6 = arith.constant 0 : index
    %c0_7 = arith.constant 0 : index
    %27 = vector.load %arg3[%c0_6, %c0_7] : memref<128x256xbf16, #tpu.memory_space<vmem>>, vector<128x256xbf16>
    %cst = arith.constant dense<0.000000e+00> : vector<256x256xf32>
    %28 = tpu.matmul %26, %27, %cst {dimension_numbers = #tpu.dot_dimension_numbers<[1], [0], [0], [1], [0, 0, 1, 1], [], []>} : vector<256x128xbf16>, vector<128x256xbf16>, vector<256x256xf32> -> vector<256x256xf32>
    %29 = vector.broadcast %25 : vector<1x256xf32> to vector<256x256xf32>
    %30 = arith.addf %28, %29 : vector<256x256xf32>
    %31 = math.tanh %30 : vector<256x256xf32>
    %c2 = arith.constant 2 : index
    %c0_8 = arith.constant 0 : index
    %32 = vector.load %arg14[%c2, %c0_8] : memref<16x512xf32, #tpu.memory_space<vmem>>, vector<1x512xf32>
    %33 = arith.truncf %31 : vector<256x256xf32> to vector<256x256xbf16>
    %c0_9 = arith.constant 0 : index
    %c0_10 = arith.constant 0 : index
    %34 = vector.load %arg4[%c0_9, %c0_10] : memref<256x512xbf16, #tpu.memory_space<vmem>>, vector<256x512xbf16>
    %cst_11 = arith.constant dense<0.000000e+00> : vector<256x512xf32>
    %35 = tpu.matmul %33, %34, %cst_11 {dimension_numbers = #tpu.dot_dimension_numbers<[1], [0], [0], [1], [0, 0, 1, 1], [], []>} : vector<256x256xbf16>, vector<256x512xbf16>, vector<256x512xf32> -> vector<256x512xf32>
    %36 = vector.broadcast %32 : vector<1x512xf32> to vector<256x512xf32>
    %37 = arith.addf %35, %36 : vector<256x512xf32>
    %38 = math.tanh %37 : vector<256x512xf32>
    %c3 = arith.constant 3 : index
    %c0_12 = arith.constant 0 : index
    %39 = vector.load %arg14[%c3, %c0_12] : memref<16x512xf32, #tpu.memory_space<vmem>>, vector<1x256xf32>
    %40 = arith.truncf %38 : vector<256x512xf32> to vector<256x512xbf16>
    %c0_13 = arith.constant 0 : index
    %c0_14 = arith.constant 0 : index
    %41 = vector.load %arg5[%c0_13, %c0_14] : memref<512x256xbf16, #tpu.memory_space<vmem>>, vector<512x256xbf16>
    %cst_15 = arith.constant dense<0.000000e+00> : vector<256x256xf32>
    %42 = tpu.matmul %40, %41, %cst_15 {dimension_numbers = #tpu.dot_dimension_numbers<[1], [0], [0], [1], [0, 0, 1, 1], [], []>} : vector<256x512xbf16>, vector<512x256xbf16>, vector<256x256xf32> -> vector<256x256xf32>
    %43 = vector.broadcast %39 : vector<1x256xf32> to vector<256x256xf32>
    %44 = arith.addf %42, %43 : vector<256x256xf32>
    %45 = math.tanh %44 : vector<256x256xf32>
    %46 = vector.extract_strided_slice %0 {offsets = [0, 0], sizes = [256, 1], strides = [1, 1]} : vector<256x8xf32> to vector<256x1xf32>
    %c4 = arith.constant 4 : index
    %c0_16 = arith.constant 0 : index
    %47 = vector.load %arg14[%c4, %c0_16] : memref<16x512xf32, #tpu.memory_space<vmem>>, vector<1x128xf32>
    %c0_17 = arith.constant 0 : index
    %c0_18 = arith.constant 0 : index
    %48 = vector.load %arg6[%c0_17, %c0_18] : memref<1x128xbf16, #tpu.memory_space<vmem>>, vector<1x128xbf16>
    %49 = arith.extf %48 : vector<1x128xbf16> to vector<1x128xf32>
    %50 = vector.broadcast %46 : vector<256x1xf32> to vector<256x128xf32>
    %51 = vector.broadcast %49 : vector<1x128xf32> to vector<256x128xf32>
    %52 = arith.mulf %50, %51 : vector<256x128xf32>
    %53 = vector.broadcast %47 : vector<1x128xf32> to vector<256x128xf32>
    %54 = arith.addf %53, %52 : vector<256x128xf32>
    %55 = math.tanh %54 : vector<256x128xf32>
    %c5 = arith.constant 5 : index
    %c0_19 = arith.constant 0 : index
    %56 = vector.load %arg14[%c5, %c0_19] : memref<16x512xf32, #tpu.memory_space<vmem>>, vector<1x256xf32>
    %57 = arith.truncf %55 : vector<256x128xf32> to vector<256x128xbf16>
    %c0_20 = arith.constant 0 : index
    %c0_21 = arith.constant 0 : index
    %58 = vector.load %arg7[%c0_20, %c0_21] : memref<128x256xbf16, #tpu.memory_space<vmem>>, vector<128x256xbf16>
    %cst_22 = arith.constant dense<0.000000e+00> : vector<256x256xf32>
    %59 = tpu.matmul %57, %58, %cst_22 {dimension_numbers = #tpu.dot_dimension_numbers<[1], [0], [0], [1], [0, 0, 1, 1], [], []>} : vector<256x128xbf16>, vector<128x256xbf16>, vector<256x256xf32> -> vector<256x256xf32>
    %60 = vector.broadcast %56 : vector<1x256xf32> to vector<256x256xf32>
    %61 = arith.addf %59, %60 : vector<256x256xf32>
    %62 = math.tanh %61 : vector<256x256xf32>
    %c6 = arith.constant 6 : index
    %c0_23 = arith.constant 0 : index
    %63 = vector.load %arg14[%c6, %c0_23] : memref<16x512xf32, #tpu.memory_space<vmem>>, vector<1x512xf32>
    %64 = arith.truncf %62 : vector<256x256xf32> to vector<256x256xbf16>
    %c0_24 = arith.constant 0 : index
    %c0_25 = arith.constant 0 : index
    %65 = vector.load %arg8[%c0_24, %c0_25] : memref<256x512xbf16, #tpu.memory_space<vmem>>, vector<256x512xbf16>
    %cst_26 = arith.constant dense<0.000000e+00> : vector<256x512xf32>
    %66 = tpu.matmul %64, %65, %cst_26 {dimension_numbers = #tpu.dot_dimension_numbers<[1], [0], [0], [1], [0, 0, 1, 1], [], []>} : vector<256x256xbf16>, vector<256x512xbf16>, vector<256x512xf32> -> vector<256x512xf32>
    %67 = vector.broadcast %63 : vector<1x512xf32> to vector<256x512xf32>
    %68 = arith.addf %66, %67 : vector<256x512xf32>
    %69 = math.tanh %68 : vector<256x512xf32>
    %c7 = arith.constant 7 : index
    %c0_27 = arith.constant 0 : index
    %70 = vector.load %arg14[%c7, %c0_27] : memref<16x512xf32, #tpu.memory_space<vmem>>, vector<1x256xf32>
    %71 = arith.truncf %69 : vector<256x512xf32> to vector<256x512xbf16>
    %c0_28 = arith.constant 0 : index
    %c0_29 = arith.constant 0 : index
    %72 = vector.load %arg9[%c0_28, %c0_29] : memref<512x256xbf16, #tpu.memory_space<vmem>>, vector<512x256xbf16>
    %cst_30 = arith.constant dense<0.000000e+00> : vector<256x256xf32>
    %73 = tpu.matmul %71, %72, %cst_30 {dimension_numbers = #tpu.dot_dimension_numbers<[1], [0], [0], [1], [0, 0, 1, 1], [], []>} : vector<256x512xbf16>, vector<512x256xbf16>, vector<256x256xf32> -> vector<256x256xf32>
    %74 = vector.broadcast %70 : vector<1x256xf32> to vector<256x256xf32>
    %75 = arith.addf %73, %74 : vector<256x256xf32>
    %76 = math.tanh %75 : vector<256x256xf32>
    %77 = arith.addf %45, %76 : vector<256x256xf32>
    %c8 = arith.constant 8 : index
    %c0_31 = arith.constant 0 : index
    %78 = vector.load %arg14[%c8, %c0_31] : memref<16x512xf32, #tpu.memory_space<vmem>>, vector<1x512xf32>
    %79 = arith.truncf %77 : vector<256x256xf32> to vector<256x256xbf16>
    %c0_32 = arith.constant 0 : index
    %c0_33 = arith.constant 0 : index
    %80 = vector.load %arg10[%c0_32, %c0_33] : memref<256x512xbf16, #tpu.memory_space<vmem>>, vector<256x512xbf16>
    %cst_34 = arith.constant dense<0.000000e+00> : vector<256x512xf32>
    %81 = tpu.matmul %79, %80, %cst_34 {dimension_numbers = #tpu.dot_dimension_numbers<[1], [0], [0], [1], [0, 0, 1, 1], [], []>} : vector<256x256xbf16>, vector<256x512xbf16>, vector<256x512xf32> -> vector<256x512xf32>
    %82 = vector.broadcast %78 : vector<1x512xf32> to vector<256x512xf32>
    %83 = arith.addf %81, %82 : vector<256x512xf32>
    %84 = math.tanh %83 : vector<256x512xf32>
    %c9 = arith.constant 9 : index
    %c0_35 = arith.constant 0 : index
    %85 = vector.load %arg14[%c9, %c0_35] : memref<16x512xf32, #tpu.memory_space<vmem>>, vector<1x256xf32>
    %86 = arith.truncf %84 : vector<256x512xf32> to vector<256x512xbf16>
    %c0_36 = arith.constant 0 : index
    %c0_37 = arith.constant 0 : index
    %87 = vector.load %arg11[%c0_36, %c0_37] : memref<512x256xbf16, #tpu.memory_space<vmem>>, vector<512x256xbf16>
    %cst_38 = arith.constant dense<0.000000e+00> : vector<256x256xf32>
    %88 = tpu.matmul %86, %87, %cst_38 {dimension_numbers = #tpu.dot_dimension_numbers<[1], [0], [0], [1], [0, 0, 1, 1], [], []>} : vector<256x512xbf16>, vector<512x256xbf16>, vector<256x256xf32> -> vector<256x256xf32>
    %89 = vector.broadcast %85 : vector<1x256xf32> to vector<256x256xf32>
    %90 = arith.addf %88, %89 : vector<256x256xf32>
    %91 = math.tanh %90 : vector<256x256xf32>
    %c10 = arith.constant 10 : index
    %c0_39 = arith.constant 0 : index
    %92 = vector.load %arg14[%c10, %c0_39] : memref<16x512xf32, #tpu.memory_space<vmem>>, vector<1x128xf32>
    %93 = arith.truncf %91 : vector<256x256xf32> to vector<256x256xbf16>
    %c0_40 = arith.constant 0 : index
    %c0_41 = arith.constant 0 : index
    %94 = vector.load %arg12[%c0_40, %c0_41] : memref<256x128xbf16, #tpu.memory_space<vmem>>, vector<256x128xbf16>
    %cst_42 = arith.constant dense<0.000000e+00> : vector<256x128xf32>
    %95 = tpu.matmul %93, %94, %cst_42 {dimension_numbers = #tpu.dot_dimension_numbers<[1], [0], [0], [1], [0, 0, 1, 1], [], []>} : vector<256x256xbf16>, vector<256x128xbf16>, vector<256x128xf32> -> vector<256x128xf32>
    %96 = vector.broadcast %92 : vector<1x128xf32> to vector<256x128xf32>
    %97 = arith.addf %95, %96 : vector<256x128xf32>
    %98 = math.tanh %97 : vector<256x128xf32>
    %c11 = arith.constant 11 : index
    %c0_43 = arith.constant 0 : index
    %99 = vector.load %arg14[%c11, %c0_43] : memref<16x512xf32, #tpu.memory_space<vmem>>, vector<1x128xf32>
    %100 = arith.truncf %98 : vector<256x128xf32> to vector<256x128xbf16>
    %c0_44 = arith.constant 0 : index
    %c0_45 = arith.constant 0 : index
    %101 = vector.load %arg13[%c0_44, %c0_45] : memref<128x128xbf16, #tpu.memory_space<vmem>>, vector<128x128xbf16>
    %cst_46 = arith.constant dense<0.000000e+00> : vector<256x128xf32>
    %102 = tpu.matmul %100, %101, %cst_46 {dimension_numbers = #tpu.dot_dimension_numbers<[1], [0], [0], [1], [0, 0, 1, 1], [], []>} : vector<256x128xbf16>, vector<128x128xbf16>, vector<256x128xf32> -> vector<256x128xf32>
    %103 = vector.broadcast %99 : vector<1x128xf32> to vector<256x128xf32>
    %104 = arith.addf %102, %103 : vector<256x128xf32>
    %c0_47 = arith.constant 0 : index
    %c0_48 = arith.constant 0 : index
    %105 = vector.load %arg15[%c0_47, %c0_48] : memref<256x128xf32, #tpu.memory_space<vmem>>, vector<256x128xf32>
    tpu.vector_store %arg15[%c0_47, %c0_48], %104 {strides = array<i32>} : memref<256x128xf32, #tpu.memory_space<vmem>>, vector<256x128xf32>,
    return
  }
  func.func @transform_0(%arg0: i32) -> (i32, i32) {
    %c0_i32 = arith.constant 0 : i32
    %c0_i32_0 = arith.constant 0 : i32
    return %arg0, %c0_i32 : i32, i32
  }
  func.func @transform_1(%arg0: i32) -> (i32, i32) {
    %c0_i32 = arith.constant 0 : i32
    %c0_i32_0 = arith.constant 0 : i32
    %c0_i32_1 = arith.constant 0 : i32
    return %c0_i32, %c0_i32_0 : i32, i32
  }
  func.func @transform_2(%arg0: i32) -> (i32, i32) {
    %c0_i32 = arith.constant 0 : i32
    %c0_i32_0 = arith.constant 0 : i32
    %c0_i32_1 = arith.constant 0 : i32
    return %c0_i32, %c0_i32_0 : i32, i32
  }
  func.func @transform_3(%arg0: i32) -> (i32, i32) {
    %c0_i32 = arith.constant 0 : i32
    %c0_i32_0 = arith.constant 0 : i32
    %c0_i32_1 = arith.constant 0 : i32
    return %c0_i32, %c0_i32_0 : i32, i32
  }
  func.func @transform_4(%arg0: i32) -> (i32, i32) {
    %c0_i32 = arith.constant 0 : i32
    %c0_i32_0 = arith.constant 0 : i32
    %c0_i32_1 = arith.constant 0 : i32
    return %c0_i32, %c0_i32_0 : i32, i32
  }
  func.func @transform_5(%arg0: i32) -> (i32, i32) {
    %c0_i32 = arith.constant 0 : i32
    %c0_i32_0 = arith.constant 0 : i32
    %c0_i32_1 = arith.constant 0 : i32
    return %c0_i32, %c0_i32_0 : i32, i32
  }
  func.func @transform_6(%arg0: i32) -> (i32, i32) {
    %c0_i32 = arith.constant 0 : i32
    %c0_i32_0 = arith.constant 0 : i32
    %c0_i32_1 = arith.constant 0 : i32
    return %c0_i32, %c0_i32_0 : i32, i32
  }
  func.func @transform_7(%arg0: i32) -> (i32, i32) {
    %c0_i32 = arith.constant 0 : i32
    %c0_i32_0 = arith.constant 0 : i32
    %c0_i32_1 = arith.constant 0 : i32
    return %c0_i32, %c0_i32_0 : i32, i32
  }
  func.func @transform_8(%arg0: i32) -> (i32, i32) {
    %c0_i32 = arith.constant 0 : i32
    %c0_i32_0 = arith.constant 0 : i32
    %c0_i32_1 = arith.constant 0 : i32
    return %c0_i32, %c0_i32_0 : i32, i32
  }
  func.func @transform_9(%arg0: i32) -> (i32, i32) {
    %c0_i32 = arith.constant 0 : i32
    %c0_i32_0 = arith.constant 0 : i32
    %c0_i32_1 = arith.constant 0 : i32
    return %c0_i32, %c0_i32_0 : i32, i32
  }
  func.func @transform_10(%arg0: i32) -> (i32, i32) {
    %c0_i32 = arith.constant 0 : i32
    %c0_i32_0 = arith.constant 0 : i32
    %c0_i32_1 = arith.constant 0 : i32
    return %c0_i32, %c0_i32_0 : i32, i32
  }
  func.func @transform_11(%arg0: i32) -> (i32, i32) {
    %c0_i32 = arith.constant 0 : i32
    %c0_i32_0 = arith.constant 0 : i32
    %c0_i32_1 = arith.constant 0 : i32
    return %c0_i32, %c0_i32_0 : i32, i32
  }
  func.func @transform_12(%arg0: i32) -> (i32, i32) {
    %c0_i32 = arith.constant 0 : i32
    %c0_i32_0 = arith.constant 0 : i32
    %c0_i32_1 = arith.constant 0 : i32
    return %c0_i32, %c0_i32_0 : i32, i32
  }
  func.func @transform_13(%arg0: i32) -> (i32, i32) {
    %c0_i32 = arith.constant 0 : i32
    %c0_i32_0 = arith.constant 0 : i32
    %c0_i32_1 = arith.constant 0 : i32
    return %c0_i32, %c0_i32_0 : i32, i32
  }
  func.func @transform_14(%arg0: i32) -> (i32, i32) {
    %c0_i32 = arith.constant 0 : i32
    %c0_i32_0 = arith.constant 0 : i32
    return %arg0, %c0_i32 : i32, i32
  }
}

</mosaic_0001>

<bundles_post_ra>
// kernel: tpu_custom_call.1
= control target key start
LH: loop header
LB: loop body
LE: loop exit
PB: predicated region body
PF: predicated region fallthrough
CT: control target
= control target key end

     0   :  { %s15653_s0 = inlined_call_operand.vmem [shape: f32[512,8], index: 0, kind: input, shape index: {}]   ;;  %s15654_s1 = inlined_call_operand.vmem [shape: bf16[3,128], index: 1, kind: input, shape index: {}]   ;;  %s15655_s2 = inlined_call_operand.hbm [shape: bf16[128,256], index: 2, kind: input, shape index: {}]   ;;  %s15656_s3 = inlined_call_operand.vmem [shape: bf16[256,512], index: 3, kind: input, shape index: {}]   ;;  %s15657_s4 = inlined_call_operand.hbm [shape: bf16[512,256], index: 4, kind: input, shape index: {}]   ;;  %s15658_s5 = inlined_call_operand.vmem [shape: bf16[1,128], index: 5, kind: input, shape index: {}]   ;;  %s15659_s6 = inlined_call_operand.hbm [shape: bf16[128,256], index: 6, kind: input, shape index: {}]   ;;  %s15660_s7 = inlined_call_operand.hbm [shape: bf16[256,512], index: 7, kind: input, shape index: {}]   ;;  %s15661_s8 = inlined_call_operand.hbm [shape: bf16[512,256], index: 8, kind: input, shape index: {}]   ;;  %s15662_s9 = inlined_call_operand.hbm [shape: bf16[256,512], index: 9, kind: input, shape index: {}]   ;;  %s15663_s10 = inlined_call_operand.hbm [shape: bf16[512,256], index: 10, kind: input, shape index: {}]   ;;  %s15664_s11 = inlined_call_operand.hbm [shape: bf16[256,128], index: 11, kind: input, shape index: {}]   ;;  %s15665_s12 = inlined_call_operand.vmem [shape: bf16[128,128], index: 12, kind: input, shape index: {}]   ;;  %s15666_s13 = inlined_call_operand.hbm [shape: f32[16,512], index: 13, kind: input, shape index: {}]   ;;  %s15667_s14 = inlined_call_operand.hbm [shape: f32[512,128], index: 14, kind: output, shape index: {}]  }
   0x1   :  { %15720 = sst [smem:[#allocation57_spill]] %s15657_s4 }
   0x2   :  { %15721 = sst [smem:[#allocation58_spill]] %s15667_s14 }
   0x3   :  { %19 = vsyncpa [#allocation3], 0 }
   0x4   :  { %20 = vsyncpa [#allocation6], 0 }
   0x5   :  { %21 = vsyncpa [#allocation9], 0 }
   0x6   :  { %22 = vsyncpa [#allocation12], 0 }
   0x7   :  { %23 = vsyncpa [#allocation15], 0 }
   0x8   :  { %24 = vsyncpa [#allocation4], 0 }
   0x9   :  { %26 = vsyncpa [#allocation4 + $0x1], 0  ;;  %s12677_s29 = smov 0   ;;  %s12679_s30 = smov 0  }
   0xa   :  { %s12681_s15 = smov 0   ;;  %s12683_s16 = smov 0  }
   0xb LB: > { %15722 = sst [smem:[#allocation24_spill]] %s12564_s29  ;;  %s12698_s17 = sadd.s32 4294967295, %s12576_s16   ;;  %s12576_s16 = sphi %s12683_s16, %s15915_s16   ;;  %s12572_s15 = sphi %s12681_s15, %s15918_s15   ;;  %s12568_s30 = sphi %s12679_s30, %s15917_s30   ;;  %s12564_s29 = sphi %s12677_s29, %s15916_s29  }
   0xc   : > { %15723 = sst [smem:[#allocation25_spill]] %s12568_s30  ;;  %s8731_s18 = sadd.s32 4294967294, %s12576_s16  }
   0xd   : > { %15724 = sst [smem:[#allocation26_spill]] %s12572_s15  ;;  %s12702_s19 = sadd.s32 1, %s12576_s16  }
   0xe   : > { %15725 = sst [smem:[#allocation27_spill]] %s12576_s16  ;;  %s338_s20 = sadd.s32 1, %s12572_s15 }
   0xf   : > { %15726 = sst [smem:[#allocation28_spill]] %s12702_s19  ;;  %s335_s21 = ssub.s32 %s12576_s16, %s12702_s19 }
  0x10   : > { %p348_p0 = scmp.ne.s32.totalorder %s12572_s15, %s12568_s30  ;;  %p336_p1 = scmp.eq.s32.totalorder %s335_s21, 0 }
  0x11   : > { %p349_p2 = scmp.eq.s32.totalorder %s12698_s17, 1  ;;  %p354_p3 = scmp.ne.s32.totalorder %s12568_s30, %s12564_s29 }
  0x12   : > { %p355_p4 = scmp.eq.s32.totalorder %s8731_s18, 1  ;;  %p8732_p7 = scmp.ge.s32.totalorder %s12576_s16, 1 }
  0x13   : > { %s12713_s22 = scalar_select %p336_p1, %s12572_s15, %s338_s20  }
  0x14   : > { %p12715_p5 = por %p349_p2, %p348_p0  ;;  %p12719_p6 = por %p355_p4, %p354_p3 }
  0x15   : > { %15727 = sst [smem:[#allocation29_spill]] %s12713_s22  ;;  %p362_p8 = scmp.lt.s32.totalorder %s12576_s16, 3 }
  0x16   : > { %s15728_s23 = scalar_select %p12715_p5, 1, 0 }
  0x17   : > { %s15730_s24 = scalar_select %p12719_p6, 1, 0 }
  0x18   : > { %15729 = sst [smem:[#allocation30_spill]] %s15728_s23  ;;  %p15673_p9 = scmp.eq.s32.totalorder %s12698_s17, 0 }
  0x19   : > { %15731 = sst [smem:[#allocation31_spill]] %s15730_s24  ;;  %p12726_p10 = pnand %p8732_p7, %p362_p8 }
  0x1a   : > { %s12578_s26 = smov [#allocation5]   ;;  %s12579_s18 = smov [#allocation8]  }
  0x1b   : > { %s15732_s25 = scalar_select %p12726_p10, 1, 0 }
  0x1c   : > { %p9808_p11 = pneg %p12726_p10  ;;  %s393_s27 = sshll.u32 %s12578_s26, 4  ;;  %s394_s27 = int_to_ptr.vmem [resolvable:$true] %s393_s27 }
  0x1d   : > { %s422_s20 = sshll.u32 %s12579_s18, 4  ;;  %s15734_s4 = sld [smem:[#allocation57_spill]]  ;;  %s12738_s20 = int_to_ptr.vmem [resolvable:$true] %s422_s20 }
  0x1e   : > { %p12734_p12 = pnand %p15673_p9, %p9808_p11 }
  0x20   : > { %p12748_p0 = pneg %p12734_p12 }
  0x23   : > { %s12242_s15 = scalar_lea.hbm %s15734_s4, 8192 }
  0x24   : > { %p12243_p13 = scmp.ne.s32.totalorder %s15734_s4, %s12242_s15  ;;  %p12249_p3 = scmp.lt.u32.totalorder %s12242_s15, %s15734_s4 }
  0x26   : > { %p12245_p1 = pnand %p12748_p0, %p12243_p13 }
  0x28   : > { %p12246_p2 = pneg %p12245_p1 }
  0x2a   : > { %p12251_p4 = pnand %p12249_p3, %p12246_p2 }
  0x2c   : > { %12254 = shalt.err (!%p12251_p4)
}
  0x2d   : > { %s12255_s22 = scalar_lea.vmem %s394_s27, 8192  ;;  %p12263_p9 = scmp.lt.s32.totalorder %s394_s27, %s394_s27 }
  0x2e   : > { %p12256_p7 = scmp.ne.s32.totalorder %s394_s27, %s12255_s22  ;;  %p12264_p6 = scmp.lt.s32.totalorder %s12255_s22, %s12255_s22 }
  0x30   : > { %p12258_p8 = pnand %p12256_p7, %p12748_p0  ;;  %p12265_p5 = por %p12264_p6, %p12263_p9 }
  0x32   : > { %p12259_p11 = pneg %p12258_p8 }
  0x34   : > { %p12266_p10 = pnand %p12265_p5, %p12259_p11 }
  0x36   : > { %12269 = shalt.err (!%p12266_p10)
}
  0x37   : > { %s15682_s19 = smov 128   ;;  %s15684_s24 = smov 8  }
  0x38   : > { %9814 = dma.hbm_to_vmem [thread:$0]  (!%p12734_p12), %s15734_s4, 8192, %s394_s27, [#allocation6], %s15682_s19, %s15682_s19, %s15684_s24  }
  0x39   : > { %s12270_s16 = scalar_lea.hbm %s15660_s7, 8192 }
  0x3a   : > { %p12271_p5 = scmp.ne.s32.totalorder %s15660_s7, %s12270_s16  ;;  %p12277_p10 = scmp.lt.u32.totalorder %s12270_s16, %s15660_s7 }
  0x3c   : > { %p12273_p6 = pnand %p12271_p5, %p12748_p0 }
  0x3e   : > { %p12274_p9 = pneg %p12273_p6 }
  0x40   : > { %p12279_p13 = pnand %p12277_p10, %p12274_p9 }
  0x42   : > { %12282 = shalt.err (!%p12279_p13)
}
  0x43   : > { %s12283_s27 = scalar_lea.vmem %s12738_s20, 8192  ;;  %p12291_p4 = scmp.lt.s32.totalorder %s12738_s20, %s12738_s20 }
  0x44   : > { %p12284_p1 = scmp.ne.s32.totalorder %s12738_s20, %s12283_s27  ;;  %p12292_p7 = scmp.lt.s32.totalorder %s12283_s27, %s12283_s27 }
  0x46   : > { %p12286_p2 = pnand %p12284_p1, %p12748_p0  ;;  %p12293_p8 = por %p12292_p7, %p12291_p4 }
  0x48   : > { %p12287_p3 = pneg %p12286_p2 }
  0x4a   : > { %p12294_p11 = pnand %p12293_p8, %p12287_p3 }
  0x4c   : > { %12297 = shalt.err (!%p12294_p11)
}
  0x4d   : > { %s12582_s14 = smov 256   ;;  %s12583_s30 = smov 16  }
  0x4e   : > { %9820 = dma.hbm_to_vmem [thread:$0]  (!%p12734_p12), %s15660_s7, 8192, %s12738_s20, [#allocation9], %s12582_s14, %s12582_s14, %s12583_s30  }
  0x4f   : > { %s12584_s29 = smov [#allocation11]   ;;  %s12585_s21 = smov [#allocation14]  }
  0x50   : > { %s448_s15 = sshll.u32 %s12584_s29, 4  ;;  %s474_s18 = sshll.u32 %s12585_s21, 4  ;;  %s449_s15 = int_to_ptr.vmem [resolvable:$true] %s448_s15  ;;  %s12790_s18 = int_to_ptr.vmem [resolvable:$true] %s474_s18 }
  0x51   : > { %s12298_s19 = scalar_lea.hbm %s15662_s9, 8192 }
  0x52   : > { %p12299_p5 = scmp.ne.s32.totalorder %s15662_s9, %s12298_s19  ;;  %p12305_p10 = scmp.lt.u32.totalorder %s12298_s19, %s15662_s9 }
  0x54   : > { %p12301_p6 = pnand %p12299_p5, %p12748_p0 }
  0x56   : > { %p12302_p9 = pneg %p12301_p6 }
  0x58   : > { %p12307_p13 = pnand %p12305_p10, %p12302_p9 }
  0x5a   : > { %12310 = shalt.err (!%p12307_p13)
}
  0x5b   : > { %s12311_s23 = scalar_lea.vmem %s449_s15, 8192  ;;  %p12319_p4 = scmp.lt.s32.totalorder %s449_s15, %s449_s15 }
  0x5c   : > { %p12312_p1 = scmp.ne.s32.totalorder %s449_s15, %s12311_s23  ;;  %p12320_p7 = scmp.lt.s32.totalorder %s12311_s23, %s12311_s23 }
  0x5e   : > { %p12314_p2 = pnand %p12312_p1, %p12748_p0  ;;  %p12321_p8 = por %p12320_p7, %p12319_p4 }
  0x60   : > { %p12315_p3 = pneg %p12314_p2 }
  0x62   : > { %p12322_p11 = pnand %p12321_p8, %p12315_p3 }
  0x64   : > { %12325 = shalt.err (!%p12322_p11)
}
  0x65   : > { %9826 = dma.hbm_to_vmem [thread:$0]  (!%p12734_p12), %s15662_s9, 8192, %s449_s15, [#allocation12], %s12582_s14, %s12582_s14, %s12583_s30  }
  0x66   : > { %s12326_s21 = scalar_lea.hbm %s15664_s11, 2048 }
  0x67   : > { %p12327_p5 = scmp.ne.s32.totalorder %s15664_s11, %s12326_s21  ;;  %p12333_p10 = scmp.lt.u32.totalorder %s12326_s21, %s15664_s11 }
  0x69   : > { %p12329_p6 = pnand %p12327_p5, %p12748_p0 }
  0x6b   : > { %p12330_p9 = pneg %p12329_p6 }
  0x6d   : > { %p12335_p13 = pnand %p12333_p10, %p12330_p9 }
  0x6f   : > { %12338 = shalt.err (!%p12335_p13)
}
  0x70   : > { %s12339_s14 = scalar_lea.vmem %s12790_s18, 2048  ;;  %p12347_p4 = scmp.lt.s32.totalorder %s12790_s18, %s12790_s18 }
  0x71   : > { %p12340_p1 = scmp.ne.s32.totalorder %s12790_s18, %s12339_s14  ;;  %p12348_p7 = scmp.lt.s32.totalorder %s12339_s14, %s12339_s14 }
  0x73   : > { %p12342_p2 = pnand %p12340_p1, %p12748_p0  ;;  %p12349_p8 = por %p12348_p7, %p12347_p4 }
  0x75   : > { %p12343_p3 = pneg %p12342_p2 }
  0x77   : > { %p12350_p11 = pnand %p12349_p8, %p12343_p3 }
  0x79   : > { %12353 = shalt.err (!%p12350_p11)
}
  0x7a   : > { %s12586_s30 = smov 64   ;;  %s12587_s15 = smov 4  }
  0x7b   : > { %9832 = dma.hbm_to_vmem [thread:$0]  (!%p12734_p12), %s15664_s11, 2048, %s12790_s18, [#allocation15], %s12586_s30, %s12586_s30, %s12587_s15  }
  0x7c   : > { %s12588_s24 = smov [#allocation2]   ;;  %s12589_s29 = smov [#allocation7]  }
  0x7d   : > { %s377_s19 = sshll.u32 %s12588_s24, 4  ;;  %s409_s21 = sshll.u32 %s12589_s29, 4  ;;  %s378_s19 = int_to_ptr.vmem [resolvable:$true] %s377_s19  ;;  %s12833_s21 = int_to_ptr.vmem [resolvable:$true] %s409_s21 }
  0x7e   : > { %s12354_s16 = scalar_lea.hbm %s15655_s2, 2048 }
  0x7f   : > { %p12355_p5 = scmp.ne.s32.totalorder %s15655_s2, %s12354_s16  ;;  %p12361_p10 = scmp.lt.u32.totalorder %s12354_s16, %s15655_s2 }
  0x81   : > { %p12357_p6 = pnand %p12355_p5, %p12748_p0 }
  0x83   : > { %p12358_p9 = pneg %p12357_p6 }
  0x85   : > { %p12363_p13 = pnand %p12361_p10, %p12358_p9 }
  0x87   : > { %12366 = shalt.err (!%p12363_p13)
}
  0x88   : > { %s12367_s30 = scalar_lea.vmem %s378_s19, 2048  ;;  %p12375_p4 = scmp.lt.s32.totalorder %s378_s19, %s378_s19 }
  0x89   : > { %p12368_p1 = scmp.ne.s32.totalorder %s378_s19, %s12367_s30  ;;  %p12376_p7 = scmp.lt.s32.totalorder %s12367_s30, %s12367_s30 }
  0x8b   : > { %p12370_p2 = pnand %p12368_p1, %p12748_p0  ;;  %p12377_p8 = por %p12376_p7, %p12375_p4 }
  0x8d   : > { %p12371_p3 = pneg %p12370_p2 }
  0x8f   : > { %p12378_p11 = pnand %p12377_p8, %p12371_p3 }
  0x91   : > { %12381 = shalt.err (!%p12378_p11)
}
  0x92   : > { %s15736_s15 = smov 8   ;;  %s15737_s4 = smov 128  }
  0x93   : > { %9811 = dma.hbm_to_vmem [thread:$0]  (!%p12734_p12), %s15655_s2, 2048, %s378_s19, [#allocation3], %s15737_s4, %s15737_s4, %s15736_s15  }
  0x94   : > { %s12382_s16 = scalar_lea.hbm %s15659_s6, 2048 }
  0x95   : > { %p12383_p5 = scmp.ne.s32.totalorder %s15659_s6, %s12382_s16  ;;  %p12389_p10 = scmp.lt.u32.totalorder %s12382_s16, %s15659_s6 }
  0x97   : > { %p12385_p6 = pnand %p12383_p5, %p12748_p0 }
  0x99   : > { %p12386_p9 = pneg %p12385_p6 }
  0x9b   : > { %p12391_p13 = pnand %p12389_p10, %p12386_p9 }
  0x9d   : > { %12394 = shalt.err (!%p12391_p13)
}
  0x9e   : > { %s12395_s19 = scalar_lea.vmem %s12833_s21, 2048  ;;  %p12403_p4 = scmp.lt.s32.totalorder %s12833_s21, %s12833_s21 }
  0x9f   : > { %p12396_p1 = scmp.ne.s32.totalorder %s12833_s21, %s12395_s19  ;;  %p12404_p7 = scmp.lt.s32.totalorder %s12395_s19, %s12395_s19 }
  0xa1   : > { %p12398_p2 = pnand %p12396_p1, %p12748_p0  ;;  %p12405_p8 = por %p12404_p7, %p12403_p4 }
  0xa3   : > { %p12399_p3 = pneg %p12398_p2 }
  0xa5   : > { %p12406_p11 = pnand %p12405_p8, %p12399_p3 }
  0xa7   : > { %12409 = shalt.err (!%p12406_p11)
}
  0xa8   : > { %9817 = dma.hbm_to_vmem [thread:$0]  (!%p12734_p12), %s15659_s6, 2048, %s12833_s21, [#allocation6], %s15737_s4, %s15737_s4, %s15736_s15  }
  0xa9   : > { %s12590_s29 = smov [#allocation10]   ;;  %s12591_s27 = smov [#allocation13]  }
  0xaa   : > { %s435_s22 = sshll.u32 %s12590_s29, 4  ;;  %s461_s16 = sshll.u32 %s12591_s27, 4  ;;  %s436_s22 = int_to_ptr.vmem [resolvable:$true] %s435_s22  ;;  %s12882_s16 = int_to_ptr.vmem [resolvable:$true] %s461_s16 }
  0xab   : > { %s12410_s23 = scalar_lea.hbm %s15661_s8, 8192 }
  0xac   : > { %p12411_p5 = scmp.ne.s32.totalorder %s15661_s8, %s12410_s23  ;;  %p12417_p10 = scmp.lt.u32.totalorder %s12410_s23, %s15661_s8 }
  0xae   : > { %p12413_p6 = pnand %p12411_p5, %p12748_p0 }
  0xb0   : > { %p12414_p9 = pneg %p12413_p6 }
  0xb2   : > { %p12419_p13 = pnand %p12417_p10, %p12414_p9 }
  0xb4   : > { %12422 = shalt.err (!%p12419_p13)
}
  0xb5   : > { %s12423_s24 = scalar_lea.vmem %s436_s22, 8192  ;;  %p12431_p4 = scmp.lt.s32.totalorder %s436_s22, %s436_s22 }
  0xb6   : > { %p12424_p1 = scmp.ne.s32.totalorder %s436_s22, %s12423_s24  ;;  %p12432_p7 = scmp.lt.s32.totalorder %s12423_s24, %s12423_s24 }
  0xb8   : > { %p12426_p2 = pnand %p12424_p1, %p12748_p0  ;;  %p12433_p8 = por %p12432_p7, %p12431_p4 }
  0xba   : > { %p12427_p3 = pneg %p12426_p2 }
  0xbc   : > { %p12434_p11 = pnand %p12433_p8, %p12427_p3 }
  0xbe   : > { %12437 = shalt.err (!%p12434_p11)
}
  0xbf   : > { %9823 = dma.hbm_to_vmem [thread:$0]  (!%p12734_p12), %s15661_s8, 8192, %s436_s22, [#allocation9], %s15737_s4, %s15737_s4, %s15736_s15  }
  0xc0   : > { %s12438_s23 = scalar_lea.hbm %s15663_s10, 8192 }
  0xc1   : > { %p12439_p5 = scmp.ne.s32.totalorder %s15663_s10, %s12438_s23  ;;  %p12445_p10 = scmp.lt.u32.totalorder %s12438_s23, %s15663_s10 }
  0xc3   : > { %p12441_p6 = pnand %p12439_p5, %p12748_p0 }
  0xc5   : > { %p12442_p9 = pneg %p12441_p6 }
  0xc7   : > { %p12447_p13 = pnand %p12445_p10, %p12442_p9 }
  0xc9   : > { %12450 = shalt.err (!%p12447_p13)
}
  0xca   : > { %s12451_s22 = scalar_lea.vmem %s12882_s16, 8192  ;;  %p12459_p4 = scmp.lt.s32.totalorder %s12882_s16, %s12882_s16 }
  0xcb   : > { %p12452_p1 = scmp.ne.s32.totalorder %s12882_s16, %s12451_s22  ;;  %p12460_p7 = scmp.lt.s32.totalorder %s12451_s22, %s12451_s22 }
  0xcd   : > { %p12454_p2 = pnand %p12452_p1, %p12748_p0  ;;  %p12461_p8 = por %p12460_p7, %p12459_p4 }
  0xcf   : > { %p12455_p3 = pneg %p12454_p2 }
  0xd1   : > { %p12462_p11 = pnand %p12461_p8, %p12455_p3 }
  0xd3   : > { %12465 = shalt.err (!%p12462_p11)
}
  0xd4   : > { %9829 = dma.hbm_to_vmem [thread:$0]  (!%p12734_p12), %s15663_s10, 8192, %s12882_s16, [#allocation12], %s15737_s4, %s15737_s4, %s15736_s15  }
  0xd5   : > { %s12592_s27 = smov [#allocation16]   ;;  %s12466_s18 = scalar_lea.hbm %s15666_s13, 1024 }
  0xd6   : > { %s490_s20 = sshll.u32 %s12592_s27, 4  ;;  %p12467_p5 = scmp.ne.s32.totalorder %s15666_s13, %s12466_s18  ;;  %s491_s20 = int_to_ptr.vmem [resolvable:$true] %s490_s20 }
  0xd7   : > { %p12473_p10 = scmp.lt.u32.totalorder %s12466_s18, %s15666_s13 }
  0xd8   : > { %p12469_p6 = pnand %p12467_p5, %p12748_p0 }
  0xda   : > { %p12470_p9 = pneg %p12469_p6 }
  0xdc   : > { %p12475_p13 = pnand %p12473_p10, %p12470_p9 }
  0xde   : > { %12478 = shalt.err (!%p12475_p13)
}
  0xdf   : > { %s12479_s15 = scalar_lea.vmem %s491_s20, 1024  ;;  %p12487_p4 = scmp.lt.s32.totalorder %s491_s20, %s491_s20 }
  0xe0   : > { %p12480_p1 = scmp.ne.s32.totalorder %s491_s20, %s12479_s15  ;;  %p12488_p7 = scmp.lt.s32.totalorder %s12479_s15, %s12479_s15 }
  0xe2   : > { %p12482_p2 = pnand %p12480_p1, %p12748_p0  ;;  %p12489_p8 = por %p12488_p7, %p12487_p4 }
  0xe4   : > { %p12483_p3 = pneg %p12482_p2 }
  0xe6   : > { %p12490_p11 = pnand %p12489_p8, %p12483_p3 }
  0xe8   : > { %12493 = shalt.err (!%p12490_p11)
}
  0xe9   : > { %s12593_s4 = smov 512   ;;  %s12594_s16 = smov 32  }
  0xea   : > { %9835 = dma.hbm_to_vmem [thread:$0]  (!%p12734_p12), %s15666_s13, 1024, %s491_s20, [#allocation15], %s12593_s4, %s12593_s4, %s12594_s16  }
  0xeb   : > { %p15738_p5 = scmp.ne.s32.totalorder %s15732_s25, 0 }
  0xed   : > { %515 = sbr.rel (%p15738_p5) target bundleno = 2945 (0xb81), region = 76 }
  0xf4   : > { %p15739_p6 = scmp.eq.s32.totalorder %s12698_s17, 0 }
  0xf6   : > { %12539 = dma.done.wait (%p15739_p6), [#allocation3], 2048   ;;  %p15740_p0 = pmov %p15739_p6 }
  0xf8   : > { %12541 = vsyncadd (%p15740_p0), [#allocation3], 4294965248  ;;  %p15741_p9 = pmov %p15740_p0 }
  0xf9   : > { %p15742_p10 = pmov %p15740_p0 }
  0xfa   : > { %12543 = dma.done.wait (%p15741_p9), [#allocation6], 10240  }
  0xfb   : > { %12545 = vsyncadd (%p15742_p10), [#allocation6], 4294957056  ;;  %p15743_p13 = pmov %p15740_p0 }
  0xfc   : > { %p15744_p12 = pmov %p15740_p0 }
  0xfd   : > { %12547 = dma.done.wait (%p15743_p13), [#allocation9], 16384  }
  0xfe   : > { %12549 = vsyncadd (%p15744_p12), [#allocation9], 4294950912  ;;  %p15745_p1 = pmov %p15740_p0 }
  0xff   : > { %p15746_p2 = pmov %p15740_p0 }
 0x100   : > { %12551 = dma.done.wait (%p15745_p1), [#allocation12], 16384  }
 0x101   : > { %12553 = vsyncadd (%p15746_p2), [#allocation12], 4294950912  ;;  %p15747_p3 = pmov %p15740_p0 }
 0x102   : > { %p15748_p4 = pmov %p15740_p0 }
 0x103   : > { %12555 = dma.done.wait (%p15747_p3), [#allocation15], 3072  }
 0x104   : > { %12557 = vsyncadd (%p15748_p4), [#allocation15], 4294964224  ;;  %s8754_s25 = sshll.u32 %s12698_s17, 5  ;;  %v12595_v0 = vmov 3   ;;  %v12596_v1 = vmov 2   ;;  %v12597_v10 = vmov 1   ;;  %v796_v48 = vlaneseq }
 0x105   : > { %9915 = vset.pattern.permute.xlu0 %v12595_v0  ;;  %9914 = vset.pattern.permute.xlu1 %v12596_v1  ;;  %p594_p7 = scmp.lt.s32.totalorder %s8754_s25, 63  ;;  %v9970_v6 = vld [vmem:[#allocation2 + $0x4] ss:$8 sps:$4 sm:$0xff]   ;;  %v9972_v7 = vld [vmem:[#allocation2] ss:$8 sps:$4 sm:$0xff]   ;;  %v15686_v29 = vmov 0  }
 0x106   : > { %1413 = vmatprep.subr.bf16.mxu0 %v9970_v6  ;;  %v9973_v8 = vld [vmem:[#allocation2 + $0x14] ss:$8 sps:$4 sm:$0xff]   ;;  %v9975_v9 = vld [vmem:[#allocation2 + $0x10] ss:$8 sps:$4 sm:$0xff]   ;;  %v9976_v11 = vld [vmem:[#allocation2 + $0x24] ss:$8 sps:$4 sm:$0xff]   ;;  %1445 = vmatprep.mubr.bf16.mxu0 %v15686_v29 }
 0x107   : > { %s15920_s25 = smov (!%p594_p7, %s8754_s25), 63  ;;  %1414 = vmatpush1.bf16.msra.mxu0 %v9972_v7  ;;  %v9978_v12 = vld [vmem:[#allocation2 + $0x20] ss:$8 sps:$4 sm:$0xff]   ;;  %v9979_v14 = vld [vmem:[#allocation2 + $0x34] ss:$8 sps:$4 sm:$0xff]   ;;  %v13090_v52 = vshrl.u32 %v796_v48, 7 }
 0x108   : > { %s8755_s28 = sshll.u32 %s15920_s25, 3  ;;  %1415 = vmatprep.subr.bf16.mxu0 %v9973_v8  ;;  %v9981_v15 = vld [vmem:[#allocation2 + $0x30] ss:$8 sps:$4 sm:$0xff]   ;;  %v9982_v17 = vld [vmem:[#allocation2 + $0x44] ss:$8 sps:$4 sm:$0xff]   ;;  %s15906_s18 = sld [smem:[#allocation25_spill]] }
 0x109   : > { %s12977_s20 = scalar_lea.vmem %s15653_s0, %s8755_s28  ;;  %v9984_v18 = vld [vmem:[#allocation2 + $0x40] ss:$8 sps:$4 sm:$0xff]   ;;  %v9985_v19 = vld [vmem:[#allocation2 + $0x54] ss:$8 sps:$4 sm:$0xff]   ;;  %v9987_v21 = vld [vmem:[#allocation2 + $0x50] ss:$8 sps:$4 sm:$0xff]  }
 0x10a   : > { %v601_v2 = vld [vmem:[%s12977_s20] sm:$0xff]  ;;  %v603_v3 = vld [vmem:[%s12977_s20 + $0x10] sm:$0xff]  ;;  %v602_v4 = vld [vmem:[%s12977_s20 + $0x8] sm:$0xff]  ;;  %v13095_v55 = vsub.s32 0, %v13090_v52  ;;  %v13102_v58 = vsub.s32 1, %v13090_v52  ;;  %v13111_v62 = vsub.s32 2, %v13090_v52 }
 0x10b   : > { %1061 = vperm.xlu0 %9915, %v601_v2   ;;  %865 = vperm.xlu1 %9914, %v601_v2   ;;  %v605_v5 = vld [vmem:[%s12977_s20 + $0x20] sm:$0xff]  ;;  %v604_v13 = vld [vmem:[%s12977_s20 + $0x18] sm:$0xff]  ;;  %v606_v16 = vld [vmem:[%s12977_s20 + $0x28] sm:$0xff]  ;;  %s9201_s22 = sshll.u32 %s12698_s17, 12  ;;  %s15907_s4 = sld [smem:[#allocation30_spill]] }
 0x10c   : > { %1416 = vmatpush1.bf16.msra.mxu0 %v9975_v9  ;;  %v608_v20 = vld [vmem:[%s12977_s20 + $0x38] sm:$0xff]  ;;  %v610_v22 = vld [vmem:[%s12977_s20 + $0x48] sm:$0xff]  ;;  %v607_v31 = vld [vmem:[%s12977_s20 + $0x30] sm:$0xff]  ;;  %15749 = vst [vmem:[#allocation32_spill] sm:$0xff] %v13095_v55  ;;  %s15908_s29 = sld [smem:[#allocation58_spill]]  ;;  %s12599_s27 = smov [#allocation17]  }
 0x10d   : > { %1417 = vmatprep.subr.bf16.mxu0 %v9976_v11  ;;  %v9988_v23 = vld [vmem:[#allocation2 + $0x64] ss:$8 sps:$4 sm:$0xff]   ;;  %v9990_v24 = vld [vmem:[#allocation2 + $0x60] ss:$8 sps:$4 sm:$0xff]   ;;  %v12994_v25 = vld [vmem:[%s12977_s20 + $0x58] sm:$0xff]  ;;  %15750 = vst [vmem:[#allocation33_spill] sm:$0xff] %v13102_v58 }
 0x10e   : > { %v9991_v26 = vld [vmem:[#allocation2 + $0x74] ss:$8 sps:$4 sm:$0xff]   ;;  %v9993_v27 = vld [vmem:[#allocation2 + $0x70] ss:$8 sps:$4 sm:$0xff]   ;;  %v12997_v28 = vld [vmem:[%s12977_s20 + $0x68] sm:$0xff]  ;;  %15751 = vst [vmem:[#allocation34_spill] sm:$0xff] %v13111_v62 }
 0x10f   : > { %1069 = vperm.xlu0 %9915, %v603_v3   ;;  %869 = vperm.xlu1 %9914, %v602_v4   ;;  %v13003_v30 = vld [vmem:[%s12977_s20 + $0x78] sm:$0xff]  ;;  %v609_v32 = vld [vmem:[%s12977_s20 + $0x40] sm:$0xff]  ;;  %v611_v33 = vld [vmem:[%s12977_s20 + $0x50] sm:$0xff]  ;;  %s590_s19 = sand.u32 1, %s15906_s18   ;;  %s12498_s14 = sshll.u32 %s12599_s27, 4  ;;  %s12499_s14 = int_to_ptr.vmem [resolvable:$false] %s12498_s14 }
 0x110   : > { %1418 = vmatpush1.bf16.msra.mxu0 %v9978_v12  ;;  %v13015_v34 = vld [vmem:[%s12977_s20 + $0x60] sm:$0xff]  ;;  %v13019_v35 = vld [vmem:[%s12977_s20 + $0x70] sm:$0xff]  ;;  %v13038_v39 = vld [vmem:[%s12977_s20 + $0x88] sm:$0xff]  ;;  %s8753_s30 = sshll.u32 %s590_s19, 8  ;;  %s15612_s17 = scalar_lea.sflag [#allocation4], %s590_s19 }
 0x111   : > { %1419 = vmatprep.subr.bf16.mxu0 %v9979_v14  ;;  %v13023_v36 = vld [vmem:[%s12977_s20 + $0x80] sm:$0xff]  ;;  %v13029_v37 = vld [vmem:[%s12977_s20 + $0x90] sm:$0xff]  ;;  %v13042_v40 = vld [vmem:[%s12977_s20 + $0x98] sm:$0xff]  ;;  %s15537_s21 = scalar_lea.vmem [#allocation17], %s8753_s30  ;;  %p15910_p11 = scmp.ne.s32.totalorder %s15907_s4, 0 }
 0x112   : > { %v13032_v38 = vld [vmem:[%s12977_s20 + $0xa0] sm:$0xff]  ;;  %v13047_v41 = vld [vmem:[%s12977_s20 + $0xa8] sm:$0xff]  ;;  %v13052_v42 = vld [vmem:[%s12977_s20 + $0xb8] sm:$0xff]  ;;  %s8581_s15 = sshll.u32 %s15537_s21, 4  ;;  %s15909_s25 = smov %s15908_s29  ;;  %s15604_s15 = int_to_ptr.vmem [resolvable:$true] %s8581_s15 }
 0x113   : > { %1077 = vperm.xlu0 %9915, %v605_v5   ;;  %9916 = vset.pattern.permute.xlu1 %v12595_v0  ;;  %v13058_v43 = vld [vmem:[%s12977_s20 + $0xc8] sm:$0xff]  ;;  %v628_v44 = vld [vmem:[%s12977_s20 + $0xd8] sm:$0xff]  ;;  %v13066_v45 = vld [vmem:[%s12977_s20 + $0xb0] sm:$0xff]  ;;  %s15602_s28 = scalar_lea.hbm %s15908_s29, %s9201_s22  ;;  %s12494_s26 = scalar_lea.vmem %s15604_s15, 4096 }
 0x114   : > { %1065 = vperm.xlu1 %9916, %v602_v4   ;;  %1420 = vmatpush1.bf16.msra.mxu0 %v9981_v15  ;;  %v13073_v46 = vld [vmem:[%s12977_s20 + $0xc0] sm:$0xff]  ;;  %v13079_v47 = vld [vmem:[%s12977_s20 + $0xd0] sm:$0xff]  ;;  %p12495_p8 = scmp.ne.s32.totalorder %s15604_s15, %s12494_s26  ;;  %s12500_s23 = scalar_lea.vmem %s12499_s14, 8192 }
 0x115   : > { %1421 = vmatprep.subr.bf16.mxu0 %v9982_v17  ;;  %v634_v51 = vld [vmem:[%s15654_s1] sm:$0x3]  ;;  %p12501_p0 = scmp.lt.s32.totalorder %s15604_s15, %s12499_s14  ;;  %p12502_p9 = scmp.lt.s32.totalorder %s12500_s23, %s12494_s26 }
 0x116   : > { %v13098_v56 = vld [vmem:[%s12977_s20 + $0xe0] sm:$0xff]  ;;  %v635_v57 = vunpack.c.l.bf16 %v634_v51  ;;  %p12496_p5 = pnand %p12495_p8, %p15910_p11 }
 0x117   : > { %9922 = vset.pattern.permute.xlu0 %v12597_v10  ;;  %v13113_v63 = vld [vmem:[#allocation16] ss:$0 sm:$0xff]  ;;  %p12503_p10 = por %p12502_p9, %p12501_p0 }
 0x118   : > { %638 = vperm.xlu0 %9922, %v601_v2   ;;  %9917 = vset.pattern.permute.xlu1 %v12597_v10  ;;  %v13108_v61 = vrot.slane %v635_v57, %v13095_v55  ;;  %v13117_v2 = vrot.slane %v635_v57, %v13102_v58  ;;  %v13126_v7 = vrot.slane %v635_v57, %v13111_v62  ;;  %p12497_p6 = pneg %p12496_p5 }
 0x119   : > { %648 = vperm.xlu1 %9917, %v603_v3   ;;  %1422 = vmatpush1.bf16.msra.mxu0 %v9984_v18 }
 0x11a   : > { %1423 = vmatprep.subr.bf16.mxu0 %v9985_v19  ;;  %p12504_p13 = pnand %p12503_p10, %p12497_p6 }
 0x11c   : > { %643 = vperm.xlu0 %9922, %v602_v4  }
 0x11d   : > { %9918 = vset.pattern.permute.xlu1 %v12596_v1  ;;  %1424 = vmatpush1.bf16.msra.mxu0 %v9987_v21 }
 0x11e   : > { %873 = vperm.xlu1 %9918, %v603_v3   ;;  %1425 = vmatprep.subr.bf16.mxu0 %v9988_v23  ;;  %v13120_v3 = vld [vmem:[%s12977_s20 + $0xe8] sm:$0xff] }
 0x120   : > { %653 = vperm.xlu0 %9922, %v604_v13  }
 0x121   : > { %1426 = vmatpush1.bf16.msra.mxu0 %v9990_v24 }
 0x122   : > { %877 = vperm.xlu1 %9918, %v604_v13   ;;  %1427 = vmatprep.subr.bf16.mxu0 %v9991_v26 }
 0x124   : > { %663 = vperm.xlu0 %9922, %v606_v16  }
 0x125   : > { %1428 = vmatpush1.bf16.msra.mxu0 %v9993_v27 }
 0x126   : > { %9919 = vset.pattern.permute.xlu1 %v12595_v0 }
 0x127   : > { %1073 = vperm.xlu1 %9919, %v604_v13  }
 0x128   : > { %673 = vperm.xlu0 %9922, %v608_v20  }
 0x12b   : > { %9920 = vset.pattern.permute.xlu1 %v12597_v10 }
 0x12c   : > { %658 = vperm.xlu1 %9920, %v605_v5   ;;  %683 = vperm.xlu0 %9922, %v610_v22  }
 0x130   : > { %9921 = vset.pattern.permute.xlu1 %v12596_v1  ;;  %693 = vperm.xlu0 %9922, %v12994_v25  }
 0x131   : > { %881 = vperm.xlu1 %9921, %v605_v5  }
 0x134   : > { %703 = vperm.xlu0 %9922, %v12997_v28  }
 0x135   : > { %885 = vperm.xlu1 %9921, %v606_v16  }
 0x138   : > { %713 = vperm.xlu0 %9922, %v13003_v30  }
 0x139   : > { %9923 = vset.pattern.permute.xlu1 %v12595_v0 }
 0x13a   : > { %1081 = vperm.xlu1 %9923, %v606_v16  }
 0x13c   : > { %9937 = vset.pattern.permute.xlu0 %v12595_v0 }
 0x13d   : > { %1085 = vperm.xlu0 %9937, %v607_v31  }
 0x13e   : > { %9924 = vset.pattern.permute.xlu1 %v12597_v10 }
 0x13f   : > { %668 = vperm.xlu1 %9924, %v607_v31  }
 0x141   : > { %1093 = vperm.xlu0 %9937, %v609_v32  }
 0x143   : > { %9925 = vset.pattern.permute.xlu1 %v12596_v1 }
 0x144   : > { %889 = vperm.xlu1 %9925, %v607_v31  }
 0x145   : > { %1101 = vperm.xlu0 %9937, %v611_v33  }
 0x148   : > { %893 = vperm.xlu1 %9925, %v608_v20  }
 0x149   : > { %1109 = vperm.xlu0 %9937, %v13015_v34  }
 0x14c   : > { %9926 = vset.pattern.permute.xlu1 %v12595_v0 }
 0x14d   : > { %1089 = vperm.xlu1 %9926, %v608_v20   ;;  %1117 = vperm.xlu0 %9937, %v13019_v35  }
 0x151   : > { %9927 = vset.pattern.permute.xlu1 %v12597_v10  ;;  %1125 = vperm.xlu0 %9937, %v13023_v36  }
 0x152   : > { %678 = vperm.xlu1 %9927, %v609_v32  }
 0x155   : > { %1133 = vperm.xlu0 %9937, %v13029_v37  }
 0x156   : > { %9928 = vset.pattern.permute.xlu1 %v12596_v1 }
 0x157   : > { %897 = vperm.xlu1 %9928, %v609_v32  }
 0x159   : > { %1141 = vperm.xlu0 %9937, %v13032_v38  }
 0x15b   : > { %901 = vperm.xlu1 %9928, %v610_v22  }
 0x15d   : > { %9948 = vset.pattern.permute.xlu0 %v12597_v10 }
 0x15e   : > { %723 = vperm.xlu0 %9948, %v13038_v39  }
 0x15f   : > { %9929 = vset.pattern.permute.xlu1 %v12595_v0 }
 0x160   : > { %1097 = vperm.xlu1 %9929, %v610_v22  }
 0x162   : > { %733 = vperm.xlu0 %9948, %v13042_v40  }
 0x164   : > { %9930 = vset.pattern.permute.xlu1 %v12597_v10 }
 0x165   : > { %688 = vperm.xlu1 %9930, %v611_v33  }
 0x166   : > { %743 = vperm.xlu0 %9948, %v13047_v41  }
 0x169   : > { %9931 = vset.pattern.permute.xlu1 %v12596_v1 }
 0x16a   : > { %905 = vperm.xlu1 %9931, %v611_v33   ;;  %753 = vperm.xlu0 %9948, %v13052_v42  }
 0x16e   : > { %909 = vperm.xlu1 %9931, %v12994_v25   ;;  %763 = vperm.xlu0 %9948, %v13058_v43  }
 0x172   : > { %9932 = vset.pattern.permute.xlu1 %v12595_v0  ;;  %773 = vperm.xlu0 %9948, %v628_v44   ;;  %v13148_v44 = vld [vmem:[%s12977_s20 + $0xf8] sm:$0xff] }
 0x173   : > { %1105 = vperm.xlu1 %9932, %v12994_v25  }
 0x176   : > { %9957 = vset.pattern.permute.xlu0 %v12595_v0 }
 0x177   : > { %9933 = vset.pattern.permute.xlu1 %v12597_v10  ;;  %1149 = vperm.xlu0 %9957, %v13066_v45  }
 0x178   : > { %698 = vperm.xlu1 %9933, %v13015_v34  }
 0x17b   : > { %1157 = vperm.xlu0 %9957, %v13073_v46  }
 0x17c   : > { %9934 = vset.pattern.permute.xlu1 %v12596_v1 }
 0x17d   : > { %913 = vperm.xlu1 %9934, %v13015_v34  }
 0x17f   : > { %1165 = vperm.xlu0 %9957, %v13079_v47  }
 0x181   : > { %917 = vperm.xlu1 %9934, %v12997_v28  }
 0x183   : > { %1173 = vperm.xlu0 %9957, %v13098_v56  }
 0x185   : > { %9935 = vset.pattern.permute.xlu1 %v12595_v0 }
 0x186   : > { %1113 = vperm.xlu1 %9935, %v12997_v28  }
 0x187   : > { %9962 = vset.pattern.permute.xlu0 %v12597_v10 }
 0x188   : > { %783 = vperm.xlu0 %9962, %v13120_v3  }
 0x18a   : > { %9936 = vset.pattern.permute.xlu1 %v12597_v10  ;;  %v866_v49 = vpop.permute.xlu1 %865  ;;  %v1062_v50 = vpop.permute.xlu0 %1061 }
 0x18b   : > { %708 = vperm.xlu1 %9936, %v13019_v35   ;;  %v996_v8 = vmul.f32 %v13117_v2, %v866_v49  ;;  %v1192_v11 = vmul.f32 %v13126_v7, %v1062_v50 }
 0x18c   : > { %793 = vperm.xlu0 %9962, %v13148_v44  }
 0x18e   : > { %v870_v53 = vpop.permute.xlu1 %869  ;;  %v1070_v54 = vpop.permute.xlu0 %1069 }
 0x18f   : > { %9938 = vset.pattern.permute.xlu1 %v12596_v1  ;;  %v997_v17 = vmul.f32 %v13117_v2, %v870_v53  ;;  %v1194_v27 = vmul.f32 %v13126_v7, %v1070_v54  ;;  %v13156_v54 = vld [vmem:[%s12977_s20 + $0xf0] sm:$0xff] }
 0x190   : > { %921 = vperm.xlu1 %9938, %v13019_v35   ;;  %9966 = vset.pattern.permute.xlu0 %v12595_v0 }
 0x191   : > { %1181 = vperm.xlu0 %9966, %v13156_v54  }
 0x192   : > { %v13104_v59 = vpop.permute.xlu0 %1077 }
 0x193   : > { %v1066_v60 = vpop.permute.xlu1 %1065 }
 0x194   : > { %925 = vperm.xlu1 %9938, %v13003_v30   ;;  %v1193_v22 = vmul.f32 %v13126_v7, %v1066_v60 }
 0x195   : > { %9969 = vset.pattern.permute.xlu0 %v15686_v29 }
 0x197   : > { %v639_v4 = vpop.permute.xlu0 %638 }
 0x198   : > { %v800_v5 = vmul.f32 %v13108_v61, %v639_v4  ;;  %9939 = vset.pattern.permute.xlu1 %v12595_v0  ;;  %v649_v6 = vpop.permute.xlu1 %648 }
 0x199   : > { %1121 = vperm.xlu1 %9939, %v13003_v30   ;;  %v802_v14 = vmul.f32 %v13108_v61, %v649_v6 }
 0x19a   : > { %v832_v9 = vadd.f32 %v800_v5, %v13113_v63 }
 0x19b   : > { %v644_v12 = vpop.permute.xlu0 %643  ;;  %v834_v23 = vadd.f32 %v802_v14, %v13113_v63 }
 0x19c   : > { %v1028_v13 = vadd.f32 %v996_v8, %v832_v9  ;;  %v801_v15 = vmul.f32 %v13108_v61, %v644_v12  ;;  %v12218_v12 = vld [vmem:[%s12977_s20 + $0x8] sm:$0xff] }
 0x19d   : > { %9940 = vset.pattern.permute.xlu1 %v12597_v10  ;;  %v874_v16 = vpop.permute.xlu1 %873  ;;  %3542 = vperm.xlu0 %9969, %v12218_v12  }
 0x19e   : > { %v833_v18 = vadd.f32 %v801_v15, %v13113_v63  ;;  %v998_v19 = vmul.f32 %v13117_v2, %v874_v16  ;;  %718 = vperm.xlu1 %9940, %v13023_v36   ;;  %v1224_v20 = vadd.f32 %v1192_v11, %v1028_v13 }
 0x19f   : > { %v654_v21 = vpop.permute.xlu0 %653 }
 0x1a0   : > { %v1029_v24 = vadd.f32 %v997_v17, %v833_v18  ;;  %v803_v25 = vmul.f32 %v13108_v61, %v654_v21  ;;  %v1030_v30 = vadd.f32 %v998_v19, %v834_v23  ;;  %10618 = vtanh.f32 %v1224_v20  ;;  %v12219_v18 = vld [vmem:[%s12977_s20 + $0x20] sm:$0xff] }
 0x1a1   : > { %v878_v26 = vpop.permute.xlu1 %877  ;;  %3554 = vperm.xlu0 %9969, %v12219_v18   ;;  %v1196_v20 = vmul.f32 %v13126_v7, %v13104_v59 }
 0x1a2   : > { %v1225_v28 = vadd.f32 %v1193_v22, %v1029_v24  ;;  %9941 = vset.pattern.permute.xlu1 %v12596_v1  ;;  %v835_v31 = vadd.f32 %v803_v25, %v13113_v63  ;;  %v999_v32 = vmul.f32 %v13117_v2, %v878_v26  ;;  %v1226_v48 = vadd.f32 %v1194_v27, %v1030_v30  ;;  %v12220_v25 = vld [vmem:[%s12977_s20 + $0x30] sm:$0xff] }
 0x1a3   : > { %929 = vperm.xlu1 %9941, %v13023_v36   ;;  %v664_v33 = vpop.permute.xlu0 %663 }
 0x1a4   : > { %10620 = vtanh.f32 %v1225_v28  ;;  %v1031_v50 = vadd.f32 %v999_v32, %v835_v31  ;;  %v12221_v32 = vld [vmem:[%s12977_s20 + $0x40] sm:$0xff] }
 0x1a5   : > { %10622 = vtanh.f32 %v1226_v48  ;;  %3562 = vperm.xlu0 %9969, %v12220_v25  }
 0x1a6   : > { %v1074_v49 = vpop.permute.xlu1 %1073 }
 0x1a7   : > { %v1195_v51 = vmul.f32 %v13126_v7, %v1074_v49  ;;  %933 = vperm.xlu1 %9941, %v13038_v39   ;;  %v13153_v53 = vpop.permute.xlu0 %673  ;;  %v12222_v49 = vld [vmem:[%s12977_s20 + $0x50] sm:$0xff] }
 0x1a9   : > { %v1227_v57 = vadd.f32 %v1195_v51, %v1031_v50  ;;  %3570 = vperm.xlu0 %9969, %v12221_v32   ;;  %v9999_v32 = vld [vmem:[%s15656_s3 + $0x20] ss:$16 sps:$4 sm:$0xff]  }
 0x1aa   : > { %v10619_v4 = vpop.eup %10618 }
 0x1ab   : > { %10624 = vtanh.f32 %v1227_v57  ;;  %9942 = vset.pattern.permute.xlu1 %v12595_v0  ;;  %v659_v60 = vpop.permute.xlu1 %658  ;;  %v13162_v5 = vpop.permute.xlu0 %683 }
 0x1ac   : > { %1129 = vperm.xlu1 %9942, %v13038_v39   ;;  %v804_v8 = vmul.f32 %v13108_v61, %v659_v60  ;;  %v805_v39 = vmul.f32 %v13108_v61, %v664_v33  ;;  %v807_v60 = vmul.f32 %v13108_v61, %v13153_v53 }
 0x1ad   : > { %3578 = vperm.xlu0 %9969, %v12222_v49  }
 0x1ae   : > { %v10621_v6 = vpop.eup %10620  ;;  %v836_v14 = vadd.f32 %v804_v8, %v13113_v63  ;;  %v837_v22 = vadd.f32 %v805_v39, %v13113_v63 }
 0x1af   : > { %v1290_v9 = vpack.c.bf16 %v10621_v6, %v10619_v4  ;;  %v13173_v15 = vpop.permute.xlu0 %693  ;;  %v10623_v16 = vpop.eup %10622 }
 0x1b0   : > { %9943 = vset.pattern.permute.xlu1 %v12597_v10  ;;  %v882_v11 = vpop.permute.xlu1 %881 }
 0x1b1   : > { %v1000_v13 = vmul.f32 %v13117_v2, %v882_v11  ;;  %728 = vperm.xlu1 %9943, %v13029_v37   ;;  %1446 = vmatmul.mubr.bf16.vlgmr.msra.gmra.mrb[0].mxu0 %v1290_v9 }
 0x1b2   : > { %1455 = vmatprep.mubr.bf16.mxu0 %v15686_v29  ;;  %3586 = vperm.xlu0 %9969, %v13015_v34  }
 0x1b3   : > { %v1032_v21 = vadd.f32 %v1000_v13, %v836_v14  ;;  %v13183_v28 = vpop.permute.xlu0 %703  ;;  %v839_v13 = vadd.f32 %v807_v60, %v13113_v63 }
 0x1b4   : > { %v886_v17 = vpop.permute.xlu1 %885 }
 0x1b5   : > { %v10625_v19 = vpop.eup %10624  ;;  %9944 = vset.pattern.permute.xlu1 %v12596_v1  ;;  %v1001_v23 = vmul.f32 %v13117_v2, %v886_v17  ;;  %v1228_v26 = vadd.f32 %v1196_v20, %v1032_v21  ;;  %v809_v21 = vmul.f32 %v13108_v61, %v13162_v5  ;;  %v9997_v5 = vld [vmem:[%s15656_s3 + $0x24] ss:$16 sps:$4 sm:$0xff]  }
 0x1b6   : > { %937 = vperm.xlu1 %9944, %v13029_v37   ;;  %v1291_v24 = vpack.c.bf16 %v10625_v19, %v10623_v16  ;;  %3594 = vperm.xlu0 %9969, %v13019_v35  }
 0x1b7   : > { %v1033_v59 = vadd.f32 %v1001_v23, %v837_v22  ;;  %10626 = vtanh.f32 %v1228_v26  ;;  %v13191_v48 = vpop.permute.xlu0 %713 }
 0x1b9   : > { %1456 = vmatmul.mubr.bf16.gmra.mrb[4].mxu0 %v1291_v24  ;;  %v1082_v27 = vpop.permute.xlu1 %1081 }
 0x1ba   : > { %v1197_v30 = vmul.f32 %v13126_v7, %v1082_v27  ;;  %941 = vperm.xlu1 %9944, %v13042_v40   ;;  %1465 = vmatprep.mubr.bf16.mxu0 %v15686_v29 }
 0x1bb   : > { %3602 = vperm.xlu0 %9969, %v13023_v36  }
 0x1bc   : > { %v1229_v31 = vadd.f32 %v1197_v30, %v1033_v59  ;;  %v1086_v4 = vpop.permute.xlu0 %1085  ;;  %v841_v59 = vadd.f32 %v809_v21, %v13113_v63  ;;  %v10014_v21 = vld [vmem:[%s15656_s3 + $0xc0] ss:$16 sps:$4 sm:$0xff]  }
 0x1bd   : > { %v1198_v12 = vmul.f32 %v13126_v7, %v1086_v4  ;;  %v10003_v4 = vld [vmem:[%s15656_s3 + $0x64] ss:$16 sps:$4 sm:$0xff]  }
 0x1be   : > { %10628 = vtanh.f32 %v1229_v31  ;;  %9945 = vset.pattern.permute.xlu1 %v12595_v0  ;;  %v669_v33 = vpop.permute.xlu1 %668 }
 0x1bf   : > { %1137 = vperm.xlu1 %9945, %v13042_v40   ;;  %v806_v50 = vmul.f32 %v13108_v61, %v669_v33  ;;  %3610 = vperm.xlu0 %9969, %v13029_v37   ;;  %v9994_v37 = vld [vmem:[%s15656_s3 + $0x4] ss:$16 sps:$4 sm:$0xff]  }
 0x1c0   : > { %v1094_v22 = vpop.permute.xlu0 %1093  ;;  %2109 = vmatprep.subr.bf16.mxu1 %v9994_v37  ;;  %v10012_v37 = vld [vmem:[%s15656_s3 + $0xc4] ss:$16 sps:$4 sm:$0xff]  }
 0x1c1   : > { %v838_v40 = vadd.f32 %v806_v50, %v13113_v63  ;;  %v10627_v6 = vpop.eup %10626  ;;  %v1200_v27 = vmul.f32 %v13126_v7, %v1094_v22  ;;  %v10000_v50 = vld [vmem:[%s15656_s3 + $0x44] ss:$16 sps:$4 sm:$0xff]  }
 0x1c3   : > { %9946 = vset.pattern.permute.xlu1 %v12597_v10  ;;  %v890_v51 = vpop.permute.xlu1 %889  ;;  %3618 = vperm.xlu0 %9969, %v13032_v38  }
 0x1c4   : > { %v1002_v57 = vmul.f32 %v13117_v2, %v890_v51  ;;  %738 = vperm.xlu1 %9946, %v13032_v38  }
 0x1c6   : > { %v1034_v11 = vadd.f32 %v1002_v57, %v838_v40  ;;  %v10002_v57 = vld [vmem:[%s15656_s3 + $0x40] ss:$16 sps:$4 sm:$0xff]  }
 0x1c7   : > { %v894_v8 = vpop.permute.xlu1 %893  ;;  %3626 = vperm.xlu0 %9969, %v13066_v45  }
 0x1c8   : > { %v10629_v9 = vpop.eup %10628  ;;  %9947 = vset.pattern.permute.xlu1 %v12596_v1  ;;  %v1003_v34 = vmul.f32 %v13117_v2, %v894_v8  ;;  %v1230_v39 = vadd.f32 %v1198_v12, %v1034_v11  ;;  %v10006_v8 = vld [vmem:[%s15656_s3 + $0x84] ss:$16 sps:$4 sm:$0xff]   ;;  %v10008_v11 = vld [vmem:[%s15656_s3 + $0x80] ss:$16 sps:$4 sm:$0xff]  }
 0x1c9   : > { %945 = vperm.xlu1 %9947, %v13032_v38   ;;  %v1292_v53 = vpack.c.bf16 %v10629_v9, %v10627_v6  ;;  %v9996_v38 = vld [vmem:[%s15656_s3] ss:$16 sps:$4 sm:$0xff]  }
 0x1ca   : > { %v1035_v16 = vadd.f32 %v1003_v34, %v839_v13  ;;  %10630 = vtanh.f32 %v1230_v39  ;;  %2110 = vmatpush1.bf16.msra.mxu1 %v9996_v38  ;;  %v10005_v6 = vld [vmem:[%s15656_s3 + $0x60] ss:$16 sps:$4 sm:$0xff]   ;;  %v811_v13 = vmul.f32 %v13108_v61, %v13173_v15  ;;  %v1102_v34 = vpop.permute.xlu0 %1101 }
 0x1cb   : > { %1466 = vmatmul.mubr.bf16.gmra.mrb[8].mxu0 %v1292_v53  ;;  %3634 = vperm.xlu0 %9969, %v13073_v46   ;;  %v10009_v53 = vld [vmem:[%s15656_s3 + $0xa4] ss:$16 sps:$4 sm:$0xff]  }
 0x1cc   : > { %v1090_v14 = vpop.permute.xlu1 %1089  ;;  %1475 = vmatprep.mubr.bf16.mxu0 %v15686_v29  ;;  %2111 = vmatprep.subr.bf16.mxu1 %v9997_v5  ;;  %v843_v15 = vadd.f32 %v811_v13, %v13113_v63  ;;  %v10020_v5 = vld [vmem:[%s15656_s3 + $0x100] ss:$16 sps:$4 sm:$0xff]  }
 0x1cd   : > { %v1199_v17 = vmul.f32 %v13126_v7, %v1090_v14  ;;  %949 = vperm.xlu1 %9947, %v13047_v41   ;;  %v10011_v14 = vld [vmem:[%s15656_s3 + $0xa0] ss:$16 sps:$4 sm:$0xff]  }
 0x1ce   : > { %2112 = vmatpush1.bf16.msra.mxu1 %v9999_v32  ;;  %v10023_v32 = vld [vmem:[%s15656_s3 + $0x120] ss:$16 sps:$4 sm:$0xff]  }
 0x1cf   : > { %v1231_v35 = vadd.f32 %v1199_v17, %v1035_v16  ;;  %3642 = vperm.xlu0 %9969, %v13079_v47   ;;  %2113 = vmatprep.subr.bf16.mxu1 %v10000_v50 }
 0x1d1   : > { %10632 = vtanh.f32 %v1231_v35  ;;  %9949 = vset.pattern.permute.xlu1 %v12595_v0  ;;  %v679_v18 = vpop.permute.xlu1 %678 }
 0x1d2   : > { %1145 = vperm.xlu1 %9949, %v13047_v41   ;;  %v808_v19 = vmul.f32 %v13108_v61, %v679_v18  ;;  %2114 = vmatpush1.bf16.msra.mxu1 %v10002_v57 }
 0x1d3   : > { %3650 = vperm.xlu0 %9969, %v13098_v56   ;;  %2115 = vmatprep.subr.bf16.mxu1 %v10003_v4 }
 0x1d4   : > { %v840_v41 = vadd.f32 %v808_v19, %v13113_v63  ;;  %v10631_v23 = vpop.eup %10630  ;;  %v1202_v19 = vmul.f32 %v13126_v7, %v1102_v34 }
 0x1d6   : > { %9950 = vset.pattern.permute.xlu1 %v12597_v10  ;;  %v898_v36 = vpop.permute.xlu1 %897  ;;  %2116 = vmatpush1.bf16.msra.mxu1 %v10005_v6 }
 0x1d7   : > { %v1004_v20 = vmul.f32 %v13117_v2, %v898_v36  ;;  %748 = vperm.xlu1 %9950, %v13066_v45   ;;  %3658 = vperm.xlu0 %9969, %v13156_v54  }
 0x1d8   : > { %2117 = vmatprep.subr.bf16.mxu1 %v10006_v8 }
 0x1d9   : > { %v1036_v26 = vadd.f32 %v1004_v20, %v840_v41 }
 0x1da   : > { %v902_v24 = vpop.permute.xlu1 %901  ;;  %2118 = vmatpush1.bf16.msra.mxu1 %v10008_v11  ;;  %v10027_v11 = vld [vmem:[%s15656_s3 + $0x164] ss:$16 sps:$4 sm:$0xff]  }
 0x1db   : > { %v10633_v25 = vpop.eup %10632  ;;  %9951 = vset.pattern.permute.xlu1 %v12596_v1  ;;  %v1005_v30 = vmul.f32 %v13117_v2, %v902_v24  ;;  %v1232_v33 = vadd.f32 %v1200_v27, %v1036_v26  ;;  %2119 = vmatprep.subr.bf16.mxu1 %v10009_v53  ;;  %v10017_v24 = vld [vmem:[%s15656_s3 + $0xe0] ss:$16 sps:$4 sm:$0xff]   ;;  %v10018_v27 = vld [vmem:[%s15656_s3 + $0x104] ss:$16 sps:$4 sm:$0xff]  }
 0x1dc   : > { %953 = vperm.xlu1 %9951, %v13066_v45   ;;  %v1293_v31 = vpack.c.bf16 %v10633_v25, %v10631_v23 }
 0x1dd   : > { %v1037_v51 = vadd.f32 %v1005_v30, %v841_v59  ;;  %10634 = vtanh.f32 %v1232_v33  ;;  %v10021_v30 = vld [vmem:[%s15656_s3 + $0x124] ss:$16 sps:$4 sm:$0xff]   ;;  %v813_v33 = vmul.f32 %v13108_v61, %v13183_v28 }
 0x1de   : > { %1476 = vmatmul.mubr.bf16.gmra.mrb[12].mxu0 %v1293_v31  ;;  %2120 = vmatpush1.bf16.msra.mxu1 %v10011_v14 }
 0x1df   : > { %v1098_v49 = vpop.permute.xlu1 %1097  ;;  %1485 = vmatprep.mubr.bf16.mxu0 %v15686_v29  ;;  %2121 = vmatprep.subr.bf16.mxu1 %v10012_v37  ;;  %v845_v28 = vadd.f32 %v813_v33, %v13113_v63 }
 0x1e0   : > { %v1201_v45 = vmul.f32 %v13126_v7, %v1098_v49  ;;  %957 = vperm.xlu1 %9951, %v13052_v42   ;;  %v1110_v49 = vpop.permute.xlu0 %1109 }
 0x1e1   : > { %v1204_v6 = vmul.f32 %v13126_v7, %v1110_v49 }
 0x1e2   : > { %v1233_v60 = vadd.f32 %v1201_v45, %v1037_v51  ;;  %2122 = vmatpush1.bf16.msra.mxu1 %v10014_v21  ;;  %v10024_v51 = vld [vmem:[%s15656_s3 + $0x144] ss:$16 sps:$4 sm:$0xff]   ;;  %v10026_v45 = vld [vmem:[%s15656_s3 + $0x140] ss:$16 sps:$4 sm:$0xff]   ;;  %v10039_v21 = vld [vmem:[%s15656_s3 + $0x28] ss:$16 sps:$4 sm:$0xff]  }
 0x1e4   : > { %10636 = vtanh.f32 %v1233_v60  ;;  %9952 = vset.pattern.permute.xlu1 %v12595_v0  ;;  %v689_v40 = vpop.permute.xlu1 %688 }
 0x1e5   : > { %1153 = vperm.xlu1 %9952, %v13052_v42   ;;  %v810_v9 = vmul.f32 %v13108_v61, %v689_v40 }
 0x1e7   : > { %v842_v39 = vadd.f32 %v810_v9, %v13113_v63  ;;  %v10635_v16 = vpop.eup %10634 }
 0x1e9   : > { %9953 = vset.pattern.permute.xlu1 %v12597_v10  ;;  %v906_v12 = vpop.permute.xlu1 %905 }
 0x1ea   : > { %v1006_v42 = vmul.f32 %v13117_v2, %v906_v12  ;;  %758 = vperm.xlu1 %9953, %v13073_v46   ;;  %v10029_v12 = vld [vmem:[%s15656_s3 + $0x160] ss:$16 sps:$4 sm:$0xff]  }
 0x1ec   : > { %v1038_v18 = vadd.f32 %v1006_v42, %v842_v39  ;;  %v10030_v39 = vld [vmem:[%s15656_s3 + $0x184] ss:$16 sps:$4 sm:$0xff]  }
 0x1ed   : > { %v910_v17 = vpop.permute.xlu1 %909 }
 0x1ee   : > { %v10637_v35 = vpop.eup %10636  ;;  %9954 = vset.pattern.permute.xlu1 %v12596_v1  ;;  %v1007_v36 = vmul.f32 %v13117_v2, %v910_v17  ;;  %v1234_v22 = vadd.f32 %v1202_v19, %v1038_v18  ;;  %v10035_v17 = vld [vmem:[%s15656_s3 + $0xc] ss:$16 sps:$4 sm:$0xff]   ;;  %v10033_v18 = vld [vmem:[%s15656_s3 + $0x8] ss:$16 sps:$4 sm:$0xff]   ;;  %v1118_v19 = vpop.permute.xlu0 %1117 }
 0x1ef   : > { %961 = vperm.xlu1 %9954, %v13073_v46   ;;  %v1294_v20 = vpack.c.bf16 %v10637_v35, %v10635_v16  ;;  %v10015_v46 = vld [vmem:[%s15656_s3 + $0xe4] ss:$16 sps:$4 sm:$0xff]   ;;  %v10032_v16 = vld [vmem:[%s15656_s3 + $0x180] ss:$16 sps:$4 sm:$0xff]   ;;  %2302 = vmatprep.subr.bf16.mxu0 %v10035_v17 }
 0x1f0   : > { %v1039_v41 = vadd.f32 %v1007_v36, %v843_v15  ;;  %2123 = vmatprep.subr.bf16.mxu1 %v10015_v46  ;;  %10638 = vtanh.f32 %v1234_v22  ;;  %v10036_v15 = vld [vmem:[%s15656_s3 + $0x1a4] ss:$16 sps:$4 sm:$0xff]   ;;  %2303 = vmatpush1.bf16.msra.mxu0 %v10033_v18  ;;  %v10038_v36 = vld [vmem:[%s15656_s3 + $0x1a0] ss:$16 sps:$4 sm:$0xff]  }
 0x1f1   : > { %1486 = vmatmul.mubr.bf16.gmra.mrb[16].mxu0 %v1294_v20  ;;  %2124 = vmatpush1.bf16.msra.mxu1 %v10017_v24  ;;  %v10041_v20 = vld [vmem:[%s15656_s3 + $0x2c] ss:$16 sps:$4 sm:$0xff]   ;;  %v10044_v46 = vld [vmem:[%s15656_s3 + $0x1c0] ss:$16 sps:$4 sm:$0xff]   ;;  %v815_v24 = vmul.f32 %v13108_v61, %v13191_v48 }
 0x1f2   : > { %v1106_v38 = vpop.permute.xlu1 %1105  ;;  %1495 = vmatprep.mubr.bf16.mxu0 %v15686_v29  ;;  %2125 = vmatprep.subr.bf16.mxu1 %v10018_v27  ;;  %v10045_v27 = vld [vmem:[%s15656_s3 + $0x48] ss:$16 sps:$4 sm:$0xff]  }
 0x1f3   : > { %v1203_v23 = vmul.f32 %v13126_v7, %v1106_v38  ;;  %965 = vperm.xlu1 %9954, %v13058_v43   ;;  %v13373_v38 = vpop.permute.xlu0 %1125  ;;  %2304 = vmatprep.subr.bf16.mxu0 %v10041_v20  ;;  %v847_v33 = vadd.f32 %v815_v24, %v13113_v63 }
 0x1f4   : > { %2305 = vmatpush1.bf16.msra.mxu0 %v10039_v21 }
 0x1f5   : > { %v1235_v25 = vadd.f32 %v1203_v23, %v1039_v41  ;;  %2126 = vmatpush1.bf16.msra.mxu1 %v10020_v5  ;;  %v10042_v41 = vld [vmem:[%s15656_s3 + $0x1c4] ss:$16 sps:$4 sm:$0xff]  }
 0x1f6   : > { %2127 = vmatprep.subr.bf16.mxu1 %v10021_v30  ;;  %v10048_v30 = vld [vmem:[%s15656_s3 + $0x1e4] ss:$16 sps:$4 sm:$0xff]  }
 0x1f7   : > { %10640 = vtanh.f32 %v1235_v25  ;;  %9955 = vset.pattern.permute.xlu1 %v12595_v0  ;;  %v699_v26 = vpop.permute.xlu1 %698  ;;  %v10047_v25 = vld [vmem:[%s15656_s3 + $0x4c] ss:$16 sps:$4 sm:$0xff]  }
 0x1f8   : > { %1161 = vperm.xlu1 %9955, %v13058_v43   ;;  %v812_v59 = vmul.f32 %v13108_v61, %v699_v26  ;;  %2306 = vmatprep.subr.bf16.mxu0 %v10047_v25  ;;  %v10069_v25 = vld [vmem:[%s15656_s3 + $0x128] ss:$16 sps:$4 sm:$0xff]  }
 0x1f9   : > { %2128 = vmatpush1.bf16.msra.mxu1 %v10023_v32  ;;  %v1206_v32 = vmul.f32 %v13126_v7, %v1118_v19  ;;  %2307 = vmatpush1.bf16.msra.mxu0 %v10045_v27  ;;  %v10074_v27 = vld [vmem:[%s15656_s3 + $0x14c] ss:$16 sps:$4 sm:$0xff]  }
 0x1fa   : > { %v844_v50 = vadd.f32 %v812_v59, %v13113_v63  ;;  %v10639_v57 = vpop.eup %10638  ;;  %2129 = vmatprep.subr.bf16.mxu1 %v10024_v51  ;;  %v13403_v51 = vpop.permute.xlu0 %1133 }
 0x1fc   : > { %9956 = vset.pattern.permute.xlu1 %v12597_v10  ;;  %v914_v31 = vpop.permute.xlu1 %913 }
 0x1fd   : > { %v1008_v43 = vmul.f32 %v13117_v2, %v914_v31  ;;  %768 = vperm.xlu1 %9956, %v13079_v47   ;;  %2130 = vmatpush1.bf16.msra.mxu1 %v10026_v45  ;;  %v10053_v45 = vld [vmem:[%s15656_s3 + $0x6c] ss:$16 sps:$4 sm:$0xff]  }
 0x1fe   : > { %2131 = vmatprep.subr.bf16.mxu1 %v10027_v11  ;;  %2308 = vmatprep.subr.bf16.mxu0 %v10053_v45  ;;  %v10080_v45 = vld [vmem:[%s15656_s3 + $0x18c] ss:$16 sps:$4 sm:$0xff]  }
 0x1ff   : > { %v1040_v40 = vadd.f32 %v1008_v43, %v844_v50  ;;  %v10050_v43 = vld [vmem:[%s15656_s3 + $0x1e0] ss:$16 sps:$4 sm:$0xff]  }
 0x200   : > { %v918_v60 = vpop.permute.xlu1 %917 }
 0x201   : > { %v10641_v4 = vpop.eup %10640  ;;  %9958 = vset.pattern.permute.xlu1 %v12596_v1  ;;  %v1009_v8 = vmul.f32 %v13117_v2, %v918_v60  ;;  %v1236_v42 = vadd.f32 %v1204_v6, %v1040_v40  ;;  %2132 = vmatpush1.bf16.msra.mxu1 %v10029_v12  ;;  %v10056_v6 = vld [vmem:[%s15656_s3 + $0x8c] ss:$16 sps:$4 sm:$0xff]  }
 0x202   : > { %969 = vperm.xlu1 %9958, %v13079_v47   ;;  %v1295_v9 = vpack.c.bf16 %v10641_v4, %v10639_v57  ;;  %v13342_v47 = vld [vmem:[%s12977_s20 + $0xd8] sm:$0xff]  ;;  %2133 = vmatprep.subr.bf16.mxu1 %v10030_v39 }
 0x203   : > { %v1041_v34 = vadd.f32 %v1009_v8, %v845_v28  ;;  %10642 = vtanh.f32 %v1236_v42  ;;  %v10051_v57 = vld [vmem:[%s15656_s3 + $0x68] ss:$16 sps:$4 sm:$0xff]   ;;  %v10059_v12 = vld [vmem:[%s15656_s3 + $0xac] ss:$16 sps:$4 sm:$0xff]  }
 0x204   : > { %1496 = vmatmul.mubr.bf16.gmra.mrb[20].mxu0 %v1295_v9  ;;  %v10054_v28 = vld [vmem:[%s15656_s3 + $0x88] ss:$16 sps:$4 sm:$0xff]   ;;  %v13420_v9 = vpop.permute.xlu0 %1141 }
 0x205   : > { %v1114_v13 = vpop.permute.xlu1 %1113  ;;  %1505 = vmatprep.mubr.bf16.mxu0 %v15686_v29  ;;  %2134 = vmatpush1.bf16.msra.mxu1 %v10032_v16  ;;  %v10057_v42 = vld [vmem:[%s15656_s3 + $0xa8] ss:$16 sps:$4 sm:$0xff]  }
 0x206   : > { %v1205_v53 = vmul.f32 %v13126_v7, %v1114_v13  ;;  %973 = vperm.xlu1 %9958, %v13342_v47   ;;  %2135 = vmatprep.subr.bf16.mxu1 %v10036_v15 }
 0x207   : > { %2309 = vmatpush1.bf16.msra.mxu0 %v10051_v57 }
 0x208   : > { %v1237_v14 = vadd.f32 %v1205_v53, %v1041_v34  ;;  %2310 = vmatprep.subr.bf16.mxu0 %v10056_v6  ;;  %v724_v34 = vpop.permute.xlu0 %723  ;;  %v10062_v53 = vld [vmem:[%s15656_s3 + $0xcc] ss:$16 sps:$4 sm:$0xff]  }
 0x209   : > { %2136 = vmatpush1.bf16.msra.mxu1 %v10038_v36  ;;  %v817_v16 = vmul.f32 %v13108_v61, %v724_v34  ;;  %v1208_v36 = vmul.f32 %v13126_v7, %v13373_v38  ;;  %v10066_v38 = vld [vmem:[%s15656_s3 + $0x108] ss:$16 sps:$4 sm:$0xff]  }
 0x20a   : > { %10644 = vtanh.f32 %v1237_v14  ;;  %9959 = vset.pattern.permute.xlu1 %v12595_v0  ;;  %v709_v35 = vpop.permute.xlu1 %708  ;;  %2137 = vmatprep.subr.bf16.mxu1 %v10042_v41  ;;  %v10068_v41 = vld [vmem:[%s15656_s3 + $0x10c] ss:$16 sps:$4 sm:$0xff]  }
 0x20b   : > { %1169 = vperm.xlu1 %9959, %v13342_v47   ;;  %v814_v37 = vmul.f32 %v13108_v61, %v709_v35  ;;  %2311 = vmatpush1.bf16.msra.mxu0 %v10054_v28  ;;  %v10063_v35 = vld [vmem:[%s15656_s3 + $0xe8] ss:$16 sps:$4 sm:$0xff]   ;;  %v12226_v28 = vld [vmem:[%s12977_s20 + $0x10] sm:$0xff] }
 0x20c   : > { %2312 = vmatprep.subr.bf16.mxu0 %v10059_v12 }
 0x20d   : > { %v846_v26 = vadd.f32 %v814_v37, %v13113_v63  ;;  %2138 = vmatpush1.bf16.msra.mxu1 %v10044_v46  ;;  %v10643_v5 = vpop.eup %10642  ;;  %v849_v37 = vadd.f32 %v817_v16, %v13113_v63  ;;  %v10084_v16 = vld [vmem:[%s15656_s3 + $0x1c8] ss:$16 sps:$4 sm:$0xff]  }
 0x20e   : > { %2139 = vmatprep.subr.bf16.mxu1 %v10048_v30  ;;  %v734_v30 = vpop.permute.xlu0 %733 }
 0x20f   : > { %9960 = vset.pattern.permute.xlu1 %v12597_v10  ;;  %v922_v22 = vpop.permute.xlu1 %921  ;;  %2313 = vmatpush1.bf16.msra.mxu0 %v10057_v42  ;;  %v10081_v42 = vld [vmem:[%s15656_s3 + $0x1a8] ss:$16 sps:$4 sm:$0xff]  }
 0x210   : > { %v1010_v23 = vmul.f32 %v13117_v2, %v922_v22  ;;  %778 = vperm.xlu1 %9960, %v13098_v56   ;;  %2314 = vmatprep.subr.bf16.mxu0 %v10062_v53 }
 0x211   : > { %2140 = vmatpush1.bf16.msra.mxu1 %v10050_v43  ;;  %v819_v43 = vmul.f32 %v13108_v61, %v734_v30 }
 0x212   : > { %v1042_v31 = vadd.f32 %v1010_v23, %v846_v26 }
 0x213   : > { %v926_v59 = vpop.permute.xlu1 %925 }
 0x214   : > { %v10645_v48 = vpop.eup %10644  ;;  %9961 = vset.pattern.permute.xlu1 %v12596_v1  ;;  %v1011_v49 = vmul.f32 %v13117_v2, %v926_v59  ;;  %v1238_v60 = vadd.f32 %v1206_v32, %v1042_v31  ;;  %v10075_v31 = vld [vmem:[%s15656_s3 + $0x168] ss:$16 sps:$4 sm:$0xff]   ;;  %v12224_v32 = vld [vmem:[%s12977_s20] sm:$0xff] }
 0x215   : > { %977 = vperm.xlu1 %9961, %v13098_v56   ;;  %v1296_v50 = vpack.c.bf16 %v10645_v48, %v10643_v5  ;;  %v10072_v5 = vld [vmem:[%s15656_s3 + $0x148] ss:$16 sps:$4 sm:$0xff]  }
 0x216   : > { %v1043_v56 = vadd.f32 %v1011_v49, %v847_v33  ;;  %10646 = vtanh.f32 %v1238_v60  ;;  %v13488_v33 = vld [vmem:[#allocation16] ss:$0 sm:$0xff] }
 0x217   : > { %1506 = vmatmul.mubr.bf16.gmra.mrb[24].mxu0 %v1296_v50  ;;  %v10078_v50 = vld [vmem:[%s15656_s3 + $0x188] ss:$16 sps:$4 sm:$0xff]  }
 0x218   : > { %v1122_v4 = vpop.permute.xlu1 %1121  ;;  %1515 = vmatprep.mubr.bf16.mxu0 %v15686_v29 }
 0x219   : > { %v1207_v40 = vmul.f32 %v13126_v7, %v1122_v4  ;;  %981 = vperm.xlu1 %9961, %v13120_v3   ;;  %v10083_v4 = vld [vmem:[%s15656_s3 + $0x1ac] ss:$16 sps:$4 sm:$0xff]  }
 0x21b   : > { %v1239_v8 = vadd.f32 %v1207_v40, %v1043_v56  ;;  %v1210_v40 = vmul.f32 %v13126_v7, %v13403_v51  ;;  %v12227_v51 = vld [vmem:[%s12977_s20 + $0x18] sm:$0xff] }
 0x21d   : > { %10648 = vtanh.f32 %v1239_v8  ;;  %9963 = vset.pattern.permute.xlu1 %v12595_v0  ;;  %v719_v11 = vpop.permute.xlu1 %718  ;;  %v851_v8 = vadd.f32 %v13488_v33, %v819_v43 }
 0x21e   : > { %1177 = vperm.xlu1 %9963, %v13120_v3   ;;  %v816_v13 = vmul.f32 %v13108_v61, %v719_v11  ;;  %v10060_v3 = vld [vmem:[%s15656_s3 + $0xc8] ss:$16 sps:$4 sm:$0xff]  }
 0x21f   : > { %2315 = vmatpush1.bf16.msra.mxu0 %v10060_v3 }
 0x220   : > { %v848_v17 = vadd.f32 %v816_v13, %v13113_v63  ;;  %v10647_v18 = vpop.eup %10646 }
 0x222   : > { %9964 = vset.pattern.permute.xlu1 %v12597_v10  ;;  %v930_v39 = vpop.permute.xlu1 %929  ;;  %v10065_v10 = vld [vmem:[%s15656_s3 + $0xec] ss:$16 sps:$4 sm:$0xff]  }
 0x223   : > { %v1012_v14 = vmul.f32 %v13117_v2, %v930_v39  ;;  %788 = vperm.xlu1 %9964, %v13156_v54   ;;  %2316 = vmatprep.subr.bf16.mxu0 %v10065_v10  ;;  %v10089_v10 = vld [vmem:[%s15656_s3 + $0x1ec] ss:$16 sps:$4 sm:$0xff]  }
 0x224   : > { %2317 = vmatpush1.bf16.msra.mxu0 %v10063_v35 }
 0x225   : > { %v1044_v20 = vadd.f32 %v1012_v14, %v848_v17  ;;  %2318 = vmatprep.subr.bf16.mxu0 %v10068_v41  ;;  %v10086_v14 = vld [vmem:[%s15656_s3 + $0x1cc] ss:$16 sps:$4 sm:$0xff]  }
 0x226   : > { %v934_v19 = vpop.permute.xlu1 %933  ;;  %v12228_v17 = vld [vmem:[%s12977_s20 + $0x28] sm:$0xff] }
 0x227   : > { %v10649_v15 = vpop.eup %10648  ;;  %9965 = vset.pattern.permute.xlu1 %v12596_v1  ;;  %v1013_v21 = vmul.f32 %v13117_v2, %v934_v19  ;;  %v1240_v23 = vadd.f32 %v1208_v36, %v1044_v20  ;;  %v12229_v19 = vld [vmem:[%s12977_s20 + $0x38] sm:$0xff]  ;;  %v744_v36 = vpop.permute.xlu0 %743 }
 0x228   : > { %985 = vperm.xlu1 %9965, %v13156_v54   ;;  %v1297_v22 = vpack.c.bf16 %v10649_v15, %v10647_v18  ;;  %2319 = vmatpush1.bf16.msra.mxu0 %v10066_v38  ;;  %v10071_v54 = vld [vmem:[%s15656_s3 + $0x12c] ss:$16 sps:$4 sm:$0xff]   ;;  %v10087_v18 = vld [vmem:[%s15656_s3 + $0x1e8] ss:$16 sps:$4 sm:$0xff]  }
 0x229   : > { %v1045_v63 = vadd.f32 %v1013_v21, %v849_v37  ;;  %10650 = vtanh.f32 %v1240_v23  ;;  %2320 = vmatprep.subr.bf16.mxu0 %v10071_v54  ;;  %v821_v21 = vmul.f32 %v13108_v61, %v744_v36 }
 0x22a   : > { %1516 = vmatmul.mubr.bf16.gmra.mrb[28].mxu0 %v1297_v22  ;;  %v12230_v22 = vld [vmem:[%s12977_s20 + $0x48] sm:$0xff] }
 0x22b   : > { %v1130_v1 = vpop.permute.xlu1 %1129  ;;  %1525 = vmatprep.mubr.bf16.mxu0 %v15686_v29  ;;  %v754_v38 = vpop.permute.xlu0 %753 }
 0x22c   : > { %v1209_v46 = vmul.f32 %v13126_v7, %v1130_v1  ;;  %989 = vperm.xlu1 %9965, %v13148_v44   ;;  %2321 = vmatpush1.bf16.msra.mxu0 %v10069_v25 }
 0x22d   : > { %2322 = vmatprep.subr.bf16.mxu0 %v10074_v27  ;;  %v12231_v27 = vld [vmem:[%s12977_s20 + $0x58] sm:$0xff] }
 0x22e   : > { %v1241_v24 = vadd.f32 %v1209_v46, %v1045_v63  ;;  %v1212_v46 = vmul.f32 %v13126_v7, %v13420_v9  ;;  %v12232_v9 = vld [vmem:[%s12977_s20 + $0x68] sm:$0xff] }
 0x22f   : > { %v764_v30 = vpop.permute.xlu0 %763 }
 0x230   : > { %10652 = vtanh.f32 %v1241_v24  ;;  %9967 = vset.pattern.permute.xlu1 %v12595_v0  ;;  %v729_v26 = vpop.permute.xlu1 %728  ;;  %2323 = vmatpush1.bf16.msra.mxu0 %v10072_v5  ;;  %v10077_v0 = vld [vmem:[%s15656_s3 + $0x16c] ss:$16 sps:$4 sm:$0xff]   ;;  %v853_v24 = vadd.f32 %v13488_v33, %v821_v21  ;;  %v825_v36 = vmul.f32 %v13108_v61, %v764_v30  ;;  %v1289_v30 = vld [vmem:[#allocation16 + $0x1] ss:$8 sm:$0x3] }
 0x231   : > { %1185 = vperm.xlu1 %9967, %v13148_v44   ;;  %v818_v59 = vmul.f32 %v13108_v61, %v729_v26  ;;  %2324 = vmatprep.subr.bf16.mxu0 %v10077_v0 }
 0x233   : > { %v850_v49 = vadd.f32 %v13488_v33, %v818_v59  ;;  %v10651_v57 = vpop.eup %10650  ;;  %v13539_v43 = vpop.permute.xlu0 %773 }
 0x234   : > { %2325 = vmatpush1.bf16.msra.mxu0 %v10075_v31 }
 0x235   : > { %v938_v48 = vpop.permute.xlu1 %937  ;;  %9968 = vset.pattern.permute.xlu1 %v15686_v29  ;;  %2326 = vmatprep.subr.bf16.mxu0 %v10080_v45 }
 0x236   : > { %v1014_v44 = vmul.f32 %v13117_v2, %v938_v48  ;;  %3538 = vperm.xlu1 %9968, %v12224_v32   ;;  %v12233_v32 = vld [vmem:[%s12977_s20 + $0x78] sm:$0xff] }
 0x238   : > { %v1046_v6 = vadd.f32 %v1014_v44, %v850_v49  ;;  %2327 = vmatpush1.bf16.msra.mxu0 %v10078_v50  ;;  %v12234_v50 = vld [vmem:[%s12977_s20 + $0x88] sm:$0xff] }
 0x239   : > { %v942_v60 = vpop.permute.xlu1 %941  ;;  %2328 = vmatprep.subr.bf16.mxu0 %v10083_v4  ;;  %v1150_v4 = vpop.permute.xlu0 %1149 }
 0x23a   : > { %v10653_v56 = vpop.eup %10652  ;;  %3546 = vperm.xlu1 %9968, %v12226_v28   ;;  %v1015_v11 = vmul.f32 %v13117_v2, %v942_v60  ;;  %v1242_v13 = vadd.f32 %v1210_v40, %v1046_v6  ;;  %v823_v60 = vmul.f32 %v13108_v61, %v754_v38  ;;  %v12235_v40 = vld [vmem:[%s12977_s20 + $0x98] sm:$0xff] }
 0x23b   : > { %v1298_v12 = vpack.c.bf16 %v10653_v56, %v10651_v57 }
 0x23c   : > { %v1047_v53 = vadd.f32 %v1015_v11, %v851_v8  ;;  %2329 = vmatpush1.bf16.msra.mxu0 %v10081_v42  ;;  %10654 = vtanh.f32 %v1242_v13  ;;  %v855_v42 = vadd.f32 %v13488_v33, %v823_v60 }
 0x23d   : > { %1526 = vmatmul.mubr.bf16.gmra.mrb[32].mxu0 %v1298_v12  ;;  %2330 = vmatprep.subr.bf16.mxu0 %v10086_v14  ;;  %v1214_v12 = vmul.f32 %v13126_v7, %v1150_v4 }
 0x23e   : > { %v1138_v34 = vpop.permute.xlu1 %1137  ;;  %1535 = vmatprep.mubr.bf16.mxu0 %v15686_v29  ;;  %3550 = vperm.xlu1 %9968, %v12227_v51   ;;  %v12236_v51 = vld [vmem:[%s12977_s20 + $0xa8] sm:$0xff] }
 0x23f   : > { %v1211_v39 = vmul.f32 %v13126_v7, %v1138_v34 }
 0x240   : > { %2331 = vmatpush1.bf16.msra.mxu0 %v10084_v16  ;;  %v12237_v16 = vld [vmem:[%s12977_s20 + $0xb8] sm:$0xff] }
 0x241   : > { %v1243_v3 = vadd.f32 %v1211_v39, %v1047_v53  ;;  %2332 = vmatprep.subr.bf16.mxu0 %v10089_v10  ;;  %v12238_v10 = vld [vmem:[%s12977_s20 + $0xc8] sm:$0xff] }
 0x242   : > { %3558 = vperm.xlu1 %9968, %v12228_v17  }
 0x243   : > { %10656 = vtanh.f32 %v1243_v3  ;;  %v739_v35 = vpop.permute.xlu1 %738 }
 0x244   : > { %v820_v15 = vmul.f32 %v13108_v61, %v739_v35  ;;  %2333 = vmatpush1.bf16.msra.mxu0 %v10087_v18 }
 0x246   : > { %3566 = vperm.xlu1 %9968, %v12229_v19   ;;  %v852_v41 = vadd.f32 %v13488_v33, %v820_v15  ;;  %v10655_v23 = vpop.eup %10654 }
 0x248   : > { %v946_v20 = vpop.permute.xlu1 %945 }
 0x249   : > { %v1016_v37 = vmul.f32 %v13117_v2, %v946_v20  ;;  %v1158_v20 = vpop.permute.xlu0 %1157 }
 0x24a   : > { %3574 = vperm.xlu1 %9968, %v12230_v22  }
 0x24b   : > { %v1048_v54 = vadd.f32 %v1016_v37, %v852_v41  ;;  %v12239_v41 = vld [vmem:[%s12977_s20 + $0xe8] sm:$0xff] }
 0x24c   : > { %v950_v1 = vpop.permute.xlu1 %949 }
 0x24d   : > { %v10657_v63 = vpop.eup %10656  ;;  %v1017_v25 = vmul.f32 %v13117_v2, %v950_v1  ;;  %v1244_v5 = vadd.f32 %v1212_v46, %v1048_v54  ;;  %v1216_v1 = vmul.f32 %v13126_v7, %v1158_v20  ;;  %v12240_v54 = vld [vmem:[%s12977_s20 + $0xf8] sm:$0xff] }
 0x24e   : > { %v1299_v26 = vpack.c.bf16 %v10657_v63, %v10655_v23  ;;  %3582 = vperm.xlu1 %9968, %v12231_v27   ;;  %v857_v63 = vadd.f32 %v13488_v33, %v825_v36 }
 0x24f   : > { %v1049_v48 = vadd.f32 %v1017_v25, %v853_v24  ;;  %10658 = vtanh.f32 %v1244_v5 }
 0x250   : > { %1536 = vmatmul.mubr.bf16.gmra.mrb[36].mxu0 %v1299_v26 }
 0x251   : > { %v1146_v59 = vpop.permute.xlu1 %1145  ;;  %1545 = vmatprep.mubr.bf16.mxu0 %v15686_v29 }
 0x252   : > { %v1213_v0 = vmul.f32 %v13126_v7, %v1146_v59  ;;  %3590 = vperm.xlu1 %9968, %v12232_v9   ;;  %v13569_v9 = vrot.slane %v1289_v30, %v13095_v55 }
 0x254   : > { %v1245_v44 = vadd.f32 %v1213_v0, %v1049_v48 }
 0x256   : > { %10660 = vtanh.f32 %v1245_v44  ;;  %v749_v31 = vpop.permute.xlu1 %748  ;;  %3598 = vperm.xlu1 %9968, %v12233_v32   ;;  %v1166_v32 = vpop.permute.xlu0 %1165 }
 0x257   : > { %v822_v49 = vmul.f32 %v13108_v61, %v749_v31  ;;  %v13573_v31 = vrot.slane %v1289_v30, %v13102_v58 }
 0x259   : > { %v854_v56 = vadd.f32 %v13488_v33, %v822_v49  ;;  %v10659_v6 = vpop.eup %10658 }
 0x25a   : > { %3606 = vperm.xlu1 %9968, %v12234_v50  }
 0x25b   : > { %v954_v45 = vpop.permute.xlu1 %953 }
 0x25c   : > { %v1018_v57 = vmul.f32 %v13117_v2, %v954_v45 }
 0x25e   : > { %3614 = vperm.xlu1 %9968, %v12235_v40   ;;  %v1050_v11 = vadd.f32 %v1018_v57, %v854_v56  ;;  %v827_v57 = vmul.f32 %v13108_v61, %v13539_v43 }
 0x25f   : > { %v958_v28 = vpop.permute.xlu1 %957 }
 0x260   : > { %v10661_v8 = vpop.eup %10660  ;;  %v1019_v13 = vmul.f32 %v13117_v2, %v958_v28  ;;  %v1246_v53 = vadd.f32 %v1214_v12, %v1050_v11  ;;  %v1218_v28 = vmul.f32 %v13126_v7, %v1166_v32 }
 0x261   : > { %v1300_v34 = vpack.c.bf16 %v10661_v8, %v10659_v6 }
 0x262   : > { %3622 = vperm.xlu1 %9968, %v12236_v51   ;;  %v1051_v3 = vadd.f32 %v1019_v13, %v855_v42  ;;  %10662 = vtanh.f32 %v1246_v53  ;;  %v859_v51 = vadd.f32 %v13488_v33, %v827_v57 }
 0x263   : > { %1546 = vmatmul.mubr.bf16.gmra.mrb[40].mxu0 %v1300_v34 }
 0x264   : > { %v1154_v39 = vpop.permute.xlu1 %1153  ;;  %1555 = vmatprep.mubr.bf16.mxu0 %v15686_v29 }
 0x265   : > { %v1215_v14 = vmul.f32 %v13126_v7, %v1154_v39 }
 0x266   : > { %3630 = vperm.xlu1 %9968, %v12237_v16  }
 0x267   : > { %v1247_v17 = vadd.f32 %v1215_v14, %v1051_v3 }
 0x269   : > { %10664 = vtanh.f32 %v1247_v17  ;;  %v759_v35 = vpop.permute.xlu1 %758 }
 0x26a   : > { %3638 = vperm.xlu1 %9968, %v12238_v10   ;;  %v824_v18 = vmul.f32 %v13108_v61, %v759_v35 }
 0x26c   : > { %v856_v37 = vadd.f32 %v13488_v33, %v824_v18  ;;  %v10663_v21 = vpop.eup %10662 }
 0x26e   : > { %v962_v19 = vpop.permute.xlu1 %961  ;;  %3646 = vperm.xlu1 %9968, %v13342_v47  }
 0x26f   : > { %v1020_v15 = vmul.f32 %v13117_v2, %v962_v19 }
 0x271   : > { %v1052_v23 = vadd.f32 %v1020_v15, %v856_v37  ;;  %v1174_v15 = vpop.permute.xlu0 %1173 }
 0x272   : > { %v966_v22 = vpop.permute.xlu1 %965  ;;  %3654 = vperm.xlu1 %9968, %v12239_v41  }
 0x273   : > { %v10665_v38 = vpop.eup %10664  ;;  %v1021_v47 = vmul.f32 %v13117_v2, %v966_v22  ;;  %v1248_v24 = vadd.f32 %v1216_v1, %v1052_v23 }
 0x274   : > { %v1301_v46 = vpack.c.bf16 %v10665_v38, %v10663_v21 }
 0x275   : > { %v1053_v26 = vadd.f32 %v1021_v47, %v857_v63  ;;  %10666 = vtanh.f32 %v1248_v24  ;;  %v784_v23 = vpop.permute.xlu0 %783 }
 0x276   : > { %1556 = vmatmul.mubr.bf16.gmra.mrb[44].mxu0 %v1301_v46  ;;  %3662 = vperm.xlu1 %9968, %v12240_v54  }
 0x277   : > { %v1162_v25 = vpop.permute.xlu1 %1161  ;;  %1565 = vmatprep.mubr.bf16.mxu0 %v15686_v29 }
 0x278   : > { %v1217_v27 = vmul.f32 %v13126_v7, %v1162_v25  ;;  %v829_v25 = vmul.f32 %v13108_v61, %v784_v23 }
 0x27a   : > { %v1249_v5 = vadd.f32 %v1217_v27, %v1053_v26 }
 0x27c   : > { %10668 = vtanh.f32 %v1249_v5  ;;  %v769_v59 = vpop.permute.xlu1 %768 }
 0x27d   : > { %v826_v48 = vmul.f32 %v13108_v61, %v769_v59 }
 0x27f   : > { %v858_v49 = vadd.f32 %v13488_v33, %v826_v48  ;;  %v10667_v45 = vpop.eup %10666 }
 0x281   : > { %v970_v0 = vpop.permute.xlu1 %969 }
 0x282   : > { %v1022_v44 = vmul.f32 %v13117_v2, %v970_v0  ;;  %v1220_v0 = vmul.f32 %v13126_v7, %v1174_v15 }
 0x284   : > { %v1447_v50 = vpop.f32.mrb[0].mxu0  ;;  %v1054_v6 = vadd.f32 %v1022_v44, %v858_v49  ;;  %v861_v44 = vadd.f32 %v13488_v33, %v829_v25 }
 0x285   : > { %v1448_v60 = vadd.f32 %v1447_v50, %v13569_v9  ;;  %v1449_v4 = vpop.f32.mrb[1].mxu0  ;;  %v974_v56 = vpop.permute.xlu1 %973 }
 0x286   : > { %v10669_v40 = vpop.eup %10668  ;;  %v1450_v8 = vadd.f32 %v1449_v4, %v13573_v31  ;;  %v1451_v11 = vpop.f32.mrb[2].mxu0  ;;  %v1023_v12 = vmul.f32 %v13117_v2, %v974_v56  ;;  %v1250_v53 = vadd.f32 %v1218_v28, %v1054_v6 }
 0x287   : > { %v1452_v42 = vadd.f32 %v1451_v11, %v13569_v9  ;;  %v1453_v13 = vpop.f32.mrb[3].mxu0  ;;  %v1302_v34 = vpack.c.bf16 %v10669_v40, %v10667_v45  ;;  %10670 = vtanh.f32 %v1448_v60 }
 0x288   : > { %v1454_v43 = vadd.f32 %v1453_v13, %v13573_v31  ;;  %10672 = vtanh.f32 %v1450_v8  ;;  %v1055_v3 = vadd.f32 %v1023_v12, %v859_v51 }
 0x289   : > { %1566 = vmatmul.mubr.bf16.gmra.mrb[48].mxu0 %v1302_v34  ;;  %10674 = vtanh.f32 %v1452_v42 }
 0x28a   : > { %v1170_v39 = vpop.permute.xlu1 %1169  ;;  %1575 = vmatprep.mubr.bf16.mxu0 %v15686_v29  ;;  %10676 = vtanh.f32 %v1454_v43 }
 0x28b   : > { %v1219_v14 = vmul.f32 %v13126_v7, %v1170_v39  ;;  %10678 = vtanh.f32 %v1250_v53 }
 0x28c   : > { %v1457_v16 = vpop.f32.mrb[4].mxu0 }
 0x28d   : > { %v1251_v17 = vadd.f32 %v1219_v14, %v1055_v3  ;;  %v1458_v35 = vadd.f32 %v1457_v16, %v13569_v9  ;;  %v1459_v10 = vpop.f32.mrb[5].mxu0  ;;  %v794_v3 = vpop.permute.xlu0 %793 }
 0x28e   : > { %v1460_v18 = vadd.f32 %v1459_v10, %v13573_v31  ;;  %v1461_v19 = vpop.f32.mrb[6].mxu0 }
 0x28f   : > { %10680 = vtanh.f32 %v1251_v17  ;;  %v1462_v36 = vadd.f32 %v1461_v19, %v13569_v9  ;;  %v1463_v20 = vpop.f32.mrb[7].mxu0  ;;  %v779_v37 = vpop.permute.xlu1 %778 }
 0x290   : > { %10682 = vtanh.f32 %v1458_v35  ;;  %v1464_v21 = vadd.f32 %v1463_v20, %v13573_v31  ;;  %v828_v41 = vmul.f32 %v13108_v61, %v779_v37 }
 0x291   : > { %10684 = vtanh.f32 %v1460_v18  ;;  %v10671_v22 = vpop.eup %10670  ;;  %v1182_v35 = vpop.permute.xlu0 %1181  ;;  %v10092_v18 = vld [vmem:[#allocation7 + $0x4] ss:$8 sps:$4 sm:$0xff]  }
 0x292   : > { %10686 = vtanh.f32 %v1462_v36  ;;  %v10673_v38 = vpop.eup %10672  ;;  %v860_v24 = vadd.f32 %v13488_v33, %v828_v41  ;;  %v831_v36 = vmul.f32 %v13108_v61, %v794_v3  ;;  %v1222_v37 = vmul.f32 %v13126_v7, %v1182_v35  ;;  %3890 = vmatprep.subr.bf16.mxu0 %v10092_v18  ;;  %v10095_v3 = vld [vmem:[#allocation7 + $0x14] ss:$8 sps:$4 sm:$0xff]  }
 0x293   : > { %10688 = vtanh.f32 %v1464_v21  ;;  %v10675_v1 = vpop.eup %10674 }
 0x294   : > { %v978_v63 = vpop.permute.xlu1 %977  ;;  %v10677_v47 = vpop.eup %10676  ;;  %v13593_v54 = vpack.c.bf16 %v10675_v1, %v10671_v22 }
 0x295   : > { %v1024_v46 = vmul.f32 %v13117_v2, %v978_v63  ;;  %v13597_v26 = vpack.c.bf16 %v10677_v47, %v10673_v38  ;;  %v10679_v27 = vpop.eup %10678  ;;  %v863_v47 = vadd.f32 %v13488_v33, %v831_v36 }
 0x297   : > { %v1056_v5 = vadd.f32 %v1024_v46, %v860_v24  ;;  %2141 = vmatprep.mubr.bf16.mxu1 %v13597_v26 }
 0x298   : > { %v982_v59 = vpop.permute.xlu1 %981  ;;  %2142 = vmatmul.mubr.bf16.vlgmr.msra.gmra.mrb[0].mxu1 %v13593_v54 }
 0x299   : > { %v10681_v30 = vpop.eup %10680  ;;  %v1025_v32 = vmul.f32 %v13117_v2, %v982_v59  ;;  %v1252_v57 = vadd.f32 %v1220_v0, %v1056_v5 }
 0x29a   : > { %v10683_v48 = vpop.eup %10682  ;;  %v1303_v49 = vpack.c.bf16 %v10681_v30, %v10679_v27 }
 0x29b   : > { %v10685_v50 = vpop.eup %10684  ;;  %v1057_v40 = vadd.f32 %v1025_v32, %v861_v44  ;;  %10690 = vtanh.f32 %v1252_v57 }
 0x29c   : > { %v10687_v45 = vpop.eup %10686  ;;  %1576 = vmatmul.mubr.bf16.gmra.mrb[52].mxu0 %v1303_v49 }
 0x29d   : > { %v10689_v60 = vpop.eup %10688  ;;  %v1178_v4 = vpop.permute.xlu1 %1177  ;;  %v13604_v56 = vpack.c.bf16 %v10687_v45, %v10683_v48  ;;  %1585 = vmatprep.mubr.bf16.mxu0 %v15686_v29 }
 0x29e   : > { %v1221_v6 = vmul.f32 %v13126_v7, %v1178_v4  ;;  %v1467_v28 = vpop.f32.mrb[8].mxu0  ;;  %v13608_v8 = vpack.c.bf16 %v10689_v60, %v10685_v50 }
 0x29f   : > { %v1468_v11 = vadd.f32 %v1467_v28, %v13569_v9  ;;  %v1469_v12 = vpop.f32.mrb[9].mxu0 }
 0x2a0   : > { %v1253_v42 = vadd.f32 %v1221_v6, %v1057_v40  ;;  %v1470_v13 = vadd.f32 %v1469_v12, %v13573_v31  ;;  %2151 = vmatprep.mubr.bf16.mxu1 %v13608_v8  ;;  %v1471_v34 = vpop.f32.mrb[10].mxu0 }
 0x2a1   : > { %10692 = vtanh.f32 %v1468_v11  ;;  %v1472_v43 = vadd.f32 %v1471_v34, %v13569_v9  ;;  %2152 = vmatmul.mubr.bf16.gmra.mrb[4].mxu1 %v13604_v56  ;;  %v1473_v51 = vpop.f32.mrb[11].mxu0 }
 0x2a2   : > { %10694 = vtanh.f32 %v1253_v42  ;;  %v1474_v53 = vadd.f32 %v1473_v51, %v13573_v31  ;;  %v789_v39 = vpop.permute.xlu1 %788 }
 0x2a3   : > { %10696 = vtanh.f32 %v1470_v13  ;;  %v830_v14 = vmul.f32 %v13108_v61, %v789_v39 }
 0x2a4   : > { %10698 = vtanh.f32 %v1472_v43 }
 0x2a5   : > { %10700 = vtanh.f32 %v1474_v53  ;;  %v862_v10 = vadd.f32 %v13488_v33, %v830_v14  ;;  %v10691_v19 = vpop.eup %10690  ;;  %v10090_v53 = vld [vmem:[#allocation7] ss:$8 sps:$4 sm:$0xff]  }
 0x2a6   : > { %v10096_v14 = vld [vmem:[#allocation7 + $0x20] ss:$8 sps:$4 sm:$0xff]  }
 0x2a7   : > { %v986_v16 = vpop.permute.xlu1 %985 }
 0x2a8   : > { %v1026_v17 = vmul.f32 %v13117_v2, %v986_v16  ;;  %v10098_v16 = vld [vmem:[#allocation7 + $0x24] ss:$8 sps:$4 sm:$0xff]  }
 0x2aa   : > { %v1058_v20 = vadd.f32 %v1026_v17, %v862_v10 }
 0x2ab   : > { %v10693_v15 = vpop.eup %10692  ;;  %v990_v21 = vpop.permute.xlu1 %989 }
 0x2ac   : > { %v10695_v22 = vpop.eup %10694  ;;  %v1027_v38 = vmul.f32 %v13117_v2, %v990_v21  ;;  %v1254_v46 = vadd.f32 %v1222_v37, %v1058_v20 }
 0x2ad   : > { %v10697_v41 = vpop.eup %10696  ;;  %v1304_v23 = vpack.c.bf16 %v10695_v22, %v10691_v19 }
 0x2ae   : > { %v10699_v1 = vpop.eup %10698  ;;  %v1059_v27 = vadd.f32 %v1027_v38, %v863_v47  ;;  %10702 = vtanh.f32 %v1254_v46  ;;  %v10099_v38 = vld [vmem:[#allocation7 + $0x30] ss:$8 sps:$4 sm:$0xff]   ;;  %v13649_v47 = vpop.permute.xlu0 %3542 }
 0x2af   : > { %v10701_v63 = vpop.eup %10700  ;;  %1586 = vmatmul.mubr.bf16.gmra.mrb[56].mxu0 %v1304_v23  ;;  %v13623_v24 = vpack.c.bf16 %v10699_v1, %v10693_v15  ;;  %v10101_v23 = vld [vmem:[#allocation7 + $0x34] ss:$8 sps:$4 sm:$0xff]  }
 0x2b0   : > { %v1186_v25 = vpop.permute.xlu1 %1185  ;;  %v1677_v61 = vpack.c.bf16 %v10701_v63, %v10697_v41  ;;  %1595 = vmatprep.mubr.bf16.mxu0 %v15686_v29 }
 0x2b1   : > { %v1223_v5 = vmul.f32 %v13126_v7, %v1186_v25  ;;  %v1477_v59 = vpop.f32.mrb[12].mxu0 }
 0x2b2   : > { %v1478_v30 = vadd.f32 %v1477_v59, %v13569_v9  ;;  %2161 = vmatprep.mubr.bf16.mxu1 %v1677_v61  ;;  %v1479_v2 = vpop.f32.mrb[13].mxu0 }
 0x2b3   : > { %v1255_v48 = vadd.f32 %v1223_v5, %v1059_v27  ;;  %v1480_v33 = vadd.f32 %v1479_v2, %v13573_v31  ;;  %2162 = vmatmul.mubr.bf16.gmra.mrb[8].mxu1 %v13623_v24  ;;  %v1481_v0 = vpop.f32.mrb[14].mxu0 }
 0x2b4   : > { %10704 = vtanh.f32 %v1478_v30  ;;  %v1482_v44 = vadd.f32 %v1481_v0, %v13569_v9  ;;  %v1483_v32 = vpop.f32.mrb[15].mxu0  ;;  %v13653_v30 = vpop.permute.xlu0 %3554 }
 0x2b5   : > { %10706 = vtanh.f32 %v1255_v48  ;;  %v1484_v49 = vadd.f32 %v1483_v32, %v13573_v31  ;;  %v13645_v41 = vpop.permute.xlu1 %3538 }
 0x2b6   : > { %10708 = vtanh.f32 %v1480_v33 }
 0x2b7   : > { %10710 = vtanh.f32 %v1482_v44 }
 0x2b8   : > { %10712 = vtanh.f32 %v1484_v49  ;;  %v10703_v7 = vpop.eup %10702 }
 0x2b9   : > { %v13647_v63 = vpop.permute.xlu1 %3546 }
 0x2bd   : > { %v13651_v5 = vpop.permute.xlu1 %3550 }
 0x2be   : > { %v10705_v50 = vpop.eup %10704 }
 0x2bf   : > { %v10707_v45 = vpop.eup %10706 }
 0x2c0   : > { %v10709_v57 = vpop.eup %10708  ;;  %v1305_v60 = vpack.c.bf16 %v10707_v45, %v10703_v7 }
 0x2c1   : > { %v10711_v4 = vpop.eup %10710  ;;  %v13657_v44 = vpop.permute.xlu1 %3558 }
 0x2c2   : > { %v10713_v40 = vpop.eup %10712  ;;  %1596 = vmatmul.mubr.bf16.gmra.mrb[60].mxu0 %v1305_v60  ;;  %v1678_v6 = vpack.c.bf16 %v10711_v4, %v10705_v50  ;;  %v13661_v50 = vpop.permute.xlu0 %3562  ;;  %v10105_v60 = vld [vmem:[#allocation5] ss:$8 sps:$4 sm:$0xff]  }
 0x2c3   : > { %2334 = vmatprep.mubr.bf16.mxu0 %v13597_v26  ;;  %v1679_v28 = vpack.c.bf16 %v10713_v40, %v10709_v57  ;;  %v10093_v26 = vld [vmem:[#allocation7 + $0x10] ss:$8 sps:$4 sm:$0xff]   ;;  %v10107_v57 = vld [vmem:[#allocation5 + $0x4] ss:$8 sps:$4 sm:$0xff]   ;;  %v10102_v4 = vld [vmem:[#allocation7 + $0x40] ss:$8 sps:$4 sm:$0xff]  }
 0x2c4   : > { %v1487_v11 = vpop.f32.mrb[16].mxu0  ;;  %3084 = vmatprep.subr.bf16.mxu1 %v10107_v57  ;;  %v10104_v40 = vld [vmem:[#allocation7 + $0x44] ss:$8 sps:$4 sm:$0xff]  }
 0x2c5   : > { %v1488_v12 = vadd.f32 %v1487_v11, %v13569_v9  ;;  %2171 = vmatprep.mubr.bf16.mxu1 %v1679_v28  ;;  %v1489_v42 = vpop.f32.mrb[17].mxu0  ;;  %v13663_v45 = vpop.permute.xlu1 %3566  ;;  %3085 = vmatpush1.bf16.msra.mxu1 %v10105_v60  ;;  %v10110_v11 = vld [vmem:[#allocation5 + $0x14] ss:$8 sps:$4 sm:$0xff]   ;;  %v10128_v57 = vld [vmem:[#allocation5 + $0x64] ss:$8 sps:$4 sm:$0xff]  }
 0x2c6   : > { %v1490_v13 = vadd.f32 %v1489_v42, %v13573_v31  ;;  %2172 = vmatmul.mubr.bf16.gmra.mrb[12].mxu1 %v1678_v6  ;;  %v1491_v34 = vpop.f32.mrb[18].mxu0  ;;  %3086 = vmatprep.subr.bf16.mxu1 %v10110_v11 }
 0x2c7   : > { %10714 = vtanh.f32 %v1488_v12  ;;  %v1492_v43 = vadd.f32 %v1491_v34, %v13569_v9  ;;  %v1493_v51 = vpop.f32.mrb[19].mxu0  ;;  %v10108_v12 = vld [vmem:[#allocation5 + $0x10] ss:$8 sps:$4 sm:$0xff]  }
 0x2c8   : > { %10716 = vtanh.f32 %v1490_v13  ;;  %v1494_v39 = vadd.f32 %v1493_v51, %v13573_v31  ;;  %v10113_v51 = vld [vmem:[#allocation5 + $0x24] ss:$8 sps:$4 sm:$0xff]  }
 0x2c9   : > { %10718 = vtanh.f32 %v1492_v43  ;;  %3087 = vmatpush1.bf16.msra.mxu1 %v10108_v12 }
 0x2ca   : > { %10720 = vtanh.f32 %v1494_v39  ;;  %2335 = vmatmul.mubr.bf16.vlgmr.msra.gmra.mrb[64].mxu0 %v13593_v54  ;;  %v10111_v39 = vld [vmem:[#allocation5 + $0x20] ss:$8 sps:$4 sm:$0xff]   ;;  %3088 = vmatprep.subr.bf16.mxu1 %v10113_v51 }
 0x2cb   : > { %2344 = vmatprep.mubr.bf16.mxu0 %v13608_v8  ;;  %3891 = vmatpush1.bf16.msra.mxu0 %v10090_v53 }
 0x2cc   : > { %3892 = vmatprep.subr.bf16.mxu0 %v10095_v3 }
 0x2cd   : > { %3089 = vmatpush1.bf16.msra.mxu1 %v10111_v39  ;;  %v10129_v39 = vld [vmem:[#allocation5 + $0x70] ss:$8 sps:$4 sm:$0xff]  }
 0x2cf   : > { %3893 = vmatpush1.bf16.msra.mxu0 %v10093_v26 }
 0x2d0   : > { %3894 = vmatprep.subr.bf16.mxu0 %v10098_v16  ;;  %v10116_v16 = vld [vmem:[#allocation5 + $0x34] ss:$8 sps:$4 sm:$0xff]  }
 0x2d1   : > { %v10715_v17 = vpop.eup %10714  ;;  %3090 = vmatprep.subr.bf16.mxu1 %v10116_v16 }
 0x2d2   : > { %v10717_v35 = vpop.eup %10716  ;;  %2345 = vmatmul.mubr.bf16.gmra.mrb[68].mxu0 %v13604_v56 }
 0x2d3   : > { %v10719_v10 = vpop.eup %10718  ;;  %2354 = vmatprep.mubr.bf16.mxu0 %v1677_v61  ;;  %3895 = vmatpush1.bf16.msra.mxu0 %v10096_v14  ;;  %v3535_v14 = vld [vmem:[%s15658_s5] sm:$0x1] }
 0x2d4   : > { %v10721_v18 = vpop.eup %10720  ;;  %v1680_v19 = vpack.c.bf16 %v10719_v10, %v10715_v17  ;;  %3896 = vmatprep.subr.bf16.mxu0 %v10101_v23  ;;  %v10119_v10 = vld [vmem:[#allocation7 + $0x54] ss:$8 sps:$4 sm:$0xff]  }
 0x2d5   : > { %v1681_v15 = vpack.c.bf16 %v10721_v18, %v10717_v35  ;;  %v10114_v35 = vld [vmem:[#allocation5 + $0x30] ss:$8 sps:$4 sm:$0xff]  }
 0x2d6   : > { %3091 = vmatpush1.bf16.msra.mxu1 %v10114_v35 }
 0x2d7   : > { %v1497_v54 = vpop.f32.mrb[20].mxu0  ;;  %2181 = vmatprep.mubr.bf16.mxu1 %v1681_v15  ;;  %3897 = vmatpush1.bf16.msra.mxu0 %v10099_v38 }
 0x2d8   : > { %v1498_v8 = vadd.f32 %v1497_v54, %v13569_v9  ;;  %v1499_v36 = vpop.f32.mrb[21].mxu0  ;;  %2182 = vmatmul.mubr.bf16.gmra.mrb[16].mxu1 %v1680_v19  ;;  %3898 = vmatprep.subr.bf16.mxu0 %v10104_v40  ;;  %v10122_v54 = vld [vmem:[#allocation5 + $0x44] ss:$8 sps:$4 sm:$0xff]  }
 0x2d9   : > { %v1500_v20 = vadd.f32 %v1499_v36, %v13573_v31  ;;  %v1501_v37 = vpop.f32.mrb[22].mxu0  ;;  %v3536_v36 = vunpack.c.l.bf16 %v3535_v14  ;;  %3092 = vmatprep.subr.bf16.mxu1 %v10122_v54 }
 0x2da   : > { %10722 = vtanh.f32 %v1498_v8  ;;  %v1502_v21 = vadd.f32 %v1501_v37, %v13569_v9  ;;  %v1503_v22 = vpop.f32.mrb[23].mxu0  ;;  %2355 = vmatmul.mubr.bf16.gmra.mrb[72].mxu0 %v13623_v24 }
 0x2db   : > { %10724 = vtanh.f32 %v1500_v20  ;;  %v1504_v56 = vadd.f32 %v1503_v22, %v13573_v31  ;;  %2364 = vmatprep.mubr.bf16.mxu0 %v1679_v28  ;;  %v13667_v28 = vpop.permute.xlu1 %3574  ;;  %3899 = vmatpush1.bf16.msra.mxu0 %v10102_v4  ;;  %v10126_v4 = vld [vmem:[#allocation5 + $0x60] ss:$8 sps:$4 sm:$0xff]  }
 0x2dc   : > { %10726 = vtanh.f32 %v1502_v21  ;;  %3900 = vmatprep.subr.bf16.mxu0 %v10119_v10  ;;  %v10134_v10 = vld [vmem:[#allocation7 + $0x64] ss:$8 sps:$4 sm:$0xff]  }
 0x2dd   : > { %10728 = vtanh.f32 %v1504_v56  ;;  %v10120_v56 = vld [vmem:[#allocation5 + $0x40] ss:$8 sps:$4 sm:$0xff]  }
 0x2de   : > { %3093 = vmatpush1.bf16.msra.mxu1 %v10120_v56 }
 0x2df   : > { %v13671_v43 = vpop.permute.xlu1 %3582 }
 0x2e2   : > { %2365 = vmatmul.mubr.bf16.gmra.mrb[76].mxu0 %v1678_v6  ;;  %v13665_v6 = vpop.permute.xlu0 %3570 }
 0x2e3   : > { %2374 = vmatprep.mubr.bf16.mxu0 %v1681_v15  ;;  %v10117_v15 = vld [vmem:[#allocation7 + $0x50] ss:$8 sps:$4 sm:$0xff]  }
 0x2e4   : > { %v10723_v1 = vpop.eup %10722  ;;  %3901 = vmatpush1.bf16.msra.mxu0 %v10117_v15 }
 0x2e5   : > { %v10725_v46 = vpop.eup %10724  ;;  %3902 = vmatprep.subr.bf16.mxu0 %v10134_v10 }
 0x2e6   : > { %v10727_v24 = vpop.eup %10726  ;;  %v13669_v34 = vpop.permute.xlu0 %3578 }
 0x2e7   : > { %v10729_v25 = vpop.eup %10728  ;;  %v1682_v61 = vpack.c.bf16 %v10727_v24, %v10723_v1  ;;  %v13687_v24 = vrot.slane %v3536_v36, %v13095_v55  ;;  %v10137_v36 = vld [vmem:[#allocation5 + $0x84] ss:$8 sps:$4 sm:$0xff]  }
 0x2e8   : > { %v1683_v27 = vpack.c.bf16 %v10729_v25, %v10725_v46 }
 0x2ea   : > { %v1507_v59 = vpop.f32.mrb[24].mxu0  ;;  %2191 = vmatprep.mubr.bf16.mxu1 %v1683_v27  ;;  %2375 = vmatmul.mubr.bf16.gmra.mrb[80].mxu0 %v1680_v19  ;;  %v13676_v18 = vpop.permute.xlu0 %3586 }
 0x2eb   : > { %v1508_v2 = vadd.f32 %v1507_v59, %v13569_v9  ;;  %v1509_v48 = vpop.f32.mrb[25].mxu0  ;;  %2192 = vmatmul.mubr.bf16.gmra.mrb[20].mxu1 %v1682_v61  ;;  %2384 = vmatprep.mubr.bf16.mxu0 %v1683_v27  ;;  %v13678_v19 = vpop.permute.xlu1 %3590  ;;  %v10125_v59 = vld [vmem:[#allocation5 + $0x54] ss:$8 sps:$4 sm:$0xff]  }
 0x2ec   : > { %v1510_v33 = vadd.f32 %v1509_v48, %v13573_v31  ;;  %v1511_v0 = vpop.f32.mrb[26].mxu0  ;;  %3094 = vmatprep.subr.bf16.mxu1 %v10125_v59 }
 0x2ed   : > { %10730 = vtanh.f32 %v1508_v2  ;;  %v1512_v32 = vadd.f32 %v1511_v0, %v13569_v9  ;;  %v1513_v49 = vpop.f32.mrb[27].mxu0 }
 0x2ee   : > { %10732 = vtanh.f32 %v1510_v33  ;;  %v1514_v7 = vadd.f32 %v1513_v49, %v13573_v31  ;;  %v13683_v1 = vpop.permute.xlu0 %3594  ;;  %v10123_v33 = vld [vmem:[#allocation5 + $0x50] ss:$8 sps:$4 sm:$0xff]  }
 0x2ef   : > { %10734 = vtanh.f32 %v1512_v32  ;;  %v13689_v25 = vpop.permute.xlu1 %3598  ;;  %3095 = vmatpush1.bf16.msra.mxu1 %v10123_v33 }
 0x2f0   : > { %10736 = vtanh.f32 %v1514_v7  ;;  %3096 = vmatprep.subr.bf16.mxu1 %v10128_v57 }
 0x2f2   : > { %2385 = vmatmul.mubr.bf16.gmra.mrb[84].mxu0 %v1682_v61  ;;  %v13691_v61 = vld [vmem:[#allocation16 + $0x4] ss:$0 sm:$0xff]  ;;  %v3603_v27 = vpop.permute.xlu0 %3602 }
 0x2f3   : > { %v3685_v2 = vmul.f32 %v13687_v24, %v3603_v27  ;;  %v3607_v48 = vpop.permute.xlu1 %3606  ;;  %3097 = vmatpush1.bf16.msra.mxu1 %v10126_v4 }
 0x2f4   : > { %v3686_v0 = vmul.f32 %v13687_v24, %v3607_v48 }
 0x2f5   : > { %v13696_v32 = vadd.f32 %v3685_v2, %v13691_v61 }
 0x2f6   : > { %v13699_v49 = vadd.f32 %v3686_v0, %v13691_v61  ;;  %v3611_v7 = vpop.permute.xlu0 %3610 }
 0x2f7   : > { %v10731_v42 = vpop.eup %10730  ;;  %v3615_v60 = vpop.permute.xlu1 %3614  ;;  %v3687_v11 = vmul.f32 %v13687_v24, %v3611_v7 }
 0x2f8   : > { %v10733_v13 = vpop.eup %10732 }
 0x2f9   : > { %v10735_v53 = vpop.eup %10734  ;;  %v3719_v51 = vadd.f32 %v3687_v11, %v13691_v61 }
 0x2fa   : > { %v10737_v3 = vpop.eup %10736  ;;  %v1684_v26 = vpack.c.bf16 %v10735_v53, %v10731_v42  ;;  %v3688_v42 = vmul.f32 %v13687_v24, %v3615_v60  ;;  %v3619_v53 = vpop.permute.xlu0 %3618 }
 0x2fb   : > { %v1685_v17 = vpack.c.bf16 %v10737_v3, %v10733_v13  ;;  %v10131_v3 = vld [vmem:[#allocation5 + $0x74] ss:$8 sps:$4 sm:$0xff]   ;;  %v3623_v35 = vpop.permute.xlu1 %3622 }
 0x2fc   : > { %v3720_v16 = vadd.f32 %v3688_v42, %v13691_v61  ;;  %v3690_v54 = vmul.f32 %v13687_v24, %v3623_v35  ;;  %3098 = vmatprep.subr.bf16.mxu1 %v10131_v3  ;;  %v10138_v42 = vld [vmem:[#allocation5 + $0x90] ss:$8 sps:$4 sm:$0xff]   ;;  %v10141_v35 = vld [vmem:[#allocation5 + $0xa0] ss:$8 sps:$4 sm:$0xff]  }
 0x2fd   : > { %v1517_v8 = vpop.f32.mrb[28].mxu0  ;;  %2201 = vmatprep.mubr.bf16.mxu1 %v1685_v17  ;;  %2394 = vmatprep.mubr.bf16.mxu0 %v1685_v17  ;;  %v3689_v17 = vmul.f32 %v13687_v24, %v3619_v53 }
 0x2fe   : > { %v1518_v20 = vadd.f32 %v1517_v8, %v13569_v9  ;;  %v1519_v37 = vpop.f32.mrb[29].mxu0  ;;  %2202 = vmatmul.mubr.bf16.gmra.mrb[24].mxu1 %v1684_v26  ;;  %2395 = vmatmul.mubr.bf16.gmra.mrb[88].mxu0 %v1684_v26  ;;  %v10132_v8 = vld [vmem:[#allocation7 + $0x60] ss:$8 sps:$4 sm:$0xff]   ;;  %v3627_v56 = vpop.permute.xlu0 %3626 }
 0x2ff   : > { %v1520_v21 = vadd.f32 %v1519_v37, %v13573_v31  ;;  %v1521_v22 = vpop.f32.mrb[30].mxu0  ;;  %3099 = vmatpush1.bf16.msra.mxu1 %v10129_v39  ;;  %v10135_v37 = vld [vmem:[#allocation5 + $0x80] ss:$8 sps:$4 sm:$0xff]   ;;  %v3631_v27 = vpop.permute.xlu1 %3630  ;;  %3903 = vmatpush1.bf16.msra.mxu0 %v10132_v8 }
 0x300   : > { %10738 = vtanh.f32 %v1518_v20  ;;  %v1522_v38 = vadd.f32 %v1521_v22, %v13569_v9  ;;  %v1523_v23 = vpop.f32.mrb[31].mxu0  ;;  %v3721_v20 = vadd.f32 %v3689_v17, %v13691_v61  ;;  %v3722_v22 = vadd.f32 %v3690_v54, %v13691_v61  ;;  %3100 = vmatprep.subr.bf16.mxu1 %v10137_v36  ;;  %v10146_v54 = vld [vmem:[#allocation5 + $0xb4] ss:$8 sps:$4 sm:$0xff]   ;;  %v10144_v36 = vld [vmem:[#allocation5 + $0xb0] ss:$8 sps:$4 sm:$0xff]  }
 0x301   : > { %10740 = vtanh.f32 %v1520_v21  ;;  %v1524_v46 = vadd.f32 %v1523_v23, %v13573_v31  ;;  %v3692_v48 = vmul.f32 %v13687_v24, %v3631_v27 }
 0x302   : > { %10742 = vtanh.f32 %v1522_v38  ;;  %v3635_v4 = vpop.permute.xlu0 %3634 }
 0x303   : > { %10744 = vtanh.f32 %v1524_v46  ;;  %v3691_v46 = vmul.f32 %v13687_v24, %v3627_v56  ;;  %3101 = vmatpush1.bf16.msra.mxu1 %v10135_v37  ;;  %v3724_v60 = vadd.f32 %v3692_v48, %v13691_v61  ;;  %v3693_v11 = vmul.f32 %v13687_v24, %v3635_v4 }
 0x305   : > { %v3723_v7 = vadd.f32 %v3691_v46, %v13691_v61  ;;  %v3725_v53 = vadd.f32 %v3693_v11, %v13691_v61  ;;  %v10152_v46 = vld [vmem:[#allocation5 + $0xc4] ss:$8 sps:$4 sm:$0xff]   ;;  %v10147_v11 = vld [vmem:[#allocation7 + $0x70] ss:$8 sps:$4 sm:$0xff]  }
 0x306   : > { %v3643_v3 = vpop.permute.xlu0 %3642 }
 0x30a   : > { %v10739_v40 = vpop.eup %10738 }
 0x30b   : > { %v10741_v12 = vpop.eup %10740 }
 0x30c   : > { %v10743_v13 = vpop.eup %10742 }
 0x30d   : > { %v10745_v26 = vpop.eup %10744  ;;  %v1686_v14 = vpack.c.bf16 %v10743_v13, %v10739_v40  ;;  %v10140_v40 = vld [vmem:[#allocation5 + $0x94] ss:$8 sps:$4 sm:$0xff]  }
 0x30e   : > { %v1687_v15 = vpack.c.bf16 %v10745_v26, %v10741_v12  ;;  %v3639_v12 = vpop.permute.xlu1 %3638  ;;  %3102 = vmatprep.subr.bf16.mxu1 %v10140_v40  ;;  %v10143_v26 = vld [vmem:[#allocation5 + $0xa4] ss:$8 sps:$4 sm:$0xff]  }
 0x30f   : > { %v3694_v13 = vmul.f32 %v13687_v24, %v3639_v12  ;;  %3103 = vmatpush1.bf16.msra.mxu1 %v10138_v42  ;;  %v10149_v12 = vld [vmem:[#allocation7 + $0x74] ss:$8 sps:$4 sm:$0xff]  }
 0x310   : > { %v1527_v21 = vpop.f32.mrb[32].mxu0  ;;  %2211 = vmatprep.mubr.bf16.mxu1 %v1687_v15  ;;  %2404 = vmatprep.mubr.bf16.mxu0 %v1687_v15  ;;  %v3651_v15 = vpop.permute.xlu0 %3650 }
 0x311   : > { %v1528_v38 = vadd.f32 %v1527_v21, %v13569_v9  ;;  %v1529_v23 = vpop.f32.mrb[33].mxu0  ;;  %2212 = vmatmul.mubr.bf16.gmra.mrb[28].mxu1 %v1686_v14  ;;  %2405 = vmatmul.mubr.bf16.gmra.mrb[92].mxu0 %v1686_v14  ;;  %v3726_v39 = vadd.f32 %v3694_v13, %v13691_v61  ;;  %v3695_v14 = vmul.f32 %v13687_v24, %v3643_v3  ;;  %v10155_v3 = vld [vmem:[#allocation5 + $0xd4] ss:$8 sps:$4 sm:$0xff]  }
 0x312   : > { %v1530_v59 = vadd.f32 %v1529_v23, %v13573_v31  ;;  %v1531_v2 = vpop.f32.mrb[34].mxu0  ;;  %v3647_v17 = vpop.permute.xlu1 %3646  ;;  %3104 = vmatprep.subr.bf16.mxu1 %v10143_v26  ;;  %3904 = vmatprep.subr.bf16.mxu0 %v10149_v12 }
 0x313   : > { %10746 = vtanh.f32 %v1528_v38  ;;  %v1532_v33 = vadd.f32 %v1531_v2, %v13569_v9  ;;  %v1533_v0 = vpop.f32.mrb[35].mxu0  ;;  %v3696_v10 = vmul.f32 %v13687_v24, %v3647_v17  ;;  %3105 = vmatpush1.bf16.msra.mxu1 %v10141_v35  ;;  %v10153_v35 = vld [vmem:[#allocation5 + $0xd0] ss:$8 sps:$4 sm:$0xff]   ;;  %3905 = vmatpush1.bf16.msra.mxu0 %v10147_v11 }
 0x314   : > { %10748 = vtanh.f32 %v1530_v59  ;;  %v1534_v57 = vadd.f32 %v1533_v0, %v13573_v31  ;;  %3106 = vmatprep.subr.bf16.mxu1 %v10146_v54  ;;  %v3659_v23 = vpop.permute.xlu0 %3658  ;;  %v10150_v0 = vld [vmem:[#allocation5 + $0xc0] ss:$8 sps:$4 sm:$0xff]  }
 0x315   : > { %10750 = vtanh.f32 %v1532_v33  ;;  %v3699_v48 = vmul.f32 %v13687_v24, %v3659_v23 }
 0x316   : > { %10752 = vtanh.f32 %v1534_v57 }
 0x317   : > { %10754 = vtanh.f32 %v13696_v32  ;;  %v3727_v32 = vadd.f32 %v3695_v14, %v13691_v61  ;;  %3107 = vmatpush1.bf16.msra.mxu1 %v10144_v36  ;;  %v3731_v40 = vadd.f32 %v3699_v48, %v13691_v61 }
 0x318   : > { %10756 = vtanh.f32 %v13699_v49  ;;  %v3728_v49 = vadd.f32 %v3696_v10, %v13691_v61  ;;  %3108 = vmatprep.subr.bf16.mxu1 %v10152_v46 }
 0x319   : > { %10758 = vtanh.f32 %v3719_v51  ;;  %v3655_v51 = vpop.permute.xlu1 %3654 }
 0x31a   : > { %10760 = vtanh.f32 %v3720_v16  ;;  %v3697_v16 = vmul.f32 %v13687_v24, %v3651_v15 }
 0x31b   : > { %10762 = vtanh.f32 %v3721_v20  ;;  %v3698_v20 = vmul.f32 %v13687_v24, %v3655_v51  ;;  %3109 = vmatpush1.bf16.msra.mxu1 %v10150_v0  ;;  %v10158_v51 = vld [vmem:[#allocation5 + $0xe4] ss:$8 sps:$4 sm:$0xff]  }
 0x31c   : > { %10764 = vtanh.f32 %v3722_v22  ;;  %v3729_v38 = vadd.f32 %v3697_v16, %v13691_v61  ;;  %3110 = vmatprep.subr.bf16.mxu1 %v10155_v3 }
 0x31d   : > { %v10747_v8 = vpop.eup %10746  ;;  %10766 = vtanh.f32 %v3723_v7  ;;  %v3730_v2 = vadd.f32 %v3698_v20, %v13691_v61  ;;  %v3663_v33 = vpop.permute.xlu1 %3662 }
 0x31e   : > { %v10749_v37 = vpop.eup %10748  ;;  %10768 = vtanh.f32 %v3724_v60  ;;  %v3700_v57 = vmul.f32 %v13687_v24, %v3663_v33 }
 0x31f   : > { %v10751_v21 = vpop.eup %10750  ;;  %10770 = vtanh.f32 %v3725_v53  ;;  %3111 = vmatpush1.bf16.msra.mxu1 %v10153_v35 }
 0x320   : > { %v10753_v56 = vpop.eup %10752  ;;  %v1688_v22 = vpack.c.bf16 %v10751_v21, %v10747_v8  ;;  %10772 = vtanh.f32 %v3726_v39  ;;  %v3732_v39 = vadd.f32 %v3700_v57, %v13691_v61  ;;  %3112 = vmatprep.subr.bf16.mxu1 %v10158_v51 }
 0x321   : > { %v13730_v27 = vpop.eup %10754  ;;  %v1689_v59 = vpack.c.bf16 %v10753_v56, %v10749_v37  ;;  %10774 = vtanh.f32 %v3727_v32  ;;  %v10156_v37 = vld [vmem:[#allocation5 + $0xe0] ss:$8 sps:$4 sm:$0xff]   ;;  %v10161_v56 = vld [vmem:[#allocation5 + $0xf4] ss:$8 sps:$4 sm:$0xff]  }
 0x322   : > { %v13734_v7 = vpop.eup %10756  ;;  %10776 = vtanh.f32 %v3728_v49 }
 0x323   : > { %v13737_v60 = vpop.eup %10758  ;;  %v1537_v4 = vpop.f32.mrb[36].mxu0  ;;  %2221 = vmatprep.mubr.bf16.mxu1 %v1689_v59  ;;  %2414 = vmatprep.mubr.bf16.mxu0 %v1689_v59  ;;  %10778 = vtanh.f32 %v3729_v38  ;;  %v10159_v38 = vld [vmem:[#allocation5 + $0xf0] ss:$8 sps:$4 sm:$0xff]  }
 0x324   : > { %v13740_v42 = vpop.eup %10760  ;;  %v1538_v13 = vadd.f32 %v1537_v4, %v13569_v9  ;;  %v1539_v53 = vpop.f32.mrb[37].mxu0  ;;  %2222 = vmatmul.mubr.bf16.gmra.mrb[32].mxu1 %v1688_v22  ;;  %2415 = vmatmul.mubr.bf16.gmra.mrb[96].mxu0 %v1688_v22  ;;  %10780 = vtanh.f32 %v3730_v2 }
 0x325   : > { %v13744_v26 = vpop.eup %10762  ;;  %v1540_v14 = vadd.f32 %v1539_v53, %v13573_v31  ;;  %v1541_v17 = vpop.f32.mrb[38].mxu0  ;;  %10782 = vtanh.f32 %v3731_v40  ;;  %3113 = vmatpush1.bf16.msra.mxu1 %v10156_v37 }
 0x326   : > { %v13747_v10 = vpop.eup %10764  ;;  %10784 = vtanh.f32 %v1538_v13  ;;  %v1542_v32 = vadd.f32 %v1541_v17, %v13569_v9  ;;  %v1543_v49 = vpop.f32.mrb[39].mxu0  ;;  %3114 = vmatprep.subr.bf16.mxu1 %v10161_v56 }
 0x327   : > { %v13750_v15 = vpop.eup %10766  ;;  %10786 = vtanh.f32 %v1540_v14  ;;  %v1544_v54 = vadd.f32 %v1543_v49, %v13573_v31 }
 0x328   : > { %v13753_v8 = vpop.eup %10768  ;;  %10788 = vtanh.f32 %v1542_v32 }
 0x329   : > { %v13755_v36 = vpop.eup %10770  ;;  %10790 = vtanh.f32 %v1544_v54  ;;  %3115 = vmatpush1.bf16.msra.mxu1 %v10159_v38 }
 0x32a   : > { %v13757_v16 = vpop.eup %10772  ;;  %10792 = vtanh.f32 %v3732_v39 }
 0x32b   : > { %v13759_v21 = vpop.eup %10774 }
 0x32c   : > { %v13761_v20 = vpop.eup %10776 }
 0x32d   : > { %v13763_v22 = vpop.eup %10778 }
 0x32e   : > { %15752 = vst [vmem:[#allocation35_spill] sm:$0xff] %v13763_v22  ;;  %v13765_v23 = vpop.eup %10780  ;;  %v10173_v22 = vld [vmem:[#allocation8 + $0x24] ss:$16 sps:$4 sm:$0xff]  }
 0x32f   : > { %v13767_v46 = vpop.eup %10782 }
 0x330   : > { %15753 = vst [vmem:[#allocation36_spill] sm:$0xff] %v13767_v46  ;;  %v10785_v59 = vpop.eup %10784 }
 0x331   : > { %v10787_v2 = vpop.eup %10786 }
 0x332   : > { %v10789_v48 = vpop.eup %10788 }
 0x333   : > { %v10791_v33 = vpop.eup %10790  ;;  %v1690_v0 = vpack.c.bf16 %v10789_v48, %v10785_v59 }
 0x334   : > { %v13769_v57 = vpop.eup %10792  ;;  %v1691_v4 = vpack.c.bf16 %v10791_v33, %v10787_v2 }
 0x335   : > { %15754 = vst [vmem:[#allocation37_spill] sm:$0xff] %v13769_v57 }
 0x336   : > { %v1547_v14 = vpop.f32.mrb[40].mxu0  ;;  %2231 = vmatprep.mubr.bf16.mxu1 %v1691_v4  ;;  %2424 = vmatprep.mubr.bf16.mxu0 %v1691_v4 }
 0x337   : > { %v1548_v35 = vadd.f32 %v1547_v14, %v13569_v9  ;;  %v1549_v32 = vpop.f32.mrb[41].mxu0  ;;  %2232 = vmatmul.mubr.bf16.gmra.mrb[36].mxu1 %v1690_v0  ;;  %2425 = vmatmul.mubr.bf16.gmra.mrb[100].mxu0 %v1690_v0 }
 0x338   : > { %v1550_v49 = vadd.f32 %v1549_v32, %v13573_v31  ;;  %v1551_v54 = vpop.f32.mrb[42].mxu0 }
 0x339   : > { %10794 = vtanh.f32 %v1548_v35  ;;  %v1552_v51 = vadd.f32 %v1551_v54, %v13569_v9  ;;  %v1553_v37 = vpop.f32.mrb[43].mxu0 }
 0x33a   : > { %10796 = vtanh.f32 %v1550_v49  ;;  %v1554_v56 = vadd.f32 %v1553_v37, %v13573_v31 }
 0x33b   : > { %10798 = vtanh.f32 %v1552_v51 }
 0x33c   : > { %10800 = vtanh.f32 %v1554_v56 }
 0x343   : > { %v10795_v38 = vpop.eup %10794 }
 0x344   : > { %v10797_v59 = vpop.eup %10796 }
 0x345   : > { %v10799_v2 = vpop.eup %10798 }
 0x346   : > { %v10801_v48 = vpop.eup %10800  ;;  %v1692_v33 = vpack.c.bf16 %v10799_v2, %v10795_v38 }
 0x347   : > { %v1693_v4 = vpack.c.bf16 %v10801_v48, %v10797_v59 }
 0x349   : > { %v1557_v14 = vpop.f32.mrb[44].mxu0  ;;  %2241 = vmatprep.mubr.bf16.mxu1 %v1693_v4  ;;  %2434 = vmatprep.mubr.bf16.mxu0 %v1693_v4 }
 0x34a   : > { %v1558_v0 = vadd.f32 %v1557_v14, %v13569_v9  ;;  %v1559_v35 = vpop.f32.mrb[45].mxu0  ;;  %2242 = vmatmul.mubr.bf16.gmra.mrb[40].mxu1 %v1692_v33  ;;  %2435 = vmatmul.mubr.bf16.gmra.mrb[104].mxu0 %v1692_v33 }
 0x34b   : > { %v1560_v32 = vadd.f32 %v1559_v35, %v13573_v31  ;;  %v1561_v49 = vpop.f32.mrb[46].mxu0 }
 0x34c   : > { %10802 = vtanh.f32 %v1558_v0  ;;  %v1562_v54 = vadd.f32 %v1561_v49, %v13569_v9  ;;  %v1563_v51 = vpop.f32.mrb[47].mxu0 }
 0x34d   : > { %10804 = vtanh.f32 %v1560_v32  ;;  %v1564_v37 = vadd.f32 %v1563_v51, %v13573_v31 }
 0x34e   : > { %10806 = vtanh.f32 %v1562_v54 }
 0x34f   : > { %10808 = vtanh.f32 %v1564_v37  ;;  %v13799_v37 = vld [vmem:[#allocation16 + $0x2] ss:$8 sm:$0xf] }
 0x356   : > { %v10803_v56 = vpop.eup %10802 }
 0x357   : > { %v10805_v38 = vpop.eup %10804 }
 0x358   : > { %v10807_v59 = vpop.eup %10806 }
 0x359   : > { %v10809_v2 = vpop.eup %10808  ;;  %v1694_v48 = vpack.c.bf16 %v10807_v59, %v10803_v56 }
 0x35a   : > { %v1695_v4 = vpack.c.bf16 %v10809_v2, %v10805_v38  ;;  %v13803_v38 = vrot.slane %v13799_v37, %v13095_v55  ;;  %v13807_v2 = vrot.slane %v13799_v37, %v13102_v58 }
 0x35c   : > { %v1567_v14 = vpop.f32.mrb[48].mxu0  ;;  %2251 = vmatprep.mubr.bf16.mxu1 %v1695_v4  ;;  %2444 = vmatprep.mubr.bf16.mxu0 %v1695_v4 }
 0x35d   : > { %v1568_v33 = vadd.f32 %v1567_v14, %v13569_v9  ;;  %v1569_v0 = vpop.f32.mrb[49].mxu0  ;;  %2252 = vmatmul.mubr.bf16.gmra.mrb[44].mxu1 %v1694_v48  ;;  %2445 = vmatmul.mubr.bf16.gmra.mrb[108].mxu0 %v1694_v48 }
 0x35e   : > { %v1570_v35 = vadd.f32 %v1569_v0, %v13573_v31  ;;  %v1571_v32 = vpop.f32.mrb[50].mxu0 }
 0x35f   : > { %10810 = vtanh.f32 %v1568_v33  ;;  %v1572_v49 = vadd.f32 %v1571_v32, %v13569_v9  ;;  %v1573_v54 = vpop.f32.mrb[51].mxu0 }
 0x360   : > { %10812 = vtanh.f32 %v1570_v35  ;;  %v1574_v51 = vadd.f32 %v1573_v54, %v13573_v31 }
 0x361   : > { %10814 = vtanh.f32 %v1572_v49 }
 0x362   : > { %10816 = vtanh.f32 %v1574_v51 }
 0x369   : > { %v10811_v56 = vpop.eup %10810 }
 0x36a   : > { %v10813_v59 = vpop.eup %10812 }
 0x36b   : > { %v10815_v48 = vpop.eup %10814  ;;  %v2143_v14 = vpop.f32.mrb[0].mxu1 }
 0x36c   : > { %v10817_v4 = vpop.eup %10816  ;;  %v1696_v33 = vpack.c.bf16 %v10815_v48, %v10811_v56  ;;  %v2144_v0 = vadd.f32 %v2143_v14, %v13803_v38  ;;  %v2145_v35 = vpop.f32.mrb[1].mxu1 }
 0x36d   : > { %v1697_v32 = vpack.c.bf16 %v10817_v4, %v10813_v59  ;;  %v2146_v49 = vadd.f32 %v2145_v35, %v13807_v2  ;;  %v2147_v54 = vpop.f32.mrb[2].mxu1 }
 0x36e   : > { %10818 = vtanh.f32 %v2144_v0  ;;  %v2148_v51 = vadd.f32 %v2147_v54, %v13803_v38  ;;  %v2149_v17 = vpop.f32.mrb[3].mxu1 }
 0x36f   : > { %v1577_v3 = vpop.f32.mrb[52].mxu0  ;;  %2261 = vmatprep.mubr.bf16.mxu1 %v1697_v32  ;;  %2454 = vmatprep.mubr.bf16.mxu0 %v1697_v32  ;;  %10820 = vtanh.f32 %v2146_v49  ;;  %v2150_v39 = vadd.f32 %v2149_v17, %v13807_v2 }
 0x370   : > { %v1578_v53 = vadd.f32 %v1577_v3, %v13569_v9  ;;  %v1579_v56 = vpop.f32.mrb[53].mxu0  ;;  %2262 = vmatmul.mubr.bf16.gmra.mrb[48].mxu1 %v1696_v33  ;;  %2455 = vmatmul.mubr.bf16.gmra.mrb[112].mxu0 %v1696_v33  ;;  %10822 = vtanh.f32 %v2148_v51 }
 0x371   : > { %v1580_v59 = vadd.f32 %v1579_v56, %v13573_v31  ;;  %v1581_v48 = vpop.f32.mrb[54].mxu0  ;;  %10824 = vtanh.f32 %v2150_v39 }
 0x372   : > { %v1582_v4 = vadd.f32 %v1581_v48, %v13569_v9  ;;  %v1583_v14 = vpop.f32.mrb[55].mxu0  ;;  %10826 = vtanh.f32 %v1578_v53 }
 0x373   : > { %v1584_v0 = vadd.f32 %v1583_v14, %v13573_v31  ;;  %10828 = vtanh.f32 %v1580_v59 }
 0x374   : > { %v2153_v35 = vpop.f32.mrb[4].mxu1  ;;  %10830 = vtanh.f32 %v1582_v4 }
 0x375   : > { %v2154_v17 = vadd.f32 %v2153_v35, %v13803_v38  ;;  %v2155_v3 = vpop.f32.mrb[5].mxu1  ;;  %10832 = vtanh.f32 %v1584_v0 }
 0x376   : > { %v2156_v33 = vadd.f32 %v2155_v3, %v13807_v2  ;;  %v2157_v32 = vpop.f32.mrb[6].mxu1 }
 0x377   : > { %10834 = vtanh.f32 %v2154_v17  ;;  %v2158_v49 = vadd.f32 %v2157_v32, %v13803_v38  ;;  %v2159_v39 = vpop.f32.mrb[7].mxu1 }
 0x378   : > { %10836 = vtanh.f32 %v2156_v33  ;;  %v2160_v54 = vadd.f32 %v2159_v39, %v13807_v2  ;;  %v13821_v53 = vpop.eup %10818 }
 0x379   : > { %10838 = vtanh.f32 %v2158_v49  ;;  %v13823_v51 = vpop.eup %10820 }
 0x37a   : > { %10840 = vtanh.f32 %v2160_v54  ;;  %v13825_v56 = vpop.eup %10822 }
 0x37b   : > { %v13827_v59 = vpop.eup %10824 }
 0x37c   : > { %v10827_v4 = vpop.eup %10826 }
 0x37d   : > { %v10829_v0 = vpop.eup %10828 }
 0x37e   : > { %v10831_v35 = vpop.eup %10830 }
 0x37f   : > { %v10833_v17 = vpop.eup %10832  ;;  %v1698_v3 = vpack.c.bf16 %v10831_v35, %v10827_v4 }
 0x380   : > { %v1699_v32 = vpack.c.bf16 %v10833_v17, %v10829_v0 }
 0x381   : > { %v13833_v33 = vpop.eup %10834 }
 0x382   : > { %v13835_v49 = vpop.eup %10836  ;;  %v1587_v39 = vpop.f32.mrb[56].mxu0  ;;  %2271 = vmatprep.mubr.bf16.mxu1 %v1699_v32  ;;  %2464 = vmatprep.mubr.bf16.mxu0 %v1699_v32 }
 0x383   : > { %v13837_v54 = vpop.eup %10838  ;;  %v1588_v13 = vadd.f32 %v1587_v39, %v13569_v9  ;;  %v1589_v12 = vpop.f32.mrb[57].mxu0  ;;  %2272 = vmatmul.mubr.bf16.gmra.mrb[52].mxu1 %v1698_v3  ;;  %2465 = vmatmul.mubr.bf16.gmra.mrb[116].mxu0 %v1698_v3 }
 0x384   : > { %v13840_v11 = vpop.eup %10840  ;;  %v1590_v40 = vadd.f32 %v1589_v12, %v13573_v31  ;;  %v1591_v4 = vpop.f32.mrb[58].mxu0 }
 0x385   : > { %10842 = vtanh.f32 %v1588_v13  ;;  %v1592_v35 = vadd.f32 %v1591_v4, %v13569_v9  ;;  %v1593_v17 = vpop.f32.mrb[59].mxu0 }
 0x386   : > { %10844 = vtanh.f32 %v1590_v40  ;;  %v1594_v32 = vadd.f32 %v1593_v17, %v13573_v31  ;;  %v2163_v48 = vpop.f32.mrb[8].mxu1  ;;  %v3669_v40 = vmul.f32 %v13687_v24, %v13645_v41 }
 0x387   : > { %10846 = vtanh.f32 %v1592_v35  ;;  %v2164_v12 = vadd.f32 %v2163_v48, %v13803_v38  ;;  %v2165_v29 = vpop.f32.mrb[9].mxu1  ;;  %v3670_v48 = vmul.f32 %v13687_v24, %v13649_v47  ;;  %v10167_v47 = vld [vmem:[#allocation8 + $0x4] ss:$16 sps:$4 sm:$0xff]  }
 0x388   : > { %10848 = vtanh.f32 %v1594_v32  ;;  %v2166_v3 = vadd.f32 %v2165_v29, %v13807_v2  ;;  %v2167_v14 = vpop.f32.mrb[10].mxu1  ;;  %4586 = vmatprep.subr.bf16.mxu0 %v10167_v47 }
 0x389   : > { %10850 = vtanh.f32 %v2164_v12  ;;  %v2168_v13 = vadd.f32 %v2167_v14, %v13803_v38  ;;  %v2169_v4 = vpop.f32.mrb[11].mxu1  ;;  %v3701_v12 = vadd.f32 %v3669_v40, %v13691_v61 }
 0x38a   : > { %10852 = vtanh.f32 %v2166_v3  ;;  %v2170_v0 = vadd.f32 %v2169_v4, %v13807_v2  ;;  %v3702_v3 = vadd.f32 %v3670_v48, %v13691_v61 }
 0x38b   : > { %10854 = vtanh.f32 %v2168_v13 }
 0x38c   : > { %10856 = vtanh.f32 %v2170_v0  ;;  %v10164_v0 = vld [vmem:[#allocation5 + $0x104] ss:$8 sps:$4 sm:$0xff]  }
 0x38d   : > { %10858 = vtanh.f32 %v3701_v12  ;;  %3277 = vmatprep.subr.bf16.mxu1 %v10164_v0 }
 0x38e   : > { %10860 = vtanh.f32 %v3702_v3 }
 0x38f   : > { %v10843_v35 = vpop.eup %10842 }
 0x390   : > { %v10845_v17 = vpop.eup %10844 }
 0x391   : > { %v10847_v32 = vpop.eup %10846 }
 0x392   : > { %v10849_v29 = vpop.eup %10848  ;;  %v1700_v39 = vpack.c.bf16 %v10847_v32, %v10843_v35 }
 0x393   : > { %v13858_v14 = vpop.eup %10850  ;;  %v1701_v4 = vpack.c.bf16 %v10849_v29, %v10845_v17  ;;  %v13872_v29 = vsub.s32 3, %v13090_v52  ;;  %v13881_v52 = vrot.slane %v13799_v37, %v13111_v62 }
 0x394   : > { %v13861_v13 = vpop.eup %10852 }
 0x395   : > { %v13863_v58 = vpop.eup %10854  ;;  %v1597_v41 = vpop.f32.mrb[60].mxu0  ;;  %2281 = vmatprep.mubr.bf16.mxu1 %v1701_v4  ;;  %2474 = vmatprep.mubr.bf16.mxu0 %v1701_v4  ;;  %15755 = vst [vmem:[#allocation38_spill] sm:$0xff] %v13872_v29 }
 0x396   : > { %v13865_v55 = vpop.eup %10856  ;;  %v1598_v40 = vadd.f32 %v1597_v41, %v13569_v9  ;;  %v1599_v35 = vpop.f32.mrb[61].mxu0  ;;  %2282 = vmatmul.mubr.bf16.gmra.mrb[56].mxu1 %v1700_v39  ;;  %2475 = vmatmul.mubr.bf16.gmra.mrb[120].mxu0 %v1700_v39 }
 0x397   : > { %v1600_v17 = vadd.f32 %v1599_v35, %v13573_v31  ;;  %v1601_v32 = vpop.f32.mrb[62].mxu0 }
 0x398   : > { %10862 = vtanh.f32 %v1598_v40  ;;  %v1602_v12 = vadd.f32 %v1601_v32, %v13569_v9  ;;  %v1603_v41 = vpop.f32.mrb[63].mxu0  ;;  %v13886_v9 = vrot.slane %v13799_v37, %v13872_v29  ;;  %v3671_v32 = vmul.f32 %v13687_v24, %v13647_v63 }
 0x399   : > { %10864 = vtanh.f32 %v1600_v17  ;;  %v1604_v39 = vadd.f32 %v1603_v41, %v13573_v31  ;;  %v2173_v48 = vpop.f32.mrb[12].mxu1 }
 0x39a   : > { %10866 = vtanh.f32 %v1602_v12  ;;  %v2174_v3 = vadd.f32 %v2173_v48, %v13803_v38  ;;  %v2175_v35 = vpop.f32.mrb[13].mxu1 }
 0x39b   : > { %10868 = vtanh.f32 %v1604_v39  ;;  %v2176_v0 = vadd.f32 %v2175_v35, %v13807_v2  ;;  %v2177_v47 = vpop.f32.mrb[14].mxu1  ;;  %v3672_v39 = vmul.f32 %v13687_v24, %v13651_v5  ;;  %v13896_v35 = vpop.eup %10858 }
 0x39c   : > { %10870 = vtanh.f32 %v2174_v3  ;;  %v2178_v31 = vadd.f32 %v2177_v47, %v13803_v38  ;;  %v2179_v40 = vpop.f32.mrb[15].mxu1 }
 0x39d   : > { %10872 = vtanh.f32 %v2176_v0  ;;  %v2180_v48 = vadd.f32 %v2179_v40, %v13807_v2  ;;  %v2336_v17 = vpop.f32.mrb[64].mxu0  ;;  %v13899_v40 = vpop.eup %10860 }
 0x39e   : > { %10874 = vtanh.f32 %v2178_v31  ;;  %v2337_v12 = vadd.f32 %v2336_v17, %v13881_v52  ;;  %v2338_v41 = vpop.f32.mrb[65].mxu0  ;;  %v3703_v17 = vadd.f32 %v3671_v32, %v13691_v61 }
 0x39f   : > { %10876 = vtanh.f32 %v2180_v48  ;;  %v2339_v37 = vadd.f32 %v2338_v41, %v13886_v9  ;;  %v2340_v3 = vpop.f32.mrb[66].mxu0  ;;  %v3704_v48 = vadd.f32 %v3672_v39, %v13691_v61 }
 0x3a0   : > { %10878 = vtanh.f32 %v2337_v12  ;;  %v2341_v0 = vadd.f32 %v2340_v3, %v13881_v52  ;;  %v2342_v47 = vpop.f32.mrb[67].mxu0  ;;  %v3673_v12 = vmul.f32 %v13687_v24, %v13653_v30  ;;  %v3674_v3 = vmul.f32 %v13687_v24, %v13657_v44 }
 0x3a1   : > { %10880 = vtanh.f32 %v2339_v37  ;;  %v2343_v63 = vadd.f32 %v2342_v47, %v13886_v9 }
 0x3a2   : > { %v10863_v31 = vpop.eup %10862  ;;  %10882 = vtanh.f32 %v2341_v0  ;;  %v3705_v57 = vadd.f32 %v3673_v12, %v13691_v61  ;;  %v15758_v12 = vmov 0  }
 0x3a3   : > { %v10865_v5 = vpop.eup %10864  ;;  %10884 = vtanh.f32 %v2343_v63 }
 0x3a4   : > { %v10867_v41 = vpop.eup %10866  ;;  %10886 = vtanh.f32 %v3703_v17 }
 0x3a5   : > { %v10869_v4 = vpop.eup %10868  ;;  %v2346_v29 = vpop.f32.mrb[68].mxu0  ;;  %v1702_v37 = vpack.c.bf16 %v10867_v41, %v10863_v31  ;;  %10888 = vtanh.f32 %v3704_v48  ;;  %v15757_v41 = vpack.c.bf16 %v13827_v59, %v13823_v51 }
 0x3a6   : > { %v13908_v62 = vpop.eup %10870  ;;  %v2347_v32 = vadd.f32 %v2346_v29, %v13881_v52  ;;  %v2348_v0 = vpop.f32.mrb[69].mxu0  ;;  %v1703_v47 = vpack.c.bf16 %v10869_v4, %v10865_v5  ;;  %v3706_v29 = vadd.f32 %v3674_v3, %v13691_v61 }
 0x3a7   : > { %v13911_v46 = vpop.eup %10872  ;;  %v2349_v39 = vadd.f32 %v2348_v0, %v13886_v9  ;;  %v2350_v63 = vpop.f32.mrb[70].mxu0 }
 0x3a8   : > { %v13914_v30 = vpop.eup %10874  ;;  %10890 = vtanh.f32 %v2347_v32  ;;  %v2351_v44 = vadd.f32 %v2350_v63, %v13881_v52  ;;  %2291 = vmatprep.mubr.bf16.mxu1 %v1703_v47  ;;  %v2352_v31 = vpop.f32.mrb[71].mxu0  ;;  %2484 = vmatprep.mubr.bf16.mxu0 %v1703_v47  ;;  %v3675_v47 = vmul.f32 %v13687_v24, %v13661_v50 }
 0x3a9   : > { %v13918_v17 = vpop.eup %10876  ;;  %10892 = vtanh.f32 %v2349_v39  ;;  %v2353_v4 = vadd.f32 %v2352_v31, %v13886_v9  ;;  %2292 = vmatmul.mubr.bf16.gmra.mrb[60].mxu1 %v1702_v37  ;;  %2485 = vmatmul.mubr.bf16.gmra.mrb[124].mxu0 %v1702_v37 }
 0x3aa   : > { %v13924_v48 = vpop.eup %10878  ;;  %10894 = vtanh.f32 %v2351_v44  ;;  %3116 = vmatprep.mubr.bf16.mxu1 %v15757_v41  ;;  %3922 = vmatprep.mubr.bf16.mxu0 %v15758_v12  ;;  %v10162_v41 = vld [vmem:[#allocation5 + $0x100] ss:$8 sps:$4 sm:$0xff]  }
 0x3ab   : > { %15756 = vst [vmem:[#allocation39_spill] sm:$0xff] %v13924_v48  ;;  %v13932_v32 = vpop.eup %10880  ;;  %10896 = vtanh.f32 %v2353_v4  ;;  %v2183_v0 = vpop.f32.mrb[16].mxu1  ;;  %v3767_v4 = vpack.c.bf16 %v13899_v40, %v13896_v35 }
 0x3ac   : > { %v13934_v37 = vpop.eup %10882  ;;  %10898 = vtanh.f32 %v3705_v57  ;;  %v2184_v39 = vadd.f32 %v2183_v0, %v13803_v38  ;;  %v2185_v63 = vpop.f32.mrb[17].mxu1 }
 0x3ad   : > { %15759 = vst [vmem:[#allocation40_spill] sm:$0xff] %v13934_v37  ;;  %v13939_v51 = vpop.eup %10884  ;;  %10900 = vtanh.f32 %v3706_v29  ;;  %v2186_v59 = vadd.f32 %v2185_v63, %v13807_v2  ;;  %v2187_v44 = vpop.f32.mrb[18].mxu1  ;;  %v3676_v63 = vmul.f32 %v13687_v24, %v13663_v45  ;;  %v10170_v37 = vld [vmem:[#allocation5 + $0x114] ss:$8 sps:$4 sm:$0xff]  }
 0x3ae   : > { %v2356_v31 = vpop.f32.mrb[72].mxu0  ;;  %10902 = vtanh.f32 %v2184_v39  ;;  %v2188_v57 = vadd.f32 %v2187_v44, %v13803_v38  ;;  %v2189_v0 = vpop.f32.mrb[19].mxu1  ;;  %v10165_v39 = vld [vmem:[#allocation8] ss:$16 sps:$4 sm:$0xff]  }
 0x3af   : > { %v2357_v50 = vadd.f32 %v2356_v31, %v13881_v52  ;;  %v2358_v5 = vpop.f32.mrb[73].mxu0  ;;  %10904 = vtanh.f32 %v2186_v59  ;;  %v2190_v3 = vadd.f32 %v2189_v0, %v13807_v2  ;;  %v13954_v48 = vpop.eup %10886  ;;  %v15760_v59 = vpack.c.bf16 %v13825_v56, %v13821_v53  ;;  %v10168_v53 = vld [vmem:[#allocation5 + $0x110] ss:$8 sps:$4 sm:$0xff]  }
 0x3b0   : > { %v2359_v35 = vadd.f32 %v2358_v5, %v13886_v9  ;;  %v2360_v40 = vpop.f32.mrb[74].mxu0  ;;  %10906 = vtanh.f32 %v2188_v57  ;;  %v10889_v29 = vpop.eup %10888  ;;  %v3707_v0 = vadd.f32 %v3675_v47, %v13691_v61  ;;  %v15762_v57 = vpack.c.bf16 %v13840_v11, %v13835_v49  ;;  %v10171_v56 = vld [vmem:[#allocation8 + $0x20] ss:$16 sps:$4 sm:$0xff]   ;;  %v10176_v11 = vld [vmem:[#allocation5 + $0x124] ss:$8 sps:$4 sm:$0xff]  }
 0x3b1   : > { %v2361_v44 = vadd.f32 %v2360_v40, %v13881_v52  ;;  %v2362_v31 = vpop.f32.mrb[75].mxu0  ;;  %10908 = vtanh.f32 %v2357_v50  ;;  %3117 = vmatmul.mubr.bf16.vlgmr.msra.gmra.mrb[64].mxu1 %v15760_v59  ;;  %3923 = vmatmul.mubr.bf16.vlgmr.msra.gmra.mrb[128].mxu0 %v3767_v4  ;;  %v3708_v50 = vadd.f32 %v3676_v63, %v13691_v61  ;;  %v10179_v49 = vld [vmem:[#allocation8 + $0x44] ss:$16 sps:$4 sm:$0xff]   ;;  %v3678_v61 = vmul.f32 %v13687_v24, %v13667_v28 }
 0x3b2   : > { %v2363_v45 = vadd.f32 %v2362_v31, %v13886_v9  ;;  %v13961_v5 = vpop.eup %10890  ;;  %10910 = vtanh.f32 %v2190_v3  ;;  %3126 = vmatprep.mubr.bf16.mxu1 %v15762_v57  ;;  %3932 = vmatprep.mubr.bf16.mxu0 %v15758_v12  ;;  %v3677_v3 = vmul.f32 %v13687_v24, %v13665_v6  ;;  %v3679_v6 = vmul.f32 %v13687_v24, %v13669_v34  ;;  %v10174_v34 = vld [vmem:[#allocation5 + $0x120] ss:$8 sps:$4 sm:$0xff]  }
 0x3b3   : > { %15761 = vst [vmem:[#allocation41_spill] sm:$0xff] %v13961_v5  ;;  %v13968_v40 = vpop.eup %10892  ;;  %10912 = vtanh.f32 %v2359_v35  ;;  %3278 = vmatpush1.bf16.msra.mxu1 %v10162_v41  ;;  %4587 = vmatpush1.bf16.msra.mxu0 %v10165_v39  ;;  %v3680_v28 = vmul.f32 %v13687_v24, %v13671_v43  ;;  %v3768_v59 = vpack.c.bf16 %v10889_v29, %v13954_v48  ;;  %v10182_v43 = vld [vmem:[#allocation5 + $0x134] ss:$8 sps:$4 sm:$0xff]  }
 0x3b4   : > { %v13971_v4 = vpop.eup %10894  ;;  %10914 = vtanh.f32 %v2361_v44  ;;  %3279 = vmatprep.subr.bf16.mxu1 %v10170_v37  ;;  %4588 = vmatprep.subr.bf16.mxu0 %v10173_v22 }
 0x3b5   : > { %v13975_v47 = vpop.eup %10896  ;;  %10916 = vtanh.f32 %v2363_v45  ;;  %v2366_v41 = vpop.f32.mrb[76].mxu0 }
 0x3b6   : > { %v13981_v35 = vpop.eup %10898  ;;  %10918 = vtanh.f32 %v3707_v0  ;;  %v2367_v22 = vadd.f32 %v2366_v41, %v13881_v52  ;;  %v2368_v37 = vpop.f32.mrb[77].mxu0  ;;  %v10177_v0 = vld [vmem:[#allocation8 + $0x40] ss:$16 sps:$4 sm:$0xff]   ;;  %v13996_v41 = vld [vmem:[#allocation16 + $0x4] ss:$0 sm:$0xff] }
 0x3b7   : > { %v13988_v44 = vpop.eup %10900  ;;  %10920 = vtanh.f32 %v3708_v50  ;;  %v2369_v31 = vadd.f32 %v2368_v37, %v13886_v9  ;;  %v2370_v45 = vpop.f32.mrb[78].mxu0  ;;  %3280 = vmatpush1.bf16.msra.mxu1 %v10168_v53  ;;  %4589 = vmatpush1.bf16.msra.mxu0 %v10171_v56  ;;  %v3709_v63 = vadd.f32 %v13996_v41, %v3677_v3  ;;  %v10185_v37 = vld [vmem:[#allocation8 + $0x64] ss:$16 sps:$4 sm:$0xff]   ;;  %v3710_v48 = vadd.f32 %v13996_v41, %v3678_v61 }
 0x3b8   : > { %v13994_v57 = vpop.eup %10902  ;;  %10922 = vtanh.f32 %v2367_v22  ;;  %v2371_v50 = vadd.f32 %v2370_v45, %v13881_v52  ;;  %v2372_v39 = vpop.f32.mrb[79].mxu0  ;;  %3281 = vmatprep.subr.bf16.mxu1 %v10176_v11  ;;  %4590 = vmatprep.subr.bf16.mxu0 %v10179_v49  ;;  %v15763_v53 = vpack.c.bf16 %v13837_v54, %v13833_v33  ;;  %v3711_v3 = vadd.f32 %v13996_v41, %v3679_v6  ;;  %v10180_v54 = vld [vmem:[#allocation5 + $0x130] ss:$8 sps:$4 sm:$0xff]  }
 0x3b9   : > { %v14000_v5 = vpop.eup %10904  ;;  %10924 = vtanh.f32 %v2369_v31  ;;  %v2373_v29 = vadd.f32 %v2372_v39, %v13886_v9  ;;  %3933 = vmatmul.mubr.bf16.gmra.mrb[132].mxu0 %v3768_v59  ;;  %v15764_v11 = vpack.c.bf16 %v13865_v55, %v13861_v13  ;;  %v3712_v61 = vadd.f32 %v13996_v41, %v3680_v28  ;;  %v10183_v22 = vld [vmem:[#allocation8 + $0x60] ss:$16 sps:$4 sm:$0xff]   ;;  %v10188_v55 = vld [vmem:[#allocation5 + $0x144] ss:$8 sps:$4 sm:$0xff]  }
 0x3ba   : > { %3127 = vmatmul.mubr.bf16.gmra.mrb[68].mxu1 %v15763_v53  ;;  %v14007_v56 = vpop.eup %10906  ;;  %10926 = vtanh.f32 %v2371_v50  ;;  %3942 = vmatprep.mubr.bf16.mxu0 %v15758_v12  ;;  %v10191_v13 = vld [vmem:[#allocation8 + $0x84] ss:$16 sps:$4 sm:$0xff]   ;;  %v10186_v53 = vld [vmem:[#allocation5 + $0x140] ss:$8 sps:$4 sm:$0xff]  }
 0x3bb   : > { %3136 = vmatprep.mubr.bf16.mxu1 %v15764_v11  ;;  %v14014_v49 = vpop.eup %10908  ;;  %10928 = vtanh.f32 %v2373_v29  ;;  %3282 = vmatpush1.bf16.msra.mxu1 %v10174_v34 }
 0x3bc   : > { %4591 = vmatpush1.bf16.msra.mxu0 %v10177_v0  ;;  %v14019_v6 = vpop.eup %10910  ;;  %10930 = vtanh.f32 %v3709_v63  ;;  %3283 = vmatprep.subr.bf16.mxu1 %v10182_v43  ;;  %v3769_v63 = vpack.c.bf16 %v13988_v44, %v13981_v35 }
 0x3bd   : > { %4592 = vmatprep.subr.bf16.mxu0 %v10185_v37  ;;  %v14021_v39 = vpop.eup %10912  ;;  %10932 = vtanh.f32 %v3710_v48  ;;  %v2376_v31 = vpop.f32.mrb[80].mxu0 }
 0x3be   : > { %v14025_v45 = vpop.eup %10914  ;;  %10934 = vtanh.f32 %v3711_v3  ;;  %v2377_v59 = vadd.f32 %v2376_v31, %v13881_v52  ;;  %v2193_v34 = vpop.f32.mrb[20].mxu1  ;;  %v10189_v3 = vld [vmem:[#allocation8 + $0x80] ss:$16 sps:$4 sm:$0xff]  }
 0x3bf   : > { %v2378_v0 = vpop.f32.mrb[81].mxu0  ;;  %v14030_v50 = vpop.eup %10916  ;;  %10936 = vtanh.f32 %v3712_v61  ;;  %v2194_v43 = vadd.f32 %v2193_v34, %v13803_v38  ;;  %3284 = vmatpush1.bf16.msra.mxu1 %v10180_v54  ;;  %v10194_v34 = vld [vmem:[#allocation5 + $0x154] ss:$8 sps:$4 sm:$0xff]  }
 0x3c0   : > { %v2379_v37 = vadd.f32 %v2378_v0, %v13886_v9  ;;  %v2195_v48 = vpop.f32.mrb[21].mxu1  ;;  %v2380_v29 = vpop.f32.mrb[82].mxu0  ;;  %4593 = vmatpush1.bf16.msra.mxu0 %v10183_v22  ;;  %10938 = vtanh.f32 %v2377_v59  ;;  %3285 = vmatprep.subr.bf16.mxu1 %v10188_v55  ;;  %v10197_v0 = vld [vmem:[#allocation8 + $0xa4] ss:$16 sps:$4 sm:$0xff]   ;;  %v15765_v59 = vpack.c.bf16 %v13863_v58, %v13858_v14  ;;  %v10192_v58 = vld [vmem:[#allocation5 + $0x150] ss:$8 sps:$4 sm:$0xff]  }
 0x3c1   : > { %v10919_v31 = vpop.eup %10918  ;;  %v2196_v35 = vadd.f32 %v2195_v48, %v13807_v2  ;;  %v2381_v44 = vadd.f32 %v2380_v29, %v13881_v52  ;;  %v2197_v61 = vpop.f32.mrb[22].mxu1  ;;  %4594 = vmatprep.subr.bf16.mxu0 %v10191_v13  ;;  %10940 = vtanh.f32 %v2194_v43  ;;  %3943 = vmatmul.mubr.bf16.gmra.mrb[136].mxu0 %v3769_v63  ;;  %v15766_v13 = vpack.c.bf16 %v13918_v17, %v13911_v46  ;;  %v10195_v14 = vld [vmem:[#allocation8 + $0xa0] ss:$16 sps:$4 sm:$0xff]  }
 0x3c2   : > { %v2382_v33 = vpop.f32.mrb[83].mxu0  ;;  %v10921_v22 = vpop.eup %10920  ;;  %v2198_v28 = vadd.f32 %v2197_v61, %v13803_v38  ;;  %3137 = vmatmul.mubr.bf16.gmra.mrb[72].mxu1 %v15765_v59  ;;  %10942 = vtanh.f32 %v2379_v37  ;;  %3952 = vmatprep.mubr.bf16.mxu0 %v15758_v12 }
 0x3c3   : > { %v2199_v11 = vpop.f32.mrb[23].mxu1  ;;  %v14044_v48 = vpop.eup %10922  ;;  %v2383_v55 = vadd.f32 %v2382_v33, %v13886_v9  ;;  %3146 = vmatprep.mubr.bf16.mxu1 %v15766_v13  ;;  %10944 = vtanh.f32 %v2196_v35  ;;  %3286 = vmatpush1.bf16.msra.mxu1 %v10186_v53 }
 0x3c4   : > { %v14051_v43 = vpop.eup %10924  ;;  %v2200_v29 = vadd.f32 %v2199_v11, %v13807_v2  ;;  %4595 = vmatpush1.bf16.msra.mxu0 %v10189_v3  ;;  %10946 = vtanh.f32 %v2381_v44  ;;  %3287 = vmatprep.subr.bf16.mxu1 %v10194_v34  ;;  %v3770_v34 = vpack.c.bf16 %v10921_v22, %v10919_v31  ;;  %v15767_v31 = vpack.c.bf16 %v13914_v30, %v13908_v62 }
 0x3c5   : > { %v14054_v63 = vpop.eup %10926  ;;  %4596 = vmatprep.subr.bf16.mxu0 %v10197_v0  ;;  %10948 = vtanh.f32 %v2198_v28  ;;  %v2386_v46 = vpop.f32.mrb[84].mxu0  ;;  %v3681_v0 = vmul.f32 %v13687_v24, %v13676_v18  ;;  %v3683_v18 = vmul.f32 %v13687_v24, %v13683_v1 }
 0x3c6   : > { %v14056_v33 = vpop.eup %10928  ;;  %10950 = vtanh.f32 %v2383_v55  ;;  %v2387_v11 = vadd.f32 %v2386_v46, %v13881_v52  ;;  %v2388_v53 = vpop.f32.mrb[85].mxu0 }
 0x3c7   : > { %v10931_v37 = vpop.eup %10930  ;;  %10952 = vtanh.f32 %v2200_v29  ;;  %v2389_v44 = vadd.f32 %v2388_v53, %v13886_v9  ;;  %v2390_v61 = vpop.f32.mrb[86].mxu0  ;;  %3288 = vmatpush1.bf16.msra.mxu1 %v10192_v58  ;;  %v3682_v29 = vmul.f32 %v13687_v24, %v13678_v19  ;;  %v15768_v58 = vpack.c.bf16 %v14019_v6, %v14000_v5  ;;  %v10198_v53 = vld [vmem:[#allocation5 + $0x160] ss:$8 sps:$4 sm:$0xff]  }
 0x3c8   : > { %v10933_v35 = vpop.eup %10932  ;;  %4597 = vmatpush1.bf16.msra.mxu0 %v10195_v14  ;;  %10954 = vtanh.f32 %v2387_v11  ;;  %v2391_v59 = vadd.f32 %v2390_v61, %v13881_v52  ;;  %v2392_v55 = vpop.f32.mrb[87].mxu0  ;;  %v3684_v14 = vmul.f32 %v13687_v24, %v13689_v25  ;;  %v3713_v30 = vadd.f32 %v13996_v41, %v3681_v0  ;;  %v10201_v6 = vld [vmem:[#allocation8 + $0xc0] ss:$16 sps:$4 sm:$0xff]   ;;  %v10206_v25 = vld [vmem:[#allocation5 + $0x174] ss:$8 sps:$4 sm:$0xff]  }
 0x3c9   : > { %v14064_v28 = vpop.eup %10934  ;;  %10956 = vtanh.f32 %v2389_v44  ;;  %v2393_v46 = vadd.f32 %v2392_v55, %v13886_v9  ;;  %3953 = vmatmul.mubr.bf16.gmra.mrb[140].mxu0 %v3770_v34  ;;  %v3714_v1 = vadd.f32 %v13996_v41, %v3682_v29  ;;  %v10200_v44 = vld [vmem:[#allocation5 + $0x164] ss:$8 sps:$4 sm:$0xff]   ;;  %v3715_v5 = vadd.f32 %v13996_v41, %v3683_v18  ;;  %v10204_v18 = vld [vmem:[#allocation5 + $0x170] ss:$8 sps:$4 sm:$0xff]  }
 0x3ca   : > { %v14069_v13 = vpop.eup %10936  ;;  %3147 = vmatmul.mubr.bf16.gmra.mrb[76].mxu1 %v15767_v31  ;;  %10958 = vtanh.f32 %v2391_v59  ;;  %3962 = vmatprep.mubr.bf16.mxu0 %v15758_v12  ;;  %v10203_v34 = vld [vmem:[#allocation8 + $0xc4] ss:$16 sps:$4 sm:$0xff]   ;;  %v3716_v55 = vadd.f32 %v13996_v41, %v3684_v14  ;;  %v3771_v24 = vpack.c.bf16 %v10933_v35, %v10931_v37  ;;  %v15769_v41 = vpack.c.bf16 %v14007_v56, %v13994_v57 }
 0x3cb   : > { %v14077_v22 = vpop.eup %10938  ;;  %3156 = vmatprep.mubr.bf16.mxu1 %v15768_v58  ;;  %10960 = vtanh.f32 %v2393_v46  ;;  %3289 = vmatprep.subr.bf16.mxu1 %v10200_v44  ;;  %v10209_v46 = vld [vmem:[#allocation8 + $0xe4] ss:$16 sps:$4 sm:$0xff]   ;;  %v10207_v44 = vld [vmem:[#allocation8 + $0xe0] ss:$16 sps:$4 sm:$0xff]  }
 0x3cc   : > { %v14085_v19 = vpop.eup %10940  ;;  %10962 = vtanh.f32 %v3713_v30  ;;  %4598 = vmatprep.subr.bf16.mxu0 %v10203_v34  ;;  %3290 = vmatpush1.bf16.msra.mxu1 %v10198_v53 }
 0x3cd   : > { %v14089_v62 = vpop.eup %10942  ;;  %10964 = vtanh.f32 %v3714_v1  ;;  %4599 = vmatpush1.bf16.msra.mxu0 %v10201_v6  ;;  %3291 = vmatprep.subr.bf16.mxu1 %v10206_v25 }
 0x3ce   : > { %v10945_v11 = vpop.eup %10944  ;;  %10966 = vtanh.f32 %v3715_v5  ;;  %4600 = vmatprep.subr.bf16.mxu0 %v10209_v46 }
 0x3cf   : > { %v14093_v61 = vpop.eup %10946  ;;  %10968 = vtanh.f32 %v3716_v55 }
 0x3d0   : > { %v10949_v59 = vpop.eup %10948  ;;  %3292 = vmatpush1.bf16.msra.mxu1 %v10204_v18  ;;  %v3772_v18 = vpack.c.bf16 %v14069_v13, %v14064_v28 }
 0x3d1   : > { %v14099_v31 = vpop.eup %10950  ;;  %v2645_v29 = vpack.c.bf16 %v10949_v59, %v14085_v19  ;;  %v2203_v17 = vpop.f32.mrb[24].mxu1  ;;  %3963 = vmatmul.mubr.bf16.gmra.mrb[144].mxu0 %v3771_v24 }
 0x3d2   : > { %v10953_v58 = vpop.eup %10952  ;;  %v2396_v3 = vpop.f32.mrb[88].mxu0  ;;  %3157 = vmatmul.mubr.bf16.gmra.mrb[80].mxu1 %v15769_v41  ;;  %v2204_v19 = vadd.f32 %v2203_v17, %v13803_v38  ;;  %3972 = vmatprep.mubr.bf16.mxu0 %v15758_v12 }
 0x3d3   : > { %v14107_v35 = vpop.eup %10954  ;;  %v2397_v14 = vadd.f32 %v2396_v3, %v13881_v52  ;;  %v2205_v30 = vpop.f32.mrb[25].mxu1  ;;  %v2646_v1 = vpack.c.bf16 %v10953_v58, %v10945_v11  ;;  %4601 = vmatpush1.bf16.msra.mxu0 %v10207_v44  ;;  %v10212_v44 = vld [vmem:[#allocation5 + $0x184] ss:$8 sps:$4 sm:$0xff]  }
 0x3d4   : > { %15770 = vst [vmem:[#allocation42_spill] sm:$0xff] %v14107_v35  ;;  %v2398_v53 = vpop.f32.mrb[89].mxu0  ;;  %v14112_v57 = vpop.eup %10956  ;;  %v2206_v56 = vadd.f32 %v2205_v30, %v13807_v2  ;;  %10970 = vtanh.f32 %v2204_v19  ;;  %3293 = vmatprep.subr.bf16.mxu1 %v10212_v44  ;;  %v10225_v35 = vld [vmem:[#allocation8 + $0x140] ss:$16 sps:$4 sm:$0xff]  }
 0x3d5   : > { %v2399_v34 = vadd.f32 %v2398_v53, %v13886_v9  ;;  %v2207_v59 = vpop.f32.mrb[26].mxu1  ;;  %v2400_v5 = vpop.f32.mrb[90].mxu0  ;;  %3166 = vmatprep.mubr.bf16.mxu1 %v2646_v1  ;;  %10972 = vtanh.f32 %v2397_v14  ;;  %v10210_v1 = vld [vmem:[#allocation5 + $0x180] ss:$8 sps:$4 sm:$0xff]  }
 0x3d6   : > { %v14116_v17 = vpop.eup %10958  ;;  %v2208_v3 = vadd.f32 %v2207_v59, %v13803_v38  ;;  %v2209_v11 = vpop.f32.mrb[27].mxu1  ;;  %v2401_v55 = vadd.f32 %v2400_v5, %v13881_v52  ;;  %10974 = vtanh.f32 %v2206_v56  ;;  %v10215_v59 = vld [vmem:[#allocation8 + $0x104] ss:$16 sps:$4 sm:$0xff]   ;;  %3294 = vmatpush1.bf16.msra.mxu1 %v10210_v1 }
 0x3d7   : > { %v2402_v6 = vpop.f32.mrb[91].mxu0  ;;  %v14119_v24 = vpop.eup %10960  ;;  %v2210_v25 = vadd.f32 %v2209_v11, %v13807_v2  ;;  %10976 = vtanh.f32 %v2399_v34  ;;  %v10213_v34 = vld [vmem:[#allocation8 + $0x100] ss:$16 sps:$4 sm:$0xff]   ;;  %4602 = vmatprep.subr.bf16.mxu0 %v10215_v59  ;;  %v10218_v11 = vld [vmem:[#allocation5 + $0x194] ss:$8 sps:$4 sm:$0xff]  }
 0x3d8   : > { %v2403_v41 = vadd.f32 %v2402_v6, %v13886_v9  ;;  %10978 = vtanh.f32 %v2208_v3  ;;  %v10963_v19 = vpop.eup %10962  ;;  %v10216_v3 = vld [vmem:[#allocation5 + $0x190] ss:$8 sps:$4 sm:$0xff]   ;;  %4603 = vmatpush1.bf16.msra.mxu0 %v10213_v34  ;;  %3295 = vmatprep.subr.bf16.mxu1 %v10218_v11 }
 0x3d9   : > { %10980 = vtanh.f32 %v2401_v55  ;;  %3973 = vmatmul.mubr.bf16.gmra.mrb[148].mxu0 %v3772_v18  ;;  %v10965_v14 = vpop.eup %10964  ;;  %v10219_v55 = vld [vmem:[#allocation8 + $0x120] ss:$16 sps:$4 sm:$0xff]  }
 0x3da   : > { %3167 = vmatmul.mubr.bf16.gmra.mrb[84].mxu1 %v2645_v29  ;;  %10982 = vtanh.f32 %v2210_v25  ;;  %3982 = vmatprep.mubr.bf16.mxu0 %v15758_v12  ;;  %v10967_v30 = vpop.eup %10966  ;;  %v3773_v28 = vpack.c.bf16 %v10965_v14, %v10963_v19  ;;  %v10221_v25 = vld [vmem:[#allocation8 + $0x124] ss:$16 sps:$4 sm:$0xff]  }
 0x3db   : > { %10984 = vtanh.f32 %v2403_v41  ;;  %v10969_v53 = vpop.eup %10968  ;;  %v10224_v41 = vld [vmem:[#allocation5 + $0x1a4] ss:$8 sps:$4 sm:$0xff]   ;;  %4604 = vmatprep.subr.bf16.mxu0 %v10221_v25  ;;  %3296 = vmatpush1.bf16.msra.mxu1 %v10216_v3 }
 0x3dc   : > { %v10227_v19 = vld [vmem:[#allocation8 + $0x144] ss:$16 sps:$4 sm:$0xff]   ;;  %3297 = vmatprep.subr.bf16.mxu1 %v10224_v41  ;;  %4605 = vmatpush1.bf16.msra.mxu0 %v10219_v55 }
 0x3dd   : > { %4606 = vmatprep.subr.bf16.mxu0 %v10227_v19  ;;  %v10230_v41 = vld [vmem:[#allocation5 + $0x1b4] ss:$8 sps:$4 sm:$0xff]   ;;  %v10231_v19 = vld [vmem:[#allocation8 + $0x160] ss:$16 sps:$4 sm:$0xff]  }
 0x3de   : > { %v10971_v56 = vpop.eup %10970 }
 0x3df   : > { %v14131_v5 = vpop.eup %10972 }
 0x3e0   : > { %v10975_v13 = vpop.eup %10974  ;;  %4607 = vmatpush1.bf16.msra.mxu0 %v10225_v35  ;;  %v10233_v35 = vld [vmem:[#allocation8 + $0x164] ss:$16 sps:$4 sm:$0xff]  }
 0x3e1   : > { %v14133_v29 = vpop.eup %10976  ;;  %3983 = vmatmul.mubr.bf16.gmra.mrb[152].mxu0 %v3773_v28  ;;  %4608 = vmatprep.subr.bf16.mxu0 %v10233_v35 }
 0x3e2   : > { %v10979_v6 = vpop.eup %10978  ;;  %3992 = vmatprep.mubr.bf16.mxu0 %v15758_v12 }
 0x3e3   : > { %v14136_v18 = vpop.eup %10980  ;;  %v2649_v58 = vpack.c.bf16 %v10979_v6, %v10971_v56  ;;  %v10222_v56 = vld [vmem:[#allocation5 + $0x1a0] ss:$8 sps:$4 sm:$0xff]  }
 0x3e4   : > { %v10983_v14 = vpop.eup %10982  ;;  %v2213_v44 = vpop.f32.mrb[28].mxu1  ;;  %3298 = vmatpush1.bf16.msra.mxu1 %v10222_v56  ;;  %v10236_v56 = vld [vmem:[#allocation5 + $0x1c4] ss:$8 sps:$4 sm:$0xff]   ;;  %4609 = vmatpush1.bf16.msra.mxu0 %v10231_v19 }
 0x3e5   : > { %v2406_v1 = vpop.f32.mrb[92].mxu0  ;;  %v14140_v28 = vpop.eup %10984  ;;  %v2214_v34 = vadd.f32 %v2213_v44, %v13803_v38  ;;  %v2650_v0 = vpack.c.bf16 %v10983_v14, %v10975_v13  ;;  %3299 = vmatprep.subr.bf16.mxu1 %v10230_v41  ;;  %v10234_v41 = vld [vmem:[#allocation5 + $0x1c0] ss:$8 sps:$4 sm:$0xff]  }
 0x3e6   : > { %v2407_v46 = vadd.f32 %v2406_v1, %v13881_v52  ;;  %v2215_v37 = vpop.f32.mrb[29].mxu1  ;;  %v2408_v54 = vpop.f32.mrb[93].mxu0  ;;  %v3774_v1 = vpack.c.bf16 %v10969_v53, %v10967_v30  ;;  %v10228_v53 = vld [vmem:[#allocation5 + $0x1b0] ss:$8 sps:$4 sm:$0xff]  }
 0x3e7   : > { %v2216_v11 = vadd.f32 %v2215_v37, %v13807_v2  ;;  %v2409_v6 = vadd.f32 %v2408_v54, %v13886_v9  ;;  %v2217_v25 = vpop.f32.mrb[30].mxu1  ;;  %v2410_v3 = vpop.f32.mrb[94].mxu0  ;;  %10986 = vtanh.f32 %v2214_v34  ;;  %3176 = vmatprep.mubr.bf16.mxu1 %v2650_v0 }
 0x3e8   : > { %v2218_v44 = vadd.f32 %v2217_v25, %v13803_v38  ;;  %v2219_v13 = vpop.f32.mrb[31].mxu1  ;;  %v2412_v14 = vpop.f32.mrb[95].mxu0  ;;  %10988 = vtanh.f32 %v2407_v46  ;;  %3177 = vmatmul.mubr.bf16.gmra.mrb[88].mxu1 %v2649_v58  ;;  %v2411_v37 = vadd.f32 %v2410_v3, %v13881_v52  ;;  %v15771_v58 = vpack.c.bf16 %v13734_v7, %v13730_v27 }
 0x3e9   : > { %10990 = vtanh.f32 %v2216_v11  ;;  %v2220_v54 = vadd.f32 %v2219_v13, %v13807_v2  ;;  %3993 = vmatmul.mubr.bf16.gmra.mrb[156].mxu0 %v3774_v1  ;;  %v2413_v55 = vadd.f32 %v2412_v14, %v13886_v9  ;;  %3300 = vmatpush1.bf16.msra.mxu1 %v10228_v53  ;;  %v10237_v13 = vld [vmem:[#allocation8 + $0x180] ss:$16 sps:$4 sm:$0xff]  }
 0x3ea   : > { %10992 = vtanh.f32 %v2409_v6  ;;  %4002 = vmatprep.mubr.bf16.mxu0 %v15758_v12  ;;  %v10239_v6 = vld [vmem:[#allocation8 + $0x184] ss:$16 sps:$4 sm:$0xff]   ;;  %3301 = vmatprep.subr.bf16.mxu1 %v10236_v56 }
 0x3eb   : > { %10994 = vtanh.f32 %v2218_v44  ;;  %4610 = vmatprep.subr.bf16.mxu0 %v10239_v6 }
 0x3ec   : > { %10996 = vtanh.f32 %v2411_v37  ;;  %4611 = vmatpush1.bf16.msra.mxu0 %v10237_v13 }
 0x3ed   : > { %10998 = vtanh.f32 %v2220_v54  ;;  %3302 = vmatpush1.bf16.msra.mxu1 %v10234_v41  ;;  %v10243_v41 = vld [vmem:[#allocation8 + $0x1a0] ss:$16 sps:$4 sm:$0xff]  }
 0x3ee   : > { %11000 = vtanh.f32 %v2413_v55 }
 0x3f1   : > { %v10987_v0 = vpop.eup %10986  ;;  %4003 = vmatmul.mubr.bf16.gmra.mrb[160].mxu0 %v15771_v58 }
 0x3f2   : > { %v14156_v46 = vpop.eup %10988  ;;  %4012 = vmatprep.mubr.bf16.mxu0 %v15758_v12 }
 0x3f3   : > { %v10991_v30 = vpop.eup %10990 }
 0x3f4   : > { %v14159_v34 = vpop.eup %10992 }
 0x3f5   : > { %v10995_v11 = vpop.eup %10994 }
 0x3f6   : > { %v14161_v25 = vpop.eup %10996  ;;  %v2653_v3 = vpack.c.bf16 %v10995_v11, %v10987_v0  ;;  %v15772_v11 = vpack.c.bf16 %v13740_v42, %v13737_v60 }
 0x3f7   : > { %v10999_v27 = vpop.eup %10998  ;;  %v2223_v7 = vpop.f32.mrb[32].mxu1 }
 0x3f8   : > { %v2416_v44 = vpop.f32.mrb[96].mxu0  ;;  %v14165_v1 = vpop.eup %11000  ;;  %v2224_v37 = vadd.f32 %v2223_v7, %v13803_v38  ;;  %v2654_v55 = vpack.c.bf16 %v10999_v27, %v10991_v30 }
 0x3f9   : > { %v2417_v54 = vadd.f32 %v2416_v44, %v13881_v52  ;;  %v2225_v58 = vpop.f32.mrb[33].mxu1  ;;  %v2418_v0 = vpop.f32.mrb[97].mxu0  ;;  %4013 = vmatmul.mubr.bf16.gmra.mrb[164].mxu0 %v15772_v11 }
 0x3fa   : > { %v2226_v53 = vadd.f32 %v2225_v58, %v13807_v2  ;;  %v2419_v19 = vadd.f32 %v2418_v0, %v13886_v9  ;;  %v2227_v35 = vpop.f32.mrb[34].mxu1  ;;  %v2420_v56 = vpop.f32.mrb[98].mxu0  ;;  %11002 = vtanh.f32 %v2224_v37  ;;  %3186 = vmatprep.mubr.bf16.mxu1 %v2654_v55  ;;  %4022 = vmatprep.mubr.bf16.mxu0 %v15758_v12  ;;  %v15773_v37 = vpack.c.bf16 %v13747_v10, %v13744_v26  ;;  %v10240_v55 = vld [vmem:[#allocation5 + $0x1d0] ss:$8 sps:$4 sm:$0xff]   ;;  %v10242_v58 = vld [vmem:[#allocation5 + $0x1d4] ss:$8 sps:$4 sm:$0xff]  }
 0x3fb   : > { %v2228_v30 = vadd.f32 %v2227_v35, %v13803_v38  ;;  %v2229_v27 = vpop.f32.mrb[35].mxu1  ;;  %v2422_v44 = vpop.f32.mrb[99].mxu0  ;;  %11004 = vtanh.f32 %v2417_v54  ;;  %3187 = vmatmul.mubr.bf16.gmra.mrb[92].mxu1 %v2653_v3  ;;  %v2421_v6 = vadd.f32 %v2420_v56, %v13881_v52  ;;  %3303 = vmatprep.subr.bf16.mxu1 %v10242_v58  ;;  %v15774_v26 = vpack.c.bf16 %v13753_v8, %v13750_v15  ;;  %v10248_v56 = vld [vmem:[#allocation5 + $0x1e4] ss:$8 sps:$4 sm:$0xff]   ;;  %v10246_v58 = vld [vmem:[#allocation5 + $0x1e0] ss:$8 sps:$4 sm:$0xff]  }
 0x3fc   : > { %11006 = vtanh.f32 %v2226_v53  ;;  %v2230_v60 = vadd.f32 %v2229_v27, %v13807_v2  ;;  %v2423_v42 = vadd.f32 %v2422_v44, %v13886_v9  ;;  %v10245_v53 = vld [vmem:[#allocation8 + $0x1a4] ss:$16 sps:$4 sm:$0xff]   ;;  %3304 = vmatpush1.bf16.msra.mxu1 %v10240_v55 }
 0x3fd   : > { %11008 = vtanh.f32 %v2419_v19  ;;  %4612 = vmatprep.subr.bf16.mxu0 %v10245_v53  ;;  %v10251_v44 = vld [vmem:[#allocation8 + $0x1c4] ss:$16 sps:$4 sm:$0xff]   ;;  %3305 = vmatprep.subr.bf16.mxu1 %v10248_v56  ;;  %v10249_v53 = vld [vmem:[#allocation8 + $0x1c0] ss:$16 sps:$4 sm:$0xff]  }
 0x3fe   : > { %11010 = vtanh.f32 %v2228_v30  ;;  %4613 = vmatpush1.bf16.msra.mxu0 %v10243_v41 }
 0x3ff   : > { %11012 = vtanh.f32 %v2421_v6  ;;  %4614 = vmatprep.subr.bf16.mxu0 %v10251_v44  ;;  %v15775_v44 = vpack.c.bf16 %v13757_v16, %v13755_v36  ;;  %v15776_v36 = vpack.c.bf16 %v13761_v20, %v13759_v21 }
 0x400   : > { %11014 = vtanh.f32 %v2230_v60  ;;  %3306 = vmatpush1.bf16.msra.mxu1 %v10246_v58  ;;  %v10260_v58 = vld [vmem:[#allocation8 + $0xc] ss:$16 sps:$4 sm:$0xff]  }
 0x401   : > { %11016 = vtanh.f32 %v2423_v42  ;;  %4023 = vmatmul.mubr.bf16.gmra.mrb[168].mxu0 %v15773_v37 }
 0x402   : > { %4032 = vmatprep.mubr.bf16.mxu0 %v15758_v12  ;;  %4615 = vmatpush1.bf16.msra.mxu0 %v10249_v53 }
 0x404   : > { %v11003_v3 = vpop.eup %11002 }
 0x405   : > { %v14185_v54 = vpop.eup %11004 }
 0x406   : > { %v11007_v13 = vpop.eup %11006 }
 0x407   : > { %v14187_v0 = vpop.eup %11008 }
 0x408   : > { %v11011_v19 = vpop.eup %11010 }
 0x409   : > { %v14189_v35 = vpop.eup %11012  ;;  %4033 = vmatmul.mubr.bf16.gmra.mrb[172].mxu0 %v15774_v26  ;;  %v2657_v10 = vpack.c.bf16 %v11011_v19, %v11003_v3 }
 0x40a   : > { %v11015_v11 = vpop.eup %11014  ;;  %v2233_v30 = vpop.f32.mrb[36].mxu1  ;;  %4042 = vmatprep.mubr.bf16.mxu0 %v15758_v12 }
 0x40b   : > { %v2426_v27 = vpop.f32.mrb[100].mxu0  ;;  %v14197_v60 = vpop.eup %11016  ;;  %v2234_v42 = vadd.f32 %v2233_v30, %v13803_v38  ;;  %v2658_v8 = vpack.c.bf16 %v11015_v11, %v11007_v13 }
 0x40c   : > { %v2427_v15 = vadd.f32 %v2426_v27, %v13881_v52  ;;  %v2235_v37 = vpop.f32.mrb[37].mxu1  ;;  %v2428_v3 = vpop.f32.mrb[101].mxu0 }
 0x40d   : > { %v2236_v19 = vadd.f32 %v2235_v37, %v13807_v2  ;;  %v2429_v55 = vadd.f32 %v2428_v3, %v13886_v9  ;;  %v2237_v26 = vpop.f32.mrb[38].mxu1  ;;  %v2430_v14 = vpop.f32.mrb[102].mxu0  ;;  %11018 = vtanh.f32 %v2234_v42  ;;  %3196 = vmatprep.mubr.bf16.mxu1 %v2658_v8  ;;  %v10252_v42 = vld [vmem:[#allocation5 + $0x1f0] ss:$8 sps:$4 sm:$0xff]  }
 0x40e   : > { %v2238_v13 = vadd.f32 %v2237_v26, %v13803_v38  ;;  %v2239_v11 = vpop.f32.mrb[39].mxu1  ;;  %v2432_v30 = vpop.f32.mrb[103].mxu0  ;;  %11020 = vtanh.f32 %v2427_v15  ;;  %3197 = vmatmul.mubr.bf16.gmra.mrb[96].mxu1 %v2657_v10  ;;  %v2431_v41 = vadd.f32 %v2430_v14, %v13881_v52  ;;  %v10254_v10 = vld [vmem:[#allocation5 + $0x1f4] ss:$8 sps:$4 sm:$0xff]   ;;  %v10255_v15 = vld [vmem:[#allocation8 + $0x1e0] ss:$16 sps:$4 sm:$0xff]  }
 0x40f   : > { %11022 = vtanh.f32 %v2236_v19  ;;  %v2240_v56 = vadd.f32 %v2239_v11, %v13807_v2  ;;  %v2433_v27 = vadd.f32 %v2432_v30, %v13886_v9  ;;  %v10257_v14 = vld [vmem:[#allocation8 + $0x1e4] ss:$16 sps:$4 sm:$0xff]   ;;  %3307 = vmatprep.subr.bf16.mxu1 %v10254_v10 }
 0x410   : > { %11024 = vtanh.f32 %v2429_v55  ;;  %4616 = vmatprep.subr.bf16.mxu0 %v10257_v14  ;;  %3308 = vmatpush1.bf16.msra.mxu1 %v10252_v42 }
 0x411   : > { %11026 = vtanh.f32 %v2238_v13  ;;  %4043 = vmatmul.mubr.bf16.gmra.mrb[176].mxu0 %v15775_v44  ;;  %4779 = vmatprep.subr.bf16.mxu1 %v10260_v58 }
 0x412   : > { %11028 = vtanh.f32 %v2431_v41  ;;  %4052 = vmatprep.mubr.bf16.mxu0 %v15758_v12  ;;  %4617 = vmatpush1.bf16.msra.mxu0 %v10255_v15 }
 0x413   : > { %11030 = vtanh.f32 %v2240_v56 }
 0x414   : > { %11032 = vtanh.f32 %v2433_v27 }
 0x417   : > { %v11019_v8 = vpop.eup %11018 }
 0x418   : > { %v14213_v37 = vpop.eup %11020 }
 0x419   : > { %v11023_v3 = vpop.eup %11022  ;;  %4053 = vmatmul.mubr.bf16.gmra.mrb[180].mxu0 %v15776_v36 }
 0x41a   : > { %v14218_v16 = vpop.eup %11024  ;;  %4062 = vmatprep.mubr.bf16.mxu0 %v15758_v12 }
 0x41b   : > { %v11027_v53 = vpop.eup %11026 }
 0x41c   : > { %v14221_v19 = vpop.eup %11028  ;;  %v2661_v55 = vpack.c.bf16 %v11027_v53, %v11019_v8 }
 0x41d   : > { %v11031_v26 = vpop.eup %11030  ;;  %v2243_v13 = vpop.f32.mrb[40].mxu1 }
 0x41e   : > { %v2436_v11 = vpop.f32.mrb[104].mxu0  ;;  %v14225_v41 = vpop.eup %11032  ;;  %v2244_v21 = vadd.f32 %v2243_v13, %v13803_v38  ;;  %v2662_v56 = vpack.c.bf16 %v11031_v26, %v11023_v3  ;;  %v15777_v26 = vld [vmem:[#allocation35_spill] sm:$0xff] }
 0x41f   : > { %v2437_v20 = vadd.f32 %v2436_v11, %v13881_v52  ;;  %v2245_v27 = vpop.f32.mrb[41].mxu1  ;;  %v2438_v44 = vpop.f32.mrb[105].mxu0  ;;  %v15778_v13 = vpack.c.bf16 %v13765_v23, %v15777_v26 }
 0x420   : > { %v2246_v42 = vadd.f32 %v2245_v27, %v13807_v2  ;;  %v2439_v10 = vadd.f32 %v2438_v44, %v13886_v9  ;;  %v2247_v15 = vpop.f32.mrb[42].mxu1  ;;  %v2440_v14 = vpop.f32.mrb[106].mxu0  ;;  %11034 = vtanh.f32 %v2244_v21  ;;  %3206 = vmatprep.mubr.bf16.mxu1 %v2662_v56 }
 0x421   : > { %v2248_v36 = vadd.f32 %v2247_v15, %v13803_v38  ;;  %v2249_v58 = vpop.f32.mrb[43].mxu1  ;;  %v2442_v53 = vpop.f32.mrb[107].mxu0  ;;  %11036 = vtanh.f32 %v2437_v20  ;;  %3207 = vmatmul.mubr.bf16.gmra.mrb[100].mxu1 %v2661_v55  ;;  %v2441_v3 = vadd.f32 %v2440_v14, %v13881_v52  ;;  %4063 = vmatmul.mubr.bf16.gmra.mrb[184].mxu0 %v15778_v13  ;;  %v15779_v20 = vld [vmem:[#allocation37_spill] sm:$0xff]  ;;  %v15780_v55 = vld [vmem:[#allocation36_spill] sm:$0xff] }
 0x422   : > { %11038 = vtanh.f32 %v2246_v42  ;;  %v2250_v11 = vadd.f32 %v2249_v58, %v13807_v2  ;;  %4072 = vmatprep.mubr.bf16.mxu0 %v15758_v12  ;;  %v2443_v21 = vadd.f32 %v2442_v53, %v13886_v9  ;;  %v15781_v56 = vpack.c.bf16 %v15779_v20, %v15780_v55 }
 0x423   : > { %11040 = vtanh.f32 %v2439_v10 }
 0x424   : > { %11042 = vtanh.f32 %v2248_v36 }
 0x425   : > { %11044 = vtanh.f32 %v2441_v3 }
 0x426   : > { %11046 = vtanh.f32 %v2250_v11 }
 0x427   : > { %11048 = vtanh.f32 %v2443_v21 }
 0x429   : > { %4073 = vmatmul.mubr.bf16.gmra.mrb[188].mxu0 %v15781_v56 }
 0x42a   : > { %v11035_v27 = vpop.eup %11034 }
 0x42b   : > { %v14244_v44 = vpop.eup %11036 }
 0x42c   : > { %15782 = vst [vmem:[#allocation35_spill] sm:$0xff] %v14244_v44  ;;  %v11039_v23 = vpop.eup %11038 }
 0x42d   : > { %v14246_v42 = vpop.eup %11040 }
 0x42e   : > { %v11043_v15 = vpop.eup %11042 }
 0x42f   : > { %v14248_v14 = vpop.eup %11044  ;;  %v2665_v12 = vpack.c.bf16 %v11043_v15, %v11035_v27 }
 0x430   : > { %v11047_v10 = vpop.eup %11046  ;;  %v2253_v58 = vpop.f32.mrb[44].mxu1 }
 0x431   : > { %v2446_v36 = vpop.f32.mrb[108].mxu0  ;;  %v14252_v3 = vpop.eup %11048  ;;  %v2254_v26 = vadd.f32 %v2253_v58, %v13803_v38  ;;  %v2666_v11 = vpack.c.bf16 %v11047_v10, %v11039_v23 }
 0x432   : > { %v2447_v13 = vadd.f32 %v2446_v36, %v13881_v52  ;;  %v2255_v21 = vpop.f32.mrb[45].mxu1  ;;  %v2448_v20 = vpop.f32.mrb[109].mxu0 }
 0x433   : > { %v2256_v55 = vadd.f32 %v2255_v21, %v13807_v2  ;;  %v2449_v56 = vadd.f32 %v2448_v20, %v13886_v9  ;;  %v2257_v27 = vpop.f32.mrb[46].mxu1  ;;  %v2450_v15 = vpop.f32.mrb[110].mxu0  ;;  %11050 = vtanh.f32 %v2254_v26  ;;  %3216 = vmatprep.mubr.bf16.mxu1 %v2666_v11 }
 0x434   : > { %v2258_v53 = vadd.f32 %v2257_v27, %v13803_v38  ;;  %v2259_v8 = vpop.f32.mrb[47].mxu1  ;;  %v2452_v58 = vpop.f32.mrb[111].mxu0  ;;  %11052 = vtanh.f32 %v2447_v13  ;;  %3217 = vmatmul.mubr.bf16.gmra.mrb[104].mxu1 %v2665_v12  ;;  %v2451_v23 = vadd.f32 %v2450_v15, %v13881_v52 }
 0x435   : > { %11054 = vtanh.f32 %v2256_v55  ;;  %v2260_v10 = vadd.f32 %v2259_v8, %v13807_v2  ;;  %v2453_v36 = vadd.f32 %v2452_v58, %v13886_v9 }
 0x436   : > { %11056 = vtanh.f32 %v2449_v56 }
 0x437   : > { %11058 = vtanh.f32 %v2258_v53 }
 0x438   : > { %11060 = vtanh.f32 %v2451_v23 }
 0x439   : > { %11062 = vtanh.f32 %v2260_v10 }
 0x43a   : > { %11064 = vtanh.f32 %v2453_v36 }
 0x43d   : > { %v11051_v26 = vpop.eup %11050 }
 0x43e   : > { %v14264_v11 = vpop.eup %11052 }
 0x43f   : > { %15783 = vst [vmem:[#allocation37_spill] sm:$0xff] %v14264_v11  ;;  %v11055_v21 = vpop.eup %11054 }
 0x440   : > { %v14266_v20 = vpop.eup %11056 }
 0x441   : > { %15784 = vst [vmem:[#allocation36_spill] sm:$0xff] %v14266_v20  ;;  %v11059_v13 = vpop.eup %11058 }
 0x442   : > { %v14268_v12 = vpop.eup %11060  ;;  %v2669_v27 = vpack.c.bf16 %v11059_v13, %v11051_v26 }
 0x443   : > { %15785 = vst [vmem:[#allocation43_spill] sm:$0xff] %v14268_v12  ;;  %v11063_v55 = vpop.eup %11062  ;;  %v2263_v15 = vpop.f32.mrb[48].mxu1 }
 0x444   : > { %v2456_v8 = vpop.f32.mrb[112].mxu0  ;;  %v14272_v53 = vpop.eup %11064  ;;  %v2264_v58 = vadd.f32 %v2263_v15, %v13803_v38  ;;  %v2670_v10 = vpack.c.bf16 %v11063_v55, %v11055_v21 }
 0x445   : > { %15786 = vst [vmem:[#allocation44_spill] sm:$0xff] %v14272_v53  ;;  %v2457_v23 = vadd.f32 %v2456_v8, %v13881_v52  ;;  %v2265_v36 = vpop.f32.mrb[49].mxu1  ;;  %v2458_v30 = vpop.f32.mrb[113].mxu0 }
 0x446   : > { %v2266_v6 = vadd.f32 %v2265_v36, %v13807_v2  ;;  %v2459_v7 = vadd.f32 %v2458_v30, %v13886_v9  ;;  %v2267_v26 = vpop.f32.mrb[50].mxu1  ;;  %v2460_v13 = vpop.f32.mrb[114].mxu0  ;;  %11066 = vtanh.f32 %v2264_v58  ;;  %3226 = vmatprep.mubr.bf16.mxu1 %v2670_v10 }
 0x447   : > { %v2268_v56 = vadd.f32 %v2267_v26, %v13803_v38  ;;  %v2269_v11 = vpop.f32.mrb[51].mxu1  ;;  %v2462_v15 = vpop.f32.mrb[115].mxu0  ;;  %11068 = vtanh.f32 %v2457_v23  ;;  %3227 = vmatmul.mubr.bf16.gmra.mrb[108].mxu1 %v2669_v27  ;;  %v2461_v21 = vadd.f32 %v2460_v13, %v13881_v52 }
 0x448   : > { %11070 = vtanh.f32 %v2266_v6  ;;  %v2270_v55 = vadd.f32 %v2269_v11, %v13807_v2  ;;  %v2463_v30 = vadd.f32 %v2462_v15, %v13886_v9 }
 0x449   : > { %11072 = vtanh.f32 %v2459_v7 }
 0x44a   : > { %11074 = vtanh.f32 %v2268_v56 }
 0x44b   : > { %11076 = vtanh.f32 %v2461_v21 }
 0x44c   : > { %11078 = vtanh.f32 %v2270_v55 }
 0x44d   : > { %11080 = vtanh.f32 %v2463_v30 }
 0x450   : > { %v11067_v8 = vpop.eup %11066 }
 0x451   : > { %v14284_v58 = vpop.eup %11068 }
 0x452   : > { %15787 = vst [vmem:[#allocation45_spill] sm:$0xff] %v14284_v58  ;;  %v11071_v10 = vpop.eup %11070 }
 0x453   : > { %v14286_v36 = vpop.eup %11072 }
 0x454   : > { %15788 = vst [vmem:[#allocation46_spill] sm:$0xff] %v14286_v36  ;;  %v11075_v23 = vpop.eup %11074 }
 0x455   : > { %v14288_v27 = vpop.eup %11076  ;;  %v2673_v26 = vpack.c.bf16 %v11075_v23, %v11067_v8 }
 0x456   : > { %15789 = vst [vmem:[#allocation47_spill] sm:$0xff] %v14288_v27  ;;  %v11079_v6 = vpop.eup %11078  ;;  %v2273_v56 = vpop.f32.mrb[52].mxu1 }
 0x457   : > { %v14292_v11 = vpop.eup %11080  ;;  %v2466_v13 = vpop.f32.mrb[116].mxu0  ;;  %v2674_v15 = vpack.c.bf16 %v11079_v6, %v11071_v10  ;;  %v2274_v21 = vadd.f32 %v2273_v56, %v13803_v38 }
 0x458   : > { %15790 = vst [vmem:[#allocation48_spill] sm:$0xff] %v14292_v11  ;;  %v2467_v55 = vadd.f32 %v2466_v13, %v13881_v52  ;;  %v2275_v30 = vpop.f32.mrb[53].mxu1  ;;  %v2468_v59 = vpop.f32.mrb[117].mxu0 }
 0x459   : > { %3236 = vmatprep.mubr.bf16.mxu1 %v2674_v15  ;;  %v2276_v8 = vadd.f32 %v2275_v30, %v13807_v2  ;;  %v2469_v23 = vadd.f32 %v2468_v59, %v13886_v9  ;;  %v2277_v7 = vpop.f32.mrb[54].mxu1  ;;  %v2470_v58 = vpop.f32.mrb[118].mxu0  ;;  %11082 = vtanh.f32 %v2274_v21 }
 0x45a   : > { %3237 = vmatmul.mubr.bf16.gmra.mrb[112].mxu1 %v2673_v26  ;;  %v2278_v10 = vadd.f32 %v2277_v7, %v13803_v38  ;;  %v2279_v6 = vpop.f32.mrb[55].mxu1  ;;  %v2472_v56 = vpop.f32.mrb[119].mxu0  ;;  %11084 = vtanh.f32 %v2467_v55  ;;  %v2471_v13 = vadd.f32 %v2470_v58, %v13881_v52 }
 0x45b   : > { %11086 = vtanh.f32 %v2276_v8  ;;  %v2280_v27 = vadd.f32 %v2279_v6, %v13807_v2  ;;  %v2473_v15 = vadd.f32 %v2472_v56, %v13886_v9 }
 0x45c   : > { %11088 = vtanh.f32 %v2469_v23 }
 0x45d   : > { %11090 = vtanh.f32 %v2278_v10 }
 0x45e   : > { %11092 = vtanh.f32 %v2471_v13 }
 0x45f   : > { %11094 = vtanh.f32 %v2280_v27 }
 0x460   : > { %11096 = vtanh.f32 %v2473_v15 }
 0x463   : > { %v11083_v59 = vpop.eup %11082 }
 0x464   : > { %v14304_v21 = vpop.eup %11084 }
 0x465   : > { %15791 = vst [vmem:[#allocation49_spill] sm:$0xff] %v14304_v21  ;;  %v11087_v26 = vpop.eup %11086 }
 0x466   : > { %v14306_v7 = vpop.eup %11088 }
 0x467   : > { %15792 = vst [vmem:[#allocation50_spill] sm:$0xff] %v14306_v7  ;;  %v11091_v30 = vpop.eup %11090  ;;  %v3766_v7 = vld [vmem:[#allocation16 + $0x5] ss:$8 sm:$0x3] }
 0x468   : > { %v14308_v55 = vpop.eup %11092  ;;  %v2677_v12 = vpack.c.bf16 %v11091_v30, %v11083_v59 }
 0x469   : > { %15793 = vst [vmem:[#allocation51_spill] sm:$0xff] %v14308_v55  ;;  %v2283_v58 = vpop.f32.mrb[56].mxu1  ;;  %v2476_v8 = vpop.f32.mrb[120].mxu0 }
 0x46a   : > { %v11095_v6 = vpop.eup %11094  ;;  %v2284_v23 = vadd.f32 %v2283_v58, %v13803_v38  ;;  %v2477_v10 = vadd.f32 %v2476_v8, %v13881_v52  ;;  %v2285_v56 = vpop.f32.mrb[57].mxu1 }
 0x46b   : > { %v2478_v27 = vpop.f32.mrb[121].mxu0  ;;  %v14314_v15 = vpop.eup %11096  ;;  %v2678_v36 = vpack.c.bf16 %v11095_v6, %v11087_v26  ;;  %v2286_v11 = vadd.f32 %v2285_v56, %v13807_v2 }
 0x46c   : > { %15794 = vst [vmem:[#allocation52_spill] sm:$0xff] %v14314_v15  ;;  %v2479_v20 = vadd.f32 %v2478_v27, %v13886_v9  ;;  %v2287_v53 = vpop.f32.mrb[58].mxu1  ;;  %v2480_v44 = vpop.f32.mrb[122].mxu0  ;;  %11098 = vtanh.f32 %v2284_v23 }
 0x46d   : > { %v2288_v59 = vadd.f32 %v2287_v53, %v13803_v38  ;;  %v2289_v30 = vpop.f32.mrb[59].mxu1  ;;  %v2482_v58 = vpop.f32.mrb[123].mxu0  ;;  %11100 = vtanh.f32 %v2477_v10  ;;  %3246 = vmatprep.mubr.bf16.mxu1 %v2678_v36  ;;  %v2481_v13 = vadd.f32 %v2480_v44, %v13881_v52 }
 0x46e   : > { %11102 = vtanh.f32 %v2286_v11  ;;  %3247 = vmatmul.mubr.bf16.gmra.mrb[116].mxu1 %v2677_v12  ;;  %v2290_v26 = vadd.f32 %v2289_v30, %v13807_v2  ;;  %v2483_v6 = vadd.f32 %v2482_v58, %v13886_v9 }
 0x46f   : > { %11104 = vtanh.f32 %v2479_v20 }
 0x470   : > { %11106 = vtanh.f32 %v2288_v59 }
 0x471   : > { %11108 = vtanh.f32 %v2481_v13 }
 0x472   : > { %11110 = vtanh.f32 %v2290_v26 }
 0x473   : > { %11112 = vtanh.f32 %v2483_v6 }
 0x476   : > { %v11099_v53 = vpop.eup %11098 }
 0x477   : > { %v14324_v23 = vpop.eup %11100 }
 0x478   : > { %15795 = vst [vmem:[#allocation53_spill] sm:$0xff] %v14324_v23  ;;  %v11103_v56 = vpop.eup %11102 }
 0x479   : > { %v14326_v27 = vpop.eup %11104 }
 0x47a   : > { %v11107_v36 = vpop.eup %11106 }
 0x47b   : > { %v14328_v10 = vpop.eup %11108  ;;  %v2681_v44 = vpack.c.bf16 %v11107_v36, %v11099_v53 }
 0x47c   : > { %v11111_v12 = vpop.eup %11110  ;;  %v2293_v11 = vpop.f32.mrb[60].mxu1 }
 0x47d   : > { %v2486_v30 = vpop.f32.mrb[124].mxu0  ;;  %v14332_v59 = vpop.eup %11112  ;;  %v2294_v13 = vadd.f32 %v2293_v11, %v13803_v38  ;;  %v2682_v26 = vpack.c.bf16 %v11111_v12, %v11103_v56 }
 0x47e   : > { %v2487_v58 = vadd.f32 %v2486_v30, %v13881_v52  ;;  %v2295_v6 = vpop.f32.mrb[61].mxu1  ;;  %v2488_v8 = vpop.f32.mrb[125].mxu0 }
 0x47f   : > { %v2296_v21 = vadd.f32 %v2295_v6, %v13807_v2  ;;  %v2489_v55 = vadd.f32 %v2488_v8, %v13886_v9  ;;  %v2297_v53 = vpop.f32.mrb[62].mxu1  ;;  %v2490_v36 = vpop.f32.mrb[126].mxu0  ;;  %11114 = vtanh.f32 %v2294_v13  ;;  %3256 = vmatprep.mubr.bf16.mxu1 %v2682_v26  ;;  %v15796_v8 = vld [vmem:[#allocation32_spill] sm:$0xff]  ;;  %v15797_v13 = vld [vmem:[#allocation33_spill] sm:$0xff] }
 0x480   : > { %v2298_v20 = vadd.f32 %v2297_v53, %v13803_v38  ;;  %v2299_v11 = vpop.f32.mrb[63].mxu1  ;;  %v2492_v23 = vpop.f32.mrb[127].mxu0  ;;  %11116 = vtanh.f32 %v2487_v58  ;;  %3257 = vmatmul.mubr.bf16.gmra.mrb[120].mxu1 %v2681_v44  ;;  %v2491_v56 = vadd.f32 %v2490_v36, %v13881_v52  ;;  %v14344_v30 = vrot.slane %v3766_v7, %v15796_v8  ;;  %v10299_v6 = vld [vmem:[#allocation10 + $0x4] ss:$8 sps:$4 sm:$0xff]  }
 0x481   : > { %11118 = vtanh.f32 %v2296_v21  ;;  %v2300_v12 = vadd.f32 %v2299_v11, %v13807_v2  ;;  %v2493_v15 = vadd.f32 %v2492_v23, %v13886_v9  ;;  %v14348_v26 = vrot.slane %v3766_v7, %v15797_v13  ;;  %5561 = vmatprep.subr.bf16.mxu0 %v10299_v6 }
 0x482   : > { %11120 = vtanh.f32 %v2489_v55 }
 0x483   : > { %11122 = vtanh.f32 %v2298_v20 }
 0x484   : > { %11124 = vtanh.f32 %v2491_v56  ;;  %v3924_v38 = vpop.f32.mrb[128].mxu0 }
 0x485   : > { %11126 = vtanh.f32 %v2300_v12  ;;  %v3925_v52 = vadd.f32 %v3924_v38, %v14344_v30  ;;  %v3926_v21 = vpop.f32.mrb[129].mxu0 }
 0x486   : > { %11128 = vtanh.f32 %v2493_v15  ;;  %v3927_v2 = vadd.f32 %v3926_v21, %v14348_v26  ;;  %v3928_v44 = vpop.f32.mrb[130].mxu0 }
 0x487   : > { %11130 = vtanh.f32 %v3925_v52  ;;  %v3929_v55 = vadd.f32 %v3928_v44, %v14344_v30  ;;  %v3930_v58 = vpop.f32.mrb[131].mxu0 }
 0x488   : > { %11132 = vtanh.f32 %v3927_v2  ;;  %v3931_v9 = vadd.f32 %v3930_v58, %v14348_v26 }
 0x489   : > { %v11115_v7 = vpop.eup %11114  ;;  %11134 = vtanh.f32 %v3929_v55 }
 0x48a   : > { %v14354_v23 = vpop.eup %11116  ;;  %11136 = vtanh.f32 %v3931_v9 }
 0x48b   : > { %15798 = vst [vmem:[#allocation54_spill] sm:$0xff] %v14354_v23  ;;  %v11119_v20 = vpop.eup %11118  ;;  %v10266_v23 = vld [vmem:[#allocation8 + $0x4c] ss:$16 sps:$4 sm:$0xff]  }
 0x48c   : > { %v14356_v53 = vpop.eup %11120  ;;  %v3934_v36 = vpop.f32.mrb[132].mxu0 }
 0x48d   : > { %v11123_v15 = vpop.eup %11122  ;;  %v3935_v11 = vadd.f32 %v3934_v36, %v14344_v30  ;;  %v3936_v56 = vpop.f32.mrb[133].mxu0 }
 0x48e   : > { %v14359_v12 = vpop.eup %11124  ;;  %v3937_v6 = vadd.f32 %v3936_v56, %v14348_v26  ;;  %v3938_v38 = vpop.f32.mrb[134].mxu0  ;;  %v2685_v52 = vpack.c.bf16 %v11123_v15, %v11115_v7 }
 0x48f   : > { %v11127_v21 = vpop.eup %11126  ;;  %11138 = vtanh.f32 %v3935_v11  ;;  %v3939_v2 = vadd.f32 %v3938_v38, %v14344_v30  ;;  %v3940_v44 = vpop.f32.mrb[135].mxu0  ;;  %v15799_v38 = vpack.c.bf16 %v13939_v51, %v13932_v32  ;;  %v10258_v51 = vld [vmem:[#allocation8 + $0x8] ss:$16 sps:$4 sm:$0xff]  }
 0x490   : > { %v14365_v58 = vpop.eup %11128  ;;  %11140 = vtanh.f32 %v3937_v6  ;;  %v2686_v9 = vpack.c.bf16 %v11127_v21, %v11119_v20  ;;  %v3941_v36 = vadd.f32 %v3940_v44, %v14348_v26  ;;  %v10297_v44 = vld [vmem:[#allocation10] ss:$8 sps:$4 sm:$0xff]  }
 0x491   : > { %v11131_v13 = vpop.eup %11130  ;;  %11142 = vtanh.f32 %v3939_v2 }
 0x492   : > { %v11133_v7 = vpop.eup %11132  ;;  %3266 = vmatprep.mubr.bf16.mxu1 %v2686_v9  ;;  %11144 = vtanh.f32 %v3941_v36  ;;  %v10305_v36 = vld [vmem:[#allocation10 + $0x14] ss:$8 sps:$4 sm:$0xff]  }
 0x493   : > { %v11135_v15 = vpop.eup %11134  ;;  %3267 = vmatmul.mubr.bf16.gmra.mrb[124].mxu1 %v2685_v52 }
 0x494   : > { %v11137_v11 = vpop.eup %11136  ;;  %3309 = vmatprep.mubr.bf16.mxu1 %v15799_v38  ;;  %v3944_v55 = vpop.f32.mrb[136].mxu0  ;;  %v14373_v6 = vpack.c.bf16 %v11135_v15, %v11131_v13 }
 0x495   : > { %v3945_v20 = vadd.f32 %v3944_v55, %v14344_v30  ;;  %v3946_v21 = vpop.f32.mrb[137].mxu0  ;;  %v14376_v2 = vpack.c.bf16 %v11137_v11, %v11133_v7  ;;  %v10263_v55 = vld [vmem:[#allocation8 + $0x2c] ss:$16 sps:$4 sm:$0xff]   ;;  %v10303_v7 = vld [vmem:[#allocation10 + $0x10] ss:$8 sps:$4 sm:$0xff]  }
 0x496   : > { %15800 = vst [vmem:[#allocation55_spill] sm:$0xff] %v14373_v6  ;;  %v3947_v56 = vadd.f32 %v3946_v21, %v14348_v26  ;;  %v3948_v9 = vpop.f32.mrb[138].mxu0  ;;  %v10311_v11 = vld [vmem:[#allocation10 + $0x24] ss:$8 sps:$4 sm:$0xff]   ;;  %v15803_v21 = vld [vmem:[#allocation39_spill] sm:$0xff] }
 0x497   : > { %15801 = vst [vmem:[#allocation56_spill] sm:$0xff] %v14376_v2  ;;  %11146 = vtanh.f32 %v3945_v20  ;;  %v3949_v52 = vadd.f32 %v3948_v9, %v14344_v30  ;;  %v3950_v8 = vpop.f32.mrb[139].mxu0  ;;  %4618 = vmatprep.mubr.bf16.mxu0 %v14376_v2  ;;  %v15802_v20 = vld [vmem:[#allocation40_spill] sm:$0xff] }
 0x498   : > { %11148 = vtanh.f32 %v3947_v56  ;;  %v3951_v32 = vadd.f32 %v3950_v8, %v14348_v26  ;;  %4619 = vmatmul.mubr.bf16.vlgmr.msra.gmra.mrb[192].mxu0 %v14373_v6  ;;  %v15804_v9 = vpack.c.bf16 %v15802_v20, %v15803_v21  ;;  %v15805_v8 = vpack.c.bf16 %v13975_v47, %v13968_v40  ;;  %v10309_v20 = vld [vmem:[#allocation10 + $0x20] ss:$8 sps:$4 sm:$0xff]  }
 0x499   : > { %v11139_v13 = vpop.eup %11138  ;;  %11150 = vtanh.f32 %v3949_v52  ;;  %5562 = vmatpush1.bf16.msra.mxu0 %v10297_v44  ;;  %v10261_v52 = vld [vmem:[#allocation8 + $0x28] ss:$16 sps:$4 sm:$0xff]  }
 0x49a   : > { %v11141_v15 = vpop.eup %11140  ;;  %11152 = vtanh.f32 %v3951_v32  ;;  %5563 = vmatprep.subr.bf16.mxu0 %v10305_v36 }
 0x49b   : > { %v11143_v38 = vpop.eup %11142  ;;  %3310 = vmatmul.mubr.bf16.vlgmr.msra.gmra.mrb[64].mxu1 %v15804_v9  ;;  %v10317_v9 = vld [vmem:[#allocation10 + $0x34] ss:$8 sps:$4 sm:$0xff]  }
 0x49c   : > { %v11145_v56 = vpop.eup %11144  ;;  %4780 = vmatpush1.bf16.msra.mxu1 %v10258_v51  ;;  %3319 = vmatprep.mubr.bf16.mxu1 %v15805_v8  ;;  %v3954_v6 = vpop.f32.mrb[140].mxu0  ;;  %v14389_v2 = vpack.c.bf16 %v11143_v38, %v11139_v13  ;;  %v10264_v13 = vld [vmem:[#allocation8 + $0x48] ss:$16 sps:$4 sm:$0xff]   ;;  %v10320_v38 = vld [vmem:[#allocation10 + $0x44] ss:$8 sps:$4 sm:$0xff]  }
 0x49d   : > { %v3955_v44 = vadd.f32 %v3954_v6, %v14344_v30  ;;  %v3956_v32 = vpop.f32.mrb[141].mxu0  ;;  %v14392_v36 = vpack.c.bf16 %v11145_v56, %v11141_v15  ;;  %4781 = vmatprep.subr.bf16.mxu1 %v10263_v55  ;;  %5564 = vmatpush1.bf16.msra.mxu0 %v10303_v7  ;;  %v10269_v7 = vld [vmem:[#allocation8 + $0x6c] ss:$16 sps:$4 sm:$0xff]   ;;  %v10315_v15 = vld [vmem:[#allocation10 + $0x30] ss:$8 sps:$4 sm:$0xff]  }
 0x49e   : > { %v3957_v21 = vadd.f32 %v3956_v32, %v14348_v26  ;;  %v3958_v51 = vpop.f32.mrb[142].mxu0  ;;  %5565 = vmatprep.subr.bf16.mxu0 %v10311_v11  ;;  %v15806_v8 = vld [vmem:[#allocation41_spill] sm:$0xff] }
 0x49f   : > { %11154 = vtanh.f32 %v3955_v44  ;;  %v3959_v40 = vadd.f32 %v3958_v51, %v14344_v30  ;;  %v3960_v47 = vpop.f32.mrb[143].mxu0  ;;  %4628 = vmatprep.mubr.bf16.mxu0 %v14392_v36  ;;  %v15807_v44 = vpack.c.bf16 %v13971_v4, %v15806_v8  ;;  %v10318_v4 = vld [vmem:[#allocation10 + $0x40] ss:$8 sps:$4 sm:$0xff]  }
 0x4a0   : > { %11156 = vtanh.f32 %v3957_v21  ;;  %v3961_v6 = vadd.f32 %v3960_v47, %v14348_v26  ;;  %4629 = vmatmul.mubr.bf16.gmra.mrb[196].mxu0 %v14389_v2  ;;  %4782 = vmatpush1.bf16.msra.mxu1 %v10261_v52  ;;  %v15808_v52 = vpack.c.bf16 %v14030_v50, %v14021_v39  ;;  %v10272_v47 = vld [vmem:[#allocation8 + $0x8c] ss:$16 sps:$4 sm:$0xff]  }
 0x4a1   : > { %v11147_v55 = vpop.eup %11146  ;;  %11158 = vtanh.f32 %v3959_v40  ;;  %4783 = vmatprep.subr.bf16.mxu1 %v10266_v23  ;;  %5566 = vmatpush1.bf16.msra.mxu0 %v10309_v20  ;;  %v10267_v23 = vld [vmem:[#allocation8 + $0x68] ss:$16 sps:$4 sm:$0xff]   ;;  %v10323_v39 = vld [vmem:[#allocation10 + $0x54] ss:$8 sps:$4 sm:$0xff]  }
 0x4a2   : > { %v11149_v11 = vpop.eup %11148  ;;  %11160 = vtanh.f32 %v3961_v6  ;;  %5567 = vmatprep.subr.bf16.mxu0 %v10317_v9 }
 0x4a3   : > { %v11151_v56 = vpop.eup %11150  ;;  %3320 = vmatmul.mubr.bf16.gmra.mrb[68].mxu1 %v15807_v44 }
 0x4a4   : > { %v11153_v32 = vpop.eup %11152  ;;  %3329 = vmatprep.mubr.bf16.mxu1 %v15808_v52  ;;  %v3964_v21 = vpop.f32.mrb[144].mxu0  ;;  %v14405_v51 = vpack.c.bf16 %v11151_v56, %v11147_v55  ;;  %4784 = vmatpush1.bf16.msra.mxu1 %v10264_v13 }
 0x4a5   : > { %v3965_v20 = vadd.f32 %v3964_v21, %v14344_v30  ;;  %v3966_v40 = vpop.f32.mrb[145].mxu0  ;;  %v14408_v9 = vpack.c.bf16 %v11153_v32, %v11149_v11  ;;  %4785 = vmatprep.subr.bf16.mxu1 %v10269_v7  ;;  %5568 = vmatpush1.bf16.msra.mxu0 %v10315_v15  ;;  %v10270_v7 = vld [vmem:[#allocation8 + $0x88] ss:$16 sps:$4 sm:$0xff]   ;;  %v10275_v11 = vld [vmem:[#allocation8 + $0xac] ss:$16 sps:$4 sm:$0xff]   ;;  %v15809_v32 = vpack.c.bf16 %v14025_v45, %v14014_v49 }
 0x4a6   : > { %v3967_v6 = vadd.f32 %v3966_v40, %v14348_v26  ;;  %v3968_v8 = vpop.f32.mrb[146].mxu0  ;;  %5569 = vmatprep.subr.bf16.mxu0 %v10320_v38  ;;  %v10321_v38 = vld [vmem:[#allocation10 + $0x50] ss:$8 sps:$4 sm:$0xff]   ;;  %v15810_v21 = vpack.c.bf16 %v14056_v33, %v14051_v43  ;;  %v10324_v49 = vld [vmem:[#allocation10 + $0x60] ss:$8 sps:$4 sm:$0xff]  }
 0x4a7   : > { %11162 = vtanh.f32 %v3965_v20  ;;  %v3969_v50 = vadd.f32 %v3968_v8, %v14344_v30  ;;  %v3970_v55 = vpop.f32.mrb[147].mxu0  ;;  %4638 = vmatprep.mubr.bf16.mxu0 %v14408_v9  ;;  %v10273_v40 = vld [vmem:[#allocation8 + $0xa8] ss:$16 sps:$4 sm:$0xff]  }
 0x4a8   : > { %11164 = vtanh.f32 %v3967_v6  ;;  %v3971_v13 = vadd.f32 %v3970_v55, %v14348_v26  ;;  %4639 = vmatmul.mubr.bf16.gmra.mrb[200].mxu0 %v14405_v51  ;;  %4786 = vmatpush1.bf16.msra.mxu1 %v10267_v23 }
 0x4a9   : > { %v11155_v15 = vpop.eup %11154  ;;  %11166 = vtanh.f32 %v3969_v50  ;;  %4787 = vmatprep.subr.bf16.mxu1 %v10272_v47  ;;  %5570 = vmatpush1.bf16.msra.mxu0 %v10318_v4  ;;  %v10326_v47 = vld [vmem:[#allocation10 + $0x64] ss:$8 sps:$4 sm:$0xff]  }
 0x4aa   : > { %v11157_v56 = vpop.eup %11156  ;;  %11168 = vtanh.f32 %v3971_v13  ;;  %5571 = vmatprep.subr.bf16.mxu0 %v10323_v39  ;;  %v10278_v39 = vld [vmem:[#allocation8 + $0xcc] ss:$16 sps:$4 sm:$0xff]   ;;  %v10276_v13 = vld [vmem:[#allocation8 + $0xc8] ss:$16 sps:$4 sm:$0xff]  }
 0x4ab   : > { %v11159_v44 = vpop.eup %11158  ;;  %3330 = vmatmul.mubr.bf16.gmra.mrb[72].mxu1 %v15809_v32 }
 0x4ac   : > { %v11161_v52 = vpop.eup %11160  ;;  %3339 = vmatprep.mubr.bf16.mxu1 %v15810_v21  ;;  %v3974_v23 = vpop.f32.mrb[148].mxu0  ;;  %v14421_v20 = vpack.c.bf16 %v11159_v44, %v11155_v15  ;;  %4788 = vmatpush1.bf16.msra.mxu1 %v10270_v7  ;;  %v10281_v15 = vld [vmem:[#allocation8 + $0xec] ss:$16 sps:$4 sm:$0xff]   ;;  %v10279_v44 = vld [vmem:[#allocation8 + $0xe8] ss:$16 sps:$4 sm:$0xff]  }
 0x4ad   : > { %v3975_v4 = vadd.f32 %v3974_v23, %v14344_v30  ;;  %v3976_v6 = vpop.f32.mrb[149].mxu0  ;;  %v14424_v8 = vpack.c.bf16 %v11161_v52, %v11157_v56  ;;  %4789 = vmatprep.subr.bf16.mxu1 %v10275_v11  ;;  %5572 = vmatpush1.bf16.msra.mxu0 %v10321_v38  ;;  %v15811_v56 = vpack.c.bf16 %v14054_v63, %v14044_v48  ;;  %v10284_v48 = vld [vmem:[#allocation8 + $0x10c] ss:$16 sps:$4 sm:$0xff]  }
 0x4ae   : > { %v3977_v45 = vadd.f32 %v3976_v6, %v14348_v26  ;;  %v3978_v50 = vpop.f32.mrb[150].mxu0  ;;  %5573 = vmatprep.subr.bf16.mxu0 %v10326_v47  ;;  %v15812_v52 = vpack.c.bf16 %v14099_v31, %v14089_v62  ;;  %v10329_v47 = vld [vmem:[#allocation10 + $0x74] ss:$8 sps:$4 sm:$0xff]  }
 0x4af   : > { %11170 = vtanh.f32 %v3975_v4  ;;  %v3979_v43 = vadd.f32 %v3978_v50, %v14344_v30  ;;  %v3980_v33 = vpop.f32.mrb[151].mxu0  ;;  %4648 = vmatprep.mubr.bf16.mxu0 %v14424_v8  ;;  %v10282_v50 = vld [vmem:[#allocation8 + $0x108] ss:$16 sps:$4 sm:$0xff]  }
 0x4b0   : > { %11172 = vtanh.f32 %v3977_v45  ;;  %v3981_v55 = vadd.f32 %v3980_v33, %v14348_v26  ;;  %4649 = vmatmul.mubr.bf16.gmra.mrb[204].mxu0 %v14421_v20  ;;  %4790 = vmatpush1.bf16.msra.mxu1 %v10273_v40  ;;  %v10327_v40 = vld [vmem:[#allocation10 + $0x70] ss:$8 sps:$4 sm:$0xff]   ;;  %v10287_v33 = vld [vmem:[#allocation8 + $0x12c] ss:$16 sps:$4 sm:$0xff]  }
 0x4b1   : > { %v11163_v7 = vpop.eup %11162  ;;  %11174 = vtanh.f32 %v3979_v43  ;;  %4791 = vmatprep.subr.bf16.mxu1 %v10278_v39  ;;  %5574 = vmatpush1.bf16.msra.mxu0 %v10324_v49 }
 0x4b2   : > { %v11165_v11 = vpop.eup %11164  ;;  %11176 = vtanh.f32 %v3981_v55  ;;  %5575 = vmatprep.subr.bf16.mxu0 %v10329_v47 }
 0x4b3   : > { %v11167_v38 = vpop.eup %11166  ;;  %3340 = vmatmul.mubr.bf16.gmra.mrb[76].mxu1 %v15811_v56 }
 0x4b4   : > { %v11169_v32 = vpop.eup %11168  ;;  %3349 = vmatprep.mubr.bf16.mxu1 %v15812_v52  ;;  %v3984_v21 = vpop.f32.mrb[152].mxu0  ;;  %v14437_v23 = vpack.c.bf16 %v11167_v38, %v11163_v7  ;;  %4792 = vmatpush1.bf16.msra.mxu1 %v10276_v13  ;;  %v15813_v7 = vpack.c.bf16 %v14093_v61, %v14077_v22  ;;  %v15814_v38 = vpack.c.bf16 %v14119_v24, %v14112_v57  ;;  %v10332_v52 = vld [vmem:[#allocation10 + $0x84] ss:$8 sps:$4 sm:$0xff]  }
 0x4b5   : > { %v3985_v4 = vadd.f32 %v3984_v21, %v14344_v30  ;;  %v3986_v6 = vpop.f32.mrb[153].mxu0  ;;  %v14440_v39 = vpack.c.bf16 %v11169_v32, %v11165_v11  ;;  %4793 = vmatprep.subr.bf16.mxu1 %v10281_v15  ;;  %5576 = vmatpush1.bf16.msra.mxu0 %v10327_v40  ;;  %v10285_v15 = vld [vmem:[#allocation8 + $0x128] ss:$16 sps:$4 sm:$0xff]   ;;  %v10290_v22 = vld [vmem:[#allocation8 + $0x14c] ss:$16 sps:$4 sm:$0xff]  }
 0x4b6   : > { %v3987_v63 = vadd.f32 %v3986_v6, %v14348_v26  ;;  %v3988_v49 = vpop.f32.mrb[154].mxu0  ;;  %v10330_v32 = vld [vmem:[#allocation10 + $0x80] ss:$8 sps:$4 sm:$0xff]   ;;  %5577 = vmatprep.subr.bf16.mxu0 %v10332_v52 }
 0x4b7   : > { %11178 = vtanh.f32 %v3985_v4  ;;  %v3989_v62 = vadd.f32 %v3988_v49, %v14344_v30  ;;  %v3990_v31 = vpop.f32.mrb[155].mxu0  ;;  %4658 = vmatprep.mubr.bf16.mxu0 %v14440_v39  ;;  %v10293_v49 = vld [vmem:[#allocation8 + $0x16c] ss:$16 sps:$4 sm:$0xff]  }
 0x4b8   : > { %11180 = vtanh.f32 %v3987_v63  ;;  %v3991_v45 = vadd.f32 %v3990_v31, %v14348_v26  ;;  %4659 = vmatmul.mubr.bf16.gmra.mrb[208].mxu0 %v14437_v23  ;;  %4794 = vmatpush1.bf16.msra.mxu1 %v10279_v44 }
 0x4b9   : > { %v11171_v43 = vpop.eup %11170  ;;  %11182 = vtanh.f32 %v3989_v62  ;;  %4795 = vmatprep.subr.bf16.mxu1 %v10284_v48  ;;  %5578 = vmatpush1.bf16.msra.mxu0 %v10330_v32  ;;  %v10288_v48 = vld [vmem:[#allocation8 + $0x148] ss:$16 sps:$4 sm:$0xff]  }
 0x4ba   : > { %v11173_v55 = vpop.eup %11172  ;;  %11184 = vtanh.f32 %v3991_v45  ;;  %v15815_v45 = vld [vmem:[#allocation42_spill] sm:$0xff] }
 0x4bb   : > { %v11175_v13 = vpop.eup %11174  ;;  %3350 = vmatmul.mubr.bf16.gmra.mrb[80].mxu1 %v15813_v7 }
 0x4bc   : > { %v11177_v11 = vpop.eup %11176  ;;  %3359 = vmatprep.mubr.bf16.mxu1 %v15814_v38  ;;  %v3994_v56 = vpop.f32.mrb[156].mxu0  ;;  %v14453_v44 = vpack.c.bf16 %v11175_v13, %v11171_v43  ;;  %4796 = vmatpush1.bf16.msra.mxu1 %v10282_v50  ;;  %v15816_v50 = vpack.c.bf16 %v14116_v17, %v15815_v45  ;;  %v10291_v43 = vld [vmem:[#allocation8 + $0x168] ss:$16 sps:$4 sm:$0xff]   ;;  %v10296_v17 = vld [vmem:[#allocation8 + $0x18c] ss:$16 sps:$4 sm:$0xff]  }
 0x4bd   : > { %v3995_v21 = vadd.f32 %v3994_v56, %v14344_v30  ;;  %v3996_v40 = vpop.f32.mrb[157].mxu0  ;;  %v14456_v47 = vpack.c.bf16 %v11177_v11, %v11173_v55  ;;  %4797 = vmatprep.subr.bf16.mxu1 %v10287_v33  ;;  %v15817_v55 = vpack.c.bf16 %v14140_v28, %v14133_v29  ;;  %v10335_v11 = vld [vmem:[#allocation10 + $0x94] ss:$8 sps:$4 sm:$0xff]   ;;  %v10336_v45 = vld [vmem:[#allocation10 + $0xa0] ss:$8 sps:$4 sm:$0xff]  }
 0x4be   : > { %v3997_v61 = vadd.f32 %v3996_v40, %v14348_v26  ;;  %v3998_v4 = vpop.f32.mrb[158].mxu0  ;;  %5579 = vmatprep.subr.bf16.mxu0 %v10335_v11  ;;  %v10306_v11 = vld [vmem:[#allocation8 + $0x1c8] ss:$16 sps:$4 sm:$0xff]  }
 0x4bf   : > { %11186 = vtanh.f32 %v3995_v21  ;;  %v3999_v57 = vadd.f32 %v3998_v4, %v14344_v30  ;;  %v4000_v24 = vpop.f32.mrb[159].mxu0  ;;  %4668 = vmatprep.mubr.bf16.mxu0 %v14456_v47  ;;  %v10302_v4 = vld [vmem:[#allocation8 + $0x1ac] ss:$16 sps:$4 sm:$0xff]  }
 0x4c0   : > { %11188 = vtanh.f32 %v3997_v61  ;;  %v4001_v6 = vadd.f32 %v4000_v24, %v14348_v26  ;;  %4669 = vmatmul.mubr.bf16.gmra.mrb[212].mxu0 %v14453_v44  ;;  %4798 = vmatpush1.bf16.msra.mxu1 %v10285_v15  ;;  %v10333_v15 = vld [vmem:[#allocation10 + $0x90] ss:$8 sps:$4 sm:$0xff]  }
 0x4c1   : > { %v11179_v63 = vpop.eup %11178  ;;  %11190 = vtanh.f32 %v3999_v57  ;;  %4799 = vmatprep.subr.bf16.mxu1 %v10290_v22  ;;  %5580 = vmatpush1.bf16.msra.mxu0 %v10333_v15  ;;  %v10294_v22 = vld [vmem:[#allocation8 + $0x188] ss:$16 sps:$4 sm:$0xff]  }
 0x4c2   : > { %v11181_v62 = vpop.eup %11180  ;;  %11192 = vtanh.f32 %v4001_v6  ;;  %v15818_v6 = vpack.c.bf16 %v14136_v18, %v14131_v5  ;;  %v10308_v5 = vld [vmem:[#allocation8 + $0x1cc] ss:$16 sps:$4 sm:$0xff]  }
 0x4c3   : > { %v11183_v31 = vpop.eup %11182  ;;  %3360 = vmatmul.mubr.bf16.gmra.mrb[84].mxu1 %v15816_v50  ;;  %v10338_v50 = vld [vmem:[#allocation10 + $0xa4] ss:$8 sps:$4 sm:$0xff]  }
 0x4c4   : > { %v11185_v33 = vpop.eup %11184  ;;  %3369 = vmatprep.mubr.bf16.mxu1 %v15817_v55  ;;  %v4004_v13 = vpop.f32.mrb[160].mxu0  ;;  %v14469_v7 = vpack.c.bf16 %v11183_v31, %v11179_v63  ;;  %4800 = vmatpush1.bf16.msra.mxu1 %v10288_v48  ;;  %v10300_v48 = vld [vmem:[#allocation8 + $0x1a8] ss:$16 sps:$4 sm:$0xff]  }
 0x4c5   : > { %v4005_v38 = vadd.f32 %v4004_v13, %v14344_v30  ;;  %v4006_v56 = vpop.f32.mrb[161].mxu0  ;;  %v14472_v32 = vpack.c.bf16 %v11185_v33, %v11181_v62  ;;  %4801 = vmatprep.subr.bf16.mxu1 %v10293_v49  ;;  %v15819_v49 = vpack.c.bf16 %v14165_v1, %v14159_v34  ;;  %5581 = vmatprep.subr.bf16.mxu0 %v10338_v50 }
 0x4c6   : > { %v4007_v52 = vadd.f32 %v4006_v56, %v14348_v26  ;;  %v4008_v21 = vpop.f32.mrb[162].mxu0  ;;  %5582 = vmatpush1.bf16.msra.mxu0 %v10336_v45  ;;  %v10314_v56 = vld [vmem:[#allocation8 + $0x1ec] ss:$16 sps:$4 sm:$0xff]   ;;  %v15822_v50 = vpack.c.bf16 %v14189_v35, %v14185_v54 }
 0x4c7   : > { %11194 = vtanh.f32 %v4005_v38  ;;  %v4009_v29 = vadd.f32 %v4008_v21, %v14344_v30  ;;  %v4010_v28 = vpop.f32.mrb[163].mxu0  ;;  %4678 = vmatprep.mubr.bf16.mxu0 %v14472_v32  ;;  %v15820_v21 = vpack.c.bf16 %v14161_v25, %v14156_v46 }
 0x4c8   : > { %11196 = vtanh.f32 %v4007_v52  ;;  %v4011_v40 = vadd.f32 %v4010_v28, %v14348_v26  ;;  %4679 = vmatmul.mubr.bf16.gmra.mrb[216].mxu0 %v14469_v7  ;;  %4802 = vmatpush1.bf16.msra.mxu1 %v10291_v43 }
 0x4c9   : > { %v11187_v61 = vpop.eup %11186  ;;  %11198 = vtanh.f32 %v4009_v29  ;;  %4803 = vmatprep.subr.bf16.mxu1 %v10296_v17  ;;  %v10312_v29 = vld [vmem:[#allocation8 + $0x1e8] ss:$16 sps:$4 sm:$0xff]  }
 0x4ca   : > { %v11189_v57 = vpop.eup %11188  ;;  %11200 = vtanh.f32 %v4011_v40  ;;  %v15821_v40 = vpack.c.bf16 %v14197_v60, %v14187_v0 }
 0x4cb   : > { %v11191_v24 = vpop.eup %11190  ;;  %3370 = vmatmul.mubr.bf16.gmra.mrb[88].mxu1 %v15818_v6 }
 0x4cc   : > { %v11193_v63 = vpop.eup %11192  ;;  %3379 = vmatprep.mubr.bf16.mxu1 %v15819_v49  ;;  %v4014_v62 = vpop.f32.mrb[164].mxu0  ;;  %v14485_v31 = vpack.c.bf16 %v11191_v24, %v11187_v61  ;;  %4804 = vmatpush1.bf16.msra.mxu1 %v10294_v22 }
 0x4cd   : > { %v4015_v43 = vadd.f32 %v4014_v62, %v14344_v30  ;;  %v4016_v33 = vpop.f32.mrb[165].mxu0  ;;  %v14488_v55 = vpack.c.bf16 %v11193_v63, %v11189_v57  ;;  %4805 = vmatprep.subr.bf16.mxu1 %v10302_v4  ;;  %v10339_v4 = vld [vmem:[#allocation10 + $0xb0] ss:$8 sps:$4 sm:$0xff]   ;;  %v10341_v57 = vld [vmem:[#allocation10 + $0xb4] ss:$8 sps:$4 sm:$0xff]  }
 0x4ce   : > { %v4017_v18 = vadd.f32 %v4016_v33, %v14348_v26  ;;  %v4018_v13 = vpop.f32.mrb[166].mxu0  ;;  %5583 = vmatprep.subr.bf16.mxu0 %v10341_v57  ;;  %v15823_v33 = vpack.c.bf16 %v14225_v41, %v14218_v16  ;;  %v10347_v57 = vld [vmem:[#allocation10 + $0xd4] ss:$8 sps:$4 sm:$0xff]  }
 0x4cf   : > { %11202 = vtanh.f32 %v4015_v43  ;;  %v4019_v34 = vadd.f32 %v4018_v13, %v14344_v30  ;;  %v4020_v1 = vpop.f32.mrb[167].mxu0  ;;  %4688 = vmatprep.mubr.bf16.mxu0 %v14488_v55  ;;  %5584 = vmatpush1.bf16.msra.mxu0 %v10339_v4  ;;  %v10342_v13 = vld [vmem:[#allocation10 + $0xc0] ss:$8 sps:$4 sm:$0xff]   ;;  %v10345_v4 = vld [vmem:[#allocation10 + $0xd0] ss:$8 sps:$4 sm:$0xff]  }
 0x4d0   : > { %11204 = vtanh.f32 %v4017_v18  ;;  %v4021_v15 = vadd.f32 %v4020_v1, %v14348_v26  ;;  %4689 = vmatmul.mubr.bf16.gmra.mrb[220].mxu0 %v14485_v31  ;;  %4806 = vmatpush1.bf16.msra.mxu1 %v10300_v48 }
 0x4d1   : > { %v11195_v38 = vpop.eup %11194  ;;  %11206 = vtanh.f32 %v4019_v34  ;;  %4807 = vmatprep.subr.bf16.mxu1 %v10308_v5  ;;  %v10344_v34 = vld [vmem:[#allocation10 + $0xc4] ss:$8 sps:$4 sm:$0xff]  }
 0x4d2   : > { %v11197_v17 = vpop.eup %11196  ;;  %11208 = vtanh.f32 %v4021_v15  ;;  %5585 = vmatprep.subr.bf16.mxu0 %v10344_v34 }
 0x4d3   : > { %v11199_v52 = vpop.eup %11198  ;;  %3380 = vmatmul.mubr.bf16.gmra.mrb[92].mxu1 %v15820_v21  ;;  %5586 = vmatpush1.bf16.msra.mxu0 %v10342_v13  ;;  %v15824_v21 = vpack.c.bf16 %v14221_v19, %v14213_v37 }
 0x4d4   : > { %v11201_v28 = vpop.eup %11200  ;;  %3389 = vmatprep.mubr.bf16.mxu1 %v15821_v40  ;;  %v4024_v22 = vpop.f32.mrb[168].mxu0  ;;  %v14501_v61 = vpack.c.bf16 %v11199_v52, %v11195_v38  ;;  %4808 = vmatpush1.bf16.msra.mxu1 %v10306_v11 }
 0x4d5   : > { %v4025_v24 = vadd.f32 %v4024_v22, %v14344_v30  ;;  %v4026_v6 = vpop.f32.mrb[169].mxu0  ;;  %v14504_v48 = vpack.c.bf16 %v11201_v28, %v11197_v17  ;;  %4809 = vmatprep.subr.bf16.mxu1 %v10314_v56  ;;  %v15825_v28 = vpack.c.bf16 %v14252_v3, %v14246_v42  ;;  %5587 = vmatprep.subr.bf16.mxu0 %v10347_v57 }
 0x4d6   : > { %v4027_v46 = vadd.f32 %v4026_v6, %v14348_v26  ;;  %v4028_v25 = vpop.f32.mrb[170].mxu0 }
 0x4d7   : > { %11210 = vtanh.f32 %v4025_v24  ;;  %v4029_v0 = vadd.f32 %v4028_v25, %v14344_v30  ;;  %v4030_v60 = vpop.f32.mrb[171].mxu0  ;;  %4698 = vmatprep.mubr.bf16.mxu0 %v14504_v48  ;;  %5588 = vmatpush1.bf16.msra.mxu0 %v10345_v4  ;;  %v15835_v4 = vld [vmem:[#allocation46_spill] sm:$0xff] }
 0x4d8   : > { %11212 = vtanh.f32 %v4027_v46  ;;  %v4031_v63 = vadd.f32 %v4030_v60, %v14348_v26  ;;  %4699 = vmatmul.mubr.bf16.gmra.mrb[224].mxu0 %v14501_v61  ;;  %4810 = vmatpush1.bf16.msra.mxu1 %v10312_v29 }
 0x4d9   : > { %v11203_v49 = vpop.eup %11202  ;;  %11214 = vtanh.f32 %v4029_v0 }
 0x4da   : > { %v11205_v62 = vpop.eup %11204  ;;  %11216 = vtanh.f32 %v4031_v63 }
 0x4db   : > { %v11207_v45 = vpop.eup %11206  ;;  %3390 = vmatmul.mubr.bf16.gmra.mrb[96].mxu1 %v15822_v50  ;;  %v15828_v50 = vld [vmem:[#allocation44_spill] sm:$0xff] }
 0x4dc   : > { %v11209_v43 = vpop.eup %11208  ;;  %3399 = vmatprep.mubr.bf16.mxu1 %v15823_v33  ;;  %v4034_v5 = vpop.f32.mrb[172].mxu0  ;;  %v14517_v18 = vpack.c.bf16 %v11207_v45, %v11203_v49  ;;  %v15826_v49 = vld [vmem:[#allocation35_spill] sm:$0xff] }
 0x4dd   : > { %v4035_v1 = vadd.f32 %v4034_v5, %v14344_v30  ;;  %v4036_v15 = vpop.f32.mrb[173].mxu0  ;;  %v14520_v11 = vpack.c.bf16 %v11209_v43, %v11205_v62  ;;  %v15827_v62 = vpack.c.bf16 %v14248_v14, %v15826_v49  ;;  %v15829_v43 = vld [vmem:[#allocation36_spill] sm:$0xff] }
 0x4de   : > { %v4037_v38 = vadd.f32 %v4036_v15, %v14348_v26  ;;  %v4038_v56 = vpop.f32.mrb[174].mxu0  ;;  %v15830_v33 = vpack.c.bf16 %v15828_v50, %v15829_v43  ;;  %v15837_v43 = vld [vmem:[#allocation47_spill] sm:$0xff] }
 0x4df   : > { %11218 = vtanh.f32 %v4035_v1  ;;  %v4039_v54 = vadd.f32 %v4038_v56, %v14344_v30  ;;  %v4040_v35 = vpop.f32.mrb[175].mxu0  ;;  %4708 = vmatprep.mubr.bf16.mxu0 %v14520_v11 }
 0x4e0   : > { %11220 = vtanh.f32 %v4037_v38  ;;  %v4041_v16 = vadd.f32 %v4040_v35, %v14348_v26  ;;  %4709 = vmatmul.mubr.bf16.gmra.mrb[228].mxu0 %v14517_v18 }
 0x4e1   : > { %v11211_v41 = vpop.eup %11210  ;;  %11222 = vtanh.f32 %v4039_v54 }
 0x4e2   : > { %v11213_v17 = vpop.eup %11212  ;;  %11224 = vtanh.f32 %v4041_v16 }
 0x4e3   : > { %v11215_v52 = vpop.eup %11214  ;;  %3400 = vmatmul.mubr.bf16.gmra.mrb[100].mxu1 %v15824_v21  ;;  %v15832_v21 = vld [vmem:[#allocation37_spill] sm:$0xff] }
 0x4e4   : > { %v11217_v29 = vpop.eup %11216  ;;  %3409 = vmatprep.mubr.bf16.mxu1 %v15825_v28  ;;  %v4044_v40 = vpop.f32.mrb[176].mxu0  ;;  %v14533_v22 = vpack.c.bf16 %v11215_v52, %v11211_v41  ;;  %v15831_v52 = vld [vmem:[#allocation43_spill] sm:$0xff] }
 0x4e5   : > { %v4045_v24 = vadd.f32 %v4044_v40, %v14344_v30  ;;  %v4046_v6 = vpop.f32.mrb[177].mxu0  ;;  %v14536_v46 = vpack.c.bf16 %v11217_v29, %v11213_v17  ;;  %v15833_v29 = vpack.c.bf16 %v15831_v52, %v15832_v21  ;;  %v15834_v40 = vld [vmem:[#allocation48_spill] sm:$0xff] }
 0x4e6   : > { %v4047_v25 = vadd.f32 %v4046_v6, %v14348_v26  ;;  %v4048_v0 = vpop.f32.mrb[178].mxu0  ;;  %v15836_v57 = vpack.c.bf16 %v15834_v40, %v15835_v4  ;;  %v10351_v4 = vld [vmem:[#allocation10 + $0xf0] ss:$8 sps:$4 sm:$0xff]  }
 0x4e7   : > { %11226 = vtanh.f32 %v4045_v24  ;;  %v4049_v37 = vadd.f32 %v4048_v0, %v14344_v30  ;;  %v4050_v19 = vpop.f32.mrb[179].mxu0  ;;  %4718 = vmatprep.mubr.bf16.mxu0 %v14536_v46 }
 0x4e8   : > { %11228 = vtanh.f32 %v4047_v25  ;;  %v4051_v42 = vadd.f32 %v4050_v19, %v14348_v26  ;;  %4719 = vmatmul.mubr.bf16.gmra.mrb[232].mxu0 %v14533_v22 }
 0x4e9   : > { %v11219_v3 = vpop.eup %11218  ;;  %11230 = vtanh.f32 %v4049_v37 }
 0x4ea   : > { %v11221_v60 = vpop.eup %11220  ;;  %11232 = vtanh.f32 %v4051_v42 }
 0x4eb   : > { %v11223_v63 = vpop.eup %11222  ;;  %3410 = vmatmul.mubr.bf16.gmra.mrb[104].mxu1 %v15827_v62 }
 0x4ec   : > { %v11225_v45 = vpop.eup %11224  ;;  %3419 = vmatprep.mubr.bf16.mxu1 %v15830_v33  ;;  %v4054_v5 = vpop.f32.mrb[180].mxu0  ;;  %v14549_v13 = vpack.c.bf16 %v11223_v63, %v11219_v3  ;;  %v15838_v33 = vld [vmem:[#allocation45_spill] sm:$0xff] }
 0x4ed   : > { %v4055_v34 = vadd.f32 %v4054_v5, %v14344_v30  ;;  %v4056_v1 = vpop.f32.mrb[181].mxu0  ;;  %v14552_v15 = vpack.c.bf16 %v11225_v45, %v11221_v60  ;;  %v10350_v45 = vld [vmem:[#allocation10 + $0xe4] ss:$8 sps:$4 sm:$0xff]   ;;  %v15839_v5 = vpack.c.bf16 %v15837_v43, %v15838_v33 }
 0x4ee   : > { %v4057_v38 = vadd.f32 %v4056_v1, %v14348_v26  ;;  %v4058_v56 = vpop.f32.mrb[182].mxu0  ;;  %5589 = vmatprep.subr.bf16.mxu0 %v10350_v45  ;;  %v10356_v33 = vld [vmem:[#allocation10 + $0x104] ss:$8 sps:$4 sm:$0xff]  }
 0x4ef   : > { %11234 = vtanh.f32 %v4055_v34  ;;  %v4059_v14 = vadd.f32 %v4058_v56, %v14344_v30  ;;  %v4060_v54 = vpop.f32.mrb[183].mxu0  ;;  %4728 = vmatprep.mubr.bf16.mxu0 %v14552_v15  ;;  %v10348_v34 = vld [vmem:[#allocation10 + $0xe0] ss:$8 sps:$4 sm:$0xff]   ;;  %v15841_v56 = vld [vmem:[#allocation50_spill] sm:$0xff] }
 0x4f0   : > { %11236 = vtanh.f32 %v4057_v38  ;;  %v4061_v35 = vadd.f32 %v4060_v54, %v14348_v26  ;;  %4729 = vmatmul.mubr.bf16.gmra.mrb[236].mxu0 %v14549_v13  ;;  %v15840_v38 = vld [vmem:[#allocation52_spill] sm:$0xff] }
 0x4f1   : > { %v11227_v16 = vpop.eup %11226  ;;  %11238 = vtanh.f32 %v4059_v14  ;;  %v15842_v14 = vpack.c.bf16 %v15840_v38, %v15841_v56  ;;  %5590 = vmatpush1.bf16.msra.mxu0 %v10348_v34  ;;  %v15853_v56 = vld [vmem:[#allocation55_spill] sm:$0xff] }
 0x4f2   : > { %v11229_v41 = vpop.eup %11228  ;;  %11240 = vtanh.f32 %v4061_v35 }
 0x4f3   : > { %v11231_v17 = vpop.eup %11230  ;;  %3420 = vmatmul.mubr.bf16.gmra.mrb[108].mxu1 %v15833_v29  ;;  %v10353_v29 = vld [vmem:[#allocation10 + $0xf4] ss:$8 sps:$4 sm:$0xff]  }
 0x4f4   : > { %v11233_v28 = vpop.eup %11232  ;;  %3429 = vmatprep.mubr.bf16.mxu1 %v15836_v57  ;;  %v4064_v24 = vpop.f32.mrb[184].mxu0  ;;  %v14565_v6 = vpack.c.bf16 %v11231_v17, %v11227_v16  ;;  %5591 = vmatprep.subr.bf16.mxu0 %v10353_v29 }
 0x4f5   : > { %v4065_v25 = vadd.f32 %v4064_v24, %v14344_v30  ;;  %v4066_v0 = vpop.f32.mrb[185].mxu0  ;;  %v14568_v37 = vpack.c.bf16 %v11233_v28, %v11229_v41  ;;  %5592 = vmatpush1.bf16.msra.mxu0 %v10351_v4 }
 0x4f6   : > { %v4067_v19 = vadd.f32 %v4066_v0, %v14348_v26  ;;  %v4068_v42 = vpop.f32.mrb[186].mxu0  ;;  %5754 = vmatprep.subr.bf16.mxu0 %v10356_v33 }
 0x4f7   : > { %11242 = vtanh.f32 %v4065_v25  ;;  %v4069_v3 = vadd.f32 %v4068_v42, %v14344_v30  ;;  %v4070_v60 = vpop.f32.mrb[187].mxu0  ;;  %4738 = vmatprep.mubr.bf16.mxu0 %v14568_v37  ;;  %v15844_v42 = vld [vmem:[#allocation49_spill] sm:$0xff] }
 0x4f8   : > { %11244 = vtanh.f32 %v4067_v19  ;;  %v4071_v63 = vadd.f32 %v4070_v60, %v14348_v26  ;;  %4739 = vmatmul.mubr.bf16.gmra.mrb[240].mxu0 %v14565_v6  ;;  %v15843_v19 = vld [vmem:[#allocation51_spill] sm:$0xff]  ;;  %v15846_v60 = vpack.c.bf16 %v14332_v59, %v14326_v27  ;;  %v15849_v27 = vpack.c.bf16 %v14365_v58, %v14356_v53 }
 0x4f9   : > { %v11235_v49 = vpop.eup %11234  ;;  %11246 = vtanh.f32 %v4069_v3  ;;  %v15845_v3 = vpack.c.bf16 %v15843_v19, %v15844_v42  ;;  %v14639_v53 = vld [vmem:[#allocation16 + $0x6] ss:$8 sm:$0xf] }
 0x4fa   : > { %v11237_v62 = vpop.eup %11236  ;;  %11248 = vtanh.f32 %v4071_v63 }
 0x4fb   : > { %v11239_v50 = vpop.eup %11238  ;;  %3430 = vmatmul.mubr.bf16.gmra.mrb[112].mxu1 %v15839_v5 }
 0x4fc   : > { %v11241_v1 = vpop.eup %11240  ;;  %3439 = vmatprep.mubr.bf16.mxu1 %v15842_v14  ;;  %v4074_v54 = vpop.f32.mrb[188].mxu0  ;;  %v14581_v35 = vpack.c.bf16 %v11239_v50, %v11235_v49  ;;  %v15847_v50 = vld [vmem:[#allocation53_spill] sm:$0xff] }
 0x4fd   : > { %v4075_v16 = vadd.f32 %v4074_v54, %v14344_v30  ;;  %v4076_v41 = vpop.f32.mrb[189].mxu0  ;;  %v14584_v17 = vpack.c.bf16 %v11241_v1, %v11237_v62  ;;  %v15848_v43 = vpack.c.bf16 %v14328_v10, %v15847_v50  ;;  %v15850_v1 = vld [vmem:[#allocation54_spill] sm:$0xff]  ;;  %v15852_v10 = vld [vmem:[#allocation56_spill] sm:$0xff] }
 0x4fe   : > { %v4077_v52 = vadd.f32 %v4076_v41, %v14348_v26  ;;  %v4078_v21 = vpop.f32.mrb[190].mxu0  ;;  %v15851_v38 = vpack.c.bf16 %v14359_v12, %v15850_v1  ;;  %v15854_v12 = vld [vmem:[#allocation32_spill] sm:$0xff]  ;;  %v10357_v1 = vld [vmem:[#allocation10 + $0x110] ss:$8 sps:$4 sm:$0xff]  }
 0x4ff   : > { %11250 = vtanh.f32 %v4075_v16  ;;  %v4079_v28 = vadd.f32 %v4078_v21, %v14344_v30  ;;  %v4080_v40 = vpop.f32.mrb[191].mxu0  ;;  %4748 = vmatprep.mubr.bf16.mxu0 %v14584_v17  ;;  %v14643_v58 = vrot.slane %v14639_v53, %v15854_v12 }
 0x500   : > { %11252 = vtanh.f32 %v4077_v52  ;;  %v4081_v57 = vadd.f32 %v4080_v40, %v14348_v26  ;;  %4749 = vmatmul.mubr.bf16.gmra.mrb[244].mxu0 %v14581_v35 }
 0x501   : > { %v11243_v24 = vpop.eup %11242  ;;  %11254 = vtanh.f32 %v4079_v28 }
 0x502   : > { %v11245_v25 = vpop.eup %11244  ;;  %11256 = vtanh.f32 %v4081_v57 }
 0x503   : > { %v11247_v0 = vpop.eup %11246  ;;  %3440 = vmatmul.mubr.bf16.gmra.mrb[116].mxu1 %v15845_v3 }
 0x504   : > { %v11249_v30 = vpop.eup %11248  ;;  %3449 = vmatprep.mubr.bf16.mxu1 %v15846_v60  ;;  %v14597_v63 = vpack.c.bf16 %v11247_v0, %v11243_v24 }
 0x505   : > { %v14599_v26 = vpack.c.bf16 %v11249_v30, %v11245_v25  ;;  %v10354_v30 = vld [vmem:[#allocation10 + $0x100] ss:$8 sps:$4 sm:$0xff]  }
 0x507   : > { %4758 = vmatprep.mubr.bf16.mxu0 %v14599_v26 }
 0x508   : > { %4759 = vmatmul.mubr.bf16.gmra.mrb[248].mxu0 %v14597_v63 }
 0x509   : > { %v11251_v49 = vpop.eup %11250 }
 0x50a   : > { %v11253_v62 = vpop.eup %11252 }
 0x50b   : > { %v11255_v45 = vpop.eup %11254  ;;  %3450 = vmatmul.mubr.bf16.gmra.mrb[120].mxu1 %v15848_v43 }
 0x50c   : > { %v11257_v5 = vpop.eup %11256  ;;  %3459 = vmatprep.mubr.bf16.mxu1 %v15849_v27  ;;  %v14609_v59 = vpack.c.bf16 %v11255_v45, %v11251_v49  ;;  %v10359_v45 = vld [vmem:[#allocation10 + $0x114] ss:$8 sps:$4 sm:$0xff]  }
 0x50d   : > { %v14611_v34 = vpack.c.bf16 %v11257_v5, %v11253_v62 }
 0x50f   : > { %4768 = vmatprep.mubr.bf16.mxu0 %v14611_v34 }
 0x510   : > { %4769 = vmatmul.mubr.bf16.gmra.mrb[252].mxu0 %v14609_v59 }
 0x513   : > { %3460 = vmatmul.mubr.bf16.gmra.mrb[124].mxu1 %v15851_v38 }
 0x514   : > { %4811 = vmatprep.mubr.bf16.mxu1 %v15852_v10  ;;  %v10362_v10 = vld [vmem:[#allocation10 + $0x124] ss:$8 sps:$4 sm:$0xff]  }
 0x51b   : > { %4812 = vmatmul.mubr.bf16.vlgmr.msra.gmra.mrb[128].mxu1 %v15853_v56 }
 0x51c   : > { %4821 = vmatprep.mubr.bf16.mxu1 %v14392_v36 }
 0x523   : > { %4822 = vmatmul.mubr.bf16.gmra.mrb[132].mxu1 %v14389_v2 }
 0x524   : > { %4831 = vmatprep.mubr.bf16.mxu1 %v14408_v9 }
 0x52b   : > { %4832 = vmatmul.mubr.bf16.gmra.mrb[136].mxu1 %v14405_v51  ;;  %v15855_v51 = vld [vmem:[#allocation33_spill] sm:$0xff] }
 0x52c   : > { %4841 = vmatprep.mubr.bf16.mxu1 %v14424_v8  ;;  %v14650_v9 = vrot.slane %v14639_v53, %v15855_v51 }
 0x533   : > { %4842 = vmatmul.mubr.bf16.gmra.mrb[140].mxu1 %v14421_v20 }
 0x534   : > { %4851 = vmatprep.mubr.bf16.mxu1 %v14440_v39 }
 0x53b   : > { %4852 = vmatmul.mubr.bf16.gmra.mrb[144].mxu1 %v14437_v23 }
 0x53c   : > { %4861 = vmatprep.mubr.bf16.mxu1 %v14456_v47 }
 0x543   : > { %4862 = vmatmul.mubr.bf16.gmra.mrb[148].mxu1 %v14453_v44 }
 0x544   : > { %4871 = vmatprep.mubr.bf16.mxu1 %v14472_v32 }
 0x54b   : > { %4872 = vmatmul.mubr.bf16.gmra.mrb[152].mxu1 %v14469_v7 }
 0x54c   : > { %4881 = vmatprep.mubr.bf16.mxu1 %v14488_v55 }
 0x553   : > { %4882 = vmatmul.mubr.bf16.gmra.mrb[156].mxu1 %v14485_v31 }
 0x554   : > { %4891 = vmatprep.mubr.bf16.mxu1 %v14504_v48 }
 0x55b   : > { %4892 = vmatmul.mubr.bf16.gmra.mrb[160].mxu1 %v14501_v61 }
 0x55c   : > { %4901 = vmatprep.mubr.bf16.mxu1 %v14520_v11 }
 0x563   : > { %4902 = vmatmul.mubr.bf16.gmra.mrb[164].mxu1 %v14517_v18 }
 0x564   : > { %4911 = vmatprep.mubr.bf16.mxu1 %v14536_v46 }
 0x56b   : > { %4912 = vmatmul.mubr.bf16.gmra.mrb[168].mxu1 %v14533_v22  ;;  %v4620_v2 = vpop.f32.mrb[192].mxu0 }
 0x56c   : > { %4921 = vmatprep.mubr.bf16.mxu1 %v14552_v15  ;;  %v4621_v36 = vadd.f32 %v4620_v2, %v14643_v58  ;;  %v4622_v20 = vpop.f32.mrb[193].mxu0 }
 0x56d   : > { %v4624_v8 = vpop.f32.mrb[194].mxu0  ;;  %v4623_v7 = vadd.f32 %v4622_v20, %v14650_v9 }
 0x56e   : > { %v14652_v23 = vpop.f32.mrb[64].mxu1  ;;  %v4625_v39 = vadd.f32 %v4624_v8, %v14643_v58  ;;  %v4626_v44 = vpop.f32.mrb[195].mxu0  ;;  %11258 = vtanh.f32 %v4621_v36 }
 0x56f   : > { %v14655_v47 = vpop.f32.mrb[65].mxu1  ;;  %v4627_v55 = vadd.f32 %v4626_v44, %v14650_v9 }
 0x570   : > { %v14658_v32 = vpop.f32.mrb[66].mxu1  ;;  %11260 = vtanh.f32 %v4625_v39 }
 0x571   : > { %v14660_v31 = vpop.f32.mrb[67].mxu1  ;;  %11262 = vtanh.f32 %v4623_v7  ;;  %v10360_v7 = vld [vmem:[#allocation10 + $0x120] ss:$8 sps:$4 sm:$0xff]  }
 0x572   : > { %11264 = vtanh.f32 %v4627_v55 }
 0x573   : > { %4922 = vmatmul.mubr.bf16.gmra.mrb[172].mxu1 %v14549_v13  ;;  %v4630_v61 = vpop.f32.mrb[196].mxu0 }
 0x574   : > { %4931 = vmatprep.mubr.bf16.mxu1 %v14568_v37  ;;  %v4631_v48 = vadd.f32 %v4630_v61, %v14643_v58  ;;  %v4632_v18 = vpop.f32.mrb[197].mxu0 }
 0x575   : > { %v4634_v11 = vpop.f32.mrb[198].mxu0  ;;  %v4633_v54 = vadd.f32 %v4632_v18, %v14650_v9  ;;  %v10365_v18 = vld [vmem:[#allocation10 + $0x134] ss:$8 sps:$4 sm:$0xff]  }
 0x576   : > { %v14666_v22 = vpop.f32.mrb[68].mxu1  ;;  %v4635_v46 = vadd.f32 %v4634_v11, %v14643_v58  ;;  %v4636_v15 = vpop.f32.mrb[199].mxu0  ;;  %11266 = vtanh.f32 %v4631_v48 }
 0x577   : > { %v14669_v14 = vpop.f32.mrb[69].mxu1  ;;  %v4637_v41 = vadd.f32 %v4636_v15, %v14650_v9 }
 0x578   : > { %v14672_v13 = vpop.f32.mrb[70].mxu1  ;;  %11268 = vtanh.f32 %v4635_v46  ;;  %v11259_v16 = vpop.eup %11258 }
 0x579   : > { %v14674_v37 = vpop.f32.mrb[71].mxu1  ;;  %11270 = vtanh.f32 %v4633_v54 }
 0x57a   : > { %v11261_v52 = vpop.eup %11260  ;;  %11272 = vtanh.f32 %v4637_v41  ;;  %v10363_v41 = vld [vmem:[#allocation10 + $0x130] ss:$8 sps:$4 sm:$0xff]  }
 0x57b   : > { %v5102_v21 = vpack.c.bf16 %v11261_v52, %v11259_v16  ;;  %4932 = vmatmul.mubr.bf16.gmra.mrb[176].mxu1 %v14565_v6  ;;  %v4640_v29 = vpop.f32.mrb[200].mxu0  ;;  %v11263_v57 = vpop.eup %11262 }
 0x57c   : > { %4941 = vmatprep.mubr.bf16.mxu1 %v14584_v17  ;;  %v4641_v28 = vadd.f32 %v4640_v29, %v14643_v58  ;;  %v4642_v40 = vpop.f32.mrb[201].mxu0  ;;  %v11265_v19 = vpop.eup %11264 }
 0x57d   : > { %v4644_v4 = vpop.f32.mrb[202].mxu0  ;;  %v4643_v6 = vadd.f32 %v4642_v40, %v14650_v9  ;;  %v5103_v17 = vpack.c.bf16 %v11265_v19, %v11263_v57  ;;  %v10366_v19 = vld [vmem:[#allocation10 + $0x140] ss:$8 sps:$4 sm:$0xff]  }
 0x57e   : > { %v14680_v24 = vpop.f32.mrb[72].mxu1  ;;  %v4645_v25 = vadd.f32 %v4644_v4, %v14643_v58  ;;  %v4646_v0 = vpop.f32.mrb[203].mxu0  ;;  %11274 = vtanh.f32 %v4641_v28 }
 0x57f   : > { %v14683_v42 = vpop.f32.mrb[73].mxu1  ;;  %v4647_v62 = vadd.f32 %v4646_v0, %v14650_v9  ;;  %5593 = vmatprep.mubr.bf16.mxu0 %v5103_v17 }
 0x580   : > { %v14686_v3 = vpop.f32.mrb[74].mxu1  ;;  %11276 = vtanh.f32 %v4645_v25  ;;  %v11267_v60 = vpop.eup %11266  ;;  %5594 = vmatmul.mubr.bf16.vlgmr.msra.gmra.mrb[0].mxu0 %v5102_v21  ;;  %v10368_v21 = vld [vmem:[#allocation10 + $0x144] ss:$8 sps:$4 sm:$0xff]  }
 0x581   : > { %v14688_v49 = vpop.f32.mrb[75].mxu1  ;;  %11278 = vtanh.f32 %v4643_v6  ;;  %5755 = vmatpush1.bf16.msra.mxu0 %v10354_v30 }
 0x582   : > { %v11269_v50 = vpop.eup %11268  ;;  %11280 = vtanh.f32 %v4647_v62  ;;  %5756 = vmatprep.subr.bf16.mxu0 %v10359_v45 }
 0x583   : > { %v5106_v43 = vpack.c.bf16 %v11269_v50, %v11267_v60  ;;  %4942 = vmatmul.mubr.bf16.gmra.mrb[180].mxu1 %v14581_v35  ;;  %v4650_v33 = vpop.f32.mrb[204].mxu0  ;;  %v11271_v56 = vpop.eup %11270  ;;  %v10371_v60 = vld [vmem:[#allocation10 + $0x154] ss:$8 sps:$4 sm:$0xff]  }
 0x584   : > { %4951 = vmatprep.mubr.bf16.mxu1 %v14599_v26  ;;  %v4651_v5 = vadd.f32 %v4650_v33, %v14643_v58  ;;  %v4652_v27 = vpop.f32.mrb[205].mxu0  ;;  %v11273_v35 = vpop.eup %11272 }
 0x585   : > { %v4654_v38 = vpop.f32.mrb[206].mxu0  ;;  %v4653_v26 = vadd.f32 %v4652_v27, %v14650_v9  ;;  %v5107_v44 = vpack.c.bf16 %v11273_v35, %v11271_v56  ;;  %5757 = vmatpush1.bf16.msra.mxu0 %v10357_v1  ;;  %v10374_v1 = vld [vmem:[#allocation10 + $0x164] ss:$8 sps:$4 sm:$0xff]  }
 0x586   : > { %v14694_v2 = vpop.f32.mrb[76].mxu1  ;;  %v4655_v36 = vadd.f32 %v4654_v38, %v14643_v58  ;;  %v4656_v20 = vpop.f32.mrb[207].mxu0  ;;  %11282 = vtanh.f32 %v4651_v5  ;;  %5758 = vmatprep.subr.bf16.mxu0 %v10362_v10  ;;  %v10369_v5 = vld [vmem:[#allocation10 + $0x150] ss:$8 sps:$4 sm:$0xff]  }
 0x587   : > { %v14697_v8 = vpop.f32.mrb[77].mxu1  ;;  %v4657_v48 = vadd.f32 %v4656_v20, %v14650_v9  ;;  %5603 = vmatprep.mubr.bf16.mxu0 %v5107_v44 }
 0x588   : > { %v14700_v39 = vpop.f32.mrb[78].mxu1  ;;  %11284 = vtanh.f32 %v4655_v36  ;;  %v11275_v55 = vpop.eup %11274  ;;  %5604 = vmatmul.mubr.bf16.gmra.mrb[4].mxu0 %v5106_v43 }
 0x589   : > { %v14702_v61 = vpop.f32.mrb[79].mxu1  ;;  %11286 = vtanh.f32 %v4653_v26  ;;  %5759 = vmatpush1.bf16.msra.mxu0 %v10360_v7  ;;  %v10372_v7 = vld [vmem:[#allocation10 + $0x160] ss:$8 sps:$4 sm:$0xff]  }
 0x58a   : > { %v11277_v11 = vpop.eup %11276  ;;  %11288 = vtanh.f32 %v4657_v48  ;;  %5760 = vmatprep.subr.bf16.mxu0 %v10365_v18 }
 0x58b   : > { %v5110_v46 = vpack.c.bf16 %v11277_v11, %v11275_v55  ;;  %4952 = vmatmul.mubr.bf16.gmra.mrb[184].mxu1 %v14597_v63  ;;  %v4660_v15 = vpop.f32.mrb[208].mxu0  ;;  %v11279_v29 = vpop.eup %11278  ;;  %v10377_v11 = vld [vmem:[#allocation10 + $0x174] ss:$8 sps:$4 sm:$0xff]  }
 0x58c   : > { %4961 = vmatprep.mubr.bf16.mxu1 %v14611_v34  ;;  %v4661_v54 = vadd.f32 %v4660_v15, %v14643_v58  ;;  %v4662_v16 = vpop.f32.mrb[209].mxu0  ;;  %v11281_v63 = vpop.eup %11280 }
 0x58d   : > { %v4664_v52 = vpop.f32.mrb[210].mxu0  ;;  %v4663_v34 = vadd.f32 %v4662_v16, %v14650_v9  ;;  %v5111_v0 = vpack.c.bf16 %v11281_v63, %v11279_v29  ;;  %5761 = vmatpush1.bf16.msra.mxu0 %v10363_v41  ;;  %v10380_v29 = vld [vmem:[#allocation10 + $0x184] ss:$8 sps:$4 sm:$0xff]  }
 0x58e   : > { %v14708_v28 = vpop.f32.mrb[80].mxu1  ;;  %v4665_v40 = vadd.f32 %v4664_v52, %v14643_v58  ;;  %v4666_v4 = vpop.f32.mrb[211].mxu0  ;;  %11290 = vtanh.f32 %v4661_v54  ;;  %5762 = vmatprep.subr.bf16.mxu0 %v10368_v21  ;;  %v10375_v52 = vld [vmem:[#allocation10 + $0x170] ss:$8 sps:$4 sm:$0xff]  }
 0x58f   : > { %v14711_v57 = vpop.f32.mrb[81].mxu1  ;;  %v4667_v30 = vadd.f32 %v4666_v4, %v14650_v9  ;;  %5613 = vmatprep.mubr.bf16.mxu0 %v5111_v0 }
 0x590   : > { %v14714_v25 = vpop.f32.mrb[82].mxu1  ;;  %11292 = vtanh.f32 %v4665_v40  ;;  %v11283_v6 = vpop.eup %11282  ;;  %5614 = vmatmul.mubr.bf16.gmra.mrb[8].mxu0 %v5110_v46 }
 0x591   : > { %v14716_v17 = vpop.f32.mrb[83].mxu1  ;;  %11294 = vtanh.f32 %v4663_v34  ;;  %5763 = vmatpush1.bf16.msra.mxu0 %v10366_v19 }
 0x592   : > { %v11285_v62 = vpop.eup %11284  ;;  %11296 = vtanh.f32 %v4667_v30  ;;  %5764 = vmatprep.subr.bf16.mxu0 %v10371_v60 }
 0x593   : > { %v5114_v45 = vpack.c.bf16 %v11285_v62, %v11283_v6  ;;  %4962 = vmatmul.mubr.bf16.gmra.mrb[188].mxu1 %v14609_v59  ;;  %v4670_v50 = vpop.f32.mrb[212].mxu0  ;;  %v11287_v38 = vpop.eup %11286  ;;  %v10378_v62 = vld [vmem:[#allocation10 + $0x180] ss:$8 sps:$4 sm:$0xff]  }
 0x594   : > { %v4671_v43 = vadd.f32 %v4670_v50, %v14643_v58  ;;  %v4672_v33 = vpop.f32.mrb[213].mxu0  ;;  %v11289_v20 = vpop.eup %11288 }
 0x595   : > { %v4674_v27 = vpop.f32.mrb[214].mxu0  ;;  %v4673_v35 = vadd.f32 %v4672_v33, %v14650_v9  ;;  %v5115_v44 = vpack.c.bf16 %v11289_v20, %v11287_v38  ;;  %5765 = vmatpush1.bf16.msra.mxu0 %v10369_v5  ;;  %v10383_v33 = vld [vmem:[#allocation10 + $0x194] ss:$8 sps:$4 sm:$0xff]  }
 0x596   : > { %v14721_v10 = vpop.f32.mrb[84].mxu1  ;;  %v4675_v56 = vadd.f32 %v4674_v27, %v14643_v58  ;;  %v4676_v36 = vpop.f32.mrb[215].mxu0  ;;  %11298 = vtanh.f32 %v4671_v43  ;;  %5766 = vmatprep.subr.bf16.mxu0 %v10374_v1 }
 0x597   : > { %v14724_v59 = vpop.f32.mrb[85].mxu1  ;;  %v4677_v18 = vadd.f32 %v4676_v36, %v14650_v9  ;;  %5623 = vmatprep.mubr.bf16.mxu0 %v5115_v44  ;;  %v10381_v36 = vld [vmem:[#allocation10 + $0x190] ss:$8 sps:$4 sm:$0xff]  }
 0x598   : > { %v14727_v26 = vpop.f32.mrb[86].mxu1  ;;  %11300 = vtanh.f32 %v4675_v56  ;;  %v11291_v55 = vpop.eup %11290  ;;  %5624 = vmatmul.mubr.bf16.gmra.mrb[12].mxu0 %v5114_v45 }
 0x599   : > { %v14729_v48 = vpop.f32.mrb[87].mxu1  ;;  %11302 = vtanh.f32 %v4673_v35  ;;  %5767 = vmatpush1.bf16.msra.mxu0 %v10372_v7  ;;  %v10386_v35 = vld [vmem:[#allocation10 + $0x1a4] ss:$8 sps:$4 sm:$0xff]  }
 0x59a   : > { %v11293_v46 = vpop.eup %11292  ;;  %11304 = vtanh.f32 %v4677_v18  ;;  %5768 = vmatprep.subr.bf16.mxu0 %v10377_v11 }
 0x59b   : > { %v5118_v15 = vpack.c.bf16 %v11293_v46, %v11291_v55  ;;  %v4680_v54 = vpop.f32.mrb[216].mxu0  ;;  %v11295_v40 = vpop.eup %11294 }
 0x59c   : > { %v4681_v16 = vadd.f32 %v4680_v54, %v14643_v58  ;;  %v4682_v41 = vpop.f32.mrb[217].mxu0  ;;  %v11297_v0 = vpop.eup %11296 }
 0x59d   : > { %v4684_v21 = vpop.f32.mrb[218].mxu0  ;;  %v4683_v6 = vadd.f32 %v4682_v41, %v14650_v9  ;;  %v5119_v60 = vpack.c.bf16 %v11297_v0, %v11295_v40  ;;  %5769 = vmatpush1.bf16.msra.mxu0 %v10375_v52  ;;  %v10384_v41 = vld [vmem:[#allocation10 + $0x1a0] ss:$8 sps:$4 sm:$0xff]   ;;  %v10389_v40 = vld [vmem:[#allocation10 + $0x1b4] ss:$8 sps:$4 sm:$0xff]  }
 0x59e   : > { %v14733_v4 = vpop.f32.mrb[88].mxu1  ;;  %v4685_v63 = vadd.f32 %v4684_v21, %v14643_v58  ;;  %v4686_v34 = vpop.f32.mrb[219].mxu0  ;;  %11306 = vtanh.f32 %v4681_v16  ;;  %5770 = vmatprep.subr.bf16.mxu0 %v10380_v29 }
 0x59f   : > { %v14736_v19 = vpop.f32.mrb[89].mxu1  ;;  %v4687_v43 = vadd.f32 %v4686_v34, %v14650_v9  ;;  %5633 = vmatprep.mubr.bf16.mxu0 %v5119_v60 }
 0x5a0   : > { %v14739_v30 = vpop.f32.mrb[90].mxu1  ;;  %11308 = vtanh.f32 %v4685_v63  ;;  %v11299_v45 = vpop.eup %11298  ;;  %5634 = vmatmul.mubr.bf16.gmra.mrb[16].mxu0 %v5118_v15 }
 0x5a1   : > { %v14741_v50 = vpop.f32.mrb[91].mxu1  ;;  %11310 = vtanh.f32 %v4683_v6  ;;  %5771 = vmatpush1.bf16.msra.mxu0 %v10378_v62  ;;  %v10387_v62 = vld [vmem:[#allocation10 + $0x1b0] ss:$8 sps:$4 sm:$0xff]  }
 0x5a2   : > { %v11301_v5 = vpop.eup %11300  ;;  %11312 = vtanh.f32 %v4687_v43  ;;  %5772 = vmatprep.subr.bf16.mxu0 %v10383_v33  ;;  %v10392_v43 = vld [vmem:[#allocation10 + $0x1c4] ss:$8 sps:$4 sm:$0xff]  }
 0x5a3   : > { %v5122_v27 = vpack.c.bf16 %v11301_v5, %v11299_v45  ;;  %v4690_v1 = vpop.f32.mrb[220].mxu0  ;;  %v11303_v44 = vpop.eup %11302 }
 0x5a4   : > { %v4691_v38 = vadd.f32 %v4690_v1, %v14643_v58  ;;  %v4692_v56 = vpop.f32.mrb[221].mxu0  ;;  %v11305_v11 = vpop.eup %11304 }
 0x5a5   : > { %v4694_v20 = vpop.f32.mrb[222].mxu0  ;;  %v4693_v15 = vadd.f32 %v4692_v56, %v14650_v9  ;;  %v5123_v16 = vpack.c.bf16 %v11305_v11, %v11303_v44  ;;  %5773 = vmatpush1.bf16.msra.mxu0 %v10381_v36  ;;  %v10390_v44 = vld [vmem:[#allocation10 + $0x1c0] ss:$8 sps:$4 sm:$0xff]  }
 0x5a6   : > { %v14745_v7 = vpop.f32.mrb[92].mxu1  ;;  %v4695_v55 = vadd.f32 %v4694_v20, %v14643_v58  ;;  %v4696_v18 = vpop.f32.mrb[223].mxu0  ;;  %11314 = vtanh.f32 %v4691_v38  ;;  %5774 = vmatprep.subr.bf16.mxu0 %v10386_v35 }
 0x5a7   : > { %v14748_v46 = vpop.f32.mrb[93].mxu1  ;;  %v4697_v29 = vadd.f32 %v4696_v18, %v14650_v9  ;;  %5643 = vmatprep.mubr.bf16.mxu0 %v5123_v16 }
 0x5a8   : > { %v14751_v54 = vpop.f32.mrb[94].mxu1  ;;  %11316 = vtanh.f32 %v4695_v55  ;;  %v11307_v52 = vpop.eup %11306  ;;  %5644 = vmatmul.mubr.bf16.gmra.mrb[20].mxu0 %v5122_v27 }
 0x5a9   : > { %v14753_v21 = vpop.f32.mrb[95].mxu1  ;;  %11318 = vtanh.f32 %v4693_v15  ;;  %5775 = vmatpush1.bf16.msra.mxu0 %v10384_v41  ;;  %v10395_v15 = vld [vmem:[#allocation10 + $0x1d4] ss:$8 sps:$4 sm:$0xff]  }
 0x5aa   : > { %v11309_v63 = vpop.eup %11308  ;;  %11320 = vtanh.f32 %v4697_v29  ;;  %5776 = vmatprep.subr.bf16.mxu0 %v10389_v40 }
 0x5ab   : > { %v5126_v34 = vpack.c.bf16 %v11309_v63, %v11307_v52  ;;  %v4700_v0 = vpop.f32.mrb[224].mxu0  ;;  %v11311_v33 = vpop.eup %11310  ;;  %v10393_v63 = vld [vmem:[#allocation10 + $0x1d0] ss:$8 sps:$4 sm:$0xff]  }
 0x5ac   : > { %v4701_v6 = vadd.f32 %v4700_v0, %v14643_v58  ;;  %v4702_v60 = vpop.f32.mrb[225].mxu0  ;;  %v11313_v56 = vpop.eup %11312 }
 0x5ad   : > { %v4704_v45 = vpop.f32.mrb[226].mxu0  ;;  %v4703_v36 = vadd.f32 %v4702_v60, %v14650_v9  ;;  %v5127_v35 = vpack.c.bf16 %v11313_v56, %v11311_v33  ;;  %5777 = vmatpush1.bf16.msra.mxu0 %v10387_v62 }
 0x5ae   : > { %v14757_v5 = vpop.f32.mrb[96].mxu1  ;;  %v4705_v1 = vadd.f32 %v4704_v45, %v14643_v58  ;;  %v4706_v38 = vpop.f32.mrb[227].mxu0  ;;  %11322 = vtanh.f32 %v4701_v6  ;;  %5778 = vmatprep.subr.bf16.mxu0 %v10392_v43  ;;  %v10398_v6 = vld [vmem:[#allocation10 + $0x1e4] ss:$8 sps:$4 sm:$0xff]  }
 0x5af   : > { %v14760_v27 = vpop.f32.mrb[97].mxu1  ;;  %v4707_v11 = vadd.f32 %v4706_v38, %v14650_v9  ;;  %5653 = vmatprep.mubr.bf16.mxu0 %v5127_v35 }
 0x5b0   : > { %v14763_v20 = vpop.f32.mrb[98].mxu1  ;;  %11324 = vtanh.f32 %v4705_v1  ;;  %v11315_v55 = vpop.eup %11314  ;;  %5654 = vmatmul.mubr.bf16.gmra.mrb[24].mxu0 %v5126_v34 }
 0x5b1   : > { %v14765_v18 = vpop.f32.mrb[99].mxu1  ;;  %11326 = vtanh.f32 %v4703_v36  ;;  %5779 = vmatpush1.bf16.msra.mxu0 %v10390_v44  ;;  %v10396_v36 = vld [vmem:[#allocation10 + $0x1e0] ss:$8 sps:$4 sm:$0xff]  }
 0x5b2   : > { %v11317_v16 = vpop.eup %11316  ;;  %11328 = vtanh.f32 %v4707_v11  ;;  %5780 = vmatprep.subr.bf16.mxu0 %v10395_v15  ;;  %v10401_v11 = vld [vmem:[#allocation10 + $0x1f4] ss:$8 sps:$4 sm:$0xff]  }
 0x5b3   : > { %v5130_v41 = vpack.c.bf16 %v11317_v16, %v11315_v55  ;;  %v4710_v52 = vpop.f32.mrb[228].mxu0  ;;  %v11319_v60 = vpop.eup %11318 }
 0x5b4   : > { %v4711_v29 = vadd.f32 %v4710_v52, %v14643_v58  ;;  %v4712_v40 = vpop.f32.mrb[229].mxu0  ;;  %v11321_v33 = vpop.eup %11320 }
 0x5b5   : > { %v4714_v0 = vpop.f32.mrb[230].mxu0  ;;  %v4713_v1 = vadd.f32 %v4712_v40, %v14650_v9  ;;  %v5131_v56 = vpack.c.bf16 %v11321_v33, %v11319_v60  ;;  %5781 = vmatpush1.bf16.msra.mxu0 %v10393_v63 }
 0x5b6   : > { %v14769_v62 = vpop.f32.mrb[100].mxu1  ;;  %v4715_v45 = vadd.f32 %v4714_v0, %v14643_v58  ;;  %v4716_v43 = vpop.f32.mrb[231].mxu0  ;;  %11330 = vtanh.f32 %v4711_v29  ;;  %5782 = vmatprep.subr.bf16.mxu0 %v10398_v6  ;;  %v10399_v0 = vld [vmem:[#allocation10 + $0x1f0] ss:$8 sps:$4 sm:$0xff]  }
 0x5b7   : > { %v14772_v34 = vpop.f32.mrb[101].mxu1  ;;  %v4717_v55 = vadd.f32 %v4716_v43, %v14650_v9  ;;  %5663 = vmatprep.mubr.bf16.mxu0 %v5131_v56 }
 0x5b8   : > { %v14775_v38 = vpop.f32.mrb[102].mxu1  ;;  %11332 = vtanh.f32 %v4715_v45  ;;  %v11323_v35 = vpop.eup %11322  ;;  %5664 = vmatmul.mubr.bf16.gmra.mrb[28].mxu0 %v5130_v41 }
 0x5b9   : > { %v14777_v44 = vpop.f32.mrb[103].mxu1  ;;  %11334 = vtanh.f32 %v4713_v1  ;;  %5783 = vmatpush1.bf16.msra.mxu0 %v10396_v36 }
 0x5ba   : > { %v11325_v15 = vpop.eup %11324  ;;  %11336 = vtanh.f32 %v4717_v55  ;;  %5784 = vmatprep.subr.bf16.mxu0 %v10401_v11 }
 0x5bb   : > { %v5134_v16 = vpack.c.bf16 %v11325_v15, %v11323_v35  ;;  %v4720_v52 = vpop.f32.mrb[232].mxu0  ;;  %v11327_v60 = vpop.eup %11326 }
 0x5bc   : > { %v4721_v29 = vadd.f32 %v4720_v52, %v14643_v58  ;;  %v4722_v40 = vpop.f32.mrb[233].mxu0  ;;  %v11329_v33 = vpop.eup %11328 }
 0x5bd   : > { %v4724_v63 = vpop.f32.mrb[234].mxu0  ;;  %v4723_v41 = vadd.f32 %v4722_v40, %v14650_v9  ;;  %v5135_v36 = vpack.c.bf16 %v11329_v33, %v11327_v60  ;;  %5785 = vmatpush1.bf16.msra.mxu0 %v10399_v0 }
 0x5be   : > { %v14781_v45 = vpop.f32.mrb[104].mxu1  ;;  %v4725_v6 = vadd.f32 %v4724_v63, %v14643_v58  ;;  %v4726_v43 = vpop.f32.mrb[235].mxu0  ;;  %11338 = vtanh.f32 %v4721_v29 }
 0x5bf   : > { %v14784_v56 = vpop.f32.mrb[105].mxu1  ;;  %v4727_v11 = vadd.f32 %v4726_v43, %v14650_v9  ;;  %5673 = vmatprep.mubr.bf16.mxu0 %v5135_v36 }
 0x5c0   : > { %15856 = vst [vmem:[#allocation40_spill] sm:$0xff] %v14784_v56  ;;  %v14787_v1 = vpop.f32.mrb[106].mxu1  ;;  %11340 = vtanh.f32 %v4725_v6  ;;  %v11331_v35 = vpop.eup %11330  ;;  %5674 = vmatmul.mubr.bf16.gmra.mrb[32].mxu0 %v5134_v16 }
 0x5c1   : > { %15857 = vst [vmem:[#allocation39_spill] sm:$0xff] %v14787_v1  ;;  %v14789_v55 = vpop.f32.mrb[107].mxu1  ;;  %11342 = vtanh.f32 %v4723_v41 }
 0x5c2   : > { %15858 = vst [vmem:[#allocation41_spill] sm:$0xff] %v14789_v55  ;;  %v11333_v15 = vpop.eup %11332  ;;  %11344 = vtanh.f32 %v4727_v11 }
 0x5c3   : > { %v5138_v52 = vpack.c.bf16 %v11333_v15, %v11331_v35  ;;  %v4730_v63 = vpop.f32.mrb[236].mxu0  ;;  %v11335_v1 = vpop.eup %11334 }
 0x5c4   : > { %v4731_v29 = vadd.f32 %v4730_v63, %v14643_v58  ;;  %v4732_v56 = vpop.f32.mrb[237].mxu0  ;;  %v11337_v33 = vpop.eup %11336 }
 0x5c5   : > { %v4734_v40 = vpop.f32.mrb[238].mxu0  ;;  %v4733_v36 = vadd.f32 %v4732_v56, %v14650_v9  ;;  %v5139_v41 = vpack.c.bf16 %v11337_v33, %v11335_v1 }
 0x5c6   : > { %v14793_v6 = vpop.f32.mrb[108].mxu1  ;;  %v4735_v0 = vadd.f32 %v4734_v40, %v14643_v58  ;;  %v4736_v60 = vpop.f32.mrb[239].mxu0  ;;  %11346 = vtanh.f32 %v4731_v29 }
 0x5c7   : > { %15859 = vst [vmem:[#allocation42_spill] sm:$0xff] %v14793_v6  ;;  %v14796_v43 = vpop.f32.mrb[109].mxu1  ;;  %v4737_v11 = vadd.f32 %v4736_v60, %v14650_v9  ;;  %5683 = vmatprep.mubr.bf16.mxu0 %v5139_v41 }
 0x5c8   : > { %15860 = vst [vmem:[#allocation35_spill] sm:$0xff] %v14796_v43  ;;  %v14799_v16 = vpop.f32.mrb[110].mxu1  ;;  %11348 = vtanh.f32 %v4735_v0  ;;  %v11339_v35 = vpop.eup %11338  ;;  %5684 = vmatmul.mubr.bf16.gmra.mrb[36].mxu0 %v5138_v52 }
 0x5c9   : > { %15861 = vst [vmem:[#allocation44_spill] sm:$0xff] %v14799_v16  ;;  %v14801_v15 = vpop.f32.mrb[111].mxu1  ;;  %11350 = vtanh.f32 %v4733_v36 }
 0x5ca   : > { %15862 = vst [vmem:[#allocation36_spill] sm:$0xff] %v14801_v15  ;;  %v11341_v63 = vpop.eup %11340  ;;  %11352 = vtanh.f32 %v4737_v11 }
 0x5cb   : > { %v5142_v6 = vpack.c.bf16 %v11341_v63, %v11339_v35  ;;  %v4740_v40 = vpop.f32.mrb[240].mxu0  ;;  %v11343_v55 = vpop.eup %11342 }
 0x5cc   : > { %v4741_v29 = vadd.f32 %v4740_v40, %v14643_v58  ;;  %v4742_v43 = vpop.f32.mrb[241].mxu0  ;;  %v11345_v33 = vpop.eup %11344 }
 0x5cd   : > { %v4744_v56 = vpop.f32.mrb[242].mxu0  ;;  %v4743_v41 = vadd.f32 %v4742_v43, %v14650_v9  ;;  %v5143_v36 = vpack.c.bf16 %v11345_v33, %v11343_v55 }
 0x5ce   : > { %v14805_v16 = vpop.f32.mrb[112].mxu1  ;;  %v4745_v1 = vadd.f32 %v4744_v56, %v14643_v58  ;;  %v4746_v0 = vpop.f32.mrb[243].mxu0  ;;  %11354 = vtanh.f32 %v4741_v29 }
 0x5cf   : > { %15863 = vst [vmem:[#allocation43_spill] sm:$0xff] %v14805_v16  ;;  %v14808_v60 = vpop.f32.mrb[113].mxu1  ;;  %v4747_v11 = vadd.f32 %v4746_v0, %v14650_v9  ;;  %5693 = vmatprep.mubr.bf16.mxu0 %v5143_v36 }
 0x5d0   : > { %15864 = vst [vmem:[#allocation37_spill] sm:$0xff] %v14808_v60  ;;  %v14811_v52 = vpop.f32.mrb[114].mxu1  ;;  %11356 = vtanh.f32 %v4745_v1  ;;  %v11347_v35 = vpop.eup %11346  ;;  %5694 = vmatmul.mubr.bf16.gmra.mrb[40].mxu0 %v5142_v6 }
 0x5d1   : > { %15865 = vst [vmem:[#allocation48_spill] sm:$0xff] %v14811_v52  ;;  %v14813_v63 = vpop.f32.mrb[115].mxu1  ;;  %11358 = vtanh.f32 %v4743_v41 }
 0x5d2   : > { %15866 = vst [vmem:[#allocation46_spill] sm:$0xff] %v14813_v63  ;;  %v11349_v40 = vpop.eup %11348  ;;  %11360 = vtanh.f32 %v4747_v11 }
 0x5d3   : > { %v5146_v16 = vpack.c.bf16 %v11349_v40, %v11347_v35  ;;  %v4750_v56 = vpop.f32.mrb[244].mxu0  ;;  %v11351_v15 = vpop.eup %11350 }
 0x5d4   : > { %v4751_v29 = vadd.f32 %v4750_v56, %v14643_v58  ;;  %v4752_v60 = vpop.f32.mrb[245].mxu0  ;;  %v11353_v33 = vpop.eup %11352 }
 0x5d5   : > { %v4754_v43 = vpop.f32.mrb[246].mxu0  ;;  %v4753_v36 = vadd.f32 %v4752_v60, %v14650_v9  ;;  %v5147_v41 = vpack.c.bf16 %v11353_v33, %v11351_v15 }
 0x5d6   : > { %v14817_v52 = vpop.f32.mrb[116].mxu1  ;;  %v4755_v55 = vadd.f32 %v4754_v43, %v14643_v58  ;;  %v4756_v1 = vpop.f32.mrb[247].mxu0  ;;  %11362 = vtanh.f32 %v4751_v29 }
 0x5d7   : > { %15867 = vst [vmem:[#allocation47_spill] sm:$0xff] %v14817_v52  ;;  %v14820_v0 = vpop.f32.mrb[117].mxu1  ;;  %v4757_v11 = vadd.f32 %v4756_v1, %v14650_v9  ;;  %5703 = vmatprep.mubr.bf16.mxu0 %v5147_v41 }
 0x5d8   : > { %15868 = vst [vmem:[#allocation45_spill] sm:$0xff] %v14820_v0  ;;  %v14823_v6 = vpop.f32.mrb[118].mxu1  ;;  %11364 = vtanh.f32 %v4755_v55  ;;  %v11355_v35 = vpop.eup %11354  ;;  %5704 = vmatmul.mubr.bf16.gmra.mrb[44].mxu0 %v5146_v16 }
 0x5d9   : > { %15869 = vst [vmem:[#allocation52_spill] sm:$0xff] %v14823_v6  ;;  %v14825_v40 = vpop.f32.mrb[119].mxu1  ;;  %11366 = vtanh.f32 %v4753_v36 }
 0x5da   : > { %15870 = vst [vmem:[#allocation50_spill] sm:$0xff] %v14825_v40  ;;  %v11357_v56 = vpop.eup %11356  ;;  %11368 = vtanh.f32 %v4757_v11 }
 0x5db   : > { %v5150_v52 = vpack.c.bf16 %v11357_v56, %v11355_v35  ;;  %v4760_v43 = vpop.f32.mrb[248].mxu0  ;;  %v11359_v63 = vpop.eup %11358 }
 0x5dc   : > { %v4761_v29 = vadd.f32 %v4760_v43, %v14643_v58  ;;  %v4762_v0 = vpop.f32.mrb[249].mxu0  ;;  %v11361_v33 = vpop.eup %11360 }
 0x5dd   : > { %v4764_v60 = vpop.f32.mrb[250].mxu0  ;;  %v4763_v41 = vadd.f32 %v4762_v0, %v14650_v9  ;;  %v5151_v36 = vpack.c.bf16 %v11361_v33, %v11359_v63 }
 0x5de   : > { %v14829_v6 = vpop.f32.mrb[120].mxu1  ;;  %v4765_v15 = vadd.f32 %v4764_v60, %v14643_v58  ;;  %v4766_v55 = vpop.f32.mrb[251].mxu0  ;;  %11370 = vtanh.f32 %v4761_v29 }
 0x5df   : > { %15871 = vst [vmem:[#allocation51_spill] sm:$0xff] %v14829_v6  ;;  %v14832_v1 = vpop.f32.mrb[121].mxu1  ;;  %v4767_v11 = vadd.f32 %v4766_v55, %v14650_v9  ;;  %5713 = vmatprep.mubr.bf16.mxu0 %v5151_v36 }
 0x5e0   : > { %15872 = vst [vmem:[#allocation49_spill] sm:$0xff] %v14832_v1  ;;  %v14835_v16 = vpop.f32.mrb[122].mxu1  ;;  %11372 = vtanh.f32 %v4765_v15  ;;  %v11363_v35 = vpop.eup %11362  ;;  %5714 = vmatmul.mubr.bf16.gmra.mrb[48].mxu0 %v5150_v52 }
 0x5e1   : > { %15873 = vst [vmem:[#allocation53_spill] sm:$0xff] %v14835_v16  ;;  %v14837_v56 = vpop.f32.mrb[123].mxu1  ;;  %11374 = vtanh.f32 %v4763_v41 }
 0x5e2   : > { %15874 = vst [vmem:[#allocation54_spill] sm:$0xff] %v14837_v56  ;;  %v11365_v43 = vpop.eup %11364  ;;  %11376 = vtanh.f32 %v4767_v11 }
 0x5e3   : > { %v5154_v6 = vpack.c.bf16 %v11365_v43, %v11363_v35  ;;  %v4770_v60 = vpop.f32.mrb[252].mxu0  ;;  %v11367_v40 = vpop.eup %11366 }
 0x5e4   : > { %v4771_v29 = vadd.f32 %v4770_v60, %v14643_v58  ;;  %v4772_v1 = vpop.f32.mrb[253].mxu0  ;;  %v11369_v33 = vpop.eup %11368 }
 0x5e5   : > { %v4774_v0 = vpop.f32.mrb[254].mxu0  ;;  %v4773_v36 = vadd.f32 %v4772_v1, %v14650_v9  ;;  %v5155_v41 = vpack.c.bf16 %v11369_v33, %v11367_v40 }
 0x5e6   : > { %v14841_v16 = vpop.f32.mrb[124].mxu1  ;;  %v4775_v63 = vadd.f32 %v4774_v0, %v14643_v58  ;;  %v4776_v15 = vpop.f32.mrb[255].mxu0  ;;  %11378 = vtanh.f32 %v4771_v29  ;;  %v15879_v58 = vld [vmem:[#allocation34_spill] sm:$0xff] }
 0x5e7   : > { %15875 = vst [vmem:[#allocation56_spill] sm:$0xff] %v14841_v16  ;;  %v14844_v55 = vpop.f32.mrb[125].mxu1  ;;  %v4777_v11 = vadd.f32 %v4776_v15, %v14650_v9  ;;  %5723 = vmatprep.mubr.bf16.mxu0 %v5155_v41  ;;  %v14854_v29 = vrot.slane %v14639_v53, %v15879_v58  ;;  %v15880_v0 = vld [vmem:[#allocation38_spill] sm:$0xff] }
 0x5e8   : > { %15876 = vst [vmem:[#allocation55_spill] sm:$0xff] %v14844_v55  ;;  %v14847_v52 = vpop.f32.mrb[126].mxu1  ;;  %11380 = vtanh.f32 %v4775_v63  ;;  %v11371_v35 = vpop.eup %11370  ;;  %5724 = vmatmul.mubr.bf16.gmra.mrb[52].mxu0 %v5154_v6  ;;  %v14858_v1 = vrot.slane %v14639_v53, %v15880_v0 }
 0x5e9   : > { %15877 = vst [vmem:[#allocation32_spill] sm:$0xff] %v14847_v52  ;;  %v14849_v43 = vpop.f32.mrb[127].mxu1  ;;  %11382 = vtanh.f32 %v4773_v36  ;;  %v10402_v52 = vld [vmem:[#allocation11] ss:$16 sps:$4 sm:$0xff]  }
 0x5ea   : > { %15878 = vst [vmem:[#allocation33_spill] sm:$0xff] %v14849_v43  ;;  %v11373_v60 = vpop.eup %11372  ;;  %11384 = vtanh.f32 %v4777_v11 }
 0x5eb   : > { %v5158_v16 = vpack.c.bf16 %v11373_v60, %v11371_v35  ;;  %v11375_v40 = vpop.eup %11374 }
 0x5ec   : > { %v11377_v33 = vpop.eup %11376 }
 0x5ed   : > { %v5159_v6 = vpack.c.bf16 %v11377_v33, %v11375_v40  ;;  %v10407_v33 = vld [vmem:[#allocation11 + $0x24] ss:$16 sps:$4 sm:$0xff]  }
 0x5ee   : > { %v4813_v63 = vpop.f32.mrb[128].mxu1 }
 0x5ef   : > { %v4814_v43 = vadd.f32 %v4813_v63, %v14854_v29  ;;  %v4815_v9 = vpop.f32.mrb[129].mxu1  ;;  %5733 = vmatprep.mubr.bf16.mxu0 %v5159_v6 }
 0x5f0   : > { %v4816_v15 = vadd.f32 %v4815_v9, %v14858_v1  ;;  %v4817_v41 = vpop.f32.mrb[130].mxu1  ;;  %v11379_v35 = vpop.eup %11378  ;;  %5734 = vmatmul.mubr.bf16.gmra.mrb[56].mxu0 %v5158_v16  ;;  %v10404_v9 = vld [vmem:[#allocation11 + $0x4] ss:$16 sps:$4 sm:$0xff]   ;;  %v10405_v16 = vld [vmem:[#allocation11 + $0x20] ss:$16 sps:$4 sm:$0xff]  }
 0x5f1   : > { %11386 = vtanh.f32 %v4814_v43  ;;  %v4818_v60 = vadd.f32 %v4817_v41, %v14854_v29  ;;  %v4819_v36 = vpop.f32.mrb[131].mxu1  ;;  %6514 = vmatprep.subr.bf16.mxu1 %v10404_v9 }
 0x5f2   : > { %v11381_v58 = vpop.eup %11380  ;;  %11388 = vtanh.f32 %v4816_v15  ;;  %v4820_v53 = vadd.f32 %v4819_v36, %v14858_v1  ;;  %6515 = vmatpush1.bf16.msra.mxu1 %v10402_v52  ;;  %v10413_v52 = vld [vmem:[#allocation11 + $0x64] ss:$16 sps:$4 sm:$0xff]  }
 0x5f3   : > { %v5162_v11 = vpack.c.bf16 %v11381_v58, %v11379_v35  ;;  %11390 = vtanh.f32 %v4818_v60  ;;  %v11383_v63 = vpop.eup %11382  ;;  %6516 = vmatprep.subr.bf16.mxu1 %v10407_v33 }
 0x5f4   : > { %11392 = vtanh.f32 %v4820_v53  ;;  %v11385_v55 = vpop.eup %11384 }
 0x5f5   : > { %v5163_v15 = vpack.c.bf16 %v11385_v55, %v11383_v63  ;;  %v10408_v55 = vld [vmem:[#allocation11 + $0x40] ss:$16 sps:$4 sm:$0xff]  }
 0x5f6   : > { %v4823_v0 = vpop.f32.mrb[132].mxu1  ;;  %6517 = vmatpush1.bf16.msra.mxu1 %v10405_v16 }
 0x5f7   : > { %v4824_v40 = vadd.f32 %v4823_v0, %v14854_v29  ;;  %v4825_v43 = vpop.f32.mrb[133].mxu1  ;;  %5743 = vmatprep.mubr.bf16.mxu0 %v5163_v15  ;;  %v10410_v0 = vld [vmem:[#allocation11 + $0x44] ss:$16 sps:$4 sm:$0xff]  }
 0x5f8   : > { %v4826_v41 = vadd.f32 %v4825_v43, %v14858_v1  ;;  %v4827_v56 = vpop.f32.mrb[134].mxu1  ;;  %5744 = vmatmul.mubr.bf16.gmra.mrb[60].mxu0 %v5162_v11  ;;  %6518 = vmatprep.subr.bf16.mxu1 %v10410_v0 }
 0x5f9   : > { %11394 = vtanh.f32 %v4824_v40  ;;  %v4828_v58 = vadd.f32 %v4827_v56, %v14854_v29  ;;  %v4829_v6 = vpop.f32.mrb[135].mxu1 }
 0x5fa   : > { %11396 = vtanh.f32 %v4826_v41  ;;  %v4830_v35 = vadd.f32 %v4829_v6, %v14858_v1  ;;  %6519 = vmatpush1.bf16.msra.mxu1 %v10408_v55  ;;  %v10411_v6 = vld [vmem:[#allocation11 + $0x60] ss:$16 sps:$4 sm:$0xff]  }
 0x5fb   : > { %v11387_v60 = vpop.eup %11386  ;;  %11398 = vtanh.f32 %v4828_v58  ;;  %6520 = vmatprep.subr.bf16.mxu1 %v10413_v52 }
 0x5fc   : > { %v11389_v36 = vpop.eup %11388  ;;  %11400 = vtanh.f32 %v4830_v35  ;;  %v10416_v35 = vld [vmem:[#allocation11 + $0x84] ss:$16 sps:$4 sm:$0xff]  }
 0x5fd   : > { %v11391_v53 = vpop.eup %11390 }
 0x5fe   : > { %v11393_v63 = vpop.eup %11392  ;;  %v5104_v9 = vpack.c.bf16 %v11391_v53, %v11387_v60  ;;  %v4833_v56 = vpop.f32.mrb[136].mxu1  ;;  %6521 = vmatpush1.bf16.msra.mxu1 %v10411_v6  ;;  %v10414_v53 = vld [vmem:[#allocation11 + $0x80] ss:$16 sps:$4 sm:$0xff]  }
 0x5ff   : > { %v4834_v40 = vadd.f32 %v4833_v56, %v14854_v29  ;;  %v4835_v43 = vpop.f32.mrb[137].mxu1  ;;  %v5105_v41 = vpack.c.bf16 %v11393_v63, %v11389_v36  ;;  %6522 = vmatprep.subr.bf16.mxu1 %v10416_v35 }
 0x600   : > { %v4836_v33 = vadd.f32 %v4835_v43, %v14858_v1  ;;  %v4837_v15 = vpop.f32.mrb[138].mxu1  ;;  %v10419_v43 = vld [vmem:[#allocation11 + $0xa4] ss:$16 sps:$4 sm:$0xff]  }
 0x601   : > { %11402 = vtanh.f32 %v4834_v40  ;;  %v4838_v11 = vadd.f32 %v4837_v15, %v14854_v29  ;;  %v4839_v58 = vpop.f32.mrb[139].mxu1  ;;  %5786 = vmatprep.mubr.bf16.mxu0 %v5105_v41 }
 0x602   : > { %11404 = vtanh.f32 %v4836_v33  ;;  %v4840_v16 = vadd.f32 %v4839_v58, %v14858_v1  ;;  %5787 = vmatmul.mubr.bf16.vlgmr.msra.gmra.mrb[0].mxu0 %v5104_v9  ;;  %6523 = vmatpush1.bf16.msra.mxu1 %v10414_v53  ;;  %v10417_v58 = vld [vmem:[#allocation11 + $0xa0] ss:$16 sps:$4 sm:$0xff]  }
 0x603   : > { %v11395_v60 = vpop.eup %11394  ;;  %11406 = vtanh.f32 %v4838_v11  ;;  %6524 = vmatprep.subr.bf16.mxu1 %v10419_v43 }
 0x604   : > { %v11397_v0 = vpop.eup %11396  ;;  %11408 = vtanh.f32 %v4840_v16  ;;  %v10422_v16 = vld [vmem:[#allocation11 + $0xc4] ss:$16 sps:$4 sm:$0xff]  }
 0x605   : > { %v11399_v36 = vpop.eup %11398 }
 0x606   : > { %v11401_v63 = vpop.eup %11400  ;;  %v5108_v56 = vpack.c.bf16 %v11399_v36, %v11395_v60  ;;  %v4843_v40 = vpop.f32.mrb[140].mxu1  ;;  %6525 = vmatpush1.bf16.msra.mxu1 %v10417_v58  ;;  %v10420_v36 = vld [vmem:[#allocation11 + $0xc0] ss:$16 sps:$4 sm:$0xff]  }
 0x607   : > { %v4844_v55 = vadd.f32 %v4843_v40, %v14854_v29  ;;  %v4845_v41 = vpop.f32.mrb[141].mxu1  ;;  %v5109_v33 = vpack.c.bf16 %v11401_v63, %v11397_v0  ;;  %6526 = vmatprep.subr.bf16.mxu1 %v10422_v16 }
 0x608   : > { %v4846_v52 = vadd.f32 %v4845_v41, %v14858_v1  ;;  %v4847_v15 = vpop.f32.mrb[142].mxu1  ;;  %v10425_v41 = vld [vmem:[#allocation11 + $0xe4] ss:$16 sps:$4 sm:$0xff]  }
 0x609   : > { %11410 = vtanh.f32 %v4844_v55  ;;  %v4848_v9 = vadd.f32 %v4847_v15, %v14854_v29  ;;  %v4849_v11 = vpop.f32.mrb[143].mxu1  ;;  %5796 = vmatprep.mubr.bf16.mxu0 %v5109_v33 }
 0x60a   : > { %11412 = vtanh.f32 %v4846_v52  ;;  %v4850_v6 = vadd.f32 %v4849_v11, %v14858_v1  ;;  %5797 = vmatmul.mubr.bf16.gmra.mrb[4].mxu0 %v5108_v56  ;;  %6527 = vmatpush1.bf16.msra.mxu1 %v10420_v36  ;;  %v10423_v11 = vld [vmem:[#allocation11 + $0xe0] ss:$16 sps:$4 sm:$0xff]  }
 0x60b   : > { %v11403_v35 = vpop.eup %11402  ;;  %11414 = vtanh.f32 %v4848_v9  ;;  %6528 = vmatprep.subr.bf16.mxu1 %v10425_v41 }
 0x60c   : > { %v11405_v60 = vpop.eup %11404  ;;  %11416 = vtanh.f32 %v4850_v6  ;;  %v10428_v6 = vld [vmem:[#allocation11 + $0x104] ss:$16 sps:$4 sm:$0xff]  }
 0x60d   : > { %v11407_v0 = vpop.eup %11406 }
 0x60e   : > { %v11409_v63 = vpop.eup %11408  ;;  %v5112_v40 = vpack.c.bf16 %v11407_v0, %v11403_v35  ;;  %v4853_v55 = vpop.f32.mrb[144].mxu1  ;;  %6529 = vmatpush1.bf16.msra.mxu1 %v10423_v11  ;;  %v10426_v0 = vld [vmem:[#allocation11 + $0x100] ss:$16 sps:$4 sm:$0xff]  }
 0x60f   : > { %v4854_v53 = vadd.f32 %v4853_v55, %v14854_v29  ;;  %v4855_v33 = vpop.f32.mrb[145].mxu1  ;;  %v5113_v52 = vpack.c.bf16 %v11409_v63, %v11405_v60  ;;  %6530 = vmatprep.subr.bf16.mxu1 %v10428_v6 }
 0x610   : > { %v4856_v43 = vadd.f32 %v4855_v33, %v14858_v1  ;;  %v4857_v15 = vpop.f32.mrb[146].mxu1  ;;  %v10431_v33 = vld [vmem:[#allocation11 + $0x124] ss:$16 sps:$4 sm:$0xff]  }
 0x611   : > { %11418 = vtanh.f32 %v4854_v53  ;;  %v4858_v56 = vadd.f32 %v4857_v15, %v14854_v29  ;;  %v4859_v9 = vpop.f32.mrb[147].mxu1  ;;  %5806 = vmatprep.mubr.bf16.mxu0 %v5113_v52 }
 0x612   : > { %11420 = vtanh.f32 %v4856_v43  ;;  %v4860_v58 = vadd.f32 %v4859_v9, %v14858_v1  ;;  %5807 = vmatmul.mubr.bf16.gmra.mrb[8].mxu0 %v5112_v40  ;;  %6531 = vmatpush1.bf16.msra.mxu1 %v10426_v0  ;;  %v10429_v9 = vld [vmem:[#allocation11 + $0x120] ss:$16 sps:$4 sm:$0xff]  }
 0x613   : > { %v11411_v16 = vpop.eup %11410  ;;  %11422 = vtanh.f32 %v4858_v56  ;;  %6532 = vmatprep.subr.bf16.mxu1 %v10431_v33 }
 0x614   : > { %v11413_v35 = vpop.eup %11412  ;;  %11424 = vtanh.f32 %v4860_v58  ;;  %v10434_v58 = vld [vmem:[#allocation11 + $0x144] ss:$16 sps:$4 sm:$0xff]  }
 0x615   : > { %v11415_v60 = vpop.eup %11414 }
 0x616   : > { %v11417_v63 = vpop.eup %11416  ;;  %v5116_v55 = vpack.c.bf16 %v11415_v60, %v11411_v16  ;;  %v4863_v53 = vpop.f32.mrb[148].mxu1  ;;  %6533 = vmatpush1.bf16.msra.mxu1 %v10429_v9  ;;  %v10432_v60 = vld [vmem:[#allocation11 + $0x140] ss:$16 sps:$4 sm:$0xff]  }
 0x617   : > { %v4864_v36 = vadd.f32 %v4863_v53, %v14854_v29  ;;  %v4865_v52 = vpop.f32.mrb[149].mxu1  ;;  %v5117_v43 = vpack.c.bf16 %v11417_v63, %v11413_v35  ;;  %6534 = vmatprep.subr.bf16.mxu1 %v10434_v58 }
 0x618   : > { %v4866_v41 = vadd.f32 %v4865_v52, %v14858_v1  ;;  %v4867_v15 = vpop.f32.mrb[150].mxu1  ;;  %v10437_v52 = vld [vmem:[#allocation11 + $0x164] ss:$16 sps:$4 sm:$0xff]  }
 0x619   : > { %11426 = vtanh.f32 %v4864_v36  ;;  %v4868_v40 = vadd.f32 %v4867_v15, %v14854_v29  ;;  %v4869_v56 = vpop.f32.mrb[151].mxu1  ;;  %5816 = vmatprep.mubr.bf16.mxu0 %v5117_v43 }
 0x61a   : > { %11428 = vtanh.f32 %v4866_v41  ;;  %v4870_v11 = vadd.f32 %v4869_v56, %v14858_v1  ;;  %5817 = vmatmul.mubr.bf16.gmra.mrb[12].mxu0 %v5116_v55  ;;  %6535 = vmatpush1.bf16.msra.mxu1 %v10432_v60  ;;  %v10435_v56 = vld [vmem:[#allocation11 + $0x160] ss:$16 sps:$4 sm:$0xff]  }
 0x61b   : > { %v11419_v6 = vpop.eup %11418  ;;  %11430 = vtanh.f32 %v4868_v40  ;;  %6536 = vmatprep.subr.bf16.mxu1 %v10437_v52 }
 0x61c   : > { %v11421_v16 = vpop.eup %11420  ;;  %11432 = vtanh.f32 %v4870_v11  ;;  %v10440_v11 = vld [vmem:[#allocation11 + $0x184] ss:$16 sps:$4 sm:$0xff]  }
 0x61d   : > { %v11423_v35 = vpop.eup %11422 }
 0x61e   : > { %v11425_v63 = vpop.eup %11424  ;;  %v5120_v53 = vpack.c.bf16 %v11423_v35, %v11419_v6  ;;  %v4873_v36 = vpop.f32.mrb[152].mxu1  ;;  %6537 = vmatpush1.bf16.msra.mxu1 %v10435_v56  ;;  %v10438_v35 = vld [vmem:[#allocation11 + $0x180] ss:$16 sps:$4 sm:$0xff]  }
 0x61f   : > { %v4874_v0 = vadd.f32 %v4873_v36, %v14854_v29  ;;  %v4875_v43 = vpop.f32.mrb[153].mxu1  ;;  %v5121_v41 = vpack.c.bf16 %v11425_v63, %v11421_v16  ;;  %6538 = vmatprep.subr.bf16.mxu1 %v10440_v11 }
 0x620   : > { %v4876_v33 = vadd.f32 %v4875_v43, %v14858_v1  ;;  %v4877_v15 = vpop.f32.mrb[154].mxu1  ;;  %v10443_v43 = vld [vmem:[#allocation11 + $0x1a4] ss:$16 sps:$4 sm:$0xff]  }
 0x621   : > { %11434 = vtanh.f32 %v4874_v0  ;;  %v4878_v55 = vadd.f32 %v4877_v15, %v14854_v29  ;;  %v4879_v40 = vpop.f32.mrb[155].mxu1  ;;  %5826 = vmatprep.mubr.bf16.mxu0 %v5121_v41 }
 0x622   : > { %11436 = vtanh.f32 %v4876_v33  ;;  %v4880_v9 = vadd.f32 %v4879_v40, %v14858_v1  ;;  %5827 = vmatmul.mubr.bf16.gmra.mrb[16].mxu0 %v5120_v53  ;;  %6539 = vmatpush1.bf16.msra.mxu1 %v10438_v35  ;;  %v10441_v40 = vld [vmem:[#allocation11 + $0x1a0] ss:$16 sps:$4 sm:$0xff]  }
 0x623   : > { %v11427_v58 = vpop.eup %11426  ;;  %11438 = vtanh.f32 %v4878_v55  ;;  %6540 = vmatprep.subr.bf16.mxu1 %v10443_v43 }
 0x624   : > { %v11429_v6 = vpop.eup %11428  ;;  %11440 = vtanh.f32 %v4880_v9 }
 0x625   : > { %v11431_v16 = vpop.eup %11430 }
 0x626   : > { %v11433_v63 = vpop.eup %11432  ;;  %v5124_v36 = vpack.c.bf16 %v11431_v16, %v11427_v58  ;;  %v4883_v0 = vpop.f32.mrb[156].mxu1  ;;  %6541 = vmatpush1.bf16.msra.mxu1 %v10441_v40 }
 0x627   : > { %v4884_v60 = vadd.f32 %v4883_v0, %v14854_v29  ;;  %v4885_v41 = vpop.f32.mrb[157].mxu1  ;;  %v5125_v33 = vpack.c.bf16 %v11433_v63, %v11429_v6 }
 0x628   : > { %v4886_v52 = vadd.f32 %v4885_v41, %v14858_v1  ;;  %v4887_v15 = vpop.f32.mrb[158].mxu1 }
 0x629   : > { %11442 = vtanh.f32 %v4884_v60  ;;  %v4888_v53 = vadd.f32 %v4887_v15, %v14854_v29  ;;  %v4889_v55 = vpop.f32.mrb[159].mxu1  ;;  %5836 = vmatprep.mubr.bf16.mxu0 %v5125_v33 }
 0x62a   : > { %11444 = vtanh.f32 %v4886_v52  ;;  %v4890_v56 = vadd.f32 %v4889_v55, %v14858_v1  ;;  %5837 = vmatmul.mubr.bf16.gmra.mrb[20].mxu0 %v5124_v36 }
 0x62b   : > { %v11435_v9 = vpop.eup %11434  ;;  %11446 = vtanh.f32 %v4888_v53 }
 0x62c   : > { %v11437_v11 = vpop.eup %11436  ;;  %11448 = vtanh.f32 %v4890_v56 }
 0x62d   : > { %v11439_v58 = vpop.eup %11438 }
 0x62e   : > { %v11441_v6 = vpop.eup %11440  ;;  %v5128_v16 = vpack.c.bf16 %v11439_v58, %v11435_v9  ;;  %v4893_v63 = vpop.f32.mrb[160].mxu1 }
 0x62f   : > { %v4894_v0 = vadd.f32 %v4893_v63, %v14854_v29  ;;  %v4895_v60 = vpop.f32.mrb[161].mxu1  ;;  %v5129_v41 = vpack.c.bf16 %v11441_v6, %v11437_v11 }
 0x630   : > { %v4896_v35 = vadd.f32 %v4895_v60, %v14858_v1  ;;  %v4897_v33 = vpop.f32.mrb[162].mxu1 }
 0x631   : > { %11450 = vtanh.f32 %v4894_v0  ;;  %v4898_v43 = vadd.f32 %v4897_v33, %v14854_v29  ;;  %v4899_v52 = vpop.f32.mrb[163].mxu1  ;;  %5846 = vmatprep.mubr.bf16.mxu0 %v5129_v41 }
 0x632   : > { %11452 = vtanh.f32 %v4896_v35  ;;  %v4900_v36 = vadd.f32 %v4899_v52, %v14858_v1  ;;  %5847 = vmatmul.mubr.bf16.gmra.mrb[24].mxu0 %v5128_v16 }
 0x633   : > { %v11443_v15 = vpop.eup %11442  ;;  %11454 = vtanh.f32 %v4898_v43 }
 0x634   : > { %v11445_v53 = vpop.eup %11444  ;;  %11456 = vtanh.f32 %v4900_v36 }
 0x635   : > { %v11447_v55 = vpop.eup %11446 }
 0x636   : > { %v11449_v40 = vpop.eup %11448  ;;  %v5132_v56 = vpack.c.bf16 %v11447_v55, %v11443_v15  ;;  %v4903_v9 = vpop.f32.mrb[164].mxu1 }
 0x637   : > { %v4904_v11 = vadd.f32 %v4903_v9, %v14854_v29  ;;  %v4905_v58 = vpop.f32.mrb[165].mxu1  ;;  %v5133_v6 = vpack.c.bf16 %v11449_v40, %v11445_v53 }
 0x638   : > { %v4906_v63 = vadd.f32 %v4905_v58, %v14858_v1  ;;  %v4907_v0 = vpop.f32.mrb[166].mxu1 }
 0x639   : > { %11458 = vtanh.f32 %v4904_v11  ;;  %v4908_v60 = vadd.f32 %v4907_v0, %v14854_v29  ;;  %v4909_v41 = vpop.f32.mrb[167].mxu1  ;;  %5856 = vmatprep.mubr.bf16.mxu0 %v5133_v6 }
 0x63a   : > { %11460 = vtanh.f32 %v4906_v63  ;;  %v4910_v16 = vadd.f32 %v4909_v41, %v14858_v1  ;;  %5857 = vmatmul.mubr.bf16.gmra.mrb[28].mxu0 %v5132_v56 }
 0x63b   : > { %v11451_v35 = vpop.eup %11450  ;;  %11462 = vtanh.f32 %v4908_v60 }
 0x63c   : > { %v11453_v33 = vpop.eup %11452  ;;  %11464 = vtanh.f32 %v4910_v16 }
 0x63d   : > { %v11455_v43 = vpop.eup %11454 }
 0x63e   : > { %v11457_v52 = vpop.eup %11456  ;;  %v5136_v36 = vpack.c.bf16 %v11455_v43, %v11451_v35  ;;  %v4913_v15 = vpop.f32.mrb[168].mxu1 }
 0x63f   : > { %v4914_v53 = vadd.f32 %v4913_v15, %v14854_v29  ;;  %v4915_v55 = vpop.f32.mrb[169].mxu1  ;;  %v5137_v40 = vpack.c.bf16 %v11457_v52, %v11453_v33 }
 0x640   : > { %v4916_v9 = vadd.f32 %v4915_v55, %v14858_v1  ;;  %v4917_v11 = vpop.f32.mrb[170].mxu1 }
 0x641   : > { %11466 = vtanh.f32 %v4914_v53  ;;  %v4918_v58 = vadd.f32 %v4917_v11, %v14854_v29  ;;  %v4919_v6 = vpop.f32.mrb[171].mxu1  ;;  %5866 = vmatprep.mubr.bf16.mxu0 %v5137_v40 }
 0x642   : > { %11468 = vtanh.f32 %v4916_v9  ;;  %v4920_v56 = vadd.f32 %v4919_v6, %v14858_v1  ;;  %5867 = vmatmul.mubr.bf16.gmra.mrb[32].mxu0 %v5136_v36 }
 0x643   : > { %v11459_v63 = vpop.eup %11458  ;;  %11470 = vtanh.f32 %v4918_v58 }
 0x644   : > { %v11461_v0 = vpop.eup %11460  ;;  %11472 = vtanh.f32 %v4920_v56 }
 0x645   : > { %v11463_v60 = vpop.eup %11462 }
 0x646   : > { %v11465_v41 = vpop.eup %11464  ;;  %v5140_v16 = vpack.c.bf16 %v11463_v60, %v11459_v63  ;;  %v4923_v35 = vpop.f32.mrb[172].mxu1 }
 0x647   : > { %v4924_v33 = vadd.f32 %v4923_v35, %v14854_v29  ;;  %v4925_v43 = vpop.f32.mrb[173].mxu1  ;;  %v5141_v52 = vpack.c.bf16 %v11465_v41, %v11461_v0 }
 0x648   : > { %v4926_v15 = vadd.f32 %v4925_v43, %v14858_v1  ;;  %v4927_v53 = vpop.f32.mrb[174].mxu1 }
 0x649   : > { %11474 = vtanh.f32 %v4924_v33  ;;  %v4928_v55 = vadd.f32 %v4927_v53, %v14854_v29  ;;  %v4929_v40 = vpop.f32.mrb[175].mxu1  ;;  %5876 = vmatprep.mubr.bf16.mxu0 %v5141_v52 }
 0x64a   : > { %11476 = vtanh.f32 %v4926_v15  ;;  %v4930_v36 = vadd.f32 %v4929_v40, %v14858_v1  ;;  %5877 = vmatmul.mubr.bf16.gmra.mrb[36].mxu0 %v5140_v16 }
 0x64b   : > { %v11467_v9 = vpop.eup %11466  ;;  %11478 = vtanh.f32 %v4928_v55 }
 0x64c   : > { %v11469_v11 = vpop.eup %11468  ;;  %11480 = vtanh.f32 %v4930_v36 }
 0x64d   : > { %v11471_v58 = vpop.eup %11470 }
 0x64e   : > { %v11473_v6 = vpop.eup %11472  ;;  %v5144_v56 = vpack.c.bf16 %v11471_v58, %v11467_v9  ;;  %v4933_v63 = vpop.f32.mrb[176].mxu1 }
 0x64f   : > { %v4934_v0 = vadd.f32 %v4933_v63, %v14854_v29  ;;  %v4935_v60 = vpop.f32.mrb[177].mxu1  ;;  %v5145_v41 = vpack.c.bf16 %v11473_v6, %v11469_v11 }
 0x650   : > { %v4936_v35 = vadd.f32 %v4935_v60, %v14858_v1  ;;  %v4937_v33 = vpop.f32.mrb[178].mxu1 }
 0x651   : > { %11482 = vtanh.f32 %v4934_v0  ;;  %v4938_v43 = vadd.f32 %v4937_v33, %v14854_v29  ;;  %v4939_v52 = vpop.f32.mrb[179].mxu1  ;;  %5886 = vmatprep.mubr.bf16.mxu0 %v5145_v41 }
 0x652   : > { %11484 = vtanh.f32 %v4936_v35  ;;  %v4940_v16 = vadd.f32 %v4939_v52, %v14858_v1  ;;  %5887 = vmatmul.mubr.bf16.gmra.mrb[40].mxu0 %v5144_v56 }
 0x653   : > { %v11475_v15 = vpop.eup %11474  ;;  %11486 = vtanh.f32 %v4938_v43 }
 0x654   : > { %v11477_v53 = vpop.eup %11476  ;;  %11488 = vtanh.f32 %v4940_v16 }
 0x655   : > { %v11479_v55 = vpop.eup %11478 }
 0x656   : > { %v11481_v40 = vpop.eup %11480  ;;  %v5148_v36 = vpack.c.bf16 %v11479_v55, %v11475_v15  ;;  %v4943_v9 = vpop.f32.mrb[180].mxu1 }
 0x657   : > { %v4944_v11 = vadd.f32 %v4943_v9, %v14854_v29  ;;  %v4945_v58 = vpop.f32.mrb[181].mxu1  ;;  %v5149_v6 = vpack.c.bf16 %v11481_v40, %v11477_v53 }
 0x658   : > { %v4946_v63 = vadd.f32 %v4945_v58, %v14858_v1  ;;  %v4947_v0 = vpop.f32.mrb[182].mxu1 }
 0x659   : > { %11490 = vtanh.f32 %v4944_v11  ;;  %v4948_v60 = vadd.f32 %v4947_v0, %v14854_v29  ;;  %v4949_v41 = vpop.f32.mrb[183].mxu1  ;;  %5896 = vmatprep.mubr.bf16.mxu0 %v5149_v6  ;;  %v10446_v0 = vld [vmem:[#allocation11 + $0x1c4] ss:$16 sps:$4 sm:$0xff]  }
 0x65a   : > { %11492 = vtanh.f32 %v4946_v63  ;;  %v4950_v56 = vadd.f32 %v4949_v41, %v14858_v1  ;;  %5897 = vmatmul.mubr.bf16.gmra.mrb[44].mxu0 %v5148_v36  ;;  %v10444_v41 = vld [vmem:[#allocation11 + $0x1c0] ss:$16 sps:$4 sm:$0xff]   ;;  %6542 = vmatprep.subr.bf16.mxu1 %v10446_v0  ;;  %v10452_v0 = vld [vmem:[#allocation11 + $0xc] ss:$16 sps:$4 sm:$0xff]  }
 0x65b   : > { %v11483_v35 = vpop.eup %11482  ;;  %11494 = vtanh.f32 %v4948_v60  ;;  %6543 = vmatpush1.bf16.msra.mxu1 %v10444_v41 }
 0x65c   : > { %v11485_v33 = vpop.eup %11484  ;;  %11496 = vtanh.f32 %v4950_v56 }
 0x65d   : > { %v11487_v43 = vpop.eup %11486 }
 0x65e   : > { %v11489_v52 = vpop.eup %11488  ;;  %v5152_v16 = vpack.c.bf16 %v11487_v43, %v11483_v35  ;;  %v4953_v15 = vpop.f32.mrb[184].mxu1 }
 0x65f   : > { %v4954_v53 = vadd.f32 %v4953_v15, %v14854_v29  ;;  %v4955_v55 = vpop.f32.mrb[185].mxu1  ;;  %v5153_v40 = vpack.c.bf16 %v11489_v52, %v11485_v33  ;;  %v10447_v52 = vld [vmem:[#allocation11 + $0x1e0] ss:$16 sps:$4 sm:$0xff]   ;;  %v10449_v15 = vld [vmem:[#allocation11 + $0x1e4] ss:$16 sps:$4 sm:$0xff]  }
 0x660   : > { %v4956_v9 = vadd.f32 %v4955_v55, %v14858_v1  ;;  %v4957_v11 = vpop.f32.mrb[186].mxu1  ;;  %6544 = vmatprep.subr.bf16.mxu1 %v10449_v15 }
 0x661   : > { %11498 = vtanh.f32 %v4954_v53  ;;  %v4958_v58 = vadd.f32 %v4957_v11, %v14854_v29  ;;  %v4959_v6 = vpop.f32.mrb[187].mxu1  ;;  %5906 = vmatprep.mubr.bf16.mxu0 %v5153_v40  ;;  %6545 = vmatpush1.bf16.msra.mxu1 %v10447_v52  ;;  %v2624_v52 = vld [vmem:[#allocation16 + $0x3] ss:$8 sm:$0x3] }
 0x662   : > { %11500 = vtanh.f32 %v4956_v9  ;;  %v4960_v36 = vadd.f32 %v4959_v6, %v14858_v1  ;;  %5907 = vmatmul.mubr.bf16.gmra.mrb[48].mxu0 %v5152_v16  ;;  %6707 = vmatprep.subr.bf16.mxu1 %v10452_v0  ;;  %v10489_v0 = vld [vmem:[#allocation13] ss:$8 sps:$4 sm:$0xff]  }
 0x663   : > { %v11491_v63 = vpop.eup %11490  ;;  %11502 = vtanh.f32 %v4958_v58 }
 0x664   : > { %v11493_v60 = vpop.eup %11492  ;;  %11504 = vtanh.f32 %v4960_v36 }
 0x665   : > { %v11495_v56 = vpop.eup %11494 }
 0x666   : > { %v11497_v35 = vpop.eup %11496  ;;  %v5156_v33 = vpack.c.bf16 %v11495_v56, %v11491_v63  ;;  %v4963_v43 = vpop.f32.mrb[188].mxu1 }
 0x667   : > { %v4964_v53 = vadd.f32 %v4963_v43, %v14854_v29  ;;  %v4965_v55 = vpop.f32.mrb[189].mxu1  ;;  %v5157_v40 = vpack.c.bf16 %v11497_v35, %v11493_v60 }
 0x668   : > { %v4966_v9 = vadd.f32 %v4965_v55, %v14858_v1  ;;  %v4967_v11 = vpop.f32.mrb[190].mxu1 }
 0x669   : > { %11506 = vtanh.f32 %v4964_v53  ;;  %v4968_v16 = vadd.f32 %v4967_v11, %v14854_v29  ;;  %v4969_v58 = vpop.f32.mrb[191].mxu1  ;;  %5916 = vmatprep.mubr.bf16.mxu0 %v5157_v40  ;;  %v14928_v40 = vrot.slane %v2624_v52, %v15855_v51 }
 0x66a   : > { %11508 = vtanh.f32 %v4966_v9  ;;  %v4970_v6 = vadd.f32 %v4969_v58, %v14858_v1  ;;  %5917 = vmatmul.mubr.bf16.gmra.mrb[52].mxu0 %v5156_v33  ;;  %v14925_v33 = vrot.slane %v2624_v52, %v15854_v12  ;;  %v5101_v9 = vld [vmem:[#allocation16 + $0x7] ss:$8 sm:$0x3] }
 0x66b   : > { %v11499_v36 = vpop.eup %11498  ;;  %11510 = vtanh.f32 %v4968_v16  ;;  %v9387_v16 = vadd.f32 %v14655_v47, %v14928_v40  ;;  %v9393_v52 = vadd.f32 %v14674_v37, %v14928_v40 }
 0x66c   : > { %v11501_v63 = vpop.eup %11500  ;;  %11512 = vtanh.f32 %v4970_v6  ;;  %v9386_v11 = vadd.f32 %v14652_v23, %v14925_v33  ;;  %v9388_v58 = vadd.f32 %v14658_v32, %v14925_v33  ;;  %v14937_v6 = vrot.slane %v5101_v9, %v15854_v12 }
 0x66d   : > { %v11503_v60 = vpop.eup %11502  ;;  %v9394_v37 = vadd.f32 %v14680_v24, %v14925_v33  ;;  %v9397_v24 = vadd.f32 %v14688_v49, %v14928_v40 }
 0x66e   : > { %v11505_v41 = vpop.eup %11504  ;;  %v5160_v56 = vpack.c.bf16 %v11503_v60, %v11499_v36  ;;  %v9389_v36 = vadd.f32 %v14660_v31, %v14928_v40  ;;  %v10491_v60 = vld [vmem:[#allocation13 + $0x4] ss:$8 sps:$4 sm:$0xff]   ;;  %11514 = vtanh.f32 %v9386_v11 }
 0x66f   : > { %v5161_v35 = vpack.c.bf16 %v11505_v41, %v11501_v63  ;;  %v14942_v63 = vrot.slane %v5101_v9, %v15855_v51  ;;  %v10497_v41 = vld [vmem:[#allocation13 + $0x14] ss:$8 sps:$4 sm:$0xff]   ;;  %11516 = vtanh.f32 %v9387_v16  ;;  %7489 = vmatprep.subr.bf16.mxu0 %v10491_v60  ;;  %v10503_v9 = vld [vmem:[#allocation13 + $0x24] ss:$8 sps:$4 sm:$0xff]  }
 0x670   : > { %11518 = vtanh.f32 %v9388_v58  ;;  %7490 = vmatpush1.bf16.msra.mxu0 %v10489_v0 }
 0x671   : > { %5926 = vmatprep.mubr.bf16.mxu0 %v5161_v35  ;;  %11520 = vtanh.f32 %v9389_v36  ;;  %7491 = vmatprep.subr.bf16.mxu0 %v10497_v41 }
 0x672   : > { %5927 = vmatmul.mubr.bf16.gmra.mrb[56].mxu0 %v5160_v56  ;;  %v10495_v56 = vld [vmem:[#allocation13 + $0x10] ss:$8 sps:$4 sm:$0xff]  }
 0x673   : > { %v11507_v43 = vpop.eup %11506 }
 0x674   : > { %v11509_v29 = vpop.eup %11508  ;;  %7492 = vmatpush1.bf16.msra.mxu0 %v10495_v56 }
 0x675   : > { %v11511_v15 = vpop.eup %11510  ;;  %7493 = vmatprep.subr.bf16.mxu0 %v10503_v9 }
 0x676   : > { %v11513_v53 = vpop.eup %11512  ;;  %v5164_v55 = vpack.c.bf16 %v11511_v15, %v11507_v43  ;;  %v9390_v43 = vadd.f32 %v14666_v22, %v14925_v33  ;;  %v10501_v22 = vld [vmem:[#allocation13 + $0x20] ss:$8 sps:$4 sm:$0xff]  }
 0x677   : > { %v5165_v1 = vpack.c.bf16 %v11513_v53, %v11509_v29  ;;  %v9391_v53 = vadd.f32 %v14669_v14, %v14928_v40 }
 0x678   : > { %v11515_v16 = vpop.eup %11514  ;;  %7494 = vmatpush1.bf16.msra.mxu0 %v10501_v22 }
 0x679   : > { %5936 = vmatprep.mubr.bf16.mxu0 %v5165_v1  ;;  %v9392_v1 = vadd.f32 %v14672_v13, %v14925_v33  ;;  %v11517_v36 = vpop.eup %11516 }
 0x67a   : > { %5937 = vmatmul.mubr.bf16.gmra.mrb[60].mxu0 %v5164_v55  ;;  %v11519_v60 = vpop.eup %11518 }
 0x6d5   : > { %v5788_v23 = vpop.f32.mrb[0].mxu0 }
 0x6d6   : > { %v9450_v47 = vadd.f32 %v5788_v23, %v14937_v6  ;;  %v5790_v32 = vpop.f32.mrb[1].mxu0 }
 0x6d7   : > { %v9451_v35 = vadd.f32 %v5790_v32, %v14942_v63  ;;  %v5792_v31 = vpop.f32.mrb[2].mxu0  ;;  %v9395_v32 = vadd.f32 %v14683_v42, %v14928_v40 }
 0x6d8   : > { %11522 = vtanh.f32 %v9450_v47  ;;  %v9452_v29 = vadd.f32 %v5792_v31, %v14937_v6  ;;  %v5794_v15 = vpop.f32.mrb[3].mxu0  ;;  %v11521_v47 = vpop.eup %11520  ;;  %v9396_v31 = vadd.f32 %v14686_v3, %v14925_v33 }
 0x6d9   : > { %11524 = vtanh.f32 %v9451_v35  ;;  %v9453_v55 = vadd.f32 %v5794_v15, %v14942_v63 }
 0x6da   : > { %11526 = vtanh.f32 %v9452_v29 }
 0x6db   : > { %11528 = vtanh.f32 %v9453_v55  ;;  %v10507_v55 = vld [vmem:[#allocation13 + $0x30] ss:$8 sps:$4 sm:$0xff]  }
 0x6dc   : > { %11530 = vtanh.f32 %v9390_v43 }
 0x6dd   : > { %11532 = vtanh.f32 %v9391_v53  ;;  %v5798_v11 = vpop.f32.mrb[4].mxu0 }
 0x6de   : > { %11534 = vtanh.f32 %v9392_v1  ;;  %v9454_v14 = vadd.f32 %v5798_v11, %v14937_v6  ;;  %v5800_v58 = vpop.f32.mrb[5].mxu0  ;;  %v10509_v1 = vld [vmem:[#allocation13 + $0x34] ss:$8 sps:$4 sm:$0xff]  }
 0x6df   : > { %11536 = vtanh.f32 %v9393_v52  ;;  %v9455_v13 = vadd.f32 %v5800_v58, %v14942_v63  ;;  %v5802_v0 = vpop.f32.mrb[6].mxu0  ;;  %7495 = vmatprep.subr.bf16.mxu0 %v10509_v1  ;;  %v10512_v1 = vld [vmem:[#allocation13 + $0x44] ss:$8 sps:$4 sm:$0xff]  }
 0x6e0   : > { %11538 = vtanh.f32 %v9454_v14  ;;  %v9456_v41 = vadd.f32 %v5802_v0, %v14937_v6  ;;  %v5804_v23 = vpop.f32.mrb[7].mxu0  ;;  %7496 = vmatpush1.bf16.msra.mxu0 %v10507_v55  ;;  %v9398_v0 = vadd.f32 %v14694_v2, %v14925_v33  ;;  %v10510_v55 = vld [vmem:[#allocation13 + $0x40] ss:$8 sps:$4 sm:$0xff]  }
 0x6e1   : > { %11540 = vtanh.f32 %v9455_v13  ;;  %v9457_v56 = vadd.f32 %v5804_v23, %v14942_v63  ;;  %v10450_v23 = vld [vmem:[#allocation11 + $0x8] ss:$16 sps:$4 sm:$0xff]   ;;  %7497 = vmatprep.subr.bf16.mxu0 %v10512_v1 }
 0x6e2   : > { %v11523_v35 = vpop.eup %11522  ;;  %11542 = vtanh.f32 %v9456_v41 }
 0x6e3   : > { %v11525_v43 = vpop.eup %11524  ;;  %v6011_v29 = vadd.f32 %v11523_v35, %v11515_v16  ;;  %11544 = vtanh.f32 %v9457_v56  ;;  %v10455_v35 = vld [vmem:[#allocation11 + $0x2c] ss:$16 sps:$4 sm:$0xff]  }
 0x6e4   : > { %v11527_v15 = vpop.eup %11526  ;;  %11546 = vtanh.f32 %v9394_v37  ;;  %v6012_v53 = vadd.f32 %v11525_v43, %v11517_v36  ;;  %v9400_v43 = vadd.f32 %v14700_v39, %v14925_v33  ;;  %7498 = vmatpush1.bf16.msra.mxu0 %v10510_v55  ;;  %v10515_v55 = vld [vmem:[#allocation13 + $0x54] ss:$8 sps:$4 sm:$0xff]  }
 0x6e5   : > { %v11529_v42 = vpop.eup %11528  ;;  %11548 = vtanh.f32 %v9395_v32  ;;  %v6013_v52 = vadd.f32 %v11527_v15, %v11519_v60  ;;  %v5808_v22 = vpop.f32.mrb[8].mxu0  ;;  %v9399_v32 = vadd.f32 %v14697_v8, %v14928_v40  ;;  %7499 = vmatprep.subr.bf16.mxu0 %v10515_v55  ;;  %v10470_v55 = vld [vmem:[#allocation11 + $0xcc] ss:$16 sps:$4 sm:$0xff]  }
 0x6e6   : > { %v11531_v9 = vpop.eup %11530  ;;  %11550 = vtanh.f32 %v9396_v31  ;;  %v9458_v3 = vadd.f32 %v5808_v22, %v14937_v6  ;;  %v5810_v11 = vpop.f32.mrb[9].mxu0  ;;  %v6014_v14 = vadd.f32 %v11529_v42, %v11521_v47  ;;  %v10458_v22 = vld [vmem:[#allocation11 + $0x4c] ss:$16 sps:$4 sm:$0xff]  }
 0x6e7   : > { %v11533_v58 = vpop.eup %11532  ;;  %11552 = vtanh.f32 %v9397_v24  ;;  %v9459_v49 = vadd.f32 %v5810_v11, %v14942_v63  ;;  %v5812_v16 = vpop.f32.mrb[10].mxu0  ;;  %v14970_v13 = vpack.c.bf16 %v6013_v52, %v6011_v29  ;;  %v9401_v24 = vadd.f32 %v14702_v61, %v14928_v40 }
 0x6e8   : > { %v11535_v36 = vpop.eup %11534  ;;  %11554 = vtanh.f32 %v9458_v3  ;;  %v9460_v60 = vadd.f32 %v5812_v16, %v14937_v6  ;;  %v5814_v37 = vpop.f32.mrb[11].mxu0  ;;  %v14975_v41 = vpack.c.bf16 %v6014_v14, %v6012_v53  ;;  %v10453_v53 = vld [vmem:[#allocation11 + $0x28] ss:$16 sps:$4 sm:$0xff]  }
 0x6e9   : > { %v11537_v47 = vpop.eup %11536  ;;  %11556 = vtanh.f32 %v9459_v49  ;;  %v9461_v56 = vadd.f32 %v5814_v37, %v14942_v63 }
 0x6ea   : > { %v11539_v31 = vpop.eup %11538  ;;  %11558 = vtanh.f32 %v9460_v60  ;;  %6546 = vmatprep.mubr.bf16.mxu1 %v14975_v41 }
 0x6eb   : > { %v11541_v2 = vpop.eup %11540  ;;  %11560 = vtanh.f32 %v9461_v56  ;;  %6547 = vmatmul.mubr.bf16.vlgmr.msra.gmra.mrb[192].mxu1 %v14970_v13  ;;  %v6015_v29 = vadd.f32 %v11539_v31, %v11531_v9  ;;  %v9403_v56 = vadd.f32 %v14711_v57, %v14928_v40  ;;  %v10461_v31 = vld [vmem:[#allocation11 + $0x6c] ss:$16 sps:$4 sm:$0xff]  }
 0x6ec   : > { %v11543_v8 = vpop.eup %11542  ;;  %11562 = vtanh.f32 %v9398_v0  ;;  %6708 = vmatpush1.bf16.msra.mxu1 %v10450_v23  ;;  %v6016_v15 = vadd.f32 %v11541_v2, %v11533_v58 }
 0x6ed   : > { %v11545_v42 = vpop.eup %11544  ;;  %11564 = vtanh.f32 %v9399_v32  ;;  %v5818_v39 = vpop.f32.mrb[12].mxu0  ;;  %6709 = vmatprep.subr.bf16.mxu1 %v10455_v35  ;;  %v6017_v52 = vadd.f32 %v11543_v8, %v11535_v36  ;;  %v9402_v36 = vadd.f32 %v14708_v28, %v14925_v33  ;;  %v9404_v28 = vadd.f32 %v14714_v25, %v14925_v33 }
 0x6ee   : > { %v11547_v3 = vpop.eup %11546  ;;  %11566 = vtanh.f32 %v9400_v43  ;;  %v9462_v61 = vadd.f32 %v5818_v39, %v14937_v6  ;;  %v5820_v11 = vpop.f32.mrb[13].mxu0  ;;  %v6018_v14 = vadd.f32 %v11545_v42, %v11537_v47  ;;  %v10456_v47 = vld [vmem:[#allocation11 + $0x48] ss:$16 sps:$4 sm:$0xff]   ;;  %v10464_v39 = vld [vmem:[#allocation11 + $0x8c] ss:$16 sps:$4 sm:$0xff]  }
 0x6ef   : > { %v11549_v9 = vpop.eup %11548  ;;  %11568 = vtanh.f32 %v9401_v24  ;;  %v9463_v58 = vadd.f32 %v5820_v11, %v14942_v63  ;;  %v5822_v49 = vpop.f32.mrb[14].mxu0  ;;  %v14988_v16 = vpack.c.bf16 %v6017_v52, %v6015_v29  ;;  %v9405_v24 = vadd.f32 %v14716_v17, %v14928_v40 }
 0x6f0   : > { %v11551_v0 = vpop.eup %11550  ;;  %11570 = vtanh.f32 %v9462_v61  ;;  %v9464_v60 = vadd.f32 %v5822_v49, %v14937_v6  ;;  %v5824_v37 = vpop.f32.mrb[15].mxu0  ;;  %v14993_v23 = vpack.c.bf16 %v6018_v14, %v6016_v15  ;;  %6710 = vmatpush1.bf16.msra.mxu1 %v10453_v53  ;;  %v10459_v15 = vld [vmem:[#allocation11 + $0x68] ss:$16 sps:$4 sm:$0xff]   ;;  %v9406_v49 = vadd.f32 %v14721_v10, %v14925_v33 }
 0x6f1   : > { %v11553_v32 = vpop.eup %11552  ;;  %11572 = vtanh.f32 %v9463_v58  ;;  %v9465_v35 = vadd.f32 %v5824_v37, %v14942_v63  ;;  %6711 = vmatprep.subr.bf16.mxu1 %v10458_v22  ;;  %v10513_v53 = vld [vmem:[#allocation13 + $0x50] ss:$8 sps:$4 sm:$0xff]   ;;  %v9408_v10 = vadd.f32 %v14727_v26, %v14925_v33 }
 0x6f2   : > { %v11555_v43 = vpop.eup %11554  ;;  %11574 = vtanh.f32 %v9464_v60  ;;  %6556 = vmatprep.mubr.bf16.mxu1 %v14993_v23  ;;  %7500 = vmatpush1.bf16.msra.mxu0 %v10513_v53  ;;  %v10462_v37 = vld [vmem:[#allocation11 + $0x88] ss:$16 sps:$4 sm:$0xff]  }
 0x6f3   : > { %v11557_v2 = vpop.eup %11556  ;;  %11576 = vtanh.f32 %v9465_v35  ;;  %6557 = vmatmul.mubr.bf16.gmra.mrb[196].mxu1 %v14988_v16  ;;  %v6019_v57 = vadd.f32 %v11555_v43, %v11547_v3  ;;  %v10467_v35 = vld [vmem:[#allocation11 + $0xac] ss:$16 sps:$4 sm:$0xff]  }
 0x6f4   : > { %v11559_v29 = vpop.eup %11558  ;;  %11578 = vtanh.f32 %v9402_v36  ;;  %v6020_v8 = vadd.f32 %v11557_v2, %v11549_v9  ;;  %6712 = vmatpush1.bf16.msra.mxu1 %v10456_v47 }
 0x6f5   : > { %v11561_v1 = vpop.eup %11560  ;;  %11580 = vtanh.f32 %v9403_v56  ;;  %v5828_v25 = vpop.f32.mrb[16].mxu0  ;;  %v6021_v42 = vadd.f32 %v11559_v29, %v11551_v0  ;;  %6713 = vmatprep.subr.bf16.mxu1 %v10461_v31  ;;  %v10516_v29 = vld [vmem:[#allocation13 + $0x60] ss:$8 sps:$4 sm:$0xff]  }
 0x6f6   : > { %v11563_v52 = vpop.eup %11562  ;;  %11582 = vtanh.f32 %v9404_v28  ;;  %v9466_v17 = vadd.f32 %v5828_v25, %v14937_v6  ;;  %v5830_v22 = vpop.f32.mrb[17].mxu0  ;;  %v6022_v61 = vadd.f32 %v11561_v1, %v11553_v32  ;;  %v9407_v32 = vadd.f32 %v14724_v59, %v14928_v40 }
 0x6f7   : > { %v11565_v3 = vpop.eup %11564  ;;  %11584 = vtanh.f32 %v9405_v24  ;;  %v9467_v11 = vadd.f32 %v5830_v22, %v14942_v63  ;;  %v5832_v14 = vpop.f32.mrb[18].mxu0  ;;  %v15006_v9 = vpack.c.bf16 %v6021_v42, %v6019_v57  ;;  %v9409_v28 = vadd.f32 %v14729_v48, %v14928_v40  ;;  %v10465_v57 = vld [vmem:[#allocation11 + $0xa8] ss:$16 sps:$4 sm:$0xff]  }
 0x6f8   : > { %v11567_v58 = vpop.eup %11566  ;;  %11586 = vtanh.f32 %v9466_v17  ;;  %v9468_v0 = vadd.f32 %v5832_v14, %v14937_v6  ;;  %v5834_v36 = vpop.f32.mrb[19].mxu0  ;;  %v15011_v60 = vpack.c.bf16 %v6022_v61, %v6020_v8  ;;  %6714 = vmatpush1.bf16.msra.mxu1 %v10459_v15  ;;  %v10518_v8 = vld [vmem:[#allocation13 + $0x64] ss:$8 sps:$4 sm:$0xff]  }
 0x6f9   : > { %v11569_v47 = vpop.eup %11568  ;;  %11588 = vtanh.f32 %v9467_v11  ;;  %v9469_v56 = vadd.f32 %v5834_v36, %v14942_v63  ;;  %6715 = vmatprep.subr.bf16.mxu1 %v10464_v39  ;;  %7501 = vmatprep.subr.bf16.mxu0 %v10518_v8  ;;  %v9411_v36 = vadd.f32 %v14736_v19, %v14928_v40 }
 0x6fa   : > { %v11571_v31 = vpop.eup %11570  ;;  %11590 = vtanh.f32 %v9468_v0  ;;  %6566 = vmatprep.mubr.bf16.mxu1 %v15011_v60  ;;  %7502 = vmatpush1.bf16.msra.mxu0 %v10516_v29 }
 0x6fb   : > { %v11573_v43 = vpop.eup %11572  ;;  %11592 = vtanh.f32 %v9469_v56  ;;  %6567 = vmatmul.mubr.bf16.gmra.mrb[200].mxu1 %v15006_v9  ;;  %v6023_v59 = vadd.f32 %v11571_v31, %v11563_v52 }
 0x6fc   : > { %v11575_v2 = vpop.eup %11574  ;;  %11594 = vtanh.f32 %v9406_v49  ;;  %v6024_v24 = vadd.f32 %v11573_v43, %v11565_v3  ;;  %6716 = vmatpush1.bf16.msra.mxu1 %v10462_v37  ;;  %v9410_v3 = vadd.f32 %v14733_v4, %v14925_v33  ;;  %v10468_v49 = vld [vmem:[#allocation11 + $0xc8] ss:$16 sps:$4 sm:$0xff]   ;;  %v9412_v4 = vadd.f32 %v14739_v30, %v14925_v33 }
 0x6fd   : > { %v11577_v15 = vpop.eup %11576  ;;  %11596 = vtanh.f32 %v9407_v32  ;;  %v5838_v26 = vpop.f32.mrb[20].mxu0  ;;  %v6025_v53 = vadd.f32 %v11575_v2, %v11567_v58  ;;  %6717 = vmatprep.subr.bf16.mxu1 %v10467_v35  ;;  %v9413_v35 = vadd.f32 %v14741_v50, %v14928_v40  ;;  %v10471_v43 = vld [vmem:[#allocation11 + $0xe8] ss:$16 sps:$4 sm:$0xff]  }
 0x6fe   : > { %v11579_v1 = vpop.eup %11578  ;;  %11598 = vtanh.f32 %v9408_v10  ;;  %v9470_v48 = vadd.f32 %v5838_v26, %v14937_v6  ;;  %v5840_v25 = vpop.f32.mrb[21].mxu0  ;;  %v6026_v42 = vadd.f32 %v11577_v15, %v11569_v47  ;;  %v10473_v47 = vld [vmem:[#allocation11 + $0xec] ss:$16 sps:$4 sm:$0xff]  }
 0x6ff   : > { %v11581_v39 = vpop.eup %11580  ;;  %11600 = vtanh.f32 %v9409_v28  ;;  %v9471_v52 = vadd.f32 %v5840_v25, %v14942_v63  ;;  %v5842_v17 = vpop.f32.mrb[22].mxu0  ;;  %v15024_v22 = vpack.c.bf16 %v6025_v53, %v6023_v59  ;;  %v10519_v28 = vld [vmem:[#allocation13 + $0x70] ss:$8 sps:$4 sm:$0xff]   ;;  %v10521_v59 = vld [vmem:[#allocation13 + $0x74] ss:$8 sps:$4 sm:$0xff]   ;;  %v9414_v25 = vadd.f32 %v14745_v7, %v14925_v33 }
 0x700   : > { %v11583_v61 = vpop.eup %11582  ;;  %11602 = vtanh.f32 %v9470_v48  ;;  %v9472_v11 = vadd.f32 %v5842_v17, %v14937_v6  ;;  %v5844_v14 = vpop.f32.mrb[23].mxu0  ;;  %v15029_v58 = vpack.c.bf16 %v6026_v42, %v6024_v24  ;;  %6718 = vmatpush1.bf16.msra.mxu1 %v10465_v57  ;;  %v10476_v57 = vld [vmem:[#allocation11 + $0x10c] ss:$16 sps:$4 sm:$0xff]   ;;  %7503 = vmatprep.subr.bf16.mxu0 %v10521_v59  ;;  %v10474_v17 = vld [vmem:[#allocation11 + $0x108] ss:$16 sps:$4 sm:$0xff]   ;;  %v9416_v7 = vadd.f32 %v14751_v54, %v14925_v33 }
 0x701   : > { %v11585_v0 = vpop.eup %11584  ;;  %11604 = vtanh.f32 %v9471_v52  ;;  %v9473_v37 = vadd.f32 %v5844_v14, %v14942_v63  ;;  %6719 = vmatprep.subr.bf16.mxu1 %v10470_v55  ;;  %7504 = vmatpush1.bf16.msra.mxu0 %v10519_v28  ;;  %v10479_v14 = vld [vmem:[#allocation11 + $0x12c] ss:$16 sps:$4 sm:$0xff]  }
 0x702   : > { %v11587_v32 = vpop.eup %11586  ;;  %11606 = vtanh.f32 %v9472_v11  ;;  %6576 = vmatprep.mubr.bf16.mxu1 %v15029_v58 }
 0x703   : > { %v11589_v56 = vpop.eup %11588  ;;  %11608 = vtanh.f32 %v9473_v37  ;;  %6577 = vmatmul.mubr.bf16.gmra.mrb[204].mxu1 %v15024_v22  ;;  %v6027_v19 = vadd.f32 %v11587_v32, %v11579_v1  ;;  %v10477_v32 = vld [vmem:[#allocation11 + $0x128] ss:$16 sps:$4 sm:$0xff]  }
 0x704   : > { %v11591_v31 = vpop.eup %11590  ;;  %11610 = vtanh.f32 %v9410_v3  ;;  %v6028_v10 = vadd.f32 %v11589_v56, %v11581_v39  ;;  %6720 = vmatpush1.bf16.msra.mxu1 %v10468_v49  ;;  %v9415_v3 = vadd.f32 %v14748_v46, %v14928_v40  ;;  %v10524_v56 = vld [vmem:[#allocation13 + $0x84] ss:$8 sps:$4 sm:$0xff]  }
 0x705   : > { %v11593_v2 = vpop.eup %11592  ;;  %11612 = vtanh.f32 %v9411_v36  ;;  %v5848_v30 = vpop.f32.mrb[24].mxu0  ;;  %v6029_v24 = vadd.f32 %v11591_v31, %v11583_v61  ;;  %6721 = vmatprep.subr.bf16.mxu1 %v10473_v47  ;;  %v9417_v36 = vadd.f32 %v14753_v21, %v14928_v40  ;;  %v10482_v31 = vld [vmem:[#allocation11 + $0x14c] ss:$16 sps:$4 sm:$0xff]   ;;  %7505 = vmatprep.subr.bf16.mxu0 %v10524_v56 }
 0x706   : > { %v11595_v29 = vpop.eup %11594  ;;  %11614 = vtanh.f32 %v9412_v4  ;;  %v9474_v50 = vadd.f32 %v5848_v30, %v14937_v6  ;;  %v5850_v8 = vpop.f32.mrb[25].mxu0  ;;  %v6030_v15 = vadd.f32 %v11593_v2, %v11585_v0  ;;  %v10522_v4 = vld [vmem:[#allocation13 + $0x80] ss:$8 sps:$4 sm:$0xff]  }
 0x707   : > { %v11597_v26 = vpop.eup %11596  ;;  %11616 = vtanh.f32 %v9413_v35  ;;  %v9475_v53 = vadd.f32 %v5850_v8, %v14942_v63  ;;  %v5852_v55 = vpop.f32.mrb[26].mxu0  ;;  %v15042_v1 = vpack.c.bf16 %v6029_v24, %v6027_v19  ;;  %7506 = vmatpush1.bf16.msra.mxu0 %v10522_v4 }
 0x708   : > { %v11599_v48 = vpop.eup %11598  ;;  %11618 = vtanh.f32 %v9474_v50  ;;  %v9476_v42 = vadd.f32 %v5852_v55, %v14937_v6  ;;  %v5854_v39 = vpop.f32.mrb[27].mxu0  ;;  %v15047_v52 = vpack.c.bf16 %v6030_v15, %v6028_v10  ;;  %6722 = vmatpush1.bf16.msra.mxu1 %v10471_v43  ;;  %v9419_v55 = vadd.f32 %v14760_v27, %v14928_v40 }
 0x709   : > { %v11601_v61 = vpop.eup %11600  ;;  %11620 = vtanh.f32 %v9475_v53  ;;  %v9477_v11 = vadd.f32 %v5854_v39, %v14942_v63  ;;  %6723 = vmatprep.subr.bf16.mxu1 %v10476_v57 }
 0x70a   : > { %v11603_v49 = vpop.eup %11602  ;;  %11622 = vtanh.f32 %v9476_v42  ;;  %6586 = vmatprep.mubr.bf16.mxu1 %v15047_v52 }
 0x70b   : > { %v11605_v0 = vpop.eup %11604  ;;  %11624 = vtanh.f32 %v9477_v11  ;;  %6587 = vmatmul.mubr.bf16.gmra.mrb[208].mxu1 %v15042_v1  ;;  %v6031_v46 = vadd.f32 %v11603_v49, %v11595_v29  ;;  %v9418_v29 = vadd.f32 %v14757_v5, %v14925_v33  ;;  %v9420_v5 = vadd.f32 %v14763_v20, %v14925_v33  ;;  %v10483_v11 = vld [vmem:[#allocation11 + $0x168] ss:$16 sps:$4 sm:$0xff]   ;;  %v10527_v49 = vld [vmem:[#allocation13 + $0x94] ss:$8 sps:$4 sm:$0xff]  }
 0x70c   : > { %v11607_v37 = vpop.eup %11606  ;;  %11626 = vtanh.f32 %v9414_v25  ;;  %v6032_v47 = vadd.f32 %v11605_v0, %v11597_v26  ;;  %6724 = vmatpush1.bf16.msra.mxu1 %v10474_v17  ;;  %v10480_v26 = vld [vmem:[#allocation11 + $0x148] ss:$16 sps:$4 sm:$0xff]   ;;  %v10485_v25 = vld [vmem:[#allocation11 + $0x16c] ss:$16 sps:$4 sm:$0xff]   ;;  %v9421_v17 = vadd.f32 %v14765_v18, %v14928_v40  ;;  %7507 = vmatprep.subr.bf16.mxu0 %v10527_v49 }
 0x70d   : > { %v11609_v35 = vpop.eup %11608  ;;  %11628 = vtanh.f32 %v9415_v3  ;;  %v5858_v54 = vpop.f32.mrb[28].mxu0  ;;  %v6033_v19 = vadd.f32 %v11607_v37, %v11599_v48  ;;  %6725 = vmatprep.subr.bf16.mxu1 %v10479_v14  ;;  %v10525_v14 = vld [vmem:[#allocation13 + $0x90] ss:$8 sps:$4 sm:$0xff]  }
 0x70e   : > { %v11611_v10 = vpop.eup %11610  ;;  %11630 = vtanh.f32 %v9416_v7  ;;  %v9478_v21 = vadd.f32 %v5858_v54, %v14937_v6  ;;  %v5860_v43 = vpop.f32.mrb[29].mxu0  ;;  %v6034_v28 = vadd.f32 %v11609_v35, %v11601_v61  ;;  %7508 = vmatpush1.bf16.msra.mxu0 %v10525_v14 }
 0x70f   : > { %v11613_v59 = vpop.eup %11612  ;;  %11632 = vtanh.f32 %v9417_v36  ;;  %v9479_v2 = vadd.f32 %v5860_v43, %v14942_v63  ;;  %v5862_v30 = vpop.f32.mrb[30].mxu0  ;;  %v15060_v24 = vpack.c.bf16 %v6033_v19, %v6031_v46  ;;  %v10488_v36 = vld [vmem:[#allocation11 + $0x18c] ss:$16 sps:$4 sm:$0xff]   ;;  %v9422_v19 = vadd.f32 %v14769_v62, %v14925_v33  ;;  %v10486_v43 = vld [vmem:[#allocation11 + $0x188] ss:$16 sps:$4 sm:$0xff]  }
 0x710   : > { %v11615_v57 = vpop.eup %11614  ;;  %11634 = vtanh.f32 %v9478_v21  ;;  %v9480_v50 = vadd.f32 %v5862_v30, %v14937_v6  ;;  %v5864_v8 = vpop.f32.mrb[31].mxu0  ;;  %v15065_v15 = vpack.c.bf16 %v6034_v28, %v6032_v47  ;;  %6726 = vmatpush1.bf16.msra.mxu1 %v10477_v32  ;;  %v10494_v30 = vld [vmem:[#allocation11 + $0x1ac] ss:$16 sps:$4 sm:$0xff]   ;;  %v9424_v62 = vadd.f32 %v14775_v38, %v14925_v33 }
 0x711   : > { %v11617_v53 = vpop.eup %11616  ;;  %11636 = vtanh.f32 %v9479_v2  ;;  %v9481_v48 = vadd.f32 %v5864_v8, %v14942_v63  ;;  %6727 = vmatprep.subr.bf16.mxu1 %v10482_v31 }
 0x712   : > { %v11619_v42 = vpop.eup %11618  ;;  %11638 = vtanh.f32 %v9480_v50  ;;  %6596 = vmatprep.mubr.bf16.mxu1 %v15065_v15  ;;  %v9425_v50 = vadd.f32 %v14777_v44, %v14928_v40 }
 0x713   : > { %v11621_v39 = vpop.eup %11620  ;;  %11640 = vtanh.f32 %v9481_v48  ;;  %6597 = vmatmul.mubr.bf16.gmra.mrb[212].mxu1 %v15060_v24  ;;  %v6035_v27 = vadd.f32 %v11619_v42, %v11611_v10  ;;  %v10530_v48 = vld [vmem:[#allocation13 + $0xa4] ss:$8 sps:$4 sm:$0xff]  }
 0x714   : > { %v11623_v61 = vpop.eup %11622  ;;  %11642 = vtanh.f32 %v9418_v29  ;;  %v6036_v3 = vadd.f32 %v11621_v39, %v11613_v59  ;;  %6728 = vmatpush1.bf16.msra.mxu1 %v10480_v26  ;;  %v9423_v59 = vadd.f32 %v14772_v34, %v14928_v40  ;;  %7509 = vmatprep.subr.bf16.mxu0 %v10530_v48 }
 0x715   : > { %v11625_v7 = vpop.eup %11624  ;;  %11644 = vtanh.f32 %v9419_v55  ;;  %v5868_v20 = vpop.f32.mrb[32].mxu0  ;;  %v6037_v0 = vadd.f32 %v11623_v61, %v11615_v57  ;;  %6729 = vmatprep.subr.bf16.mxu1 %v10485_v25  ;;  %v10528_v55 = vld [vmem:[#allocation13 + $0xa0] ss:$8 sps:$4 sm:$0xff]  }
 0x716   : > { %v11627_v46 = vpop.eup %11626  ;;  %11646 = vtanh.f32 %v9420_v5  ;;  %v9482_v18 = vadd.f32 %v5868_v20, %v14937_v6  ;;  %v5870_v37 = vpop.f32.mrb[33].mxu0  ;;  %v6038_v47 = vadd.f32 %v11625_v7, %v11617_v53  ;;  %v10492_v53 = vld [vmem:[#allocation11 + $0x1a8] ss:$16 sps:$4 sm:$0xff]   ;;  %v10500_v5 = vld [vmem:[#allocation11 + $0x1cc] ss:$16 sps:$4 sm:$0xff]   ;;  %7510 = vmatpush1.bf16.msra.mxu0 %v10528_v55  ;;  %v9426_v7 = vadd.f32 %v14781_v45, %v14925_v33 }
 0x717   : > { %v11629_v32 = vpop.eup %11628  ;;  %11648 = vtanh.f32 %v9421_v17  ;;  %v9483_v4 = vadd.f32 %v5870_v37, %v14942_v63  ;;  %v5872_v56 = vpop.f32.mrb[34].mxu0  ;;  %v15078_v35 = vpack.c.bf16 %v6037_v0, %v6035_v27  ;;  %v15881_v37 = vld [vmem:[#allocation40_spill] sm:$0xff]  ;;  %v15882_v45 = vld [vmem:[#allocation39_spill] sm:$0xff] }
 0x718   : > { %v11631_v54 = vpop.eup %11630  ;;  %11650 = vtanh.f32 %v9482_v18  ;;  %v9484_v31 = vadd.f32 %v5872_v56, %v14937_v6  ;;  %v5874_v10 = vpop.f32.mrb[35].mxu0  ;;  %v15083_v21 = vpack.c.bf16 %v6038_v47, %v6036_v3  ;;  %6730 = vmatpush1.bf16.msra.mxu1 %v10483_v11  ;;  %v9427_v47 = vadd.f32 %v15881_v37, %v14928_v40 }
 0x719   : > { %v11633_v28 = vpop.eup %11632  ;;  %11652 = vtanh.f32 %v9483_v4  ;;  %v9485_v2 = vadd.f32 %v5874_v10, %v14942_v63  ;;  %6731 = vmatprep.subr.bf16.mxu1 %v10488_v36  ;;  %v10506_v4 = vld [vmem:[#allocation11 + $0x1ec] ss:$16 sps:$4 sm:$0xff]  }
 0x71a   : > { %v11635_v57 = vpop.eup %11634  ;;  %11654 = vtanh.f32 %v9484_v31  ;;  %6606 = vmatprep.mubr.bf16.mxu1 %v15083_v21  ;;  %v15883_v31 = vld [vmem:[#allocation41_spill] sm:$0xff] }
 0x71b   : > { %v11637_v29 = vpop.eup %11636  ;;  %11656 = vtanh.f32 %v9485_v2  ;;  %6607 = vmatmul.mubr.bf16.gmra.mrb[216].mxu1 %v15078_v35  ;;  %v6039_v34 = vadd.f32 %v11635_v57, %v11627_v46  ;;  %v10498_v46 = vld [vmem:[#allocation11 + $0x1c8] ss:$16 sps:$4 sm:$0xff]   ;;  %v9429_v10 = vadd.f32 %v15883_v31, %v14928_v40  ;;  %v10533_v57 = vld [vmem:[#allocation13 + $0xb4] ss:$8 sps:$4 sm:$0xff]  }
 0x71c   : > { %v11639_v8 = vpop.eup %11638  ;;  %11658 = vtanh.f32 %v9422_v19  ;;  %v6040_v26 = vadd.f32 %v11637_v29, %v11629_v32  ;;  %6732 = vmatpush1.bf16.msra.mxu1 %v10486_v43  ;;  %v10504_v2 = vld [vmem:[#allocation11 + $0x1e8] ss:$16 sps:$4 sm:$0xff]   ;;  %7511 = vmatprep.subr.bf16.mxu0 %v10533_v57 }
 0x71d   : > { %v11641_v25 = vpop.eup %11640  ;;  %11660 = vtanh.f32 %v9423_v59  ;;  %v5878_v38 = vpop.f32.mrb[36].mxu0  ;;  %v6041_v42 = vadd.f32 %v11639_v8, %v11631_v54  ;;  %6733 = vmatprep.subr.bf16.mxu1 %v10494_v30  ;;  %v9428_v54 = vadd.f32 %v15882_v45, %v14925_v33  ;;  %v10531_v30 = vld [vmem:[#allocation13 + $0xb0] ss:$8 sps:$4 sm:$0xff]   ;;  %v10536_v45 = vld [vmem:[#allocation13 + $0xc4] ss:$8 sps:$4 sm:$0xff]  }
 0x71e   : > { %v11643_v39 = vpop.eup %11642  ;;  %11662 = vtanh.f32 %v9424_v62  ;;  %v9486_v44 = vadd.f32 %v5878_v38, %v14937_v6  ;;  %v5880_v17 = vpop.f32.mrb[37].mxu0  ;;  %v6042_v27 = vadd.f32 %v11641_v25, %v11633_v28  ;;  %7512 = vmatpush1.bf16.msra.mxu0 %v10531_v30 }
 0x71f   : > { %v11645_v61 = vpop.eup %11644  ;;  %11664 = vtanh.f32 %v9425_v50  ;;  %v9487_v3 = vadd.f32 %v5880_v17, %v14942_v63  ;;  %v5882_v11 = vpop.f32.mrb[38].mxu0  ;;  %v15096_v14 = vpack.c.bf16 %v6041_v42, %v6039_v34  ;;  %7513 = vmatprep.subr.bf16.mxu0 %v10536_v45 }
 0x720   : > { %v11647_v49 = vpop.eup %11646  ;;  %11666 = vtanh.f32 %v9486_v44  ;;  %v9488_v20 = vadd.f32 %v5882_v11, %v14937_v6  ;;  %v5884_v0 = vpop.f32.mrb[39].mxu0  ;;  %v15101_v36 = vpack.c.bf16 %v6042_v27, %v6040_v26  ;;  %6734 = vmatpush1.bf16.msra.mxu1 %v10492_v53 }
 0x721   : > { %v11649_v18 = vpop.eup %11648  ;;  %11668 = vtanh.f32 %v9487_v3  ;;  %v9489_v32 = vadd.f32 %v5884_v0, %v14942_v63  ;;  %6735 = vmatprep.subr.bf16.mxu1 %v10500_v5  ;;  %v15884_v5 = vld [vmem:[#allocation42_spill] sm:$0xff]  ;;  %v15885_v3 = vld [vmem:[#allocation35_spill] sm:$0xff] }
 0x722   : > { %v11651_v56 = vpop.eup %11650  ;;  %11670 = vtanh.f32 %v9488_v20  ;;  %6616 = vmatprep.mubr.bf16.mxu1 %v15101_v36  ;;  %v9431_v11 = vadd.f32 %v15885_v3, %v14928_v40  ;;  %v15886_v20 = vld [vmem:[#allocation44_spill] sm:$0xff] }
 0x723   : > { %v11653_v19 = vpop.eup %11652  ;;  %11672 = vtanh.f32 %v9489_v32  ;;  %6617 = vmatmul.mubr.bf16.gmra.mrb[220].mxu1 %v15096_v14  ;;  %v6043_v43 = vadd.f32 %v11651_v56, %v11643_v39  ;;  %v9430_v39 = vadd.f32 %v15884_v5, %v14925_v33  ;;  %v9432_v0 = vadd.f32 %v15886_v20, %v14925_v33  ;;  %v10534_v56 = vld [vmem:[#allocation13 + $0xc0] ss:$8 sps:$4 sm:$0xff]   ;;  %v10537_v20 = vld [vmem:[#allocation13 + $0xd0] ss:$8 sps:$4 sm:$0xff]  }
 0x724   : > { %v11655_v28 = vpop.eup %11654  ;;  %11674 = vtanh.f32 %v9426_v7  ;;  %v6044_v59 = vadd.f32 %v11653_v19, %v11645_v61  ;;  %6736 = vmatpush1.bf16.msra.mxu1 %v10498_v46  ;;  %7514 = vmatpush1.bf16.msra.mxu0 %v10534_v56 }
 0x725   : > { %v11657_v62 = vpop.eup %11656  ;;  %11676 = vtanh.f32 %v9427_v47  ;;  %v5888_v29 = vpop.f32.mrb[40].mxu0  ;;  %v6045_v50 = vadd.f32 %v11655_v28, %v11647_v49  ;;  %6737 = vmatprep.subr.bf16.mxu1 %v10506_v4 }
 0x726   : > { %v11659_v34 = vpop.eup %11658  ;;  %11678 = vtanh.f32 %v9428_v54  ;;  %v9490_v8 = vadd.f32 %v5888_v29, %v14937_v6  ;;  %v5890_v26 = vpop.f32.mrb[41].mxu0  ;;  %v6046_v53 = vadd.f32 %v11657_v62, %v11649_v18  ;;  %v15887_v18 = vld [vmem:[#allocation36_spill] sm:$0xff] }
 0x727   : > { %v11661_v55 = vpop.eup %11660  ;;  %11680 = vtanh.f32 %v9429_v10  ;;  %v9491_v48 = vadd.f32 %v5890_v26, %v14942_v63  ;;  %v5892_v25 = vpop.f32.mrb[42].mxu0  ;;  %v15114_v38 = vpack.c.bf16 %v6045_v50, %v6043_v43  ;;  %v9433_v37 = vadd.f32 %v15887_v18, %v14928_v40  ;;  %v15888_v50 = vld [vmem:[#allocation43_spill] sm:$0xff] }
 0x728   : > { %v11663_v42 = vpop.eup %11662  ;;  %11682 = vtanh.f32 %v9490_v8  ;;  %v9492_v44 = vadd.f32 %v5892_v25, %v14937_v6  ;;  %v5894_v17 = vpop.f32.mrb[43].mxu0  ;;  %v15119_v27 = vpack.c.bf16 %v6046_v53, %v6044_v59  ;;  %6738 = vmatpush1.bf16.msra.mxu1 %v10504_v2 }
 0x729   : > { %v11665_v61 = vpop.eup %11664  ;;  %11684 = vtanh.f32 %v9491_v48  ;;  %v9493_v49 = vadd.f32 %v5894_v17, %v14942_v63  ;;  %v15889_v48 = vld [vmem:[#allocation37_spill] sm:$0xff] }
 0x72a   : > { %v11667_v7 = vpop.eup %11666  ;;  %11686 = vtanh.f32 %v9492_v44  ;;  %6626 = vmatprep.mubr.bf16.mxu1 %v15119_v27  ;;  %v9435_v25 = vadd.f32 %v15889_v48, %v14928_v40 }
 0x72b   : > { %v11669_v46 = vpop.eup %11668  ;;  %11688 = vtanh.f32 %v9493_v49  ;;  %6627 = vmatmul.mubr.bf16.gmra.mrb[224].mxu1 %v15114_v38  ;;  %v6047_v47 = vadd.f32 %v11667_v7, %v11659_v34  ;;  %v9434_v34 = vadd.f32 %v15888_v50, %v14925_v33 }
 0x72c   : > { %v11671_v32 = vpop.eup %11670  ;;  %11690 = vtanh.f32 %v9430_v39  ;;  %v6048_v4 = vadd.f32 %v11669_v46, %v11661_v55  ;;  %v15890_v39 = vld [vmem:[#allocation48_spill] sm:$0xff] }
 0x72d   : > { %v11673_v54 = vpop.eup %11672  ;;  %11692 = vtanh.f32 %v9431_v11  ;;  %v5898_v19 = vpop.f32.mrb[44].mxu0  ;;  %v6049_v31 = vadd.f32 %v11671_v32, %v11663_v42  ;;  %v9436_v44 = vadd.f32 %v15890_v39, %v14925_v33 }
 0x72e   : > { %v11675_v10 = vpop.eup %11674  ;;  %11694 = vtanh.f32 %v9432_v0  ;;  %v9494_v43 = vadd.f32 %v5898_v19, %v14937_v6  ;;  %v5900_v28 = vpop.f32.mrb[45].mxu0  ;;  %v6050_v59 = vadd.f32 %v11673_v54, %v11665_v61  ;;  %v15891_v61 = vld [vmem:[#allocation46_spill] sm:$0xff] }
 0x72f   : > { %v11677_v2 = vpop.eup %11676  ;;  %11696 = vtanh.f32 %v9433_v37  ;;  %v9495_v30 = vadd.f32 %v5900_v28, %v14942_v63  ;;  %v5902_v57 = vpop.f32.mrb[46].mxu0  ;;  %v15132_v62 = vpack.c.bf16 %v6049_v31, %v6047_v47  ;;  %v9437_v3 = vadd.f32 %v15891_v61, %v14928_v40  ;;  %v10539_v0 = vld [vmem:[#allocation13 + $0xd4] ss:$8 sps:$4 sm:$0xff]  }
 0x730   : > { %v11679_v29 = vpop.eup %11678  ;;  %11698 = vtanh.f32 %v9494_v43  ;;  %v9496_v8 = vadd.f32 %v5902_v57, %v14937_v6  ;;  %v5904_v26 = vpop.f32.mrb[47].mxu0  ;;  %v15137_v53 = vpack.c.bf16 %v6050_v59, %v6048_v4  ;;  %7515 = vmatprep.subr.bf16.mxu0 %v10539_v0  ;;  %v15892_v43 = vld [vmem:[#allocation47_spill] sm:$0xff] }
 0x731   : > { %v11681_v55 = vpop.eup %11680  ;;  %11700 = vtanh.f32 %v9495_v30  ;;  %v9497_v42 = vadd.f32 %v5904_v26, %v14942_v63  ;;  %7516 = vmatpush1.bf16.msra.mxu0 %v10537_v20  ;;  %v9438_v28 = vadd.f32 %v15892_v43, %v14925_v33  ;;  %v15894_v26 = vld [vmem:[#allocation52_spill] sm:$0xff] }
 0x732   : > { %v11683_v5 = vpop.eup %11682  ;;  %11702 = vtanh.f32 %v9496_v8  ;;  %6636 = vmatprep.mubr.bf16.mxu1 %v15137_v53 }
 0x733   : > { %v11685_v17 = vpop.eup %11684  ;;  %11704 = vtanh.f32 %v9497_v42  ;;  %6637 = vmatmul.mubr.bf16.gmra.mrb[228].mxu1 %v15132_v62  ;;  %v6051_v11 = vadd.f32 %v11683_v5, %v11675_v10 }
 0x734   : > { %v11687_v49 = vpop.eup %11686  ;;  %11706 = vtanh.f32 %v9434_v34  ;;  %v6052_v7 = vadd.f32 %v11685_v17, %v11677_v2 }
 0x735   : > { %v11689_v46 = vpop.eup %11688  ;;  %11708 = vtanh.f32 %v9435_v25  ;;  %v5908_v18 = vpop.f32.mrb[48].mxu0  ;;  %v6053_v37 = vadd.f32 %v11687_v49, %v11679_v29  ;;  %v15893_v29 = vld [vmem:[#allocation45_spill] sm:$0xff]  ;;  %v15895_v25 = vld [vmem:[#allocation50_spill] sm:$0xff] }
 0x736   : > { %v11691_v47 = vpop.eup %11690  ;;  %11710 = vtanh.f32 %v9436_v44  ;;  %v9498_v32 = vadd.f32 %v5908_v18, %v14937_v6  ;;  %v5910_v4 = vpop.f32.mrb[49].mxu0  ;;  %v6054_v56 = vadd.f32 %v11689_v46, %v11681_v55  ;;  %v9439_v50 = vadd.f32 %v15893_v29, %v14928_v40 }
 0x737   : > { %v11693_v45 = vpop.eup %11692  ;;  %11712 = vtanh.f32 %v9437_v3  ;;  %v9499_v54 = vadd.f32 %v5910_v4, %v14942_v63  ;;  %v5912_v19 = vpop.f32.mrb[50].mxu0  ;;  %v15150_v31 = vpack.c.bf16 %v6053_v37, %v6051_v11  ;;  %v9440_v55 = vadd.f32 %v15894_v26, %v14925_v33 }
 0x738   : > { %v11695_v10 = vpop.eup %11694  ;;  %11714 = vtanh.f32 %v9498_v32  ;;  %v9500_v59 = vadd.f32 %v5912_v19, %v14937_v6  ;;  %v5914_v2 = vpop.f32.mrb[51].mxu0  ;;  %v15155_v30 = vpack.c.bf16 %v6054_v56, %v6052_v7  ;;  %v9441_v42 = vadd.f32 %v15895_v25, %v14928_v40  ;;  %v15896_v32 = vld [vmem:[#allocation51_spill] sm:$0xff] }
 0x739   : > { %v11697_v57 = vpop.eup %11696  ;;  %11716 = vtanh.f32 %v9499_v54  ;;  %v9501_v34 = vadd.f32 %v5914_v2, %v14942_v63  ;;  %v9442_v4 = vadd.f32 %v15896_v32, %v14925_v33  ;;  %v15898_v2 = vld [vmem:[#allocation53_spill] sm:$0xff] }
 0x73a   : > { %v11699_v8 = vpop.eup %11698  ;;  %11718 = vtanh.f32 %v9500_v59  ;;  %6646 = vmatprep.mubr.bf16.mxu1 %v15155_v30 }
 0x73b   : > { %v11701_v48 = vpop.eup %11700  ;;  %11720 = vtanh.f32 %v9501_v34  ;;  %6647 = vmatmul.mubr.bf16.gmra.mrb[232].mxu1 %v15150_v31  ;;  %v6055_v5 = vadd.f32 %v11699_v8, %v11691_v47 }
 0x73c   : > { %v11703_v39 = vpop.eup %11702  ;;  %11722 = vtanh.f32 %v9438_v28  ;;  %v6056_v44 = vadd.f32 %v11701_v48, %v11693_v45 }
 0x73d   : > { %v11705_v17 = vpop.eup %11704  ;;  %11724 = vtanh.f32 %v9439_v50  ;;  %v5918_v61 = vpop.f32.mrb[52].mxu0  ;;  %v6057_v3 = vadd.f32 %v11703_v39, %v11695_v10  ;;  %v15897_v10 = vld [vmem:[#allocation49_spill] sm:$0xff]  ;;  %v15899_v50 = vld [vmem:[#allocation54_spill] sm:$0xff] }
 0x73e   : > { %v11707_v11 = vpop.eup %11706  ;;  %11726 = vtanh.f32 %v9440_v55  ;;  %v9502_v49 = vadd.f32 %v5918_v61, %v14937_v6  ;;  %v5920_v7 = vpop.f32.mrb[53].mxu0  ;;  %v6058_v20 = vadd.f32 %v11705_v17, %v11697_v57  ;;  %v9443_v43 = vadd.f32 %v15897_v10, %v14928_v40 }
 0x73f   : > { %v11709_v0 = vpop.eup %11708  ;;  %11728 = vtanh.f32 %v9441_v42  ;;  %v9503_v46 = vadd.f32 %v5920_v7, %v14942_v63  ;;  %v5922_v18 = vpop.f32.mrb[54].mxu0  ;;  %v15168_v37 = vpack.c.bf16 %v6057_v3, %v6055_v5  ;;  %v9444_v57 = vadd.f32 %v15898_v2, %v14925_v33 }
 0x740   : > { %v11711_v47 = vpop.eup %11710  ;;  %11730 = vtanh.f32 %v9502_v49  ;;  %v9504_v56 = vadd.f32 %v5922_v18, %v14937_v6  ;;  %v5924_v45 = vpop.f32.mrb[55].mxu0  ;;  %v15173_v54 = vpack.c.bf16 %v6058_v20, %v6056_v44  ;;  %v9445_v34 = vadd.f32 %v15899_v50, %v14928_v40  ;;  %v15900_v20 = vld [vmem:[#allocation56_spill] sm:$0xff] }
 0x741   : > { %v11713_v19 = vpop.eup %11712  ;;  %11732 = vtanh.f32 %v9503_v46  ;;  %v9505_v28 = vadd.f32 %v5924_v45, %v14942_v63 }
 0x742   : > { %v11715_v59 = vpop.eup %11714  ;;  %11734 = vtanh.f32 %v9504_v56  ;;  %6656 = vmatprep.mubr.bf16.mxu1 %v15173_v54 }
 0x743   : > { %v11717_v29 = vpop.eup %11716  ;;  %11736 = vtanh.f32 %v9505_v28  ;;  %6657 = vmatmul.mubr.bf16.gmra.mrb[236].mxu1 %v15168_v37  ;;  %v6059_v8 = vadd.f32 %v11715_v59, %v11707_v11  ;;  %v10540_v59 = vld [vmem:[#allocation13 + $0xe0] ss:$8 sps:$4 sm:$0xff]  }
 0x744   : > { %v11719_v26 = vpop.eup %11718  ;;  %11738 = vtanh.f32 %v9442_v4  ;;  %v6060_v55 = vadd.f32 %v11717_v29, %v11709_v0  ;;  %v9446_v0 = vadd.f32 %v15900_v20, %v14925_v33  ;;  %v15901_v4 = vld [vmem:[#allocation55_spill] sm:$0xff] }
 0x745   : > { %v11721_v48 = vpop.eup %11720  ;;  %11740 = vtanh.f32 %v9443_v43  ;;  %v5928_v25 = vpop.f32.mrb[56].mxu0  ;;  %v6061_v42 = vadd.f32 %v11719_v26, %v11711_v47  ;;  %v9447_v56 = vadd.f32 %v15901_v4, %v14928_v40  ;;  %v15902_v43 = vld [vmem:[#allocation32_spill] sm:$0xff] }
 0x746   : > { %v11723_v5 = vpop.eup %11722  ;;  %11742 = vtanh.f32 %v9444_v57  ;;  %v9506_v39 = vadd.f32 %v5928_v25, %v14937_v6  ;;  %v5930_v44 = vpop.f32.mrb[57].mxu0  ;;  %v6062_v17 = vadd.f32 %v11721_v48, %v11713_v19  ;;  %v10542_v19 = vld [vmem:[#allocation13 + $0xe4] ss:$8 sps:$4 sm:$0xff]   ;;  %v9448_v28 = vadd.f32 %v15902_v43, %v14925_v33  ;;  %v10545_v48 = vld [vmem:[#allocation13 + $0xf4] ss:$8 sps:$4 sm:$0xff]  }
 0x747   : > { %v11725_v61 = vpop.eup %11724  ;;  %11744 = vtanh.f32 %v9445_v34  ;;  %v9507_v3 = vadd.f32 %v5930_v44, %v14942_v63  ;;  %v5932_v49 = vpop.f32.mrb[58].mxu0  ;;  %v15186_v7 = vpack.c.bf16 %v6061_v42, %v6059_v8  ;;  %v15903_v57 = vld [vmem:[#allocation33_spill] sm:$0xff]  ;;  %7517 = vmatprep.subr.bf16.mxu0 %v10542_v19  ;;  %v10543_v44 = vld [vmem:[#allocation13 + $0xf0] ss:$8 sps:$4 sm:$0xff]  }
 0x748   : > { %v11727_v11 = vpop.eup %11726  ;;  %11746 = vtanh.f32 %v9506_v39  ;;  %v9508_v46 = vadd.f32 %v5932_v49, %v14937_v6  ;;  %v5934_v18 = vpop.f32.mrb[59].mxu0  ;;  %v15191_v47 = vpack.c.bf16 %v6062_v17, %v6060_v55  ;;  %v9449_v29 = vadd.f32 %v15903_v57, %v14928_v40  ;;  %7518 = vmatpush1.bf16.msra.mxu0 %v10540_v59 }
 0x749   : > { %v11729_v32 = vpop.eup %11728  ;;  %11748 = vtanh.f32 %v9507_v3  ;;  %v9509_v45 = vadd.f32 %v5934_v18, %v14942_v63  ;;  %7519 = vmatprep.subr.bf16.mxu0 %v10545_v48 }
 0x74a   : > { %v11731_v10 = vpop.eup %11730  ;;  %11750 = vtanh.f32 %v9508_v46  ;;  %6666 = vmatprep.mubr.bf16.mxu1 %v15191_v47 }
 0x74b   : > { %v11733_v2 = vpop.eup %11732  ;;  %11752 = vtanh.f32 %v9509_v45  ;;  %6667 = vmatmul.mubr.bf16.gmra.mrb[240].mxu1 %v15186_v7  ;;  %v6063_v50 = vadd.f32 %v11731_v10, %v11723_v5 }
 0x74c   : > { %v11735_v34 = vpop.eup %11734  ;;  %11754 = vtanh.f32 %v9446_v0  ;;  %v6064_v8 = vadd.f32 %v11733_v2, %v11725_v61  ;;  %7520 = vmatpush1.bf16.msra.mxu0 %v10543_v44 }
 0x74d   : > { %v11737_v26 = vpop.eup %11736  ;;  %11756 = vtanh.f32 %v9447_v56  ;;  %v5938_v33 = vpop.f32.mrb[60].mxu0  ;;  %v6065_v55 = vadd.f32 %v11735_v34, %v11727_v11 }
 0x74e   : > { %v11739_v25 = vpop.eup %11738  ;;  %11758 = vtanh.f32 %v9448_v28  ;;  %v9510_v42 = vadd.f32 %v5938_v33, %v14937_v6  ;;  %v5940_v39 = vpop.f32.mrb[61].mxu0  ;;  %v6066_v40 = vadd.f32 %v11737_v26, %v11729_v32 }
 0x74f   : > { %v11741_v17 = vpop.eup %11740  ;;  %11760 = vtanh.f32 %v9449_v29  ;;  %v9511_v5 = vadd.f32 %v5940_v39, %v14942_v63  ;;  %v5942_v3 = vpop.f32.mrb[62].mxu0  ;;  %v15204_v49 = vpack.c.bf16 %v6065_v55, %v6063_v50 }
 0x750   : > { %v11743_v61 = vpop.eup %11742  ;;  %11762 = vtanh.f32 %v9510_v42  ;;  %v9512_v11 = vadd.f32 %v5942_v3, %v14937_v6  ;;  %v5944_v20 = vpop.f32.mrb[63].mxu0  ;;  %v15207_v0 = vpack.c.bf16 %v6066_v40, %v6064_v8  ;;  %v10548_v42 = vld [vmem:[#allocation13 + $0x104] ss:$8 sps:$4 sm:$0xff]   ;;  %v10546_v3 = vld [vmem:[#allocation13 + $0x100] ss:$8 sps:$4 sm:$0xff]  }
 0x751   : > { %v11745_v46 = vpop.eup %11744  ;;  %11764 = vtanh.f32 %v9511_v5  ;;  %v9513_v18 = vadd.f32 %v5944_v20, %v14942_v63  ;;  %7682 = vmatprep.subr.bf16.mxu0 %v10548_v42  ;;  %v10551_v20 = vld [vmem:[#allocation13 + $0x114] ss:$8 sps:$4 sm:$0xff]  }
 0x752   : > { %v11747_v32 = vpop.eup %11746  ;;  %11766 = vtanh.f32 %v9512_v11  ;;  %6676 = vmatprep.mubr.bf16.mxu1 %v15207_v0 }
 0x753   : > { %v11749_v4 = vpop.eup %11748  ;;  %11768 = vtanh.f32 %v9513_v18  ;;  %6677 = vmatmul.mubr.bf16.gmra.mrb[244].mxu1 %v15204_v49  ;;  %v6067_v56 = vadd.f32 %v11747_v32, %v11739_v25  ;;  %v10549_v32 = vld [vmem:[#allocation13 + $0x110] ss:$8 sps:$4 sm:$0xff]  }
 0x754   : > { %v11751_v45 = vpop.eup %11750  ;;  %v6068_v19 = vadd.f32 %v11749_v4, %v11741_v17 }
 0x755   : > { %v11753_v6 = vpop.eup %11752  ;;  %v6069_v10 = vadd.f32 %v11751_v45, %v11743_v61 }
 0x756   : > { %v11755_v43 = vpop.eup %11754  ;;  %v6070_v28 = vadd.f32 %v11753_v6, %v11745_v46 }
 0x757   : > { %v11757_v59 = vpop.eup %11756  ;;  %v15212_v2 = vpack.c.bf16 %v6069_v10, %v6067_v56  ;;  %v10554_v56 = vld [vmem:[#allocation13 + $0x124] ss:$8 sps:$4 sm:$0xff]  }
 0x758   : > { %v11759_v57 = vpop.eup %11758  ;;  %v15214_v63 = vpack.c.bf16 %v6070_v28, %v6068_v19 }
 0x759   : > { %v11761_v29 = vpop.eup %11760 }
 0x75a   : > { %v11763_v50 = vpop.eup %11762  ;;  %6686 = vmatprep.mubr.bf16.mxu1 %v15214_v63 }
 0x75b   : > { %v11765_v34 = vpop.eup %11764  ;;  %6687 = vmatmul.mubr.bf16.gmra.mrb[248].mxu1 %v15212_v2  ;;  %v6071_v8 = vadd.f32 %v11763_v50, %v11755_v43  ;;  %v10557_v50 = vld [vmem:[#allocation13 + $0x134] ss:$8 sps:$4 sm:$0xff]  }
 0x75c   : > { %v11767_v26 = vpop.eup %11766  ;;  %v6072_v33 = vadd.f32 %v11765_v34, %v11757_v59 }
 0x75d   : > { %v11769_v55 = vpop.eup %11768  ;;  %v6073_v48 = vadd.f32 %v11767_v26, %v11759_v57  ;;  %v10552_v57 = vld [vmem:[#allocation13 + $0x120] ss:$8 sps:$4 sm:$0xff]  }
 0x75e   : > { %v6074_v25 = vadd.f32 %v11769_v55, %v11761_v29 }
 0x75f   : > { %v15218_v39 = vpack.c.bf16 %v6073_v48, %v6071_v8  ;;  %v10560_v48 = vld [vmem:[#allocation13 + $0x144] ss:$8 sps:$4 sm:$0xff]  }
 0x760   : > { %v15220_v40 = vpack.c.bf16 %v6074_v25, %v6072_v33  ;;  %v10555_v33 = vld [vmem:[#allocation13 + $0x130] ss:$8 sps:$4 sm:$0xff]  }
 0x762   : > { %6696 = vmatprep.mubr.bf16.mxu1 %v15220_v40 }
 0x763   : > { %6697 = vmatmul.mubr.bf16.gmra.mrb[252].mxu1 %v15218_v39 }
 0x764   : > { %6739 = vmatprep.mubr.bf16.mxu1 %v14975_v41 }
 0x76b   : > { %6740 = vmatmul.mubr.bf16.vlgmr.msra.gmra.mrb[0].mxu1 %v14970_v13  ;;  %v15245_v13 = vld [vmem:[#allocation16 + $0x20] ss:$8 sm:$0xf] }
 0x76c   : > { %6749 = vmatprep.mubr.bf16.mxu1 %v14993_v23  ;;  %v15250_v41 = vrot.slane %v15245_v13, %v15854_v12 }
 0x773   : > { %6750 = vmatmul.mubr.bf16.gmra.mrb[4].mxu1 %v14988_v16  ;;  %v15255_v16 = vrot.slane %v15245_v13, %v15855_v51 }
 0x774   : > { %6759 = vmatprep.mubr.bf16.mxu1 %v15011_v60 }
 0x77b   : > { %6760 = vmatmul.mubr.bf16.gmra.mrb[8].mxu1 %v15006_v9 }
 0x77c   : > { %6769 = vmatprep.mubr.bf16.mxu1 %v15029_v58 }
 0x783   : > { %6770 = vmatmul.mubr.bf16.gmra.mrb[12].mxu1 %v15024_v22 }
 0x784   : > { %6779 = vmatprep.mubr.bf16.mxu1 %v15047_v52 }
 0x78b   : > { %6780 = vmatmul.mubr.bf16.gmra.mrb[16].mxu1 %v15042_v1 }
 0x78c   : > { %6789 = vmatprep.mubr.bf16.mxu1 %v15065_v15 }
 0x793   : > { %6790 = vmatmul.mubr.bf16.gmra.mrb[20].mxu1 %v15060_v24 }
 0x794   : > { %6799 = vmatprep.mubr.bf16.mxu1 %v15083_v21 }
 0x79b   : > { %6800 = vmatmul.mubr.bf16.gmra.mrb[24].mxu1 %v15078_v35 }
 0x79c   : > { %6809 = vmatprep.mubr.bf16.mxu1 %v15101_v36 }
 0x7a3   : > { %6810 = vmatmul.mubr.bf16.gmra.mrb[28].mxu1 %v15096_v14 }
 0x7a4   : > { %6819 = vmatprep.mubr.bf16.mxu1 %v15119_v27 }
 0x7ab   : > { %6820 = vmatmul.mubr.bf16.gmra.mrb[32].mxu1 %v15114_v38 }
 0x7ac   : > { %6829 = vmatprep.mubr.bf16.mxu1 %v15137_v53 }
 0x7b3   : > { %6830 = vmatmul.mubr.bf16.gmra.mrb[36].mxu1 %v15132_v62 }
 0x7b4   : > { %6839 = vmatprep.mubr.bf16.mxu1 %v15155_v30 }
 0x7bb   : > { %6840 = vmatmul.mubr.bf16.gmra.mrb[40].mxu1 %v15150_v31 }
 0x7bc   : > { %6849 = vmatprep.mubr.bf16.mxu1 %v15173_v54 }
 0x7be   : > { %v6548_v23 = vpop.f32.mrb[192].mxu1 }
 0x7bf   : > { %v6549_v9 = vadd.f32 %v6548_v23, %v15250_v41  ;;  %v6550_v60 = vpop.f32.mrb[193].mxu1 }
 0x7c0   : > { %v6551_v22 = vadd.f32 %v6550_v60, %v15255_v16  ;;  %v6552_v58 = vpop.f32.mrb[194].mxu1 }
 0x7c1   : > { %11770 = vtanh.f32 %v6549_v9  ;;  %v6553_v1 = vadd.f32 %v6552_v58, %v15250_v41  ;;  %v6554_v52 = vpop.f32.mrb[195].mxu1 }
 0x7c2   : > { %11772 = vtanh.f32 %v6551_v22  ;;  %v6555_v24 = vadd.f32 %v6554_v52, %v15255_v16 }
 0x7c3   : > { %11774 = vtanh.f32 %v6553_v1  ;;  %6850 = vmatmul.mubr.bf16.gmra.mrb[44].mxu1 %v15168_v37  ;;  %v10558_v1 = vld [vmem:[#allocation13 + $0x140] ss:$8 sps:$4 sm:$0xff]  }
 0x7c4   : > { %11776 = vtanh.f32 %v6555_v24  ;;  %6859 = vmatprep.mubr.bf16.mxu1 %v15191_v47  ;;  %v10563_v24 = vld [vmem:[#allocation13 + $0x154] ss:$8 sps:$4 sm:$0xff]  }
 0x7c6   : > { %v6558_v15 = vpop.f32.mrb[196].mxu1 }
 0x7c7   : > { %v6559_v35 = vadd.f32 %v6558_v15, %v15250_v41  ;;  %v6560_v21 = vpop.f32.mrb[197].mxu1 }
 0x7c8   : > { %v6561_v14 = vadd.f32 %v6560_v21, %v15255_v16  ;;  %v6562_v36 = vpop.f32.mrb[198].mxu1 }
 0x7c9   : > { %11778 = vtanh.f32 %v6559_v35  ;;  %v6563_v38 = vadd.f32 %v6562_v36, %v15250_v41  ;;  %v6564_v27 = vpop.f32.mrb[199].mxu1 }
 0x7ca   : > { %11780 = vtanh.f32 %v6561_v14  ;;  %v6565_v62 = vadd.f32 %v6564_v27, %v15255_v16  ;;  %v10561_v14 = vld [vmem:[#allocation13 + $0x150] ss:$8 sps:$4 sm:$0xff]  }
 0x7cb   : > { %v11771_v53 = vpop.eup %11770  ;;  %11782 = vtanh.f32 %v6563_v38  ;;  %6860 = vmatmul.mubr.bf16.gmra.mrb[48].mxu1 %v15186_v7  ;;  %v10566_v38 = vld [vmem:[#allocation13 + $0x164] ss:$8 sps:$4 sm:$0xff]  }
 0x7cc   : > { %v11773_v31 = vpop.eup %11772  ;;  %11784 = vtanh.f32 %v6565_v62  ;;  %6869 = vmatprep.mubr.bf16.mxu1 %v15207_v0 }
 0x7cd   : > { %v11775_v30 = vpop.eup %11774 }
 0x7ce   : > { %v11777_v37 = vpop.eup %11776  ;;  %v7030_v54 = vpack.c.bf16 %v11775_v30, %v11771_v53  ;;  %v6568_v47 = vpop.f32.mrb[200].mxu1 }
 0x7cf   : > { %v6569_v44 = vadd.f32 %v6568_v47, %v15250_v41  ;;  %v6570_v17 = vpop.f32.mrb[201].mxu1  ;;  %v7031_v5 = vpack.c.bf16 %v11777_v37, %v11773_v31  ;;  %v10564_v47 = vld [vmem:[#allocation13 + $0x160] ss:$8 sps:$4 sm:$0xff]  }
 0x7d0   : > { %v6571_v61 = vadd.f32 %v6570_v17, %v15255_v16  ;;  %v6572_v11 = vpop.f32.mrb[202].mxu1 }
 0x7d1   : > { %11786 = vtanh.f32 %v6569_v44  ;;  %v6573_v7 = vadd.f32 %v6572_v11, %v15250_v41  ;;  %v6574_v46 = vpop.f32.mrb[203].mxu1  ;;  %7521 = vmatprep.mubr.bf16.mxu0 %v7031_v5 }
 0x7d2   : > { %11788 = vtanh.f32 %v6571_v61  ;;  %v6575_v0 = vadd.f32 %v6574_v46, %v15255_v16  ;;  %7522 = vmatmul.mubr.bf16.vlgmr.msra.gmra.mrb[64].mxu0 %v7030_v54  ;;  %v10572_v46 = vld [vmem:[#allocation13 + $0x184] ss:$8 sps:$4 sm:$0xff]  }
 0x7d3   : > { %v11779_v18 = vpop.eup %11778  ;;  %11790 = vtanh.f32 %v6573_v7  ;;  %7683 = vmatpush1.bf16.msra.mxu0 %v10546_v3  ;;  %6870 = vmatmul.mubr.bf16.gmra.mrb[52].mxu1 %v15204_v49 }
 0x7d4   : > { %v11781_v4 = vpop.eup %11780  ;;  %11792 = vtanh.f32 %v6575_v0  ;;  %6879 = vmatprep.mubr.bf16.mxu1 %v15214_v63  ;;  %7684 = vmatprep.subr.bf16.mxu0 %v10551_v20  ;;  %v10567_v20 = vld [vmem:[#allocation13 + $0x170] ss:$8 sps:$4 sm:$0xff]  }
 0x7d5   : > { %v11783_v45 = vpop.eup %11782 }
 0x7d6   : > { %v11785_v19 = vpop.eup %11784  ;;  %v7034_v6 = vpack.c.bf16 %v11783_v45, %v11779_v18  ;;  %v6578_v10 = vpop.f32.mrb[204].mxu1 }
 0x7d7   : > { %v6579_v43 = vadd.f32 %v6578_v10, %v15250_v41  ;;  %v6580_v28 = vpop.f32.mrb[205].mxu1  ;;  %v7035_v59 = vpack.c.bf16 %v11785_v19, %v11781_v4  ;;  %7685 = vmatpush1.bf16.msra.mxu0 %v10549_v32 }
 0x7d8   : > { %v6581_v29 = vadd.f32 %v6580_v28, %v15255_v16  ;;  %v6582_v49 = vpop.f32.mrb[206].mxu1  ;;  %7686 = vmatprep.subr.bf16.mxu0 %v10554_v56  ;;  %v10575_v28 = vld [vmem:[#allocation13 + $0x194] ss:$8 sps:$4 sm:$0xff]  }
 0x7d9   : > { %11794 = vtanh.f32 %v6579_v43  ;;  %v6583_v63 = vadd.f32 %v6582_v49, %v15250_v41  ;;  %v6584_v34 = vpop.f32.mrb[207].mxu1  ;;  %7531 = vmatprep.mubr.bf16.mxu0 %v7035_v59 }
 0x7da   : > { %11796 = vtanh.f32 %v6581_v29  ;;  %v6585_v8 = vadd.f32 %v6584_v34, %v15255_v16  ;;  %7532 = vmatmul.mubr.bf16.gmra.mrb[68].mxu0 %v7034_v6  ;;  %v10570_v6 = vld [vmem:[#allocation13 + $0x180] ss:$8 sps:$4 sm:$0xff]   ;;  %v10578_v34 = vld [vmem:[#allocation13 + $0x1a4] ss:$8 sps:$4 sm:$0xff]  }
 0x7db   : > { %v11787_v26 = vpop.eup %11786  ;;  %11798 = vtanh.f32 %v6583_v63  ;;  %6880 = vmatmul.mubr.bf16.gmra.mrb[56].mxu1 %v15212_v2  ;;  %7687 = vmatpush1.bf16.msra.mxu0 %v10552_v57 }
 0x7dc   : > { %v11789_v55 = vpop.eup %11788  ;;  %11800 = vtanh.f32 %v6585_v8  ;;  %6889 = vmatprep.mubr.bf16.mxu1 %v15220_v40  ;;  %7688 = vmatprep.subr.bf16.mxu0 %v10557_v50  ;;  %v10573_v50 = vld [vmem:[#allocation13 + $0x190] ss:$8 sps:$4 sm:$0xff]  }
 0x7dd   : > { %v11791_v25 = vpop.eup %11790 }
 0x7de   : > { %v11793_v42 = vpop.eup %11792  ;;  %v7038_v23 = vpack.c.bf16 %v11791_v25, %v11787_v26  ;;  %v6588_v9 = vpop.f32.mrb[208].mxu1 }
 0x7df   : > { %v6589_v60 = vadd.f32 %v6588_v9, %v15250_v41  ;;  %v6590_v22 = vpop.f32.mrb[209].mxu1  ;;  %v7039_v58 = vpack.c.bf16 %v11793_v42, %v11789_v55  ;;  %7689 = vmatpush1.bf16.msra.mxu0 %v10555_v33 }
 0x7e0   : > { %v6591_v2 = vadd.f32 %v6590_v22, %v15255_v16  ;;  %v6592_v52 = vpop.f32.mrb[210].mxu1  ;;  %7690 = vmatprep.subr.bf16.mxu0 %v10560_v48  ;;  %v10581_v22 = vld [vmem:[#allocation13 + $0x1b4] ss:$8 sps:$4 sm:$0xff]  }
 0x7e1   : > { %11802 = vtanh.f32 %v6589_v60  ;;  %v6593_v40 = vadd.f32 %v6592_v52, %v15250_v41  ;;  %v6594_v15 = vpop.f32.mrb[211].mxu1  ;;  %7541 = vmatprep.mubr.bf16.mxu0 %v7039_v58 }
 0x7e2   : > { %11804 = vtanh.f32 %v6591_v2  ;;  %v6595_v35 = vadd.f32 %v6594_v15, %v15255_v16  ;;  %7542 = vmatmul.mubr.bf16.gmra.mrb[72].mxu0 %v7038_v23  ;;  %v10576_v23 = vld [vmem:[#allocation13 + $0x1a0] ss:$8 sps:$4 sm:$0xff]   ;;  %v10584_v15 = vld [vmem:[#allocation13 + $0x1c4] ss:$8 sps:$4 sm:$0xff]  }
 0x7e3   : > { %v11795_v21 = vpop.eup %11794  ;;  %11806 = vtanh.f32 %v6593_v40  ;;  %6890 = vmatmul.mubr.bf16.gmra.mrb[60].mxu1 %v15218_v39  ;;  %7691 = vmatpush1.bf16.msra.mxu0 %v10558_v1  ;;  %v10569_v39 = vld [vmem:[#allocation13 + $0x174] ss:$8 sps:$4 sm:$0xff]  }
 0x7e4   : > { %v11797_v36 = vpop.eup %11796  ;;  %11808 = vtanh.f32 %v6595_v35  ;;  %7692 = vmatprep.subr.bf16.mxu0 %v10563_v24  ;;  %v10579_v24 = vld [vmem:[#allocation13 + $0x1b0] ss:$8 sps:$4 sm:$0xff]  }
 0x7e5   : > { %v11799_v27 = vpop.eup %11798 }
 0x7e6   : > { %v11801_v62 = vpop.eup %11800  ;;  %v7042_v53 = vpack.c.bf16 %v11799_v27, %v11795_v21  ;;  %v6598_v31 = vpop.f32.mrb[212].mxu1 }
 0x7e7   : > { %v6599_v30 = vadd.f32 %v6598_v31, %v15250_v41  ;;  %v6600_v37 = vpop.f32.mrb[213].mxu1  ;;  %v7043_v54 = vpack.c.bf16 %v11801_v62, %v11797_v36  ;;  %7693 = vmatpush1.bf16.msra.mxu0 %v10561_v14 }
 0x7e8   : > { %v6601_v44 = vadd.f32 %v6600_v37, %v15255_v16  ;;  %v6602_v17 = vpop.f32.mrb[214].mxu1  ;;  %7694 = vmatprep.subr.bf16.mxu0 %v10566_v38  ;;  %v10587_v37 = vld [vmem:[#allocation13 + $0x1d4] ss:$8 sps:$4 sm:$0xff]  }
 0x7e9   : > { %11810 = vtanh.f32 %v6599_v30  ;;  %v6603_v5 = vadd.f32 %v6602_v17, %v15250_v41  ;;  %v6604_v3 = vpop.f32.mrb[215].mxu1  ;;  %7551 = vmatprep.mubr.bf16.mxu0 %v7043_v54 }
 0x7ea   : > { %11812 = vtanh.f32 %v6601_v44  ;;  %v6605_v61 = vadd.f32 %v6604_v3, %v15255_v16  ;;  %7552 = vmatmul.mubr.bf16.gmra.mrb[76].mxu0 %v7042_v53  ;;  %v10582_v53 = vld [vmem:[#allocation13 + $0x1c0] ss:$8 sps:$4 sm:$0xff]   ;;  %v10590_v3 = vld [vmem:[#allocation13 + $0x1e4] ss:$8 sps:$4 sm:$0xff]  }
 0x7eb   : > { %v11803_v11 = vpop.eup %11802  ;;  %11814 = vtanh.f32 %v6603_v5  ;;  %7695 = vmatpush1.bf16.msra.mxu0 %v10564_v47 }
 0x7ec   : > { %v11805_v7 = vpop.eup %11804  ;;  %11816 = vtanh.f32 %v6605_v61  ;;  %7696 = vmatprep.subr.bf16.mxu0 %v10569_v39  ;;  %v10585_v39 = vld [vmem:[#allocation13 + $0x1d0] ss:$8 sps:$4 sm:$0xff]  }
 0x7ed   : > { %v11807_v0 = vpop.eup %11806 }
 0x7ee   : > { %v11809_v18 = vpop.eup %11808  ;;  %v7046_v32 = vpack.c.bf16 %v11807_v0, %v11803_v11  ;;  %v6608_v4 = vpop.f32.mrb[216].mxu1 }
 0x7ef   : > { %v6609_v56 = vadd.f32 %v6608_v4, %v15250_v41  ;;  %v6610_v45 = vpop.f32.mrb[217].mxu1  ;;  %v7047_v19 = vpack.c.bf16 %v11809_v18, %v11805_v7  ;;  %7697 = vmatpush1.bf16.msra.mxu0 %v10567_v20 }
 0x7f0   : > { %v6611_v10 = vadd.f32 %v6610_v45, %v15255_v16  ;;  %v6612_v43 = vpop.f32.mrb[218].mxu1  ;;  %7698 = vmatprep.subr.bf16.mxu0 %v10572_v46  ;;  %v10593_v45 = vld [vmem:[#allocation13 + $0x1f4] ss:$8 sps:$4 sm:$0xff]  }
 0x7f1   : > { %11818 = vtanh.f32 %v6609_v56  ;;  %v6613_v59 = vadd.f32 %v6612_v43, %v15250_v41  ;;  %v6614_v57 = vpop.f32.mrb[219].mxu1  ;;  %7561 = vmatprep.mubr.bf16.mxu0 %v7047_v19 }
 0x7f2   : > { %11820 = vtanh.f32 %v6611_v10  ;;  %v6615_v29 = vadd.f32 %v6614_v57, %v15255_v16  ;;  %7562 = vmatmul.mubr.bf16.gmra.mrb[80].mxu0 %v7046_v32  ;;  %v10588_v32 = vld [vmem:[#allocation13 + $0x1e0] ss:$8 sps:$4 sm:$0xff]  }
 0x7f3   : > { %v11811_v49 = vpop.eup %11810  ;;  %11822 = vtanh.f32 %v6613_v59  ;;  %7699 = vmatpush1.bf16.msra.mxu0 %v10570_v6 }
 0x7f4   : > { %v11813_v63 = vpop.eup %11812  ;;  %11824 = vtanh.f32 %v6615_v29  ;;  %7700 = vmatprep.subr.bf16.mxu0 %v10575_v28  ;;  %v10591_v28 = vld [vmem:[#allocation13 + $0x1f0] ss:$8 sps:$4 sm:$0xff]  }
 0x7f5   : > { %v11815_v8 = vpop.eup %11814 }
 0x7f6   : > { %v11817_v26 = vpop.eup %11816  ;;  %v7050_v33 = vpack.c.bf16 %v11815_v8, %v11811_v49  ;;  %v6618_v55 = vpop.f32.mrb[220].mxu1 }
 0x7f7   : > { %v6619_v48 = vadd.f32 %v6618_v55, %v15250_v41  ;;  %v6620_v25 = vpop.f32.mrb[221].mxu1  ;;  %v7051_v42 = vpack.c.bf16 %v11817_v26, %v11813_v63  ;;  %7701 = vmatpush1.bf16.msra.mxu0 %v10573_v50 }
 0x7f8   : > { %v6621_v9 = vadd.f32 %v6620_v25, %v15255_v16  ;;  %v6622_v60 = vpop.f32.mrb[222].mxu1  ;;  %7702 = vmatprep.subr.bf16.mxu0 %v10578_v34 }
 0x7f9   : > { %11826 = vtanh.f32 %v6619_v48  ;;  %v6623_v58 = vadd.f32 %v6622_v60, %v15250_v41  ;;  %v6624_v1 = vpop.f32.mrb[223].mxu1  ;;  %7571 = vmatprep.mubr.bf16.mxu0 %v7051_v42 }
 0x7fa   : > { %11828 = vtanh.f32 %v6621_v9  ;;  %v6625_v2 = vadd.f32 %v6624_v1, %v15255_v16  ;;  %7572 = vmatmul.mubr.bf16.gmra.mrb[84].mxu0 %v7050_v33 }
 0x7fb   : > { %v11819_v52 = vpop.eup %11818  ;;  %11830 = vtanh.f32 %v6623_v58  ;;  %7703 = vmatpush1.bf16.msra.mxu0 %v10576_v23 }
 0x7fc   : > { %v11821_v40 = vpop.eup %11820  ;;  %11832 = vtanh.f32 %v6625_v2  ;;  %7704 = vmatprep.subr.bf16.mxu0 %v10581_v22 }
 0x7fd   : > { %v11823_v35 = vpop.eup %11822 }
 0x7fe   : > { %v11825_v21 = vpop.eup %11824  ;;  %v7054_v14 = vpack.c.bf16 %v11823_v35, %v11819_v52  ;;  %v6628_v36 = vpop.f32.mrb[224].mxu1 }
 0x7ff   : > { %v6629_v38 = vadd.f32 %v6628_v36, %v15250_v41  ;;  %v6630_v27 = vpop.f32.mrb[225].mxu1  ;;  %v7055_v62 = vpack.c.bf16 %v11825_v21, %v11821_v40  ;;  %7705 = vmatpush1.bf16.msra.mxu0 %v10579_v24 }
 0x800   : > { %v6631_v31 = vadd.f32 %v6630_v27, %v15255_v16  ;;  %v6632_v30 = vpop.f32.mrb[226].mxu1  ;;  %7706 = vmatprep.subr.bf16.mxu0 %v10584_v15 }
 0x801   : > { %11834 = vtanh.f32 %v6629_v38  ;;  %v6633_v54 = vadd.f32 %v6632_v30, %v15250_v41  ;;  %v6634_v47 = vpop.f32.mrb[227].mxu1  ;;  %7581 = vmatprep.mubr.bf16.mxu0 %v7055_v62 }
 0x802   : > { %11836 = vtanh.f32 %v6631_v31  ;;  %v6635_v44 = vadd.f32 %v6634_v47, %v15255_v16  ;;  %7582 = vmatmul.mubr.bf16.gmra.mrb[88].mxu0 %v7054_v14 }
 0x803   : > { %v11827_v17 = vpop.eup %11826  ;;  %11838 = vtanh.f32 %v6633_v54  ;;  %7707 = vmatpush1.bf16.msra.mxu0 %v10582_v53 }
 0x804   : > { %v11829_v5 = vpop.eup %11828  ;;  %11840 = vtanh.f32 %v6635_v44  ;;  %7708 = vmatprep.subr.bf16.mxu0 %v10587_v37 }
 0x805   : > { %v11831_v61 = vpop.eup %11830 }
 0x806   : > { %v11833_v11 = vpop.eup %11832  ;;  %v7058_v20 = vpack.c.bf16 %v11831_v61, %v11827_v17  ;;  %v6638_v7 = vpop.f32.mrb[228].mxu1 }
 0x807   : > { %v6639_v46 = vadd.f32 %v6638_v7, %v15250_v41  ;;  %v6640_v0 = vpop.f32.mrb[229].mxu1  ;;  %v7059_v18 = vpack.c.bf16 %v11833_v11, %v11829_v5  ;;  %7709 = vmatpush1.bf16.msra.mxu0 %v10585_v39 }
 0x808   : > { %v6641_v4 = vadd.f32 %v6640_v0, %v15255_v16  ;;  %v6642_v56 = vpop.f32.mrb[230].mxu1  ;;  %7710 = vmatprep.subr.bf16.mxu0 %v10590_v3 }
 0x809   : > { %11842 = vtanh.f32 %v6639_v46  ;;  %v6643_v19 = vadd.f32 %v6642_v56, %v15250_v41  ;;  %v6644_v6 = vpop.f32.mrb[231].mxu1  ;;  %7591 = vmatprep.mubr.bf16.mxu0 %v7059_v18 }
 0x80a   : > { %11844 = vtanh.f32 %v6641_v4  ;;  %v6645_v10 = vadd.f32 %v6644_v6, %v15255_v16  ;;  %7592 = vmatmul.mubr.bf16.gmra.mrb[92].mxu0 %v7058_v20 }
 0x80b   : > { %v11835_v43 = vpop.eup %11834  ;;  %11846 = vtanh.f32 %v6643_v19  ;;  %7711 = vmatpush1.bf16.msra.mxu0 %v10588_v32 }
 0x80c   : > { %v11837_v59 = vpop.eup %11836  ;;  %11848 = vtanh.f32 %v6645_v10  ;;  %7712 = vmatprep.subr.bf16.mxu0 %v10593_v45 }
 0x80d   : > { %v11839_v57 = vpop.eup %11838 }
 0x80e   : > { %v11841_v29 = vpop.eup %11840  ;;  %v7062_v49 = vpack.c.bf16 %v11839_v57, %v11835_v43  ;;  %v6648_v50 = vpop.f32.mrb[232].mxu1 }
 0x80f   : > { %v6649_v63 = vadd.f32 %v6648_v50, %v15250_v41  ;;  %v6650_v34 = vpop.f32.mrb[233].mxu1  ;;  %v7063_v8 = vpack.c.bf16 %v11841_v29, %v11837_v59  ;;  %7713 = vmatpush1.bf16.msra.mxu0 %v10591_v28 }
 0x810   : > { %v6651_v26 = vadd.f32 %v6650_v34, %v15255_v16  ;;  %v6652_v33 = vpop.f32.mrb[234].mxu1 }
 0x811   : > { %11850 = vtanh.f32 %v6649_v63  ;;  %v6653_v55 = vadd.f32 %v6652_v33, %v15250_v41  ;;  %v6654_v48 = vpop.f32.mrb[235].mxu1  ;;  %7601 = vmatprep.mubr.bf16.mxu0 %v7063_v8 }
 0x812   : > { %11852 = vtanh.f32 %v6651_v26  ;;  %v6655_v25 = vadd.f32 %v6654_v48, %v15255_v16  ;;  %7602 = vmatmul.mubr.bf16.gmra.mrb[96].mxu0 %v7062_v49 }
 0x813   : > { %v11843_v42 = vpop.eup %11842  ;;  %11854 = vtanh.f32 %v6653_v55 }
 0x814   : > { %v11845_v23 = vpop.eup %11844  ;;  %11856 = vtanh.f32 %v6655_v25 }
 0x815   : > { %v11847_v9 = vpop.eup %11846 }
 0x816   : > { %v11849_v60 = vpop.eup %11848  ;;  %v7066_v22 = vpack.c.bf16 %v11847_v9, %v11843_v42  ;;  %v6658_v58 = vpop.f32.mrb[236].mxu1 }
 0x817   : > { %v6659_v1 = vadd.f32 %v6658_v58, %v15250_v41  ;;  %v6660_v2 = vpop.f32.mrb[237].mxu1  ;;  %v7067_v52 = vpack.c.bf16 %v11849_v60, %v11845_v23 }
 0x818   : > { %v6661_v24 = vadd.f32 %v6660_v2, %v15255_v16  ;;  %v6662_v40 = vpop.f32.mrb[238].mxu1 }
 0x819   : > { %11858 = vtanh.f32 %v6659_v1  ;;  %v6663_v15 = vadd.f32 %v6662_v40, %v15250_v41  ;;  %v6664_v35 = vpop.f32.mrb[239].mxu1  ;;  %7611 = vmatprep.mubr.bf16.mxu0 %v7067_v52 }
 0x81a   : > { %11860 = vtanh.f32 %v6661_v24  ;;  %v6665_v21 = vadd.f32 %v6664_v35, %v15255_v16  ;;  %7612 = vmatmul.mubr.bf16.gmra.mrb[100].mxu0 %v7066_v22  ;;  %v15904_v35 = vld [vmem:[#allocation34_spill] sm:$0xff] }
 0x81b   : > { %v11851_v14 = vpop.eup %11850  ;;  %11862 = vtanh.f32 %v6663_v15 }
 0x81c   : > { %v11853_v36 = vpop.eup %11852  ;;  %11864 = vtanh.f32 %v6665_v21  ;;  %v15332_v21 = vrot.slane %v15245_v13, %v15904_v35 }
 0x81d   : > { %v11855_v38 = vpop.eup %11854 }
 0x81e   : > { %v11857_v27 = vpop.eup %11856  ;;  %v7070_v62 = vpack.c.bf16 %v11855_v38, %v11851_v14  ;;  %v6668_v53 = vpop.f32.mrb[240].mxu1 }
 0x81f   : > { %v6669_v31 = vadd.f32 %v6668_v53, %v15250_v41  ;;  %v6670_v30 = vpop.f32.mrb[241].mxu1  ;;  %v7071_v37 = vpack.c.bf16 %v11857_v27, %v11853_v36  ;;  %v15905_v36 = vld [vmem:[#allocation38_spill] sm:$0xff] }
 0x820   : > { %v6671_v54 = vadd.f32 %v6670_v30, %v15255_v16  ;;  %v6672_v47 = vpop.f32.mrb[242].mxu1  ;;  %v15336_v38 = vrot.slane %v15245_v13, %v15905_v36 }
 0x821   : > { %11866 = vtanh.f32 %v6669_v31  ;;  %v6673_v44 = vadd.f32 %v6672_v47, %v15250_v41  ;;  %v6674_v17 = vpop.f32.mrb[243].mxu1  ;;  %7621 = vmatprep.mubr.bf16.mxu0 %v7071_v37 }
 0x822   : > { %11868 = vtanh.f32 %v6671_v54  ;;  %v6675_v39 = vadd.f32 %v6674_v17, %v15255_v16  ;;  %7622 = vmatmul.mubr.bf16.gmra.mrb[104].mxu0 %v7070_v62 }
 0x823   : > { %v11859_v5 = vpop.eup %11858  ;;  %11870 = vtanh.f32 %v6673_v44 }
 0x824   : > { %v11861_v3 = vpop.eup %11860  ;;  %11872 = vtanh.f32 %v6675_v39 }
 0x825   : > { %v11863_v61 = vpop.eup %11862 }
 0x826   : > { %v11865_v11 = vpop.eup %11864  ;;  %v7074_v20 = vpack.c.bf16 %v11863_v61, %v11859_v5  ;;  %v6678_v7 = vpop.f32.mrb[244].mxu1 }
 0x827   : > { %v6679_v46 = vadd.f32 %v6678_v7, %v15250_v41  ;;  %v6680_v0 = vpop.f32.mrb[245].mxu1  ;;  %v7075_v18 = vpack.c.bf16 %v11865_v11, %v11861_v3  ;;  %v10595_v7 = vld [vmem:[#allocation14] sm:$0xff]  }
 0x828   : > { %v6681_v32 = vadd.f32 %v6680_v0, %v15255_v16  ;;  %v6682_v4 = vpop.f32.mrb[246].mxu1 }
 0x829   : > { %11874 = vtanh.f32 %v6679_v46  ;;  %v6683_v56 = vadd.f32 %v6682_v4, %v15250_v41  ;;  %v6684_v45 = vpop.f32.mrb[247].mxu1  ;;  %7631 = vmatprep.mubr.bf16.mxu0 %v7075_v18  ;;  %v10596_v46 = vld [vmem:[#allocation14 + $0x48] sm:$0xff]  }
 0x82a   : > { %11876 = vtanh.f32 %v6681_v32  ;;  %v6685_v19 = vadd.f32 %v6684_v45, %v15255_v16  ;;  %7632 = vmatmul.mubr.bf16.gmra.mrb[108].mxu0 %v7074_v20  ;;  %v10594_v20 = vld [vmem:[#allocation14 + $0x40] sm:$0xff]  }
 0x82b   : > { %v11867_v6 = vpop.eup %11866  ;;  %11878 = vtanh.f32 %v6683_v56  ;;  %9202 = vmatprep.subr.bf16.mxu1 %v10594_v20 }
 0x82c   : > { %v11869_v10 = vpop.eup %11868  ;;  %11880 = vtanh.f32 %v6685_v19  ;;  %9203 = vmatpush3.bf16.msra.mxu1 %v10595_v7 }
 0x82d   : > { %v11871_v43 = vpop.eup %11870  ;;  %9204 = vmatprep.subr.bf16.mxu1 %v10596_v46 }
 0x82e   : > { %v11873_v28 = vpop.eup %11872  ;;  %v7078_v59 = vpack.c.bf16 %v11871_v43, %v11867_v6  ;;  %v6688_v57 = vpop.f32.mrb[248].mxu1  ;;  %v10597_v6 = vld [vmem:[#allocation14 + $0x8] sm:$0xff]   ;;  %v10598_v43 = vld [vmem:[#allocation14 + $0x50] sm:$0xff]  }
 0x82f   : > { %v6689_v29 = vadd.f32 %v6688_v57, %v15250_v41  ;;  %v6690_v49 = vpop.f32.mrb[249].mxu1  ;;  %v7079_v50 = vpack.c.bf16 %v11873_v28, %v11869_v10 }
 0x830   : > { %v6691_v63 = vadd.f32 %v6690_v49, %v15255_v16  ;;  %v6692_v34 = vpop.f32.mrb[250].mxu1  ;;  %9205 = vmatpush3.bf16.msra.mxu1 %v10597_v6 }
 0x831   : > { %11882 = vtanh.f32 %v6689_v29  ;;  %v6693_v8 = vadd.f32 %v6692_v34, %v15250_v41  ;;  %v6694_v26 = vpop.f32.mrb[251].mxu1  ;;  %7641 = vmatprep.mubr.bf16.mxu0 %v7079_v50  ;;  %v10599_v29 = vld [vmem:[#allocation14 + $0x10] sm:$0xff]   ;;  %9206 = vmatprep.subr.bf16.mxu1 %v10598_v43  ;;  %v10600_v34 = vld [vmem:[#allocation14 + $0x58] sm:$0xff]  }
 0x832   : > { %11884 = vtanh.f32 %v6691_v63  ;;  %v6695_v33 = vadd.f32 %v6694_v26, %v15255_v16  ;;  %7642 = vmatmul.mubr.bf16.gmra.mrb[112].mxu0 %v7078_v59 }
 0x833   : > { %v11875_v55 = vpop.eup %11874  ;;  %11886 = vtanh.f32 %v6693_v8 }
 0x834   : > { %v11877_v48 = vpop.eup %11876  ;;  %11888 = vtanh.f32 %v6695_v33  ;;  %9207 = vmatpush3.bf16.msra.mxu1 %v10599_v29 }
 0x835   : > { %v11879_v25 = vpop.eup %11878  ;;  %9208 = vmatprep.subr.bf16.mxu1 %v10600_v34 }
 0x836   : > { %v11881_v42 = vpop.eup %11880  ;;  %v7082_v23 = vpack.c.bf16 %v11879_v25, %v11875_v55  ;;  %v6698_v9 = vpop.f32.mrb[252].mxu1 }
 0x837   : > { %v6699_v60 = vadd.f32 %v6698_v9, %v15250_v41  ;;  %v6700_v22 = vpop.f32.mrb[253].mxu1  ;;  %v7083_v58 = vpack.c.bf16 %v11881_v42, %v11877_v48 }
 0x838   : > { %v6701_v1 = vadd.f32 %v6700_v22, %v15255_v16  ;;  %v6702_v2 = vpop.f32.mrb[254].mxu1 }
 0x839   : > { %11890 = vtanh.f32 %v6699_v60  ;;  %v6703_v52 = vadd.f32 %v6702_v2, %v15250_v41  ;;  %v6704_v24 = vpop.f32.mrb[255].mxu1  ;;  %7651 = vmatprep.mubr.bf16.mxu0 %v7083_v58  ;;  %v10602_v60 = vld [vmem:[#allocation14 + $0x60] sm:$0xff]  }
 0x83a   : > { %11892 = vtanh.f32 %v6701_v1  ;;  %v6705_v40 = vadd.f32 %v6704_v24, %v15255_v16  ;;  %7652 = vmatmul.mubr.bf16.gmra.mrb[116].mxu0 %v7082_v23  ;;  %v10601_v23 = vld [vmem:[#allocation14 + $0x18] sm:$0xff]   ;;  %v10603_v2 = vld [vmem:[#allocation14 + $0x20] sm:$0xff]  }
 0x83b   : > { %v11883_v15 = vpop.eup %11882  ;;  %11894 = vtanh.f32 %v6703_v52  ;;  %9209 = vmatpush3.bf16.msra.mxu1 %v10601_v23 }
 0x83c   : > { %v11885_v14 = vpop.eup %11884  ;;  %11896 = vtanh.f32 %v6705_v40  ;;  %9210 = vmatprep.subr.bf16.mxu1 %v10602_v60 }
 0x83d   : > { %v11887_v27 = vpop.eup %11886 }
 0x83e   : > { %v11889_v41 = vpop.eup %11888  ;;  %v7086_v62 = vpack.c.bf16 %v11887_v27, %v11883_v15  ;;  %v6741_v53 = vpop.f32.mrb[0].mxu1  ;;  %v10604_v15 = vld [vmem:[#allocation14 + $0x68] sm:$0xff]  }
 0x83f   : > { %v6742_v31 = vadd.f32 %v6741_v53, %v15332_v21  ;;  %v6743_v16 = vpop.f32.mrb[1].mxu1  ;;  %v7087_v30 = vpack.c.bf16 %v11889_v41, %v11885_v14  ;;  %9211 = vmatpush3.bf16.msra.mxu1 %v10603_v2 }
 0x840   : > { %v6744_v37 = vadd.f32 %v6743_v16, %v15336_v38  ;;  %v6745_v54 = vpop.f32.mrb[2].mxu1  ;;  %9212 = vmatprep.subr.bf16.mxu1 %v10604_v15 }
 0x841   : > { %11898 = vtanh.f32 %v6742_v31  ;;  %v6746_v47 = vadd.f32 %v6745_v54, %v15332_v21  ;;  %v6747_v44 = vpop.f32.mrb[3].mxu1  ;;  %7661 = vmatprep.mubr.bf16.mxu0 %v7087_v30  ;;  %v10605_v31 = vld [vmem:[#allocation14 + $0x28] sm:$0xff]   ;;  %v10606_v30 = vld [vmem:[#allocation14 + $0x70] sm:$0xff]  }
 0x842   : > { %11900 = vtanh.f32 %v6744_v37  ;;  %v6748_v13 = vadd.f32 %v6747_v44, %v15336_v38  ;;  %7662 = vmatmul.mubr.bf16.gmra.mrb[120].mxu0 %v7086_v62  ;;  %v10607_v44 = vld [vmem:[#allocation14 + $0x30] sm:$0xff]  }
 0x843   : > { %v11891_v17 = vpop.eup %11890  ;;  %11902 = vtanh.f32 %v6746_v47  ;;  %9213 = vmatpush3.bf16.msra.mxu1 %v10605_v31 }
 0x844   : > { %v11893_v39 = vpop.eup %11892  ;;  %11904 = vtanh.f32 %v6748_v13  ;;  %9214 = vmatprep.subr.bf16.mxu1 %v10606_v30 }
 0x845   : > { %v11895_v5 = vpop.eup %11894 }
 0x846   : > { %v11897_v3 = vpop.eup %11896  ;;  %v7090_v61 = vpack.c.bf16 %v11895_v5, %v11891_v17  ;;  %v6751_v11 = vpop.f32.mrb[4].mxu1 }
 0x847   : > { %v6752_v0 = vadd.f32 %v6751_v11, %v15332_v21  ;;  %v6753_v18 = vpop.f32.mrb[5].mxu1  ;;  %v7091_v32 = vpack.c.bf16 %v11897_v3, %v11893_v39  ;;  %9215 = vmatpush3.bf16.msra.mxu1 %v10607_v44 }
 0x848   : > { %v6754_v4 = vadd.f32 %v6753_v18, %v15336_v38  ;;  %v6755_v56 = vpop.f32.mrb[6].mxu1 }
 0x849   : > { %11906 = vtanh.f32 %v6752_v0  ;;  %v6756_v45 = vadd.f32 %v6755_v56, %v15332_v21  ;;  %v6757_v19 = vpop.f32.mrb[7].mxu1  ;;  %7671 = vmatprep.mubr.bf16.mxu0 %v7091_v32 }
 0x84a   : > { %11908 = vtanh.f32 %v6754_v4  ;;  %v6758_v10 = vadd.f32 %v6757_v19, %v15336_v38  ;;  %7672 = vmatmul.mubr.bf16.gmra.mrb[124].mxu0 %v7090_v61 }
 0x84b   : > { %v11899_v28 = vpop.eup %11898  ;;  %11910 = vtanh.f32 %v6756_v45 }
 0x84c   : > { %v11901_v59 = vpop.eup %11900  ;;  %11912 = vtanh.f32 %v6758_v10 }
 0x84d   : > { %v11903_v57 = vpop.eup %11902 }
 0x84e   : > { %v11905_v49 = vpop.eup %11904  ;;  %v7032_v50 = vpack.c.bf16 %v11903_v57, %v11899_v28  ;;  %v6761_v63 = vpop.f32.mrb[8].mxu1 }
 0x84f   : > { %v6762_v8 = vadd.f32 %v6761_v63, %v15332_v21  ;;  %v6763_v26 = vpop.f32.mrb[9].mxu1  ;;  %v7033_v33 = vpack.c.bf16 %v11905_v49, %v11901_v59 }
 0x850   : > { %v6764_v55 = vadd.f32 %v6763_v26, %v15336_v38  ;;  %v6765_v48 = vpop.f32.mrb[10].mxu1 }
 0x851   : > { %11914 = vtanh.f32 %v6762_v8  ;;  %v6766_v25 = vadd.f32 %v6765_v48, %v15332_v21  ;;  %v6767_v42 = vpop.f32.mrb[11].mxu1  ;;  %7714 = vmatprep.mubr.bf16.mxu0 %v7033_v33 }
 0x852   : > { %11916 = vtanh.f32 %v6764_v55  ;;  %v6768_v9 = vadd.f32 %v6767_v42, %v15336_v38  ;;  %7715 = vmatmul.mubr.bf16.vlgmr.msra.gmra.mrb[64].mxu0 %v7032_v50 }
 0x853   : > { %v11907_v22 = vpop.eup %11906  ;;  %11918 = vtanh.f32 %v6766_v25 }
 0x854   : > { %v11909_v58 = vpop.eup %11908  ;;  %11920 = vtanh.f32 %v6768_v9 }
 0x855   : > { %v11911_v1 = vpop.eup %11910 }
 0x856   : > { %v11913_v52 = vpop.eup %11912  ;;  %v7036_v24 = vpack.c.bf16 %v11911_v1, %v11907_v22  ;;  %v6771_v40 = vpop.f32.mrb[12].mxu1 }
 0x857   : > { %v6772_v35 = vadd.f32 %v6771_v40, %v15332_v21  ;;  %v6773_v14 = vpop.f32.mrb[13].mxu1  ;;  %v7037_v36 = vpack.c.bf16 %v11913_v52, %v11909_v58 }
 0x858   : > { %v6774_v27 = vadd.f32 %v6773_v14, %v15336_v38  ;;  %v6775_v41 = vpop.f32.mrb[14].mxu1 }
 0x859   : > { %11922 = vtanh.f32 %v6772_v35  ;;  %v6776_v62 = vadd.f32 %v6775_v41, %v15332_v21  ;;  %v6777_v53 = vpop.f32.mrb[15].mxu1  ;;  %7724 = vmatprep.mubr.bf16.mxu0 %v7037_v36 }
 0x85a   : > { %11924 = vtanh.f32 %v6774_v27  ;;  %v6778_v16 = vadd.f32 %v6777_v53, %v15336_v38  ;;  %7725 = vmatmul.mubr.bf16.gmra.mrb[68].mxu0 %v7036_v24 }
 0x85b   : > { %v11915_v37 = vpop.eup %11914  ;;  %11926 = vtanh.f32 %v6776_v62 }
 0x85c   : > { %v11917_v54 = vpop.eup %11916  ;;  %11928 = vtanh.f32 %v6778_v16 }
 0x85d   : > { %v11919_v47 = vpop.eup %11918 }
 0x85e   : > { %v11921_v13 = vpop.eup %11920  ;;  %v7040_v17 = vpack.c.bf16 %v11919_v47, %v11915_v37  ;;  %v6781_v39 = vpop.f32.mrb[16].mxu1 }
 0x85f   : > { %v6782_v5 = vadd.f32 %v6781_v39, %v15332_v21  ;;  %v6783_v3 = vpop.f32.mrb[17].mxu1  ;;  %v7041_v61 = vpack.c.bf16 %v11921_v13, %v11917_v54 }
 0x860   : > { %v6784_v11 = vadd.f32 %v6783_v3, %v15336_v38  ;;  %v6785_v20 = vpop.f32.mrb[18].mxu1 }
 0x861   : > { %11930 = vtanh.f32 %v6782_v5  ;;  %v6786_v7 = vadd.f32 %v6785_v20, %v15332_v21  ;;  %v6787_v46 = vpop.f32.mrb[19].mxu1  ;;  %7734 = vmatprep.mubr.bf16.mxu0 %v7041_v61 }
 0x862   : > { %11932 = vtanh.f32 %v6784_v11  ;;  %v6788_v0 = vadd.f32 %v6787_v46, %v15336_v38  ;;  %7735 = vmatmul.mubr.bf16.gmra.mrb[72].mxu0 %v7040_v17 }
 0x863   : > { %v11923_v18 = vpop.eup %11922  ;;  %11934 = vtanh.f32 %v6786_v7 }
 0x864   : > { %v11925_v32 = vpop.eup %11924  ;;  %11936 = vtanh.f32 %v6788_v0 }
 0x865   : > { %v11927_v4 = vpop.eup %11926 }
 0x866   : > { %v11929_v56 = vpop.eup %11928  ;;  %v7044_v45 = vpack.c.bf16 %v11927_v4, %v11923_v18  ;;  %v6791_v19 = vpop.f32.mrb[20].mxu1 }
 0x867   : > { %v6792_v6 = vadd.f32 %v6791_v19, %v15332_v21  ;;  %v6793_v10 = vpop.f32.mrb[21].mxu1  ;;  %v7045_v43 = vpack.c.bf16 %v11929_v56, %v11925_v32 }
 0x868   : > { %v6794_v28 = vadd.f32 %v6793_v10, %v15336_v38  ;;  %v6795_v59 = vpop.f32.mrb[22].mxu1 }
 0x869   : > { %11938 = vtanh.f32 %v6792_v6  ;;  %v6796_v57 = vadd.f32 %v6795_v59, %v15332_v21  ;;  %v6797_v29 = vpop.f32.mrb[23].mxu1  ;;  %7744 = vmatprep.mubr.bf16.mxu0 %v7045_v43 }
 0x86a   : > { %11940 = vtanh.f32 %v6794_v28  ;;  %v6798_v49 = vadd.f32 %v6797_v29, %v15336_v38  ;;  %7745 = vmatmul.mubr.bf16.gmra.mrb[76].mxu0 %v7044_v45 }
 0x86b   : > { %v11931_v50 = vpop.eup %11930  ;;  %11942 = vtanh.f32 %v6796_v57 }
 0x86c   : > { %v11933_v63 = vpop.eup %11932  ;;  %11944 = vtanh.f32 %v6798_v49 }
 0x86d   : > { %v11935_v34 = vpop.eup %11934 }
 0x86e   : > { %v11937_v8 = vpop.eup %11936  ;;  %v7048_v26 = vpack.c.bf16 %v11935_v34, %v11931_v50  ;;  %v6801_v33 = vpop.f32.mrb[24].mxu1 }
 0x86f   : > { %v6802_v55 = vadd.f32 %v6801_v33, %v15332_v21  ;;  %v6803_v48 = vpop.f32.mrb[25].mxu1  ;;  %v7049_v25 = vpack.c.bf16 %v11937_v8, %v11933_v63 }
 0x870   : > { %v6804_v42 = vadd.f32 %v6803_v48, %v15336_v38  ;;  %v6805_v23 = vpop.f32.mrb[26].mxu1 }
 0x871   : > { %11946 = vtanh.f32 %v6802_v55  ;;  %v6806_v9 = vadd.f32 %v6805_v23, %v15332_v21  ;;  %v6807_v60 = vpop.f32.mrb[27].mxu1  ;;  %7754 = vmatprep.mubr.bf16.mxu0 %v7049_v25 }
 0x872   : > { %11948 = vtanh.f32 %v6804_v42  ;;  %v6808_v22 = vadd.f32 %v6807_v60, %v15336_v38  ;;  %7755 = vmatmul.mubr.bf16.gmra.mrb[80].mxu0 %v7048_v26 }
 0x873   : > { %v11939_v58 = vpop.eup %11938  ;;  %11950 = vtanh.f32 %v6806_v9 }
 0x874   : > { %v11941_v1 = vpop.eup %11940  ;;  %11952 = vtanh.f32 %v6808_v22 }
 0x875   : > { %v11943_v2 = vpop.eup %11942 }
 0x876   : > { %v11945_v52 = vpop.eup %11944  ;;  %v7052_v24 = vpack.c.bf16 %v11943_v2, %v11939_v58  ;;  %v6811_v40 = vpop.f32.mrb[28].mxu1 }
 0x877   : > { %v6812_v15 = vadd.f32 %v6811_v40, %v15332_v21  ;;  %v6813_v35 = vpop.f32.mrb[29].mxu1  ;;  %v7053_v14 = vpack.c.bf16 %v11945_v52, %v11941_v1 }
 0x878   : > { %v6814_v36 = vadd.f32 %v6813_v35, %v15336_v38  ;;  %v6815_v27 = vpop.f32.mrb[30].mxu1 }
 0x879   : > { %11954 = vtanh.f32 %v6812_v15  ;;  %v6816_v41 = vadd.f32 %v6815_v27, %v15332_v21  ;;  %v6817_v62 = vpop.f32.mrb[31].mxu1  ;;  %7764 = vmatprep.mubr.bf16.mxu0 %v7053_v14 }
 0x87a   : > { %11956 = vtanh.f32 %v6814_v36  ;;  %v6818_v53 = vadd.f32 %v6817_v62, %v15336_v38  ;;  %7765 = vmatmul.mubr.bf16.gmra.mrb[84].mxu0 %v7052_v24 }
 0x87b   : > { %v11947_v31 = vpop.eup %11946  ;;  %11958 = vtanh.f32 %v6816_v41 }
 0x87c   : > { %v11949_v16 = vpop.eup %11948  ;;  %11960 = vtanh.f32 %v6818_v53 }
 0x87d   : > { %v11951_v30 = vpop.eup %11950 }
 0x87e   : > { %v11953_v37 = vpop.eup %11952  ;;  %v7056_v54 = vpack.c.bf16 %v11951_v30, %v11947_v31  ;;  %v6821_v47 = vpop.f32.mrb[32].mxu1 }
 0x87f   : > { %v6822_v44 = vadd.f32 %v6821_v47, %v15332_v21  ;;  %v6823_v13 = vpop.f32.mrb[33].mxu1  ;;  %v7057_v17 = vpack.c.bf16 %v11953_v37, %v11949_v16 }
 0x880   : > { %v6824_v39 = vadd.f32 %v6823_v13, %v15336_v38  ;;  %v6825_v5 = vpop.f32.mrb[34].mxu1 }
 0x881   : > { %11962 = vtanh.f32 %v6822_v44  ;;  %v6826_v3 = vadd.f32 %v6825_v5, %v15332_v21  ;;  %v6827_v61 = vpop.f32.mrb[35].mxu1  ;;  %7774 = vmatprep.mubr.bf16.mxu0 %v7057_v17 }
 0x882   : > { %11964 = vtanh.f32 %v6824_v39  ;;  %v6828_v11 = vadd.f32 %v6827_v61, %v15336_v38  ;;  %7775 = vmatmul.mubr.bf16.gmra.mrb[88].mxu0 %v7056_v54 }
 0x883   : > { %v11955_v20 = vpop.eup %11954  ;;  %11966 = vtanh.f32 %v6826_v3 }
 0x884   : > { %v11957_v7 = vpop.eup %11956  ;;  %11968 = vtanh.f32 %v6828_v11 }
 0x885   : > { %v11959_v46 = vpop.eup %11958 }
 0x886   : > { %v11961_v0 = vpop.eup %11960  ;;  %v7060_v18 = vpack.c.bf16 %v11959_v46, %v11955_v20  ;;  %v6831_v32 = vpop.f32.mrb[36].mxu1 }
 0x887   : > { %v6832_v4 = vadd.f32 %v6831_v32, %v15332_v21  ;;  %v6833_v56 = vpop.f32.mrb[37].mxu1  ;;  %v7061_v45 = vpack.c.bf16 %v11961_v0, %v11957_v7 }
 0x888   : > { %v6834_v19 = vadd.f32 %v6833_v56, %v15336_v38  ;;  %v6835_v6 = vpop.f32.mrb[38].mxu1 }
 0x889   : > { %11970 = vtanh.f32 %v6832_v4  ;;  %v6836_v10 = vadd.f32 %v6835_v6, %v15332_v21  ;;  %v6837_v43 = vpop.f32.mrb[39].mxu1  ;;  %7784 = vmatprep.mubr.bf16.mxu0 %v7061_v45 }
 0x88a   : > { %11972 = vtanh.f32 %v6834_v19  ;;  %v6838_v28 = vadd.f32 %v6837_v43, %v15336_v38  ;;  %7785 = vmatmul.mubr.bf16.gmra.mrb[92].mxu0 %v7060_v18 }
 0x88b   : > { %v11963_v59 = vpop.eup %11962  ;;  %11974 = vtanh.f32 %v6836_v10 }
 0x88c   : > { %v11965_v57 = vpop.eup %11964  ;;  %11976 = vtanh.f32 %v6838_v28 }
 0x88d   : > { %v11967_v29 = vpop.eup %11966 }
 0x88e   : > { %v11969_v49 = vpop.eup %11968  ;;  %v7064_v50 = vpack.c.bf16 %v11967_v29, %v11963_v59  ;;  %v6841_v63 = vpop.f32.mrb[40].mxu1 }
 0x88f   : > { %v6842_v34 = vadd.f32 %v6841_v63, %v15332_v21  ;;  %v6843_v8 = vpop.f32.mrb[41].mxu1  ;;  %v7065_v26 = vpack.c.bf16 %v11969_v49, %v11965_v57 }
 0x890   : > { %v6844_v33 = vadd.f32 %v6843_v8, %v15336_v38  ;;  %v6845_v55 = vpop.f32.mrb[42].mxu1 }
 0x891   : > { %11978 = vtanh.f32 %v6842_v34  ;;  %v6846_v48 = vadd.f32 %v6845_v55, %v15332_v21  ;;  %v6847_v25 = vpop.f32.mrb[43].mxu1  ;;  %7794 = vmatprep.mubr.bf16.mxu0 %v7065_v26 }
 0x892   : > { %11980 = vtanh.f32 %v6844_v33  ;;  %v6848_v42 = vadd.f32 %v6847_v25, %v15336_v38  ;;  %7795 = vmatmul.mubr.bf16.gmra.mrb[96].mxu0 %v7064_v50  ;;  %v10608_v25 = vld [vmem:[#allocation14 + $0x78] sm:$0xff]  }
 0x893   : > { %v11971_v23 = vpop.eup %11970  ;;  %11982 = vtanh.f32 %v6846_v48  ;;  %9216 = vmatprep.subr.bf16.mxu1 %v10608_v25 }
 0x894   : > { %v11973_v9 = vpop.eup %11972  ;;  %11984 = vtanh.f32 %v6848_v42 }
 0x895   : > { %v11975_v60 = vpop.eup %11974 }
 0x896   : > { %v11977_v22 = vpop.eup %11976  ;;  %v7068_v58 = vpack.c.bf16 %v11975_v60, %v11971_v23  ;;  %v6851_v1 = vpop.f32.mrb[44].mxu1  ;;  %v10609_v23 = vld [vmem:[#allocation14 + $0x38] sm:$0xff]  }
 0x897   : > { %v6852_v2 = vadd.f32 %v6851_v1, %v15332_v21  ;;  %v6853_v52 = vpop.f32.mrb[45].mxu1  ;;  %v7069_v24 = vpack.c.bf16 %v11977_v22, %v11973_v9  ;;  %9217 = vmatpush3.bf16.msra.mxu1 %v10609_v23 }
 0x898   : > { %v6854_v40 = vadd.f32 %v6853_v52, %v15336_v38  ;;  %v6855_v15 = vpop.f32.mrb[46].mxu1 }
 0x899   : > { %11986 = vtanh.f32 %v6852_v2  ;;  %v6856_v35 = vadd.f32 %v6855_v15, %v15332_v21  ;;  %v6857_v14 = vpop.f32.mrb[47].mxu1  ;;  %7804 = vmatprep.mubr.bf16.mxu0 %v7069_v24 }
 0x89a   : > { %11988 = vtanh.f32 %v6854_v40  ;;  %v6858_v36 = vadd.f32 %v6857_v14, %v15336_v38  ;;  %7805 = vmatmul.mubr.bf16.gmra.mrb[100].mxu0 %v7068_v58 }
 0x89b   : > { %v11979_v27 = vpop.eup %11978  ;;  %11990 = vtanh.f32 %v6856_v35 }
 0x89c   : > { %v11981_v41 = vpop.eup %11980  ;;  %11992 = vtanh.f32 %v6858_v36 }
 0x89d   : > { %v11983_v62 = vpop.eup %11982 }
 0x89e   : > { %v11985_v53 = vpop.eup %11984  ;;  %v7072_v31 = vpack.c.bf16 %v11983_v62, %v11979_v27  ;;  %v6861_v16 = vpop.f32.mrb[48].mxu1 }
 0x89f   : > { %v6862_v30 = vadd.f32 %v6861_v16, %v15332_v21  ;;  %v6863_v37 = vpop.f32.mrb[49].mxu1  ;;  %v7073_v54 = vpack.c.bf16 %v11985_v53, %v11981_v41 }
 0x8a0   : > { %v6864_v47 = vadd.f32 %v6863_v37, %v15336_v38  ;;  %v6865_v44 = vpop.f32.mrb[50].mxu1 }
 0x8a1   : > { %11994 = vtanh.f32 %v6862_v30  ;;  %v6866_v13 = vadd.f32 %v6865_v44, %v15332_v21  ;;  %v6867_v17 = vpop.f32.mrb[51].mxu1  ;;  %7814 = vmatprep.mubr.bf16.mxu0 %v7073_v54 }
 0x8a2   : > { %11996 = vtanh.f32 %v6864_v47  ;;  %v6868_v39 = vadd.f32 %v6867_v17, %v15336_v38  ;;  %7815 = vmatmul.mubr.bf16.gmra.mrb[104].mxu0 %v7072_v31 }
 0x8a3   : > { %v11987_v5 = vpop.eup %11986  ;;  %11998 = vtanh.f32 %v6866_v13 }
 0x8a4   : > { %v11989_v3 = vpop.eup %11988  ;;  %12000 = vtanh.f32 %v6868_v39 }
 0x8a5   : > { %v11991_v61 = vpop.eup %11990 }
 0x8a6   : > { %v11993_v11 = vpop.eup %11992  ;;  %v7076_v20 = vpack.c.bf16 %v11991_v61, %v11987_v5  ;;  %v6871_v7 = vpop.f32.mrb[52].mxu1 }
 0x8a7   : > { %v6872_v46 = vadd.f32 %v6871_v7, %v15332_v21  ;;  %v6873_v0 = vpop.f32.mrb[53].mxu1  ;;  %v7077_v18 = vpack.c.bf16 %v11993_v11, %v11989_v3 }
 0x8a8   : > { %v6874_v32 = vadd.f32 %v6873_v0, %v15336_v38  ;;  %v6875_v4 = vpop.f32.mrb[54].mxu1 }
 0x8a9   : > { %12002 = vtanh.f32 %v6872_v46  ;;  %v6876_v56 = vadd.f32 %v6875_v4, %v15332_v21  ;;  %v6877_v45 = vpop.f32.mrb[55].mxu1  ;;  %7824 = vmatprep.mubr.bf16.mxu0 %v7077_v18 }
 0x8aa   : > { %12004 = vtanh.f32 %v6874_v32  ;;  %v6878_v19 = vadd.f32 %v6877_v45, %v15336_v38  ;;  %7825 = vmatmul.mubr.bf16.gmra.mrb[108].mxu0 %v7076_v20 }
 0x8ab   : > { %v11995_v6 = vpop.eup %11994  ;;  %12006 = vtanh.f32 %v6876_v56  ;;  %v10610_v56 = vld [vmem:[%s15665_s12] sm:$0xff]  }
 0x8ac   : > { %v11997_v10 = vpop.eup %11996  ;;  %12008 = vtanh.f32 %v6878_v19  ;;  %9338 = vmatprep.subr.bf16.mxu1 %v10610_v56 }
 0x8ad   : > { %v11999_v43 = vpop.eup %11998 }
 0x8ae   : > { %v12001_v28 = vpop.eup %12000  ;;  %v7080_v59 = vpack.c.bf16 %v11999_v43, %v11995_v6  ;;  %v6881_v57 = vpop.f32.mrb[56].mxu1 }
 0x8af   : > { %v6882_v29 = vadd.f32 %v6881_v57, %v15332_v21  ;;  %v6883_v49 = vpop.f32.mrb[57].mxu1  ;;  %v7081_v50 = vpack.c.bf16 %v12001_v28, %v11997_v10 }
 0x8b0   : > { %v6884_v63 = vadd.f32 %v6883_v49, %v15336_v38  ;;  %v6885_v34 = vpop.f32.mrb[58].mxu1 }
 0x8b1   : > { %12010 = vtanh.f32 %v6882_v29  ;;  %v6886_v8 = vadd.f32 %v6885_v34, %v15332_v21  ;;  %v6887_v26 = vpop.f32.mrb[59].mxu1  ;;  %7834 = vmatprep.mubr.bf16.mxu0 %v7081_v50 }
 0x8b2   : > { %12012 = vtanh.f32 %v6884_v63  ;;  %v6888_v33 = vadd.f32 %v6887_v26, %v15336_v38  ;;  %7835 = vmatmul.mubr.bf16.gmra.mrb[112].mxu0 %v7080_v59  ;;  %v10611_v63 = vld [vmem:[%s15665_s12 + $0x8] sm:$0xff]  }
 0x8b3   : > { %v12003_v55 = vpop.eup %12002  ;;  %12014 = vtanh.f32 %v6886_v8 }
 0x8b4   : > { %v12005_v48 = vpop.eup %12004  ;;  %12016 = vtanh.f32 %v6888_v33 }
 0x8b5   : > { %v12007_v42 = vpop.eup %12006 }
 0x8b6   : > { %v12009_v9 = vpop.eup %12008  ;;  %v7084_v60 = vpack.c.bf16 %v12007_v42, %v12003_v55  ;;  %v6891_v22 = vpop.f32.mrb[60].mxu1 }
 0x8b7   : > { %v6892_v58 = vadd.f32 %v6891_v22, %v15332_v21  ;;  %v6893_v1 = vpop.f32.mrb[61].mxu1  ;;  %v7085_v2 = vpack.c.bf16 %v12009_v9, %v12005_v48  ;;  %v10612_v48 = vld [vmem:[%s15665_s12 + $0x10] sm:$0xff]  }
 0x8b8   : > { %v6894_v52 = vadd.f32 %v6893_v1, %v15336_v38  ;;  %v6895_v24 = vpop.f32.mrb[62].mxu1 }
 0x8b9   : > { %12018 = vtanh.f32 %v6892_v58  ;;  %v6896_v40 = vadd.f32 %v6895_v24, %v15332_v21  ;;  %v6897_v15 = vpop.f32.mrb[63].mxu1  ;;  %7844 = vmatprep.mubr.bf16.mxu0 %v7085_v2 }
 0x8ba   : > { %12020 = vtanh.f32 %v6894_v52  ;;  %v6898_v35 = vadd.f32 %v6897_v15, %v15336_v38  ;;  %7845 = vmatmul.mubr.bf16.gmra.mrb[116].mxu0 %v7084_v60  ;;  %v7029_v38 = vld [vmem:[#allocation16 + $0x21] ss:$8 sm:$0x3] }
 0x8bb   : > { %v12011_v14 = vpop.eup %12010  ;;  %12022 = vtanh.f32 %v6896_v40  ;;  %v15403_v47 = vrot.slane %v7029_v38, %v15854_v12  ;;  %v15406_v44 = vrot.slane %v7029_v38, %v15855_v51 }
 0x8bc   : > { %v12013_v36 = vpop.eup %12012  ;;  %12024 = vtanh.f32 %v6898_v35 }
 0x8bd   : > { %v12015_v27 = vpop.eup %12014 }
 0x8be   : > { %v12017_v41 = vpop.eup %12016  ;;  %v7088_v62 = vpack.c.bf16 %v12015_v27, %v12011_v14 }
 0x8bf   : > { %v7089_v53 = vpack.c.bf16 %v12017_v41, %v12013_v36 }
 0x8c1   : > { %7854 = vmatprep.mubr.bf16.mxu0 %v7089_v53 }
 0x8c2   : > { %7855 = vmatmul.mubr.bf16.gmra.mrb[120].mxu0 %v7088_v62 }
 0x8c3   : > { %v12019_v31 = vpop.eup %12018 }
 0x8c4   : > { %v12021_v16 = vpop.eup %12020 }
 0x8c5   : > { %v12023_v30 = vpop.eup %12022 }
 0x8c6   : > { %v12025_v21 = vpop.eup %12024  ;;  %v7092_v37 = vpack.c.bf16 %v12023_v30, %v12019_v31 }
 0x8c7   : > { %v7093_v54 = vpack.c.bf16 %v12025_v21, %v12021_v16 }
 0x8c9   : > { %7864 = vmatprep.mubr.bf16.mxu0 %v7093_v54 }
 0x8ca   : > { %7865 = vmatmul.mubr.bf16.gmra.mrb[124].mxu0 %v7092_v37 }
 0x925   : > { %v7716_v13 = vpop.f32.mrb[64].mxu0 }
 0x926   : > { %v9514_v17 = vadd.f32 %v7716_v13, %v15403_v47  ;;  %v7718_v39 = vpop.f32.mrb[65].mxu0 }
 0x927   : > { %v9515_v5 = vadd.f32 %v7718_v39, %v15406_v44  ;;  %v7720_v3 = vpop.f32.mrb[66].mxu0 }
 0x928   : > { %12026 = vtanh.f32 %v9514_v17  ;;  %v9516_v61 = vadd.f32 %v7720_v3, %v15403_v47  ;;  %v7722_v11 = vpop.f32.mrb[67].mxu0 }
 0x929   : > { %12028 = vtanh.f32 %v9515_v5  ;;  %v9517_v20 = vadd.f32 %v7722_v11, %v15406_v44 }
 0x92a   : > { %12030 = vtanh.f32 %v9516_v61 }
 0x92b   : > { %12032 = vtanh.f32 %v9517_v20 }
 0x92d   : > { %v7726_v12 = vpop.f32.mrb[68].mxu0 }
 0x92e   : > { %v9518_v51 = vadd.f32 %v7726_v12, %v15403_v47  ;;  %v7728_v7 = vpop.f32.mrb[69].mxu0 }
 0x92f   : > { %v9519_v46 = vadd.f32 %v7728_v7, %v15406_v44  ;;  %v7730_v0 = vpop.f32.mrb[70].mxu0 }
 0x930   : > { %12034 = vtanh.f32 %v9518_v51  ;;  %v9520_v18 = vadd.f32 %v7730_v0, %v15403_v47  ;;  %v7732_v32 = vpop.f32.mrb[71].mxu0 }
 0x931   : > { %12036 = vtanh.f32 %v9519_v46  ;;  %v9521_v4 = vadd.f32 %v7732_v32, %v15406_v44 }
 0x932   : > { %v12027_v45 = vpop.eup %12026  ;;  %12038 = vtanh.f32 %v9520_v18 }
 0x933   : > { %v12029_v19 = vpop.eup %12028  ;;  %12040 = vtanh.f32 %v9521_v4 }
 0x934   : > { %v12031_v6 = vpop.eup %12030 }
 0x935   : > { %v12033_v10 = vpop.eup %12032  ;;  %v7940_v43 = vpack.c.bf16 %v12031_v6, %v12027_v45  ;;  %v7736_v28 = vpop.f32.mrb[72].mxu0 }
 0x936   : > { %v9522_v59 = vadd.f32 %v7736_v28, %v15403_v47  ;;  %v7738_v57 = vpop.f32.mrb[73].mxu0  ;;  %v7941_v29 = vpack.c.bf16 %v12033_v10, %v12029_v19 }
 0x937   : > { %v9523_v49 = vadd.f32 %v7738_v57, %v15406_v44  ;;  %v7740_v50 = vpop.f32.mrb[74].mxu0 }
 0x938   : > { %12042 = vtanh.f32 %v9522_v59  ;;  %v9524_v34 = vadd.f32 %v7740_v50, %v15403_v47  ;;  %v7742_v8 = vpop.f32.mrb[75].mxu0  ;;  %8132 = vmatprep.mubr.bf16.mxu1 %v7941_v29 }
 0x939   : > { %12044 = vtanh.f32 %v9523_v49  ;;  %v9525_v26 = vadd.f32 %v7742_v8, %v15406_v44  ;;  %8133 = vmatmul.mubr.bf16.vlgmr.msra.gmra.mrb[64].mxu1 %v7940_v43 }
 0x93a   : > { %v12035_v33 = vpop.eup %12034  ;;  %12046 = vtanh.f32 %v9524_v34  ;;  %9339 = vmatpush3.bf16.msra.mxu1 %v10610_v56 }
 0x93b   : > { %v12037_v55 = vpop.eup %12036  ;;  %12048 = vtanh.f32 %v9525_v26  ;;  %9340 = vmatprep.subr.bf16.mxu1 %v10611_v63 }
 0x93c   : > { %v12039_v25 = vpop.eup %12038 }
 0x93d   : > { %v12041_v42 = vpop.eup %12040  ;;  %v7942_v23 = vpack.c.bf16 %v12039_v25, %v12035_v33  ;;  %v7746_v9 = vpop.f32.mrb[76].mxu0 }
 0x93e   : > { %v9526_v60 = vadd.f32 %v7746_v9, %v15403_v47  ;;  %v7748_v22 = vpop.f32.mrb[77].mxu0  ;;  %v7943_v58 = vpack.c.bf16 %v12041_v42, %v12037_v55  ;;  %9341 = vmatpush3.bf16.msra.mxu1 %v10611_v63 }
 0x93f   : > { %v9527_v1 = vadd.f32 %v7748_v22, %v15406_v44  ;;  %v7750_v2 = vpop.f32.mrb[78].mxu0  ;;  %9342 = vmatprep.subr.bf16.mxu1 %v10612_v48 }
 0x940   : > { %12050 = vtanh.f32 %v9526_v60  ;;  %v9528_v52 = vadd.f32 %v7750_v2, %v15403_v47  ;;  %v7752_v24 = vpop.f32.mrb[79].mxu0  ;;  %8140 = vmatprep.mubr.bf16.mxu1 %v7943_v58 }
 0x941   : > { %12052 = vtanh.f32 %v9527_v1  ;;  %v9529_v40 = vadd.f32 %v7752_v24, %v15406_v44  ;;  %8141 = vmatmul.mubr.bf16.gmra.mrb[68].mxu1 %v7942_v23 }
 0x942   : > { %v12043_v15 = vpop.eup %12042  ;;  %12054 = vtanh.f32 %v9528_v52  ;;  %9343 = vmatpush3.bf16.msra.mxu1 %v10612_v48 }
 0x943   : > { %v12045_v35 = vpop.eup %12044  ;;  %12056 = vtanh.f32 %v9529_v40 }
 0x944   : > { %v12047_v14 = vpop.eup %12046 }
 0x945   : > { %v12049_v36 = vpop.eup %12048  ;;  %v7944_v27 = vpack.c.bf16 %v12047_v14, %v12043_v15  ;;  %v7756_v41 = vpop.f32.mrb[80].mxu0 }
 0x946   : > { %v9530_v62 = vadd.f32 %v7756_v41, %v15403_v47  ;;  %v7758_v53 = vpop.f32.mrb[81].mxu0  ;;  %v7945_v31 = vpack.c.bf16 %v12049_v36, %v12045_v35 }
 0x947   : > { %v9531_v16 = vadd.f32 %v7758_v53, %v15406_v44  ;;  %v7760_v30 = vpop.f32.mrb[82].mxu0 }
 0x948   : > { %12058 = vtanh.f32 %v9530_v62  ;;  %v9532_v21 = vadd.f32 %v7760_v30, %v15403_v47  ;;  %v7762_v37 = vpop.f32.mrb[83].mxu0  ;;  %8148 = vmatprep.mubr.bf16.mxu1 %v7945_v31 }
 0x949   : > { %12060 = vtanh.f32 %v9531_v16  ;;  %v9533_v54 = vadd.f32 %v7762_v37, %v15406_v44  ;;  %8149 = vmatmul.mubr.bf16.gmra.mrb[72].mxu1 %v7944_v27 }
 0x94a   : > { %v12051_v38 = vpop.eup %12050  ;;  %12062 = vtanh.f32 %v9532_v21 }
 0x94b   : > { %v12053_v13 = vpop.eup %12052  ;;  %12064 = vtanh.f32 %v9533_v54 }
 0x94c   : > { %v12055_v17 = vpop.eup %12054 }
 0x94d   : > { %v12057_v39 = vpop.eup %12056  ;;  %v7946_v5 = vpack.c.bf16 %v12055_v17, %v12051_v38  ;;  %v7766_v3 = vpop.f32.mrb[84].mxu0 }
 0x94e   : > { %v9534_v61 = vadd.f32 %v7766_v3, %v15403_v47  ;;  %v7768_v11 = vpop.f32.mrb[85].mxu0  ;;  %v7947_v20 = vpack.c.bf16 %v12057_v39, %v12053_v13 }
 0x94f   : > { %v9535_v12 = vadd.f32 %v7768_v11, %v15406_v44  ;;  %v7770_v51 = vpop.f32.mrb[86].mxu0 }
 0x950   : > { %12066 = vtanh.f32 %v9534_v61  ;;  %v9536_v7 = vadd.f32 %v7770_v51, %v15403_v47  ;;  %v7772_v46 = vpop.f32.mrb[87].mxu0  ;;  %8156 = vmatprep.mubr.bf16.mxu1 %v7947_v20 }
 0x951   : > { %12068 = vtanh.f32 %v9535_v12  ;;  %v9537_v0 = vadd.f32 %v7772_v46, %v15406_v44  ;;  %8157 = vmatmul.mubr.bf16.gmra.mrb[76].mxu1 %v7946_v5 }
 0x952   : > { %v12059_v18 = vpop.eup %12058  ;;  %12070 = vtanh.f32 %v9536_v7 }
 0x953   : > { %v12061_v32 = vpop.eup %12060  ;;  %12072 = vtanh.f32 %v9537_v0 }
 0x954   : > { %v12063_v4 = vpop.eup %12062 }
 0x955   : > { %v12065_v56 = vpop.eup %12064  ;;  %v7948_v45 = vpack.c.bf16 %v12063_v4, %v12059_v18  ;;  %v7776_v19 = vpop.f32.mrb[88].mxu0 }
 0x956   : > { %v9538_v6 = vadd.f32 %v7776_v19, %v15403_v47  ;;  %v7778_v10 = vpop.f32.mrb[89].mxu0  ;;  %v7949_v43 = vpack.c.bf16 %v12065_v56, %v12061_v32 }
 0x957   : > { %v9539_v28 = vadd.f32 %v7778_v10, %v15406_v44  ;;  %v7780_v59 = vpop.f32.mrb[90].mxu0 }
 0x958   : > { %12074 = vtanh.f32 %v9538_v6  ;;  %v9540_v57 = vadd.f32 %v7780_v59, %v15403_v47  ;;  %v7782_v29 = vpop.f32.mrb[91].mxu0  ;;  %8164 = vmatprep.mubr.bf16.mxu1 %v7949_v43 }
 0x959   : > { %12076 = vtanh.f32 %v9539_v28  ;;  %v9541_v49 = vadd.f32 %v7782_v29, %v15406_v44  ;;  %8165 = vmatmul.mubr.bf16.gmra.mrb[80].mxu1 %v7948_v45 }
 0x95a   : > { %v12067_v50 = vpop.eup %12066  ;;  %12078 = vtanh.f32 %v9540_v57 }
 0x95b   : > { %v12069_v63 = vpop.eup %12068  ;;  %12080 = vtanh.f32 %v9541_v49 }
 0x95c   : > { %v12071_v34 = vpop.eup %12070 }
 0x95d   : > { %v12073_v8 = vpop.eup %12072  ;;  %v7950_v26 = vpack.c.bf16 %v12071_v34, %v12067_v50  ;;  %v7786_v33 = vpop.f32.mrb[92].mxu0 }
 0x95e   : > { %v9542_v55 = vadd.f32 %v7786_v33, %v15403_v47  ;;  %v7788_v48 = vpop.f32.mrb[93].mxu0  ;;  %v7951_v25 = vpack.c.bf16 %v12073_v8, %v12069_v63 }
 0x95f   : > { %v9543_v42 = vadd.f32 %v7788_v48, %v15406_v44  ;;  %v7790_v23 = vpop.f32.mrb[94].mxu0 }
 0x960   : > { %12082 = vtanh.f32 %v9542_v55  ;;  %v9544_v9 = vadd.f32 %v7790_v23, %v15403_v47  ;;  %v7792_v60 = vpop.f32.mrb[95].mxu0  ;;  %8172 = vmatprep.mubr.bf16.mxu1 %v7951_v25 }
 0x961   : > { %12084 = vtanh.f32 %v9543_v42  ;;  %v9545_v22 = vadd.f32 %v7792_v60, %v15406_v44  ;;  %8173 = vmatmul.mubr.bf16.gmra.mrb[84].mxu1 %v7950_v26 }
 0x962   : > { %v12075_v58 = vpop.eup %12074  ;;  %12086 = vtanh.f32 %v9544_v9 }
 0x963   : > { %v12077_v1 = vpop.eup %12076  ;;  %12088 = vtanh.f32 %v9545_v22 }
 0x964   : > { %v12079_v2 = vpop.eup %12078 }
 0x965   : > { %v12081_v52 = vpop.eup %12080  ;;  %v7952_v24 = vpack.c.bf16 %v12079_v2, %v12075_v58  ;;  %v7796_v40 = vpop.f32.mrb[96].mxu0 }
 0x966   : > { %v9546_v15 = vadd.f32 %v7796_v40, %v15403_v47  ;;  %v7798_v35 = vpop.f32.mrb[97].mxu0  ;;  %v7953_v14 = vpack.c.bf16 %v12081_v52, %v12077_v1 }
 0x967   : > { %v9547_v36 = vadd.f32 %v7798_v35, %v15406_v44  ;;  %v7800_v27 = vpop.f32.mrb[98].mxu0 }
 0x968   : > { %12090 = vtanh.f32 %v9546_v15  ;;  %v9548_v41 = vadd.f32 %v7800_v27, %v15403_v47  ;;  %v7802_v62 = vpop.f32.mrb[99].mxu0  ;;  %8180 = vmatprep.mubr.bf16.mxu1 %v7953_v14 }
 0x969   : > { %12092 = vtanh.f32 %v9547_v36  ;;  %v9549_v53 = vadd.f32 %v7802_v62, %v15406_v44  ;;  %8181 = vmatmul.mubr.bf16.gmra.mrb[88].mxu1 %v7952_v24 }
 0x96a   : > { %v12083_v31 = vpop.eup %12082  ;;  %12094 = vtanh.f32 %v9548_v41 }
 0x96b   : > { %v12085_v16 = vpop.eup %12084  ;;  %12096 = vtanh.f32 %v9549_v53 }
 0x96c   : > { %v12087_v30 = vpop.eup %12086 }
 0x96d   : > { %v12089_v21 = vpop.eup %12088  ;;  %v7954_v37 = vpack.c.bf16 %v12087_v30, %v12083_v31  ;;  %v7806_v54 = vpop.f32.mrb[100].mxu0 }
 0x96e   : > { %v9550_v38 = vadd.f32 %v7806_v54, %v15403_v47  ;;  %v7808_v13 = vpop.f32.mrb[101].mxu0  ;;  %v7955_v17 = vpack.c.bf16 %v12089_v21, %v12085_v16 }
 0x96f   : > { %v9551_v39 = vadd.f32 %v7808_v13, %v15406_v44  ;;  %v7810_v5 = vpop.f32.mrb[102].mxu0 }
 0x970   : > { %12098 = vtanh.f32 %v9550_v38  ;;  %v9552_v3 = vadd.f32 %v7810_v5, %v15403_v47  ;;  %v7812_v61 = vpop.f32.mrb[103].mxu0  ;;  %8188 = vmatprep.mubr.bf16.mxu1 %v7955_v17 }
 0x971   : > { %12100 = vtanh.f32 %v9551_v39  ;;  %v9553_v11 = vadd.f32 %v7812_v61, %v15406_v44  ;;  %8189 = vmatmul.mubr.bf16.gmra.mrb[92].mxu1 %v7954_v37 }
 0x972   : > { %v12091_v20 = vpop.eup %12090  ;;  %12102 = vtanh.f32 %v9552_v3  ;;  %v10613_v3 = vld [vmem:[%s15665_s12 + $0x18] sm:$0xff]  }
 0x973   : > { %v12093_v12 = vpop.eup %12092  ;;  %12104 = vtanh.f32 %v9553_v11  ;;  %9344 = vmatprep.subr.bf16.mxu1 %v10613_v3 }
 0x974   : > { %v12095_v51 = vpop.eup %12094  ;;  %9345 = vmatpush3.bf16.msra.mxu1 %v10613_v3 }
 0x975   : > { %v12097_v7 = vpop.eup %12096  ;;  %v7956_v46 = vpack.c.bf16 %v12095_v51, %v12091_v20  ;;  %v7816_v0 = vpop.f32.mrb[104].mxu0 }
 0x976   : > { %v9554_v18 = vadd.f32 %v7816_v0, %v15403_v47  ;;  %v7818_v32 = vpop.f32.mrb[105].mxu0  ;;  %v7957_v4 = vpack.c.bf16 %v12097_v7, %v12093_v12 }
 0x977   : > { %v9555_v56 = vadd.f32 %v7818_v32, %v15406_v44  ;;  %v7820_v45 = vpop.f32.mrb[106].mxu0 }
 0x978   : > { %12106 = vtanh.f32 %v9554_v18  ;;  %v9556_v19 = vadd.f32 %v7820_v45, %v15403_v47  ;;  %v7822_v6 = vpop.f32.mrb[107].mxu0  ;;  %8196 = vmatprep.mubr.bf16.mxu1 %v7957_v4  ;;  %v10614_v4 = vld [vmem:[%s15665_s12 + $0x20] sm:$0xff]  }
 0x979   : > { %12108 = vtanh.f32 %v9555_v56  ;;  %v9557_v10 = vadd.f32 %v7822_v6, %v15406_v44  ;;  %8197 = vmatmul.mubr.bf16.gmra.mrb[96].mxu1 %v7956_v46  ;;  %9346 = vmatprep.subr.bf16.mxu1 %v10614_v4 }
 0x97a   : > { %v12099_v43 = vpop.eup %12098  ;;  %12110 = vtanh.f32 %v9556_v19  ;;  %9347 = vmatpush3.bf16.msra.mxu1 %v10614_v4 }
 0x97b   : > { %v12101_v28 = vpop.eup %12100  ;;  %12112 = vtanh.f32 %v9557_v10  ;;  %v10615_v10 = vld [vmem:[%s15665_s12 + $0x28] sm:$0xff]  }
 0x97c   : > { %v12103_v59 = vpop.eup %12102  ;;  %9348 = vmatprep.subr.bf16.mxu1 %v10615_v10 }
 0x97d   : > { %v12105_v57 = vpop.eup %12104  ;;  %v7958_v29 = vpack.c.bf16 %v12103_v59, %v12099_v43  ;;  %v7826_v49 = vpop.f32.mrb[108].mxu0 }
 0x97e   : > { %v9558_v50 = vadd.f32 %v7826_v49, %v15403_v47  ;;  %v7828_v63 = vpop.f32.mrb[109].mxu0  ;;  %v7959_v34 = vpack.c.bf16 %v12105_v57, %v12101_v28  ;;  %9349 = vmatpush3.bf16.msra.mxu1 %v10615_v10 }
 0x97f   : > { %v9559_v8 = vadd.f32 %v7828_v63, %v15406_v44  ;;  %v7830_v26 = vpop.f32.mrb[110].mxu0 }
 0x980   : > { %12114 = vtanh.f32 %v9558_v50  ;;  %v9560_v33 = vadd.f32 %v7830_v26, %v15403_v47  ;;  %v7832_v55 = vpop.f32.mrb[111].mxu0  ;;  %8204 = vmatprep.mubr.bf16.mxu1 %v7959_v34  ;;  %v10616_v26 = vld [vmem:[%s15665_s12 + $0x30] sm:$0xff]  }
 0x981   : > { %12116 = vtanh.f32 %v9559_v8  ;;  %v9561_v48 = vadd.f32 %v7832_v55, %v15406_v44  ;;  %8205 = vmatmul.mubr.bf16.gmra.mrb[100].mxu1 %v7958_v29  ;;  %9350 = vmatprep.subr.bf16.mxu1 %v10616_v26 }
 0x982   : > { %v12107_v25 = vpop.eup %12106  ;;  %12118 = vtanh.f32 %v9560_v33  ;;  %9351 = vmatpush3.bf16.msra.mxu1 %v10616_v26 }
 0x983   : > { %v12109_v42 = vpop.eup %12108  ;;  %12120 = vtanh.f32 %v9561_v48 }
 0x984   : > { %v12111_v23 = vpop.eup %12110 }
 0x985   : > { %v12113_v9 = vpop.eup %12112  ;;  %v7960_v60 = vpack.c.bf16 %v12111_v23, %v12107_v25  ;;  %v7836_v22 = vpop.f32.mrb[112].mxu0 }
 0x986   : > { %v9562_v58 = vadd.f32 %v7836_v22, %v15403_v47  ;;  %v7838_v1 = vpop.f32.mrb[113].mxu0  ;;  %v7961_v2 = vpack.c.bf16 %v12113_v9, %v12109_v42 }
 0x987   : > { %v9563_v52 = vadd.f32 %v7838_v1, %v15406_v44  ;;  %v7840_v24 = vpop.f32.mrb[114].mxu0 }
 0x988   : > { %12122 = vtanh.f32 %v9562_v58  ;;  %v9564_v40 = vadd.f32 %v7840_v24, %v15403_v47  ;;  %v7842_v15 = vpop.f32.mrb[115].mxu0  ;;  %8212 = vmatprep.mubr.bf16.mxu1 %v7961_v2  ;;  %v15496_v24 = vld [vmem:[#allocation16 + $0x22] ss:$0 sm:$0xff] }
 0x989   : > { %12124 = vtanh.f32 %v9563_v52  ;;  %v9565_v35 = vadd.f32 %v7842_v15, %v15406_v44  ;;  %8213 = vmatmul.mubr.bf16.gmra.mrb[104].mxu1 %v7960_v60 }
 0x98a   : > { %v12115_v14 = vpop.eup %12114  ;;  %12126 = vtanh.f32 %v9564_v40 }
 0x98b   : > { %v12117_v36 = vpop.eup %12116  ;;  %12128 = vtanh.f32 %v9565_v35 }
 0x98c   : > { %v12119_v27 = vpop.eup %12118 }
 0x98d   : > { %v12121_v41 = vpop.eup %12120  ;;  %v7962_v62 = vpack.c.bf16 %v12119_v27, %v12115_v14  ;;  %v7846_v53 = vpop.f32.mrb[116].mxu0 }
 0x98e   : > { %v9566_v31 = vadd.f32 %v7846_v53, %v15403_v47  ;;  %v7848_v16 = vpop.f32.mrb[117].mxu0  ;;  %v7963_v30 = vpack.c.bf16 %v12121_v41, %v12117_v36 }
 0x98f   : > { %v9567_v21 = vadd.f32 %v7848_v16, %v15406_v44  ;;  %v7850_v37 = vpop.f32.mrb[118].mxu0 }
 0x990   : > { %12130 = vtanh.f32 %v9566_v31  ;;  %v9568_v54 = vadd.f32 %v7850_v37, %v15403_v47  ;;  %v7852_v38 = vpop.f32.mrb[119].mxu0  ;;  %8220 = vmatprep.mubr.bf16.mxu1 %v7963_v30 }
 0x991   : > { %12132 = vtanh.f32 %v9567_v21  ;;  %v9569_v13 = vadd.f32 %v7852_v38, %v15406_v44  ;;  %8221 = vmatmul.mubr.bf16.gmra.mrb[108].mxu1 %v7962_v62 }
 0x992   : > { %v12123_v17 = vpop.eup %12122  ;;  %12134 = vtanh.f32 %v9568_v54 }
 0x993   : > { %v12125_v39 = vpop.eup %12124  ;;  %12136 = vtanh.f32 %v9569_v13 }
 0x994   : > { %v12127_v5 = vpop.eup %12126 }
 0x995   : > { %v12129_v61 = vpop.eup %12128  ;;  %v7964_v11 = vpack.c.bf16 %v12127_v5, %v12123_v17  ;;  %v7856_v20 = vpop.f32.mrb[120].mxu0 }
 0x996   : > { %v9570_v12 = vadd.f32 %v7856_v20, %v15403_v47  ;;  %v7858_v51 = vpop.f32.mrb[121].mxu0  ;;  %v7965_v7 = vpack.c.bf16 %v12129_v61, %v12125_v39 }
 0x997   : > { %v9571_v46 = vadd.f32 %v7858_v51, %v15406_v44  ;;  %v7860_v0 = vpop.f32.mrb[122].mxu0 }
 0x998   : > { %12138 = vtanh.f32 %v9570_v12  ;;  %v9572_v18 = vadd.f32 %v7860_v0, %v15403_v47  ;;  %v7862_v32 = vpop.f32.mrb[123].mxu0  ;;  %8228 = vmatprep.mubr.bf16.mxu1 %v7965_v7 }
 0x999   : > { %12140 = vtanh.f32 %v9571_v46  ;;  %v9573_v56 = vadd.f32 %v7862_v32, %v15406_v44  ;;  %8229 = vmatmul.mubr.bf16.gmra.mrb[112].mxu1 %v7964_v11 }
 0x99a   : > { %v12131_v45 = vpop.eup %12130  ;;  %12142 = vtanh.f32 %v9572_v18 }
 0x99b   : > { %v12133_v19 = vpop.eup %12132  ;;  %12144 = vtanh.f32 %v9573_v56 }
 0x99c   : > { %v12135_v6 = vpop.eup %12134 }
 0x99d   : > { %v12137_v43 = vpop.eup %12136  ;;  %v7966_v28 = vpack.c.bf16 %v12135_v6, %v12131_v45  ;;  %v7866_v59 = vpop.f32.mrb[124].mxu0 }
 0x99e   : > { %v9574_v57 = vadd.f32 %v7866_v59, %v15403_v47  ;;  %v7868_v29 = vpop.f32.mrb[125].mxu0  ;;  %v7967_v49 = vpack.c.bf16 %v12137_v43, %v12133_v19 }
 0x99f   : > { %v9575_v50 = vadd.f32 %v7868_v29, %v15406_v44  ;;  %v7870_v63 = vpop.f32.mrb[126].mxu0 }
 0x9a0   : > { %12146 = vtanh.f32 %v9574_v57  ;;  %v9576_v34 = vadd.f32 %v7870_v63, %v15403_v47  ;;  %v7872_v8 = vpop.f32.mrb[127].mxu0  ;;  %8236 = vmatprep.mubr.bf16.mxu1 %v7967_v49  ;;  %v10617_v47 = vld [vmem:[%s15665_s12 + $0x38] sm:$0xff]  }
 0x9a1   : > { %12148 = vtanh.f32 %v9575_v50  ;;  %v9577_v33 = vadd.f32 %v7872_v8, %v15406_v44  ;;  %8237 = vmatmul.mubr.bf16.gmra.mrb[116].mxu1 %v7966_v28  ;;  %9352 = vmatprep.subr.bf16.mxu1 %v10617_v47 }
 0x9a2   : > { %v12139_v55 = vpop.eup %12138  ;;  %12150 = vtanh.f32 %v9576_v34  ;;  %9353 = vmatpush3.bf16.msra.mxu1 %v10617_v47 }
 0x9a3   : > { %v12141_v48 = vpop.eup %12140  ;;  %12152 = vtanh.f32 %v9577_v33 }
 0x9a4   : > { %v12143_v25 = vpop.eup %12142 }
 0x9a5   : > { %v12145_v42 = vpop.eup %12144  ;;  %v7968_v23 = vpack.c.bf16 %v12143_v25, %v12139_v55 }
 0x9a6   : > { %v7969_v9 = vpack.c.bf16 %v12145_v42, %v12141_v48 }
 0x9a8   : > { %8244 = vmatprep.mubr.bf16.mxu1 %v7969_v9 }
 0x9a9   : > { %8245 = vmatmul.mubr.bf16.gmra.mrb[120].mxu1 %v7968_v23 }
 0x9aa   : > { %v12147_v44 = vpop.eup %12146 }
 0x9ab   : > { %v12149_v60 = vpop.eup %12148 }
 0x9ac   : > { %v12151_v22 = vpop.eup %12150 }
 0x9ad   : > { %v12153_v58 = vpop.eup %12152  ;;  %v7970_v1 = vpack.c.bf16 %v12151_v22, %v12147_v44 }
 0x9ae   : > { %v7971_v2 = vpack.c.bf16 %v12153_v58, %v12149_v60 }
 0x9b0   : > { %8252 = vmatprep.mubr.bf16.mxu1 %v7971_v2 }
 0x9b1   : > { %8253 = vmatmul.mubr.bf16.gmra.mrb[124].mxu1 %v7970_v1 }
 0xa0c   : > { %v9218_v52 = vpop.f32.mrb[64].mxu1 }
 0xa0d   : > { %v9219_v40 = vpop.f32.mrb[65].mxu1 }
 0xa0e   : > { %v9220_v15 = vadd.f32 %v9219_v40, %v9218_v52  ;;  %v9221_v35 = vpop.f32.mrb[66].mxu1 }
 0xa0f   : > { %v9222_v14 = vpop.f32.mrb[67].mxu1 }
 0xa10   : > { %v8135_v36 = vadd.f32 %v9220_v15, %v15496_v24  ;;  %v9223_v27 = vadd.f32 %v9222_v14, %v9221_v35 }
 0xa12   : > { %v8138_v41 = vadd.f32 %v9223_v27, %v15496_v24  ;;  %12154 = vtanh.f32 %v8135_v36 }
 0xa14   : > { %12156 = vtanh.f32 %v8138_v41  ;;  %v9224_v62 = vpop.f32.mrb[68].mxu1 }
 0xa15   : > { %v9225_v53 = vpop.f32.mrb[69].mxu1 }
 0xa16   : > { %v9226_v31 = vadd.f32 %v9225_v53, %v9224_v62  ;;  %v9227_v16 = vpop.f32.mrb[70].mxu1 }
 0xa17   : > { %v9228_v30 = vpop.f32.mrb[71].mxu1 }
 0xa18   : > { %v8143_v21 = vadd.f32 %v9226_v31, %v15496_v24  ;;  %v9229_v37 = vadd.f32 %v9228_v30, %v9227_v16 }
 0xa1a   : > { %v8146_v54 = vadd.f32 %v9229_v37, %v15496_v24  ;;  %12158 = vtanh.f32 %v8143_v21 }
 0xa1c   : > { %12160 = vtanh.f32 %v8146_v54  ;;  %v9230_v38 = vpop.f32.mrb[72].mxu1  ;;  %v12155_v13 = vpop.eup %12154 }
 0xa1d   : > { %v9231_v17 = vpop.f32.mrb[73].mxu1 }
 0xa1e   : > { %v12157_v39 = vpop.eup %12156  ;;  %v9232_v5 = vadd.f32 %v9231_v17, %v9230_v38  ;;  %v9233_v3 = vpop.f32.mrb[74].mxu1 }
 0xa1f   : > { %v9234_v61 = vpop.f32.mrb[75].mxu1  ;;  %v8294_v11 = vpack.c.bf16 %v12157_v39, %v12155_v13 }
 0xa20   : > { %v8151_v20 = vadd.f32 %v9232_v5, %v15496_v24  ;;  %v9235_v12 = vadd.f32 %v9234_v61, %v9233_v3 }
 0xa21   : > { %9354 = vmatprep.mubr.bf16.mxu1 %v8294_v11 }
 0xa22   : > { %v8154_v51 = vadd.f32 %v9235_v12, %v15496_v24  ;;  %12162 = vtanh.f32 %v8151_v20 }
 0xa24   : > { %12164 = vtanh.f32 %v8154_v51  ;;  %v9236_v7 = vpop.f32.mrb[76].mxu1  ;;  %v12159_v46 = vpop.eup %12158 }
 0xa25   : > { %v9237_v0 = vpop.f32.mrb[77].mxu1 }
 0xa26   : > { %v12161_v18 = vpop.eup %12160  ;;  %v9238_v32 = vadd.f32 %v9237_v0, %v9236_v7  ;;  %v9239_v4 = vpop.f32.mrb[78].mxu1 }
 0xa27   : > { %v8295_v56 = vpack.c.bf16 %v12161_v18, %v12159_v46  ;;  %v9240_v45 = vpop.f32.mrb[79].mxu1 }
 0xa28   : > { %v8159_v19 = vadd.f32 %v9238_v32, %v15496_v24  ;;  %v9241_v6 = vadd.f32 %v9240_v45, %v9239_v4 }
 0xa29   : > { %9355 = vmatmul.mubr.bf16.vlgmr.msra.gmra.mrb[128].mxu1 %v8295_v56 }
 0xa2a   : > { %v8162_v10 = vadd.f32 %v9241_v6, %v15496_v24  ;;  %12166 = vtanh.f32 %v8159_v19 }
 0xa2c   : > { %12168 = vtanh.f32 %v8162_v10  ;;  %v9242_v43 = vpop.f32.mrb[80].mxu1  ;;  %v12163_v28 = vpop.eup %12162 }
 0xa2d   : > { %v9243_v59 = vpop.f32.mrb[81].mxu1 }
 0xa2e   : > { %v12165_v57 = vpop.eup %12164  ;;  %v9244_v29 = vadd.f32 %v9243_v59, %v9242_v43  ;;  %v9245_v49 = vpop.f32.mrb[82].mxu1 }
 0xa2f   : > { %v9246_v50 = vpop.f32.mrb[83].mxu1  ;;  %v8296_v63 = vpack.c.bf16 %v12165_v57, %v12163_v28 }
 0xa30   : > { %v8167_v34 = vadd.f32 %v9244_v29, %v15496_v24  ;;  %v9247_v8 = vadd.f32 %v9246_v50, %v9245_v49 }
 0xa31   : > { %9358 = vmatprep.mubr.bf16.mxu1 %v8296_v63 }
 0xa32   : > { %v8170_v26 = vadd.f32 %v9247_v8, %v15496_v24  ;;  %12170 = vtanh.f32 %v8167_v34 }
 0xa34   : > { %12172 = vtanh.f32 %v8170_v26  ;;  %v9248_v33 = vpop.f32.mrb[84].mxu1  ;;  %v12167_v55 = vpop.eup %12166 }
 0xa35   : > { %v9249_v48 = vpop.f32.mrb[85].mxu1 }
 0xa36   : > { %v12169_v25 = vpop.eup %12168  ;;  %v9250_v47 = vadd.f32 %v9249_v48, %v9248_v33  ;;  %v9251_v42 = vpop.f32.mrb[86].mxu1 }
 0xa37   : > { %v8297_v23 = vpack.c.bf16 %v12169_v25, %v12167_v55  ;;  %v9252_v9 = vpop.f32.mrb[87].mxu1 }
 0xa38   : > { %v8175_v44 = vadd.f32 %v9250_v47, %v15496_v24  ;;  %v9253_v60 = vadd.f32 %v9252_v9, %v9251_v42 }
 0xa39   : > { %9359 = vmatmul.mubr.bf16.gmra.mrb[132].mxu1 %v8297_v23 }
 0xa3a   : > { %v8178_v22 = vadd.f32 %v9253_v60, %v15496_v24  ;;  %12174 = vtanh.f32 %v8175_v44 }
 0xa3c   : > { %12176 = vtanh.f32 %v8178_v22  ;;  %v9254_v58 = vpop.f32.mrb[88].mxu1  ;;  %v12171_v1 = vpop.eup %12170 }
 0xa3d   : > { %v9255_v2 = vpop.f32.mrb[89].mxu1 }
 0xa3e   : > { %v12173_v52 = vpop.eup %12172  ;;  %v9256_v40 = vadd.f32 %v9255_v2, %v9254_v58  ;;  %v9257_v15 = vpop.f32.mrb[90].mxu1 }
 0xa3f   : > { %v9258_v35 = vpop.f32.mrb[91].mxu1  ;;  %v8298_v14 = vpack.c.bf16 %v12173_v52, %v12171_v1 }
 0xa40   : > { %v8183_v36 = vadd.f32 %v9256_v40, %v15496_v24  ;;  %v9259_v27 = vadd.f32 %v9258_v35, %v9257_v15 }
 0xa41   : > { %9362 = vmatprep.mubr.bf16.mxu1 %v8298_v14 }
 0xa42   : > { %v8186_v41 = vadd.f32 %v9259_v27, %v15496_v24  ;;  %12178 = vtanh.f32 %v8183_v36 }
 0xa44   : > { %12180 = vtanh.f32 %v8186_v41  ;;  %v9260_v62 = vpop.f32.mrb[92].mxu1  ;;  %v12175_v53 = vpop.eup %12174 }
 0xa45   : > { %v9261_v31 = vpop.f32.mrb[93].mxu1 }
 0xa46   : > { %v12177_v16 = vpop.eup %12176  ;;  %v9262_v30 = vadd.f32 %v9261_v31, %v9260_v62  ;;  %v9263_v21 = vpop.f32.mrb[94].mxu1 }
 0xa47   : > { %v8299_v37 = vpack.c.bf16 %v12177_v16, %v12175_v53  ;;  %v9264_v54 = vpop.f32.mrb[95].mxu1 }
 0xa48   : > { %v8191_v38 = vadd.f32 %v9262_v30, %v15496_v24  ;;  %v9265_v13 = vadd.f32 %v9264_v54, %v9263_v21 }
 0xa49   : > { %9363 = vmatmul.mubr.bf16.gmra.mrb[136].mxu1 %v8299_v37 }
 0xa4a   : > { %v8194_v17 = vadd.f32 %v9265_v13, %v15496_v24  ;;  %12182 = vtanh.f32 %v8191_v38 }
 0xa4c   : > { %12184 = vtanh.f32 %v8194_v17  ;;  %v9266_v39 = vpop.f32.mrb[96].mxu1  ;;  %v12179_v5 = vpop.eup %12178 }
 0xa4d   : > { %v9267_v3 = vpop.f32.mrb[97].mxu1 }
 0xa4e   : > { %v12181_v61 = vpop.eup %12180  ;;  %v9268_v11 = vadd.f32 %v9267_v3, %v9266_v39  ;;  %v9269_v20 = vpop.f32.mrb[98].mxu1 }
 0xa4f   : > { %v9270_v12 = vpop.f32.mrb[99].mxu1  ;;  %v8300_v51 = vpack.c.bf16 %v12181_v61, %v12179_v5 }
 0xa50   : > { %v8199_v7 = vadd.f32 %v9268_v11, %v15496_v24  ;;  %v9271_v46 = vadd.f32 %v9270_v12, %v9269_v20 }
 0xa51   : > { %9366 = vmatprep.mubr.bf16.mxu1 %v8300_v51 }
 0xa52   : > { %v8202_v0 = vadd.f32 %v9271_v46, %v15496_v24  ;;  %12186 = vtanh.f32 %v8199_v7 }
 0xa54   : > { %12188 = vtanh.f32 %v8202_v0  ;;  %v9272_v18 = vpop.f32.mrb[100].mxu1  ;;  %v12183_v32 = vpop.eup %12182 }
 0xa55   : > { %v9273_v4 = vpop.f32.mrb[101].mxu1 }
 0xa56   : > { %v12185_v56 = vpop.eup %12184  ;;  %v9274_v45 = vadd.f32 %v9273_v4, %v9272_v18  ;;  %v9275_v19 = vpop.f32.mrb[102].mxu1 }
 0xa57   : > { %v8301_v6 = vpack.c.bf16 %v12185_v56, %v12183_v32  ;;  %v9276_v10 = vpop.f32.mrb[103].mxu1 }
 0xa58   : > { %v8207_v43 = vadd.f32 %v9274_v45, %v15496_v24  ;;  %v9277_v28 = vadd.f32 %v9276_v10, %v9275_v19 }
 0xa59   : > { %9367 = vmatmul.mubr.bf16.gmra.mrb[140].mxu1 %v8301_v6 }
 0xa5a   : > { %v8210_v59 = vadd.f32 %v9277_v28, %v15496_v24  ;;  %12190 = vtanh.f32 %v8207_v43 }
 0xa5c   : > { %12192 = vtanh.f32 %v8210_v59  ;;  %v9278_v57 = vpop.f32.mrb[104].mxu1  ;;  %v12187_v29 = vpop.eup %12186 }
 0xa5d   : > { %v9279_v49 = vpop.f32.mrb[105].mxu1 }
 0xa5e   : > { %v12189_v50 = vpop.eup %12188  ;;  %v9280_v63 = vadd.f32 %v9279_v49, %v9278_v57  ;;  %v9281_v34 = vpop.f32.mrb[106].mxu1 }
 0xa5f   : > { %v9282_v8 = vpop.f32.mrb[107].mxu1  ;;  %v8302_v26 = vpack.c.bf16 %v12189_v50, %v12187_v29 }
 0xa60   : > { %v8215_v33 = vadd.f32 %v9280_v63, %v15496_v24  ;;  %v9283_v55 = vadd.f32 %v9282_v8, %v9281_v34 }
 0xa61   : > { %9370 = vmatprep.mubr.bf16.mxu1 %v8302_v26 }
 0xa62   : > { %v8218_v48 = vadd.f32 %v9283_v55, %v15496_v24  ;;  %12194 = vtanh.f32 %v8215_v33  ;;  %v15533_v55 = vld [vmem:[#allocation16 + $0x23] ss:$0 sm:$0xff] }
 0xa64   : > { %12196 = vtanh.f32 %v8218_v48  ;;  %v9284_v25 = vpop.f32.mrb[108].mxu1  ;;  %v12191_v47 = vpop.eup %12190 }
 0xa65   : > { %v9285_v42 = vpop.f32.mrb[109].mxu1 }
 0xa66   : > { %v12193_v23 = vpop.eup %12192  ;;  %v9286_v9 = vadd.f32 %v9285_v42, %v9284_v25  ;;  %v9287_v44 = vpop.f32.mrb[110].mxu1 }
 0xa67   : > { %v8303_v60 = vpack.c.bf16 %v12193_v23, %v12191_v47  ;;  %v9288_v22 = vpop.f32.mrb[111].mxu1 }
 0xa68   : > { %v8223_v58 = vadd.f32 %v9286_v9, %v15496_v24  ;;  %v9289_v1 = vadd.f32 %v9288_v22, %v9287_v44 }
 0xa69   : > { %9371 = vmatmul.mubr.bf16.gmra.mrb[144].mxu1 %v8303_v60 }
 0xa6a   : > { %v8226_v2 = vadd.f32 %v9289_v1, %v15496_v24  ;;  %12198 = vtanh.f32 %v8223_v58 }
 0xa6c   : > { %12200 = vtanh.f32 %v8226_v2  ;;  %v9290_v52 = vpop.f32.mrb[112].mxu1  ;;  %v12195_v40 = vpop.eup %12194 }
 0xa6d   : > { %v9291_v15 = vpop.f32.mrb[113].mxu1 }
 0xa6e   : > { %v12197_v35 = vpop.eup %12196  ;;  %v9292_v14 = vadd.f32 %v9291_v15, %v9290_v52  ;;  %v9293_v36 = vpop.f32.mrb[114].mxu1 }
 0xa6f   : > { %v9294_v27 = vpop.f32.mrb[115].mxu1  ;;  %v8304_v41 = vpack.c.bf16 %v12197_v35, %v12195_v40 }
 0xa70   : > { %v8231_v62 = vadd.f32 %v9292_v14, %v15496_v24  ;;  %v9295_v53 = vadd.f32 %v9294_v27, %v9293_v36 }
 0xa71   : > { %9374 = vmatprep.mubr.bf16.mxu1 %v8304_v41 }
 0xa72   : > { %v8234_v31 = vadd.f32 %v9295_v53, %v15496_v24  ;;  %12202 = vtanh.f32 %v8231_v62 }
 0xa74   : > { %12204 = vtanh.f32 %v8234_v31  ;;  %v9296_v16 = vpop.f32.mrb[116].mxu1  ;;  %v12199_v30 = vpop.eup %12198 }
 0xa75   : > { %v9297_v21 = vpop.f32.mrb[117].mxu1 }
 0xa76   : > { %v12201_v37 = vpop.eup %12200  ;;  %v9298_v54 = vadd.f32 %v9297_v21, %v9296_v16  ;;  %v9299_v38 = vpop.f32.mrb[118].mxu1 }
 0xa77   : > { %v8305_v13 = vpack.c.bf16 %v12201_v37, %v12199_v30  ;;  %v9300_v17 = vpop.f32.mrb[119].mxu1 }
 0xa78   : > { %v8239_v39 = vadd.f32 %v9298_v54, %v15496_v24  ;;  %v9301_v5 = vadd.f32 %v9300_v17, %v9299_v38 }
 0xa79   : > { %9375 = vmatmul.mubr.bf16.gmra.mrb[148].mxu1 %v8305_v13 }
 0xa7a   : > { %v8242_v3 = vadd.f32 %v9301_v5, %v15496_v24  ;;  %12206 = vtanh.f32 %v8239_v39 }
 0xa7c   : > { %12208 = vtanh.f32 %v8242_v3  ;;  %v9302_v61 = vpop.f32.mrb[120].mxu1  ;;  %v12203_v11 = vpop.eup %12202 }
 0xa7d   : > { %v9303_v20 = vpop.f32.mrb[121].mxu1 }
 0xa7e   : > { %v12205_v12 = vpop.eup %12204  ;;  %v9304_v51 = vadd.f32 %v9303_v20, %v9302_v61  ;;  %v9305_v7 = vpop.f32.mrb[122].mxu1 }
 0xa7f   : > { %v9306_v46 = vpop.f32.mrb[123].mxu1  ;;  %v8306_v0 = vpack.c.bf16 %v12205_v12, %v12203_v11 }
 0xa80   : > { %v8247_v18 = vadd.f32 %v9304_v51, %v15496_v24  ;;  %v9307_v32 = vadd.f32 %v9306_v46, %v9305_v7 }
 0xa81   : > { %9378 = vmatprep.mubr.bf16.mxu1 %v8306_v0 }
 0xa82   : > { %v8250_v4 = vadd.f32 %v9307_v32, %v15496_v24  ;;  %12210 = vtanh.f32 %v8247_v18 }
 0xa84   : > { %12212 = vtanh.f32 %v8250_v4  ;;  %v9308_v56 = vpop.f32.mrb[124].mxu1  ;;  %v12207_v45 = vpop.eup %12206 }
 0xa85   : > { %v9309_v19 = vpop.f32.mrb[125].mxu1 }
 0xa86   : > { %v12209_v6 = vpop.eup %12208  ;;  %v9310_v10 = vadd.f32 %v9309_v19, %v9308_v56  ;;  %v9311_v43 = vpop.f32.mrb[126].mxu1 }
 0xa87   : > { %v8307_v28 = vpack.c.bf16 %v12209_v6, %v12207_v45  ;;  %v9312_v59 = vpop.f32.mrb[127].mxu1 }
 0xa88   : > { %v8255_v57 = vadd.f32 %v9310_v10, %v15496_v24  ;;  %v9313_v29 = vadd.f32 %v9312_v59, %v9311_v43 }
 0xa89   : > { %9379 = vmatmul.mubr.bf16.gmra.mrb[152].mxu1 %v8307_v28 }
 0xa8a   : > { %v8258_v49 = vadd.f32 %v9313_v29, %v15496_v24  ;;  %12214 = vtanh.f32 %v8255_v57 }
 0xa8c   : > { %12216 = vtanh.f32 %v8258_v49  ;;  %v12211_v50 = vpop.eup %12210 }
 0xa8e   : > { %v12213_v63 = vpop.eup %12212 }
 0xa8f   : > { %v8308_v34 = vpack.c.bf16 %v12213_v63, %v12211_v50 }
 0xa91   : > { %9382 = vmatprep.mubr.bf16.mxu1 %v8308_v34 }
 0xa94   : > { %v12215_v8 = vpop.eup %12214 }
 0xa96   : > { %v12217_v26 = vpop.eup %12216 }
 0xa97   : > { %v8309_v33 = vpack.c.bf16 %v12217_v26, %v12215_v8 }
 0xa99   : > { %9383 = vmatmul.mubr.bf16.gmra.mrb[156].mxu1 %v8309_v33 }
 0xafc   : > { %v9356_v48 = vpop.f32.mrb[128].mxu1 }
 0xafd   : > { %v8417_v25 = vadd.f32 %v9356_v48, %v15533_v55  ;;  %v8408_v47 = vpop.f32.mrb[129].mxu1 }
 0xafe   : > { %v8409_v24 = vadd.f32 %v8408_v47, %v15533_v55  ;;  %v9357_v42 = vpop.f32.mrb[130].mxu1 }
 0xaff   : > { %8537 = vst [vmem:[%s15537_s21 + $0x10] sm:$0xff] %v8417_v25  ;;  %v8420_v23 = vadd.f32 %v9357_v42, %v15533_v55  ;;  %v8411_v9 = vpop.f32.mrb[131].mxu1 }
 0xb00   : > { %8535 = vst [vmem:[%s15537_s21] sm:$0xff] %v8409_v24  ;;  %v8412_v44 = vadd.f32 %v8411_v9, %v15533_v55 }
 0xb01   : > { %8538 = vst [vmem:[%s15537_s21 + $0x18] sm:$0xff] %v8420_v23 }
 0xb02   : > { %8536 = vst [vmem:[%s15537_s21 + $0x8] sm:$0xff] %v8412_v44 }
 0xb0c   : > { %v9360_v60 = vpop.f32.mrb[132].mxu1 }
 0xb0d   : > { %v8433_v22 = vadd.f32 %v9360_v60, %v15533_v55  ;;  %v8424_v58 = vpop.f32.mrb[133].mxu1 }
 0xb0e   : > { %v8425_v1 = vadd.f32 %v8424_v58, %v15533_v55  ;;  %v9361_v2 = vpop.f32.mrb[134].mxu1 }
 0xb0f   : > { %8541 = vst [vmem:[%s15537_s21 + $0x30] sm:$0xff] %v8433_v22  ;;  %v8436_v52 = vadd.f32 %v9361_v2, %v15533_v55  ;;  %v8427_v40 = vpop.f32.mrb[135].mxu1 }
 0xb10   : > { %8539 = vst [vmem:[%s15537_s21 + $0x20] sm:$0xff] %v8425_v1  ;;  %v8428_v15 = vadd.f32 %v8427_v40, %v15533_v55 }
 0xb11   : > { %8542 = vst [vmem:[%s15537_s21 + $0x38] sm:$0xff] %v8436_v52 }
 0xb12   : > { %8540 = vst [vmem:[%s15537_s21 + $0x28] sm:$0xff] %v8428_v15 }
 0xb1c   : > { %v9364_v35 = vpop.f32.mrb[136].mxu1 }
 0xb1d   : > { %v8449_v14 = vadd.f32 %v9364_v35, %v15533_v55  ;;  %v8440_v36 = vpop.f32.mrb[137].mxu1 }
 0xb1e   : > { %v8441_v27 = vadd.f32 %v8440_v36, %v15533_v55  ;;  %v9365_v41 = vpop.f32.mrb[138].mxu1 }
 0xb1f   : > { %8545 = vst [vmem:[%s15537_s21 + $0x50] sm:$0xff] %v8449_v14  ;;  %v8452_v62 = vadd.f32 %v9365_v41, %v15533_v55  ;;  %v8443_v53 = vpop.f32.mrb[139].mxu1 }
 0xb20   : > { %8543 = vst [vmem:[%s15537_s21 + $0x40] sm:$0xff] %v8441_v27  ;;  %v8444_v31 = vadd.f32 %v8443_v53, %v15533_v55 }
 0xb21   : > { %8546 = vst [vmem:[%s15537_s21 + $0x58] sm:$0xff] %v8452_v62 }
 0xb22   : > { %8544 = vst [vmem:[%s15537_s21 + $0x48] sm:$0xff] %v8444_v31 }
 0xb2c   : > { %v9368_v16 = vpop.f32.mrb[140].mxu1 }
 0xb2d   : > { %v8465_v30 = vadd.f32 %v9368_v16, %v15533_v55  ;;  %v8456_v21 = vpop.f32.mrb[141].mxu1 }
 0xb2e   : > { %v8457_v37 = vadd.f32 %v8456_v21, %v15533_v55  ;;  %v9369_v54 = vpop.f32.mrb[142].mxu1 }
 0xb2f   : > { %8549 = vst [vmem:[%s15537_s21 + $0x70] sm:$0xff] %v8465_v30  ;;  %v8468_v38 = vadd.f32 %v9369_v54, %v15533_v55  ;;  %v8459_v13 = vpop.f32.mrb[143].mxu1 }
 0xb30   : > { %8547 = vst [vmem:[%s15537_s21 + $0x60] sm:$0xff] %v8457_v37  ;;  %v8460_v17 = vadd.f32 %v8459_v13, %v15533_v55 }
 0xb31   : > { %8550 = vst [vmem:[%s15537_s21 + $0x78] sm:$0xff] %v8468_v38 }
 0xb32   : > { %8548 = vst [vmem:[%s15537_s21 + $0x68] sm:$0xff] %v8460_v17 }
 0xb3c   : > { %v9372_v39 = vpop.f32.mrb[144].mxu1 }
 0xb3d   : > { %v8481_v5 = vadd.f32 %v9372_v39, %v15533_v55  ;;  %v8472_v3 = vpop.f32.mrb[145].mxu1 }
 0xb3e   : > { %v8473_v61 = vadd.f32 %v8472_v3, %v15533_v55  ;;  %v9373_v11 = vpop.f32.mrb[146].mxu1 }
 0xb3f   : > { %8553 = vst [vmem:[%s15537_s21 + $0x90] sm:$0xff] %v8481_v5  ;;  %v8484_v20 = vadd.f32 %v9373_v11, %v15533_v55  ;;  %v8475_v12 = vpop.f32.mrb[147].mxu1 }
 0xb40   : > { %8551 = vst [vmem:[%s15537_s21 + $0x80] sm:$0xff] %v8473_v61  ;;  %v8476_v51 = vadd.f32 %v8475_v12, %v15533_v55 }
 0xb41   : > { %8554 = vst [vmem:[%s15537_s21 + $0x98] sm:$0xff] %v8484_v20 }
 0xb42   : > { %8552 = vst [vmem:[%s15537_s21 + $0x88] sm:$0xff] %v8476_v51 }
 0xb4c   : > { %v9376_v7 = vpop.f32.mrb[148].mxu1 }
 0xb4d   : > { %v8497_v46 = vadd.f32 %v9376_v7, %v15533_v55  ;;  %v8488_v0 = vpop.f32.mrb[149].mxu1 }
 0xb4e   : > { %v8489_v18 = vadd.f32 %v8488_v0, %v15533_v55  ;;  %v9377_v32 = vpop.f32.mrb[150].mxu1 }
 0xb4f   : > { %8557 = vst [vmem:[%s15537_s21 + $0xb0] sm:$0xff] %v8497_v46  ;;  %v8500_v4 = vadd.f32 %v9377_v32, %v15533_v55  ;;  %v8491_v56 = vpop.f32.mrb[151].mxu1 }
 0xb50   : > { %8555 = vst [vmem:[%s15537_s21 + $0xa0] sm:$0xff] %v8489_v18  ;;  %v8492_v45 = vadd.f32 %v8491_v56, %v15533_v55 }
 0xb51   : > { %8558 = vst [vmem:[%s15537_s21 + $0xb8] sm:$0xff] %v8500_v4 }
 0xb52   : > { %8556 = vst [vmem:[%s15537_s21 + $0xa8] sm:$0xff] %v8492_v45 }
 0xb5c   : > { %v9380_v19 = vpop.f32.mrb[152].mxu1 }
 0xb5d   : > { %v8513_v6 = vadd.f32 %v9380_v19, %v15533_v55  ;;  %v8504_v10 = vpop.f32.mrb[153].mxu1 }
 0xb5e   : > { %v8505_v43 = vadd.f32 %v8504_v10, %v15533_v55  ;;  %v9381_v28 = vpop.f32.mrb[154].mxu1 }
 0xb5f   : > { %8561 = vst [vmem:[%s15537_s21 + $0xd0] sm:$0xff] %v8513_v6  ;;  %v8516_v59 = vadd.f32 %v9381_v28, %v15533_v55  ;;  %v8507_v57 = vpop.f32.mrb[155].mxu1 }
 0xb60   : > { %8559 = vst [vmem:[%s15537_s21 + $0xc0] sm:$0xff] %v8505_v43  ;;  %v8508_v29 = vadd.f32 %v8507_v57, %v15533_v55 }
 0xb61   : > { %8562 = vst [vmem:[%s15537_s21 + $0xd8] sm:$0xff] %v8516_v59 }
 0xb62   : > { %8560 = vst [vmem:[%s15537_s21 + $0xc8] sm:$0xff] %v8508_v29 }
 0xb6c   : > { %v9384_v49 = vpop.f32.mrb[156].mxu1 }
 0xb6d   : > { %v8529_v50 = vadd.f32 %v9384_v49, %v15533_v55  ;;  %v8520_v63 = vpop.f32.mrb[157].mxu1 }
 0xb6e   : > { %v8521_v34 = vadd.f32 %v8520_v63, %v15533_v55  ;;  %v9385_v8 = vpop.f32.mrb[158].mxu1 }
 0xb6f   : > { %8565 = vst [vmem:[%s15537_s21 + $0xf0] sm:$0xff] %v8529_v50  ;;  %v8532_v26 = vadd.f32 %v9385_v8, %v15533_v55  ;;  %v8523_v33 = vpop.f32.mrb[159].mxu1 }
 0xb70   : > { %8563 = vst [vmem:[%s15537_s21 + $0xe0] sm:$0xff] %v8521_v34  ;;  %v8524_v48 = vadd.f32 %v8523_v33, %v15533_v55 }
 0xb71   : > { %8566 = vst [vmem:[%s15537_s21 + $0xf8] sm:$0xff] %v8532_v26 }
 0xb72   : > { %8564 = vst [vmem:[%s15537_s21 + $0xe8] sm:$0xff] %v8524_v48 }
 0xb73   : > { %12507 = shalt.err (!%p12504_p13)
}
 0xb74   : > { %s12508_s20 = scalar_lea.hbm %s15602_s28, 4096  ;;  %s12512_s30 = scalar_lea.hbm %s15909_s25, 8192 }
 0xb75   : > { %p12509_p12 = scmp.ne.s32.totalorder %s15602_s28, %s12508_s20  ;;  %p12513_p3 = scmp.lt.u32.totalorder %s15602_s28, %s15909_s25 }
 0xb76   : > { %p12514_p4 = scmp.lt.u32.totalorder %s12512_s30, %s12508_s20  ;;  %p12516_p8 = scmp.lt.u32.totalorder %s12508_s20, %s15602_s28 }
 0xb77   : > { %p12510_p1 = pnand %p12509_p12, %p15910_p11 }
 0xb78   : > { %p12515_p7 = por %p12514_p4, %p12513_p3 }
 0xb79   : > { %p12511_p2 = pneg %p12510_p1 }
 0xb7a   : > { %p12517_p5 = por %p12516_p8, %p12515_p7 }
 0xb7c   : > { %p12518_p6 = pnand %p12517_p5, %p12511_p2 }
 0xb7e   : > { %12521 = shalt.err (!%p12518_p6)
}
 0xb7f   : > { %s12600_s16 = smov 128   ;;  %s12601_s24 = smov 8  }
 0xb80   : > { %9806 = dma.vmem_to_hbm [thread:$0]  (%p15910_p11), %s15604_s15, 4096, %s15602_s28, %s15612_s17, %s12600_s16, %s12600_s16, %s12601_s24  }
 0xb81 PF: > { %s15911_s29 = sld [smem:[#allocation27_spill]]  ;;  %s15912_s26 = sld [smem:[#allocation24_spill]] }
 0xb82   : > { %s15913_s27 = sld [smem:[#allocation31_spill]] }
 0xb87   : > { %p9858_p0 = scmp.ge.s32.totalorder %s15911_s29, 2  ;;  %s8596_s14 = sand.u32 1, %s15912_s26  }
 0xb88   : > { %p15914_p9 = scmp.ne.s32.totalorder %s15913_s27, 0  ;;  %s8597_s23 = scalar_lea.sflag [#allocation4], %s8596_s14 }
 0xb8a   : > { %p9837_p10 = pnand %p9858_p0, %p15914_p9 }
 0xb8c   : > { %12559 = dma.done.wait (!%p9837_p10), %s8597_s23, 4096  }
 0xb8d   : > { %12561 = vsyncadd (!%p9837_p10), %s8597_s23, 4294963200  ;;  %s15915_s16 = sld [smem:[#allocation28_spill]]  ;;  %s15916_s29 = sld [smem:[#allocation25_spill]] }
 0xb8e   : > { %s15917_s30 = sld [smem:[#allocation26_spill]]  ;;  %s15918_s15 = sld [smem:[#allocation29_spill]] }
 0xb93   : > { %p29_p13 = scmp.ge.s32.totalorder %s15915_s16, 4  }
 0xb95   :  { %31 = sbr.rel (!%p29_p13) target bundleno = 11 (0xb), region = 156 }
 0xb9c   :  { %8602 = vsyncpa [#allocation3], 1 }
 0xb9d   :  { %8604 = vsyncpa [#allocation3 + $0x1], 1 }
 0xb9e   :  { %8605 = vsyncpa [#allocation6], 1 }
 0xb9f   :  { %8606 = vsyncpa [#allocation9], 1 }
 0xba0   :  { %8607 = vsyncpa [#allocation12], 1 }
 0xba1   :  { %8608 = vsyncpa [#allocation15], 1 }
 0xba2   :  { %8609 = vsyncpa [#allocation4], 1 }
 0xba3   :  { %8611 = vsyncpa [#allocation4 + $0x1], 1 }

</bundles_post_ra>
